<compile_context>
chip_gen: v5e
topology: v5e:2x2
jax: 0.10.0
libtpu: 0.0.40
codegen_flags: <defaults>
</compile_context>

<pallas_src>
import numpy as np

import jax
import jax.numpy as jnp
from jax import lax
from jax.experimental import pallas as pl
from jax.experimental.pallas import tpu as pltpu

# ------------------------- fixed geometry of the Net ----------------------- #
H0 = W0 = 32              # input spatial size (forced by fc1 = 16*5*5)
C0 = 3                    # input channels
C1, C1P = 6, 8            # conv1 out channels (padded to 8 lanes / pixel)
C2, C2P = 16, 16          # conv2 out channels
K = 5                     # conv kernel size
H1 = W1 = H0 - K + 1      # 28  (conv1 out)
H1P = W1P = H1 // 2       # 14  (pool1 out)
H2 = W2 = H1P - K + 1     # 10  (conv2 out)
H2P = W2P = H2 // 2       # 5   (pool2 out)
FC1, FC2, FC3 = 120, 84, 10
NP = 128                  # lane padding for the fc layers and the output

_WEIGHT_ORDER = ("w1", "b1", "cs1", "w2", "b2", "cs2",
                 "wf1", "bf1", "wf2", "bf2", "wf3", "bf3")


def _round_up(x, m):
    return (x + m - 1) // m * m


# ------------------------- host-side weight packing ------------------------ #

def _pack_conv_kfold(w_oihw, bias, in_width, in_stride, out_cpad):
    """Pack a VALID stride-1 conv into ONE K-folded Toeplitz matmul weight.

    Per-image activations use the 2-D layout act[h, w*in_stride + c].  The kernel
    builds an LHS row per output row by concatenating the 5 kh-shifted input rows
    along lanes, so  out[oh, ow*out_cpad + o] = LHS[oh] @ mat  with
    mat[kh*in_width*in_stride + wi*in_stride + ci, ow*out_cpad + o].
    """
    w = np.asarray(w_oihw, np.float32)               # (O, Ci, KH, KW)
    b = np.asarray(bias, np.float32)
    o_ch, c_ch, kh_sz, kw_sz = w.shape
    out_w = in_width - kw_sz + 1
    mat = np.zeros((kh_sz * in_width * in_stride, out_w * out_cpad), np.float32)
    for kh in range(kh_sz):
        for kw in range(kw_sz):
            blk = w[:, :, kh, kw].T                  # (Ci, O)
            for ow in range(out_w):
                wi = ow + kw
                r0 = kh * in_width * in_stride + wi * in_stride
                mat[r0:r0 + c_ch, ow * out_cpad: ow * out_cpad + o_ch] = blk
    bias_row = np.zeros((1, out_w * out_cpad), np.float32)
    for ow in range(out_w):
        bias_row[0, ow * out_cpad: ow * out_cpad + o_ch] = b
    return mat, bias_row


def _pool_lane_selector(out_w, cpad):
    """0/1 matrix compacting the lane-pair-max result to the pooled lane layout.

    Input lane j of the pair-max holds max(col j, col j+cpad); valid pooled
    outputs are at j = (2k)*cpad + c -> output lane k*cpad + c.
    """
    in_lanes = (2 * out_w - 1) * cpad
    cs = np.zeros((in_lanes, out_w * cpad), np.float32)
    for k in range(out_w):
        for c in range(cpad):
            cs[(2 * k) * cpad + c, k * cpad + c] = 1.0
    return cs


def _pack_fc1(fc1_w, fc1_b):
    """fc1 weights permuted from PyTorch's (c,h,w) flatten order to the kernel's
    feature order r*80 + w*16 + o; output lanes padded to 128."""
    w = np.asarray(fc1_w, np.float32)                # (120, 400)
    b = np.asarray(fc1_b, np.float32)
    m = np.zeros((H2P * W2P * C2P, NP), np.float32)  # (400, 128)
    for r in range(H2P):
        for wc in range(W2P):
            for o in range(C2):
                m[r * (W2P * C2P) + wc * C2P + o, :FC1] = \
                    w[:, o * (H2P * W2P) + r * W2P + wc]
    bias = np.zeros((1, NP), np.float32)
    bias[0, :FC1] = b
    return m, bias


def _pack_fc(w, bias, in_pad, out_pad):
    """Plain fc: store as (in_pad, out_pad) lane-padded (in, out) matrix."""
    w = np.asarray(w, np.float32)                    # (out, in)
    b = np.asarray(bias, np.float32)
    out_f, in_f = w.shape
    m = np.zeros((in_pad, out_pad), np.float32)
    m[:in_f, :out_f] = w.T
    bb = np.zeros((1, out_pad), np.float32)
    bb[0, :out_f] = b
    return m, bb


def pack_params(params):
    """One-time repack of PyTorch-layout weights into kernel-ready bf16 matrices."""
    w1, b1 = _pack_conv_kfold(params["conv1_w"], params["conv1_b"], W0, C0, C1P)
    cs1 = _pool_lane_selector(W1P, C1P)
    w2, b2 = _pack_conv_kfold(params["conv2_w"], params["conv2_b"], W1P, C1P, C2P)
    cs2 = _pool_lane_selector(W2P, C2P)
    wf1, bf1 = _pack_fc1(params["fc1_w"], params["fc1_b"])
    wf2, bf2 = _pack_fc(params["fc2_w"], params["fc2_b"], NP, NP)
    wf3, bf3 = _pack_fc(params["fc3_w"], params["fc3_b"], NP, NP)
    mats = dict(w1=w1, cs1=cs1, w2=w2, cs2=cs2, wf1=wf1, wf2=wf2, wf3=wf3)
    biases = dict(b1=b1, b2=b2, bf1=bf1, bf2=bf2, bf3=bf3)
    packed = {k: jnp.asarray(v, jnp.bfloat16) for k, v in mats.items()}
    packed.update({k: jnp.asarray(v, jnp.float32) for k, v in biases.items()})
    return packed


# -------------------------------- the kernel ------------------------------- #

def _make_kernel(B):
    """Build the fused LeNet kernel for a batch tile of B images."""

    def kernel(x_ref, w1_ref, b1_ref, cs1_ref, w2_ref, b2_ref, cs2_ref,
               wf1_ref, bf1_ref, wf2_ref, bf2_ref, wf3_ref, bf3_ref,
               out_ref, t1_scr, t2_scr):
        f32, bf16 = jnp.float32, jnp.bfloat16

        # conv1: single K-folded bf16 matmul, M = B*28, K = 5*96 = 480.
        x = x_ref[...].astype(bf16)                                      # (B, 32, 96)
        lhs1 = jnp.concatenate([x[:, kh:kh + H1, :] for kh in range(K)], axis=2)
        lhs1 = lhs1.reshape(B * H1, K * W0 * C0)                         # (B*28, 480)
        h1 = jnp.dot(lhs1, w1_ref[...], preferred_element_type=f32)      # (B*28, 224)
        h1 = jnp.maximum(h1 + b1_ref[...], 0.0)

        # pool1: lane-pair max (VPU) + ONE 0/1 selector matmul for lane compaction;
        # the row-pair max uses stride-2 VMEM reads (no MXU work for rows).
        pm1 = jnp.maximum(h1[:, :(W1 - 1) * C1P], h1[:, C1P:])           # (B*28, 216)
        t1_scr[...] = jnp.dot(pm1.astype(bf16), cs1_ref[...],
                              preferred_element_type=f32)                # (B*28, 112)
        p1 = jnp.maximum(t1_scr[pl.ds(0, B * H1P, 2), :],
                         t1_scr[pl.ds(1, B * H1P, 2), :])                # (B*14, 112)
        p1 = p1.reshape(B, H1P, W1P * C1P).astype(bf16)

        # conv2: single K-folded bf16 matmul, M = B*10, K = 5*112 = 560.
        lhs2 = jnp.concatenate([p1[:, kh:kh + H2, :] for kh in range(K)], axis=2)
        lhs2 = lhs2.reshape(B * H2, K * W1P * C1P)                       # (B*10, 560)
        h2 = jnp.dot(lhs2, w2_ref[...], preferred_element_type=f32)      # (B*10, 160)
        h2 = jnp.maximum(h2 + b2_ref[...], 0.0)

        # pool2 lanes (same recipe); row-pair max is fused into fc1 assembly below.
        pm2 = jnp.maximum(h2[:, :(W2 - 1) * C2P], h2[:, C2P:])           # (B*10, 144)
        t2_scr[...] = jnp.dot(pm2.astype(bf16), cs2_ref[...],
                              preferred_element_type=f32)                # (B*10, 80)

        # fc1 features: per pooled spatial row r, stride-10 reads pick conv2 rows
        # (2r, 2r+1) of every image -> max -> concat to the (B, 400) flatten.
        feats = []
        for r in range(H2P):
            fr = jnp.maximum(t2_scr[pl.ds(2 * r, B, 2 * H2P), :],
                             t2_scr[pl.ds(2 * r + 1, B, 2 * H2P), :])    # (B, 80)
            feats.append(fr)
        feat = jnp.concatenate(feats, axis=1).astype(bf16)               # (B, 400)

        # fc stack: real M=B matmuls on 128-lane padded weights.
        f = jnp.dot(feat, wf1_ref[...], preferred_element_type=f32) + bf1_ref[...]
        f = jnp.maximum(f, 0.0)
        f = jnp.dot(f.astype(bf16), wf2_ref[...],
                    preferred_element_type=f32) + bf2_ref[...]
        f = jnp.maximum(f, 0.0)
        f = jnp.dot(f.astype(bf16), wf3_ref[...],
                    preferred_element_type=f32) + bf3_ref[...]
        out_ref[...] = f                                                 # (B, 128)

    return kernel


def net_forward(packed, x_nchw, b_tile=64):
    """Forward pass matching PyTorch Net.forward; x_nchw is (B, 3, 32, 32) f32."""
    batch = x_nchw.shape[0]
    bt = _round_up(min(int(b_tile), _round_up(batch, 8)), 8)
    batch_p = _round_up(batch, bt)

    # NCHW -> per-image 2-D (H, W*C) layout (tiny one-shot XLA transpose).
    x = jnp.transpose(x_nchw, (0, 2, 3, 1)).reshape(batch, H0, W0 * C0)
    x = x.astype(jnp.float32)
    if batch_p != batch:
        x = jnp.pad(x, ((0, batch_p - batch), (0, 0), (0, 0)))

    w_args = [packed[k] for k in _WEIGHT_ORDER]
    in_specs = [pl.BlockSpec((bt, H0, W0 * C0), lambda i: (i, 0, 0))]
    # Weights: full-array blocks with constant index maps -> VMEM-resident.
    in_specs += [pl.BlockSpec(w.shape, lambda i: (0, 0)) for w in w_args]

    out = pl.pallas_call(
        _make_kernel(bt),
        out_shape=jax.ShapeDtypeStruct((batch_p, NP), jnp.float32),
        grid=(batch_p // bt,),
        in_specs=in_specs,
        out_specs=pl.BlockSpec((bt, NP), lambda i: (i, 0)),
        scratch_shapes=[pltpu.VMEM((bt * H1, W1P * C1P), jnp.float32),   # pool1 buf
                        pltpu.VMEM((bt * H2, W2P * C2P), jnp.float32)],  # pool2 buf
        compiler_params=pltpu.CompilerParams(
            dimension_semantics=("parallel",),
            vmem_limit_bytes=32 * 1024 * 1024),
    )(x, *w_args)
    return out[:batch, :FC3]


# ------------------------------- init & check ------------------------------ #

def init_params(key):
    """Deterministic PyTorch-default-style uniform init (synthetic weights)."""
    keys = jax.random.split(key, 10)

    def u(k, shape, fan_in):
        bound = 1.0 / jnp.sqrt(jnp.float32(fan_in))
        return jax.random.uniform(k, shape, jnp.float32, -bound, bound)

    return {
        "conv1_w": u(keys[0], (6, 3, 5, 5), 3 * 25),    # PyTorch OIHW
        "conv1_b": u(keys[1], (6,), 3 * 25),
        "conv2_w": u(keys[2], (16, 6, 5, 5), 6 * 25),
        "conv2_b": u(keys[3], (16,), 6 * 25),
        "fc1_w": u(keys[4], (120, 400), 400),           # PyTorch (out, in)
        "fc1_b": u(keys[5], (120,), 400),
        "fc2_w": u(keys[6], (84, 120), 120),
        "fc2_b": u(keys[7], (84,), 120),
        "fc3_w": u(keys[8], (10, 84), 84),
        "fc3_b": u(keys[9], (10,), 84),
    }


def reference_forward(params, x_nchw):
    """Pure-JAX f32 reference of the PyTorch forward (for a correctness check)."""
    hp = lax.Precision.HIGHEST
    y = lax.conv_general_dilated(
        x_nchw, params["conv1_w"], (1, 1), "VALID",
        dimension_numbers=("NCHW", "OIHW", "NCHW"), precision=hp)
    y = jnp.maximum(y + params["conv1_b"][None, :, None, None], 0.0)
    y = lax.reduce_window(y, -jnp.inf, lax.max, (1, 1, 2, 2), (1, 1, 2, 2), "VALID")
    y = lax.conv_general_dilated(
        y, params["conv2_w"], (1, 1), "VALID",
        dimension_numbers=("NCHW", "OIHW", "NCHW"), precision=hp)
    y = jnp.maximum(y + params["conv2_b"][None, :, None, None], 0.0)
    y = lax.reduce_window(y, -jnp.inf, lax.max, (1, 1, 2, 2), (1, 1, 2, 2), "VALID")
    y = y.reshape(y.shape[0], -1)                                   # NCHW flatten
    y = jnp.maximum(jnp.dot(y, params["fc1_w"].T, precision=hp) + params["fc1_b"], 0.0)
    y = jnp.maximum(jnp.dot(y, params["fc2_w"].T, precision=hp) + params["fc2_b"], 0.0)
    return jnp.dot(y, params["fc3_w"].T, precision=hp) + params["fc3_b"]


if __name__ == "__main__":
    key = jax.random.PRNGKey(0)
    pkey, xkey = jax.random.split(key)
    params = init_params(pkey)
    packed = pack_params(params)

    # Spatial size is fixed at 32x32 by the fc1 input dim (16*5*5).  batch=16 with
    # an 8-image batch tile -> grid length 2 (both TensorCores get work on v7x).
    x = jax.random.normal(xkey, (16, 3, 32, 32), jnp.float32)

    fwd = jax.jit(lambda p, xx: net_forward(p, xx, b_tile=8))
    out = jax.block_until_ready(fwd(packed, x))
    assert out.shape == (16, 10) and out.dtype == jnp.float32

    ref = reference_forward(params, x)
    np.testing.assert_allclose(np.asarray(out), np.asarray(ref), rtol=5e-2, atol=5e-2)
    print("KERNEL_OK")
</pallas_src>

<mosaic_0001>
module attributes {stable_mosaic.version = 11 : i64} {
  func.func @kernel(%arg0: i32, %arg1: memref<8x32x96xf32, #tpu.memory_space<vmem>>, %arg2: memref<480x224xbf16, #tpu.memory_space<vmem>>, %arg3: memref<1x224xf32, #tpu.memory_space<vmem>>, %arg4: memref<216x112xbf16, #tpu.memory_space<vmem>>, %arg5: memref<560x160xbf16, #tpu.memory_space<vmem>>, %arg6: memref<1x160xf32, #tpu.memory_space<vmem>>, %arg7: memref<144x80xbf16, #tpu.memory_space<vmem>>, %arg8: memref<400x128xbf16, #tpu.memory_space<vmem>>, %arg9: memref<1x128xf32, #tpu.memory_space<vmem>>, %arg10: memref<128x128xbf16, #tpu.memory_space<vmem>>, %arg11: memref<1x128xf32, #tpu.memory_space<vmem>>, %arg12: memref<128x128xbf16, #tpu.memory_space<vmem>>, %arg13: memref<1x128xf32, #tpu.memory_space<vmem>>, %arg14: memref<8x128xf32, #tpu.memory_space<vmem>>, %arg15: memref<224x112xf32, #tpu.memory_space<vmem>>, %arg16: memref<80x80xf32, #tpu.memory_space<vmem>>) attributes {dimension_semantics = [#tpu.dimension_semantics<parallel>], iteration_bounds = array<i64: 2>, scalar_prefetch = 0 : i64, scratch_operands = 2 : i64, tpu.core_type = #tpu.core_type<tc>, window_params = [{transform_indices = @transform_0, window_bounds = array<i64: 8, 32, 96>}, {pipeline_mode = #tpu.pipeline_mode<synchronous>, transform_indices = @transform_1, window_bounds = array<i64: 480, 224>}, {pipeline_mode = #tpu.pipeline_mode<synchronous>, transform_indices = @transform_2, window_bounds = array<i64: 1, 224>}, {pipeline_mode = #tpu.pipeline_mode<synchronous>, transform_indices = @transform_3, window_bounds = array<i64: 216, 112>}, {pipeline_mode = #tpu.pipeline_mode<synchronous>, transform_indices = @transform_4, window_bounds = array<i64: 560, 160>}, {pipeline_mode = #tpu.pipeline_mode<synchronous>, transform_indices = @transform_5, window_bounds = array<i64: 1, 160>}, {pipeline_mode = #tpu.pipeline_mode<synchronous>, transform_indices = @transform_6, window_bounds = array<i64: 144, 80>}, {pipeline_mode = #tpu.pipeline_mode<synchronous>, transform_indices = @transform_7, window_bounds = array<i64: 400, 128>}, {pipeline_mode = #tpu.pipeline_mode<synchronous>, transform_indices = @transform_8, window_bounds = array<i64: 1, 128>}, {pipeline_mode = #tpu.pipeline_mode<synchronous>, transform_indices = @transform_9, window_bounds = array<i64: 128, 128>}, {pipeline_mode = #tpu.pipeline_mode<synchronous>, transform_indices = @transform_10, window_bounds = array<i64: 1, 128>}, {pipeline_mode = #tpu.pipeline_mode<synchronous>, transform_indices = @transform_11, window_bounds = array<i64: 128, 128>}, {pipeline_mode = #tpu.pipeline_mode<synchronous>, transform_indices = @transform_12, window_bounds = array<i64: 1, 128>}, {transform_indices = @transform_13, window_bounds = array<i64: 8, 128>}]} {
    %c0 = arith.constant 0 : index
    %c0_0 = arith.constant 0 : index
    %c0_1 = arith.constant 0 : index
    %0 = vector.load %arg1[%c0, %c0_0, %c0_1] : memref<8x32x96xf32, #tpu.memory_space<vmem>>, vector<8x32x96xf32>
    %1 = arith.truncf %0 : vector<8x32x96xf32> to vector<8x32x96xbf16>
    %2 = vector.extract_strided_slice %1 {offsets = [0, 0, 0], sizes = [8, 28, 96], strides = [1, 1, 1]} : vector<8x32x96xbf16> to vector<8x28x96xbf16>
    %3 = vector.extract_strided_slice %1 {offsets = [0, 1, 0], sizes = [8, 28, 96], strides = [1, 1, 1]} : vector<8x32x96xbf16> to vector<8x28x96xbf16>
    %4 = vector.extract_strided_slice %1 {offsets = [0, 2, 0], sizes = [8, 28, 96], strides = [1, 1, 1]} : vector<8x32x96xbf16> to vector<8x28x96xbf16>
    %5 = vector.extract_strided_slice %1 {offsets = [0, 3, 0], sizes = [8, 28, 96], strides = [1, 1, 1]} : vector<8x32x96xbf16> to vector<8x28x96xbf16>
    %6 = vector.extract_strided_slice %1 {offsets = [0, 4, 0], sizes = [8, 28, 96], strides = [1, 1, 1]} : vector<8x32x96xbf16> to vector<8x28x96xbf16>
    %7 = tpu.concatenate %2, %3, %4, %5, %6 in 2 : vector<8x28x96xbf16>, vector<8x28x96xbf16>, vector<8x28x96xbf16>, vector<8x28x96xbf16>, vector<8x28x96xbf16> -> vector<8x28x480xbf16>
    %8 = vector.shape_cast %7 : vector<8x28x480xbf16> to vector<224x480xbf16>
    %c0_2 = arith.constant 0 : index
    %c0_3 = arith.constant 0 : index
    %9 = vector.load %arg2[%c0_2, %c0_3] : memref<480x224xbf16, #tpu.memory_space<vmem>>, vector<480x224xbf16>
    %cst = arith.constant dense<0.000000e+00> : vector<224x224xf32>
    %10 = tpu.matmul %8, %9, %cst {dimension_numbers = #tpu.dot_dimension_numbers<[1], [0], [0], [1], [0, 0, 1, 1], [], []>} : vector<224x480xbf16>, vector<480x224xbf16>, vector<224x224xf32> -> vector<224x224xf32>
    %c0_4 = arith.constant 0 : index
    %c0_5 = arith.constant 0 : index
    %11 = vector.load %arg3[%c0_4, %c0_5] : memref<1x224xf32, #tpu.memory_space<vmem>>, vector<1x224xf32>
    %12 = vector.broadcast %11 : vector<1x224xf32> to vector<224x224xf32>
    %13 = arith.addf %10, %12 : vector<224x224xf32>
    %cst_6 = arith.constant 0.000000e+00 : f32
    %14 = vector.broadcast %cst_6 : f32 to vector<224x224xf32>
    %15 = arith.maximumf %13, %14 : vector<224x224xf32>
    %16 = vector.extract_strided_slice %15 {offsets = [0, 0], sizes = [224, 216], strides = [1, 1]} : vector<224x224xf32> to vector<224x216xf32>
    %17 = vector.extract_strided_slice %15 {offsets = [0, 8], sizes = [224, 216], strides = [1, 1]} : vector<224x224xf32> to vector<224x216xf32>
    %18 = arith.maximumf %16, %17 : vector<224x216xf32>
    %19 = arith.truncf %18 : vector<224x216xf32> to vector<224x216xbf16>
    %c0_7 = arith.constant 0 : index
    %c0_8 = arith.constant 0 : index
    %20 = vector.load %arg4[%c0_7, %c0_8] : memref<216x112xbf16, #tpu.memory_space<vmem>>, vector<216x112xbf16>
    %cst_9 = arith.constant dense<0.000000e+00> : vector<224x112xf32>
    %21 = tpu.matmul %19, %20, %cst_9 {dimension_numbers = #tpu.dot_dimension_numbers<[1], [0], [0], [1], [0, 0, 1, 1], [], []>} : vector<224x216xbf16>, vector<216x112xbf16>, vector<224x112xf32> -> vector<224x112xf32>
    %c0_10 = arith.constant 0 : index
    %c0_11 = arith.constant 0 : index
    %22 = vector.load %arg15[%c0_10, %c0_11] : memref<224x112xf32, #tpu.memory_space<vmem>>, vector<224x112xf32>
    tpu.vector_store %arg15[%c0_10, %c0_11], %21 {strides = array<i32>} : memref<224x112xf32, #tpu.memory_space<vmem>>, vector<224x112xf32>,
    %c0_12 = arith.constant 0 : index
    %c0_13 = arith.constant 0 : index
    %23 = tpu.strided_load %arg15[%c0_12, %c0_13] {strides = array<i32: 2, 1>} : memref<224x112xf32, #tpu.memory_space<vmem>>, vector<112x112xf32>
    %c1 = arith.constant 1 : index
    %c0_14 = arith.constant 0 : index
    %24 = tpu.strided_load %arg15[%c1, %c0_14] {strides = array<i32: 2, 1>} : memref<224x112xf32, #tpu.memory_space<vmem>>, vector<112x112xf32>
    %25 = arith.maximumf %23, %24 : vector<112x112xf32>
    %26 = vector.shape_cast %25 : vector<112x112xf32> to vector<8x14x112xf32>
    %27 = arith.truncf %26 : vector<8x14x112xf32> to vector<8x14x112xbf16>
    %28 = vector.extract_strided_slice %27 {offsets = [0, 0, 0], sizes = [8, 10, 112], strides = [1, 1, 1]} : vector<8x14x112xbf16> to vector<8x10x112xbf16>
    %29 = vector.extract_strided_slice %27 {offsets = [0, 1, 0], sizes = [8, 10, 112], strides = [1, 1, 1]} : vector<8x14x112xbf16> to vector<8x10x112xbf16>
    %30 = vector.extract_strided_slice %27 {offsets = [0, 2, 0], sizes = [8, 10, 112], strides = [1, 1, 1]} : vector<8x14x112xbf16> to vector<8x10x112xbf16>
    %31 = vector.extract_strided_slice %27 {offsets = [0, 3, 0], sizes = [8, 10, 112], strides = [1, 1, 1]} : vector<8x14x112xbf16> to vector<8x10x112xbf16>
    %32 = vector.extract_strided_slice %27 {offsets = [0, 4, 0], sizes = [8, 10, 112], strides = [1, 1, 1]} : vector<8x14x112xbf16> to vector<8x10x112xbf16>
    %33 = tpu.concatenate %28, %29, %30, %31, %32 in 2 : vector<8x10x112xbf16>, vector<8x10x112xbf16>, vector<8x10x112xbf16>, vector<8x10x112xbf16>, vector<8x10x112xbf16> -> vector<8x10x560xbf16>
    %34 = vector.shape_cast %33 : vector<8x10x560xbf16> to vector<80x560xbf16>
    %c0_15 = arith.constant 0 : index
    %c0_16 = arith.constant 0 : index
    %35 = vector.load %arg5[%c0_15, %c0_16] : memref<560x160xbf16, #tpu.memory_space<vmem>>, vector<560x160xbf16>
    %cst_17 = arith.constant dense<0.000000e+00> : vector<80x160xf32>
    %36 = tpu.matmul %34, %35, %cst_17 {dimension_numbers = #tpu.dot_dimension_numbers<[1], [0], [0], [1], [0, 0, 1, 1], [], []>} : vector<80x560xbf16>, vector<560x160xbf16>, vector<80x160xf32> -> vector<80x160xf32>
    %c0_18 = arith.constant 0 : index
    %c0_19 = arith.constant 0 : index
    %37 = vector.load %arg6[%c0_18, %c0_19] : memref<1x160xf32, #tpu.memory_space<vmem>>, vector<1x160xf32>
    %38 = vector.broadcast %37 : vector<1x160xf32> to vector<80x160xf32>
    %39 = arith.addf %36, %38 : vector<80x160xf32>
    %cst_20 = arith.constant 0.000000e+00 : f32
    %40 = vector.broadcast %cst_20 : f32 to vector<80x160xf32>
    %41 = arith.maximumf %39, %40 : vector<80x160xf32>
    %42 = vector.extract_strided_slice %41 {offsets = [0, 0], sizes = [80, 144], strides = [1, 1]} : vector<80x160xf32> to vector<80x144xf32>
    %43 = vector.extract_strided_slice %41 {offsets = [0, 16], sizes = [80, 144], strides = [1, 1]} : vector<80x160xf32> to vector<80x144xf32>
    %44 = arith.maximumf %42, %43 : vector<80x144xf32>
    %45 = arith.truncf %44 : vector<80x144xf32> to vector<80x144xbf16>
    %c0_21 = arith.constant 0 : index
    %c0_22 = arith.constant 0 : index
    %46 = vector.load %arg7[%c0_21, %c0_22] : memref<144x80xbf16, #tpu.memory_space<vmem>>, vector<144x80xbf16>
    %cst_23 = arith.constant dense<0.000000e+00> : vector<80x80xf32>
    %47 = tpu.matmul %45, %46, %cst_23 {dimension_numbers = #tpu.dot_dimension_numbers<[1], [0], [0], [1], [0, 0, 1, 1], [], []>} : vector<80x144xbf16>, vector<144x80xbf16>, vector<80x80xf32> -> vector<80x80xf32>
    %c0_24 = arith.constant 0 : index
    %c0_25 = arith.constant 0 : index
    %48 = vector.load %arg16[%c0_24, %c0_25] : memref<80x80xf32, #tpu.memory_space<vmem>>, vector<80x80xf32>
    tpu.vector_store %arg16[%c0_24, %c0_25], %47 {strides = array<i32>} : memref<80x80xf32, #tpu.memory_space<vmem>>, vector<80x80xf32>,
    %c0_26 = arith.constant 0 : index
    %c0_27 = arith.constant 0 : index
    %49 = tpu.strided_load %arg16[%c0_26, %c0_27] {strides = array<i32: 10, 1>} : memref<80x80xf32, #tpu.memory_space<vmem>>, vector<8x80xf32>
    %c1_28 = arith.constant 1 : index
    %c0_29 = arith.constant 0 : index
    %50 = tpu.strided_load %arg16[%c1_28, %c0_29] {strides = array<i32: 10, 1>} : memref<80x80xf32, #tpu.memory_space<vmem>>, vector<8x80xf32>
    %51 = arith.maximumf %49, %50 : vector<8x80xf32>
    %c2 = arith.constant 2 : index
    %c0_30 = arith.constant 0 : index
    %52 = tpu.strided_load %arg16[%c2, %c0_30] {strides = array<i32: 10, 1>} : memref<80x80xf32, #tpu.memory_space<vmem>>, vector<8x80xf32>
    %c3 = arith.constant 3 : index
    %c0_31 = arith.constant 0 : index
    %53 = tpu.strided_load %arg16[%c3, %c0_31] {strides = array<i32: 10, 1>} : memref<80x80xf32, #tpu.memory_space<vmem>>, vector<8x80xf32>
    %54 = arith.maximumf %52, %53 : vector<8x80xf32>
    %c4 = arith.constant 4 : index
    %c0_32 = arith.constant 0 : index
    %55 = tpu.strided_load %arg16[%c4, %c0_32] {strides = array<i32: 10, 1>} : memref<80x80xf32, #tpu.memory_space<vmem>>, vector<8x80xf32>
    %c5 = arith.constant 5 : index
    %c0_33 = arith.constant 0 : index
    %56 = tpu.strided_load %arg16[%c5, %c0_33] {strides = array<i32: 10, 1>} : memref<80x80xf32, #tpu.memory_space<vmem>>, vector<8x80xf32>
    %57 = arith.maximumf %55, %56 : vector<8x80xf32>
    %c6 = arith.constant 6 : index
    %c0_34 = arith.constant 0 : index
    %58 = tpu.strided_load %arg16[%c6, %c0_34] {strides = array<i32: 10, 1>} : memref<80x80xf32, #tpu.memory_space<vmem>>, vector<8x80xf32>
    %c7 = arith.constant 7 : index
    %c0_35 = arith.constant 0 : index
    %59 = tpu.strided_load %arg16[%c7, %c0_35] {strides = array<i32: 10, 1>} : memref<80x80xf32, #tpu.memory_space<vmem>>, vector<8x80xf32>
    %60 = arith.maximumf %58, %59 : vector<8x80xf32>
    %c8 = arith.constant 8 : index
    %c0_36 = arith.constant 0 : index
    %61 = tpu.strided_load %arg16[%c8, %c0_36] {strides = array<i32: 10, 1>} : memref<80x80xf32, #tpu.memory_space<vmem>>, vector<8x80xf32>
    %c9 = arith.constant 9 : index
    %c0_37 = arith.constant 0 : index
    %62 = tpu.strided_load %arg16[%c9, %c0_37] {strides = array<i32: 10, 1>} : memref<80x80xf32, #tpu.memory_space<vmem>>, vector<8x80xf32>
    %63 = arith.maximumf %61, %62 : vector<8x80xf32>
    %64 = tpu.concatenate %51, %54, %57, %60, %63 in 1 : vector<8x80xf32>, vector<8x80xf32>, vector<8x80xf32>, vector<8x80xf32>, vector<8x80xf32> -> vector<8x400xf32>
    %65 = arith.truncf %64 : vector<8x400xf32> to vector<8x400xbf16>
    %c0_38 = arith.constant 0 : index
    %c0_39 = arith.constant 0 : index
    %66 = vector.load %arg8[%c0_38, %c0_39] : memref<400x128xbf16, #tpu.memory_space<vmem>>, vector<400x128xbf16>
    %cst_40 = arith.constant dense<0.000000e+00> : vector<8x128xf32>
    %67 = tpu.matmul %65, %66, %cst_40 {dimension_numbers = #tpu.dot_dimension_numbers<[1], [0], [0], [1], [0, 0, 1, 1], [], []>} : vector<8x400xbf16>, vector<400x128xbf16>, vector<8x128xf32> -> vector<8x128xf32>
    %c0_41 = arith.constant 0 : index
    %c0_42 = arith.constant 0 : index
    %68 = vector.load %arg9[%c0_41, %c0_42] : memref<1x128xf32, #tpu.memory_space<vmem>>, vector<1x128xf32>
    %69 = vector.broadcast %68 : vector<1x128xf32> to vector<8x128xf32>
    %70 = arith.addf %67, %69 : vector<8x128xf32>
    %cst_43 = arith.constant 0.000000e+00 : f32
    %71 = vector.broadcast %cst_43 : f32 to vector<8x128xf32>
    %72 = arith.maximumf %70, %71 : vector<8x128xf32>
    %73 = arith.truncf %72 : vector<8x128xf32> to vector<8x128xbf16>
    %c0_44 = arith.constant 0 : index
    %c0_45 = arith.constant 0 : index
    %74 = vector.load %arg10[%c0_44, %c0_45] : memref<128x128xbf16, #tpu.memory_space<vmem>>, vector<128x128xbf16>
    %cst_46 = arith.constant dense<0.000000e+00> : vector<8x128xf32>
    %75 = tpu.matmul %73, %74, %cst_46 {dimension_numbers = #tpu.dot_dimension_numbers<[1], [0], [0], [1], [0, 0, 1, 1], [], []>} : vector<8x128xbf16>, vector<128x128xbf16>, vector<8x128xf32> -> vector<8x128xf32>
    %c0_47 = arith.constant 0 : index
    %c0_48 = arith.constant 0 : index
    %76 = vector.load %arg11[%c0_47, %c0_48] : memref<1x128xf32, #tpu.memory_space<vmem>>, vector<1x128xf32>
    %77 = vector.broadcast %76 : vector<1x128xf32> to vector<8x128xf32>
    %78 = arith.addf %75, %77 : vector<8x128xf32>
    %cst_49 = arith.constant 0.000000e+00 : f32
    %79 = vector.broadcast %cst_49 : f32 to vector<8x128xf32>
    %80 = arith.maximumf %78, %79 : vector<8x128xf32>
    %81 = arith.truncf %80 : vector<8x128xf32> to vector<8x128xbf16>
    %c0_50 = arith.constant 0 : index
    %c0_51 = arith.constant 0 : index
    %82 = vector.load %arg12[%c0_50, %c0_51] : memref<128x128xbf16, #tpu.memory_space<vmem>>, vector<128x128xbf16>
    %cst_52 = arith.constant dense<0.000000e+00> : vector<8x128xf32>
    %83 = tpu.matmul %81, %82, %cst_52 {dimension_numbers = #tpu.dot_dimension_numbers<[1], [0], [0], [1], [0, 0, 1, 1], [], []>} : vector<8x128xbf16>, vector<128x128xbf16>, vector<8x128xf32> -> vector<8x128xf32>
    %c0_53 = arith.constant 0 : index
    %c0_54 = arith.constant 0 : index
    %84 = vector.load %arg13[%c0_53, %c0_54] : memref<1x128xf32, #tpu.memory_space<vmem>>, vector<1x128xf32>
    %85 = vector.broadcast %84 : vector<1x128xf32> to vector<8x128xf32>
    %86 = arith.addf %83, %85 : vector<8x128xf32>
    %c0_55 = arith.constant 0 : index
    %c0_56 = arith.constant 0 : index
    %87 = vector.load %arg14[%c0_55, %c0_56] : memref<8x128xf32, #tpu.memory_space<vmem>>, vector<8x128xf32>
    tpu.vector_store %arg14[%c0_55, %c0_56], %86 {strides = array<i32>} : memref<8x128xf32, #tpu.memory_space<vmem>>, vector<8x128xf32>,
    return
  }
  func.func @transform_0(%arg0: i32) -> (i32, i32, i32) {
    %c0_i32 = arith.constant 0 : i32
    %c0_i32_0 = arith.constant 0 : i32
    %c0_i32_1 = arith.constant 0 : i32
    return %arg0, %c0_i32, %c0_i32_0 : i32, i32, i32
  }
  func.func @transform_1(%arg0: i32) -> (i32, i32) {
    %c0_i32 = arith.constant 0 : i32
    %c0_i32_0 = arith.constant 0 : i32
    %c0_i32_1 = arith.constant 0 : i32
    return %c0_i32, %c0_i32_0 : i32, i32
  }
  func.func @transform_2(%arg0: i32) -> (i32, i32) {
    %c0_i32 = arith.constant 0 : i32
    %c0_i32_0 = arith.constant 0 : i32
    %c0_i32_1 = arith.constant 0 : i32
    return %c0_i32, %c0_i32_0 : i32, i32
  }
  func.func @transform_3(%arg0: i32) -> (i32, i32) {
    %c0_i32 = arith.constant 0 : i32
    %c0_i32_0 = arith.constant 0 : i32
    %c0_i32_1 = arith.constant 0 : i32
    return %c0_i32, %c0_i32_0 : i32, i32
  }
  func.func @transform_4(%arg0: i32) -> (i32, i32) {
    %c0_i32 = arith.constant 0 : i32
    %c0_i32_0 = arith.constant 0 : i32
    %c0_i32_1 = arith.constant 0 : i32
    return %c0_i32, %c0_i32_0 : i32, i32
  }
  func.func @transform_5(%arg0: i32) -> (i32, i32) {
    %c0_i32 = arith.constant 0 : i32
    %c0_i32_0 = arith.constant 0 : i32
    %c0_i32_1 = arith.constant 0 : i32
    return %c0_i32, %c0_i32_0 : i32, i32
  }
  func.func @transform_6(%arg0: i32) -> (i32, i32) {
    %c0_i32 = arith.constant 0 : i32
    %c0_i32_0 = arith.constant 0 : i32
    %c0_i32_1 = arith.constant 0 : i32
    return %c0_i32, %c0_i32_0 : i32, i32
  }
  func.func @transform_7(%arg0: i32) -> (i32, i32) {
    %c0_i32 = arith.constant 0 : i32
    %c0_i32_0 = arith.constant 0 : i32
    %c0_i32_1 = arith.constant 0 : i32
    return %c0_i32, %c0_i32_0 : i32, i32
  }
  func.func @transform_8(%arg0: i32) -> (i32, i32) {
    %c0_i32 = arith.constant 0 : i32
    %c0_i32_0 = arith.constant 0 : i32
    %c0_i32_1 = arith.constant 0 : i32
    return %c0_i32, %c0_i32_0 : i32, i32
  }
  func.func @transform_9(%arg0: i32) -> (i32, i32) {
    %c0_i32 = arith.constant 0 : i32
    %c0_i32_0 = arith.constant 0 : i32
    %c0_i32_1 = arith.constant 0 : i32
    return %c0_i32, %c0_i32_0 : i32, i32
  }
  func.func @transform_10(%arg0: i32) -> (i32, i32) {
    %c0_i32 = arith.constant 0 : i32
    %c0_i32_0 = arith.constant 0 : i32
    %c0_i32_1 = arith.constant 0 : i32
    return %c0_i32, %c0_i32_0 : i32, i32
  }
  func.func @transform_11(%arg0: i32) -> (i32, i32) {
    %c0_i32 = arith.constant 0 : i32
    %c0_i32_0 = arith.constant 0 : i32
    %c0_i32_1 = arith.constant 0 : i32
    return %c0_i32, %c0_i32_0 : i32, i32
  }
  func.func @transform_12(%arg0: i32) -> (i32, i32) {
    %c0_i32 = arith.constant 0 : i32
    %c0_i32_0 = arith.constant 0 : i32
    %c0_i32_1 = arith.constant 0 : i32
    return %c0_i32, %c0_i32_0 : i32, i32
  }
  func.func @transform_13(%arg0: i32) -> (i32, i32) {
    %c0_i32 = arith.constant 0 : i32
    %c0_i32_0 = arith.constant 0 : i32
    return %arg0, %c0_i32 : i32, i32
  }
}

</mosaic_0001>

<bundles_post_ra>
// kernel: _lambda_.1
= control target key start
LH: loop header
LB: loop body
LE: loop exit
PB: predicated region body
PF: predicated region fallthrough
CT: control target
= control target key end

     0   :  { %s10430_s0 = inlined_call_operand.vmem [shape: f32[16,32,96], index: 0, kind: input, shape index: {}]   ;;  %s10431_s1 = inlined_call_operand.vmem [shape: bf16[480,224], index: 1, kind: input, shape index: {}]   ;;  %s10432_s2 = inlined_call_operand.vmem [shape: f32[1,224], index: 2, kind: input, shape index: {}]   ;;  %s10433_s3 = inlined_call_operand.vmem [shape: bf16[216,112], index: 3, kind: input, shape index: {}]   ;;  %s10434_s4 = inlined_call_operand.vmem [shape: bf16[560,160], index: 4, kind: input, shape index: {}]   ;;  %s10435_s5 = inlined_call_operand.vmem [shape: f32[1,160], index: 5, kind: input, shape index: {}]   ;;  %s10436_s6 = inlined_call_operand.vmem [shape: bf16[144,80], index: 6, kind: input, shape index: {}]   ;;  %s10437_s7 = inlined_call_operand.vmem [shape: bf16[400,128], index: 7, kind: input, shape index: {}]   ;;  %s10438_s8 = inlined_call_operand.vmem [shape: f32[1,128], index: 8, kind: input, shape index: {}]   ;;  %s10439_s9 = inlined_call_operand.vmem [shape: bf16[128,128], index: 9, kind: input, shape index: {}]   ;;  %s10440_s10 = inlined_call_operand.vmem [shape: f32[1,128], index: 10, kind: input, shape index: {}]   ;;  %s10441_s11 = inlined_call_operand.vmem [shape: bf16[128,128], index: 11, kind: input, shape index: {}]   ;;  %s10442_s12 = inlined_call_operand.vmem [shape: f32[1,128], index: 12, kind: input, shape index: {}]   ;;  %s10443_s13 = inlined_call_operand.hbm [shape: f32[16,128], index: 13, kind: output, shape index: {}]  }
   0x1   :  { %10534 = sst [smem:[#allocation36_spill]] %s10430_s0 }
   0x2   :  { %18 = vsyncpa [#allocation5], 0 }
   0x3   :  { %20 = vsyncpa [#allocation5 + $0x1], 0  ;;  %s7352_s25 = smov 0   ;;  %s7354_s26 = smov 0  }
   0x4   :  { %s7356_s27 = smov 0   ;;  %s7358_s28 = smov 0  }
   0x5 LB: > { %10535 = sst [smem:[#allocation7_spill]] %s7262_s25  ;;  %s5937_s29 = sadd.s32 4294967295, %s7274_s28   ;;  %s7274_s28 = sphi %s7358_s28, %s10761_s28   ;;  %s7270_s27 = sphi %s7356_s27, %s10763_s27   ;;  %s7266_s26 = sphi %s7354_s26, %s10765_s26   ;;  %s7262_s25 = sphi %s7352_s25, %s10764_s25  }
   0x6   : > { %10536 = sst [smem:[#allocation8_spill]] %s7270_s27  ;;  %s5938_s30 = sadd.s32 4294967294, %s7274_s28  }
   0x7   : > { %10537 = sst [smem:[#allocation9_spill]] %s7274_s28  ;;  %s7375_s14 = sadd.s32 1, %s7274_s28  }
   0x8   : > { %10538 = sst [smem:[#allocation10_spill]] %s7375_s14  ;;  %s311_s15 = sadd.s32 1, %s7270_s27 }
   0x9   : > { %s308_s16 = ssub.s32 %s7274_s28, %s7375_s14  ;;  %p321_p0 = scmp.ne.s32.totalorder %s7270_s27, %s7266_s26 }
   0xa   : > { %p309_p1 = scmp.eq.s32.totalorder %s308_s16, 0  ;;  %p322_p2 = scmp.eq.s32.totalorder %s5937_s29, 1 }
   0xb   : > { %p327_p3 = scmp.ne.s32.totalorder %s7266_s26, %s7262_s25  ;;  %p328_p4 = scmp.eq.s32.totalorder %s5938_s30, 1 }
   0xc   : > { %s7385_s17 = scalar_select %p309_p1, %s7270_s27, %s311_s15  }
   0xd   : > { %p7387_p5 = por %p322_p2, %p321_p0  ;;  %p7391_p6 = por %p328_p4, %p327_p3 }
   0xe   : > { %10539 = sst [smem:[#allocation11_spill]] %s7385_s17  ;;  %p5941_p7 = scmp.ge.s32.totalorder %s7274_s28, 1 }
   0xf   : > { %s10541_s19 = scalar_select %p7391_p6, 1, 0 }
  0x10   : > { %p392_p8 = scmp.lt.s32.totalorder %s7274_s28, 3 }
  0x11   : > { %10542 = sst [smem:[#allocation12_spill]] %s10541_s19 }
  0x12   : > { %p393_p9 = pnand %p5941_p7, %p392_p8 }
  0x14   : > { %396 = sbr.rel (%p393_p9) target bundleno = 2422 (0x976), region = 72 }
  0x19   : > { %s7397_s20 = sshll.u32 %s5937_s29, 3  ;;  %s10543_s0 = sld [smem:[#allocation36_spill]]  ;;  %vm589_vm0 = vsmask.f32 7424  ;;  %vm799_vm1 = vsmask.f32 6400 }
  0x1a   : > { %p438_p10 = scmp.lt.s32.totalorder %s7397_s20, 15  ;;  %s10448_s29 = smov 64   ;;  %vm10526_vm2 = vcmask 1046528   ;;  %vm10522_vm3 = vcmask 261120   ;;  %vm913_vm4 = vcmask 785408   ;;  %vm888_vm5 = vcmask 1045504  }
  0x1b   : > { %s10446_s15 = smov 96   ;;  %s10444_s16 = smov 32   ;;  %vm10523_vm6 = vcmask 1041408   ;;  %vm10527_vm7 = vcmask 1045508   ;;  %vm10529_vm8 = vcmask 523264   ;;  %vm1099_vm9 = vcmask 1043456  }
  0x1c   : > { %s439_s21 = scalar_select %p438_p10, %s7397_s20, 15  ;;  %vm10524_vm10 = vcmask 1043458   ;;  %vm1105_vm11 = vcmask 1045506   ;;  %vm2845_vm12 = vcmask 982016   ;;  %vm3122_vm13 = vcmask 719872  }
  0x1d   : > { %s10544_s24 = smov 32   ;;  %s10545_s27 = smov 96   ;;  %vm10525_vm14 = vcmask 916480   ;;  %vm10530_vm15 = vcmask 654336  }
  0x1e   : > { %s6780_s22 = sshll.u32 %s439_s21, 5  ;;  %s10546_s14 = smov 64  }
  0x1f   : > { %s7404_s30 = scalar_lea.vmem %s10543_s0, %s6780_s22  ;;  %s7280_s19 = smov 80  }
  0x20   : > { %v445_v0 = vld [vmem:[%s7404_s30] sm:$0xff]  ;;  %v446_v1 = vld [vmem:[%s7404_s30 + $0x8] sm:$0xff]  ;;  %v447_v2 = vld [vmem:[%s7404_s30 + $0x10] sm:$0xff]  ;;  %s10636_s25 = smov 112  }
  0x21   : > { %v448_v3 = vld [vmem:[%s7404_s30 + $0x18] sm:$0xff]  ;;  %v477_v4 = vpack.c.bf16 %v445_v0, %v445_v0  ;;  %v478_v5 = vpack.c.bf16 %v446_v1, %v446_v1  ;;  %v479_v6 = vpack.c.bf16 %v447_v2, %v447_v2  ;;  %v449_v7 = vld [vmem:[%s7404_s30 + $0x20] sm:$0xff]  ;;  %v450_v8 = vld [vmem:[%s7404_s30 + $0x28] sm:$0xff] }
  0x22   : > { %v480_v9 = vpack.c.bf16 %v448_v3, %v448_v3  ;;  %v451_v10 = vld [vmem:[%s7404_s30 + $0x30] sm:$0xff]  ;;  %v452_v11 = vld [vmem:[%s7404_s30 + $0x38] sm:$0xff]  ;;  %v481_v12 = vpack.c.bf16 %v449_v7, %v449_v7  ;;  %v482_v13 = vpack.c.bf16 %v450_v8, %v450_v8  ;;  %v453_v47 = vld [vmem:[%s7404_s30 + $0x40] sm:$0xff] }
  0x23   : > { %v541_v14 = vunpack.c.l.b16 %v477_v4  ;;  %v542_v15 = vunpack.c.l.b16 %v478_v5  ;;  %v543_v16 = vunpack.c.l.b16 %v479_v6  ;;  %v483_v17 = vpack.c.bf16 %v451_v10, %v451_v10  ;;  %v454_v50 = vld [vmem:[%s7404_s30 + $0x48] sm:$0xff]  ;;  %v455_v51 = vld [vmem:[%s7404_s30 + $0x50] sm:$0xff]  ;;  %v456_v52 = vld [vmem:[%s7404_s30 + $0x58] sm:$0xff] }
  0x24   : > { %v544_v18 = vunpack.c.l.b16 %v480_v9  ;;  %v484_v19 = vpack.c.bf16 %v452_v11, %v452_v11  ;;  %v545_v20 = vunpack.c.l.b16 %v481_v12  ;;  %v546_v21 = vunpack.c.l.b16 %v482_v13 }
  0x25   : > { %v7414_v22 = vpack.c.b16 %v542_v15, %v541_v14  ;;  %v547_v23 = vunpack.c.l.b16 %v483_v17  ;;  %v485_v57 = vpack.c.bf16 %v453_v47, %v453_v47  ;;  %v486_v58 = vpack.c.bf16 %v454_v50, %v454_v50  ;;  %v6068_v50 = vld [vmem:[%s10431_s1 + $0xf0] sm:$0xf] }
  0x26   : > { %v7416_v24 = vpack.c.b16 %v544_v18, %v543_v16  ;;  %v548_v25 = vunpack.c.l.b16 %v484_v19  ;;  %v7423_v31 = vpack.c.b16 %v546_v21, %v545_v20  ;;  %v487_v59 = vpack.c.bf16 %v455_v51, %v455_v51  ;;  %v457_v19 = vld [vmem:[%s7404_s30 + $0x60] sm:$0xff]  ;;  %v458_v20 = vld [vmem:[%s7404_s30 + $0x68] sm:$0xff]  ;;  %v459_v21 = vld [vmem:[%s7404_s30 + $0x70] sm:$0xff] }
  0x27   : > { %v591_v26 = vshrl.u32 %v7414_v22, 16  ;;  %v593_v27 = vshll.u32 %v7414_v22, 16  ;;  %v743_v49 = vrot.slane %v7414_v22, 1  ;;  %v488_v60 = vpack.c.bf16 %v456_v52, %v456_v52  ;;  %v6812_v51 = vld [vmem:[%s10431_s1 + $0xf4] sm:$0xf0] }
  0x28   : > { %v598_v28 = vshll.u32 %v7416_v24, 16  ;;  %v602_v29 = vshrl.u32 %v7416_v24, 16  ;;  %v744_v30 = vrot.slane %v7416_v24, 1  ;;  %v7425_v35 = vpack.c.b16 %v548_v25, %v547_v23  ;;  %v460_v23 = vld [vmem:[%s7404_s30 + $0x78] sm:$0xff] }
  0x29   : > { %v800_v32 = vrot.slane %v591_v26, 1  ;;  %v801_v33 = vrot.slane %v593_v27, 2  ;;  %v595_v34 = vrot.slane %v593_v27, 1  ;;  %v606_v42 = vshrl.u32 %v7423_v31, 16 }
  0x2a   : > { %v803_v36 = vrot.slane %v602_v29, 1  ;;  %v804_v37 = vrot.slane %v598_v28, 2  ;;  %v600_v38 = vrot.slane %v598_v28, 1  ;;  %769 = vrot.lane.b32.xlu2 %v744_v30, %s10448_s29  ;;  %v608_v44 = vshll.u32 %v7423_v31, 16 }
  0x2b   : > { %v802_v39 = vor.u32 %v801_v33, %v800_v32  ;;  %v596_v40 = vor.u32 %v595_v34, %v591_v26  ;;  %v613_v45 = vshll.u32 %v7425_v35, 16  ;;  %v617_v46 = vshrl.u32 %v7425_v35, 16 }
  0x2c   : > { %v805_v41 = vor.u32 %v804_v37, %v803_v36  ;;  %v807_v54 = vrot.slane %v606_v42, 1  ;;  %v808_v55 = vrot.slane %v608_v44, 2  ;;  %v745_v61 = vsel %vm10526_vm2, %v743_v49, %v744_v30  ;;  %v6796_v49 = vld [vmem:[%s10431_s1 + $0x74] sm:$0xf0] }
  0x2d   : > { %v601_v43 = vsel %vm589_vm0, %v596_v40, %v600_v38  ;;  %v810_v53 = vrot.slane %v617_v46, 1  ;;  %v811_v56 = vrot.slane %v613_v45, 2  ;;  %v604_v62 = vor.u32 %v602_v29, %v600_v38 }
  0x2e   : > { %v806_v48 = vsel %vm799_vm1, %v802_v39, %v805_v41  ;;  %710 = vrot.lane.b32.xlu0 %v601_v43, %s10446_s15  ;;  %v610_v63 = vrot.slane %v608_v44, 1  ;;  %v809_v0 = vor.u32 %v808_v55, %v807_v54  ;;  %v549_v2 = vunpack.c.l.b16 %v485_v57  ;;  %v6132_v55 = vld [vmem:[%s10431_s1 + $0x170] sm:$0xf] }
  0x2f   : > { %856 = vrot.lane.b32.xlu1 %v806_v48, %s10444_s16  ;;  %v812_v1 = vor.u32 %v811_v56, %v810_v53  ;;  %v550_v3 = vunpack.c.l.b16 %v486_v58  ;;  %v551_v4 = vunpack.c.l.b16 %v487_v59  ;;  %v552_v5 = vunpack.c.l.b16 %v488_v60  ;;  %v6004_v48 = vld [vmem:[%s10431_s1 + $0x70] sm:$0xf]  ;;  %v6828_v56 = vld [vmem:[%s10431_s1 + $0x174] sm:$0xf0]  ;;  %v5996_v59 = vld [vmem:[%s10431_s1 + $0x60] sm:$0xf] }
  0x30   : > { %v611_v6 = vor.u32 %v610_v63, %v606_v42  ;;  %v615_v7 = vrot.slane %v613_v45, 1  ;;  %v746_v9 = vrot.slane %v7423_v31, 1  ;;  %v747_v10 = vrot.slane %v7425_v35, 1  ;;  %v6794_v60 = vld [vmem:[%s10431_s1 + $0x64] sm:$0xf0] }
  0x31   : > { %v813_v8 = vsel %vm799_vm1, %v809_v0, %v812_v1  ;;  %v7448_v11 = vpack.c.b16 %v550_v3, %v549_v2  ;;  %v7450_v12 = vpack.c.b16 %v552_v5, %v551_v4  ;;  %v489_v29 = vpack.c.bf16 %v457_v19, %v457_v19  ;;  %v6810_v0 = vld [vmem:[%s10431_s1 + $0xe4] sm:$0xf0] }
  0x32   : > { %858 = vrot.lane.b32.xlu2 %v805_v41, %s10444_s16  ;;  %v616_v13 = vsel %vm589_vm0, %v611_v6, %v615_v7  ;;  %v748_v14 = vsel %vm10526_vm2, %v746_v9, %v747_v10  ;;  %v490_v30 = vpack.c.bf16 %v458_v20, %v458_v20  ;;  %v491_v32 = vpack.c.bf16 %v459_v21, %v459_v21  ;;  %v6826_v2 = vld [vmem:[%s10431_s1 + $0x164] sm:$0xf0] }
  0x33   : > { %v621_v15 = vshrl.u32 %v7448_v11, 16  ;;  %v623_v16 = vshll.u32 %v7448_v11, 16  ;;  %v628_v17 = vshll.u32 %v7450_v12, 16  ;;  %v632_v18 = vshrl.u32 %v7450_v12, 16 }
  0x34   : > { %v492_v33 = vpack.c.bf16 %v460_v23, %v460_v23  ;;  %v619_v34 = vor.u32 %v617_v46, %v615_v7  ;;  %v553_v39 = vunpack.c.l.b16 %v489_v29  ;;  %v554_v40 = vunpack.c.l.b16 %v490_v30 }
  0x35   : > { %v817_v25 = vrot.slane %v632_v18, 1  ;;  %v814_v26 = vrot.slane %v621_v15, 1  ;;  %v815_v27 = vrot.slane %v623_v16, 2  ;;  %v818_v28 = vrot.slane %v628_v17, 2 }
  0x36   : > { %767 = vrot.lane.b32.xlu0 %v745_v61, %s10448_s29  ;;  %v625_v36 = vrot.slane %v623_v16, 1  ;;  %v555_v41 = vunpack.c.l.b16 %v491_v32  ;;  %v556_v42 = vunpack.c.l.b16 %v492_v33  ;;  %v749_v43 = vrot.slane %v7448_v11, 1  ;;  %v6060_v61 = vld [vmem:[%s10431_s1 + $0xe0] sm:$0xf] }
  0x37   : > { %712 = vrot.lane.b32.xlu1 %v604_v62, %s10446_s15  ;;  %v816_v37 = vor.u32 %v815_v27, %v814_v26  ;;  %v819_v38 = vor.u32 %v818_v28, %v817_v25  ;;  %v750_v44 = vrot.slane %v7450_v12, 1  ;;  %v630_v47 = vrot.slane %v628_v17, 1  ;;  %v461_v16 = vld [vmem:[%s7404_s30 + $0x80] sm:$0xff]  ;;  %v462_v17 = vld [vmem:[%s7404_s30 + $0x88] sm:$0xff]  ;;  %v463_v27 = vld [vmem:[%s7404_s30 + $0x90] sm:$0xff] }
  0x38   : > { %v626_v45 = vor.u32 %v625_v36, %v621_v15  ;;  %v7485_v52 = vpack.c.b16 %v554_v40, %v553_v39  ;;  %v7487_v53 = vpack.c.b16 %v556_v42, %v555_v41  ;;  %v6005_v54 = vor.u32 %v6796_v49, %v6004_v48  ;;  %v464_v28 = vld [vmem:[%s7404_s30 + $0x98] sm:$0xff] }
  0x39   : > { %v820_v46 = vsel %vm799_vm1, %v816_v37, %v819_v38  ;;  %v6069_v57 = vor.u32 %v6812_v51, %v6068_v50  ;;  %v6133_v58 = vor.u32 %v6828_v56, %v6132_v55  ;;  %v5997_v63 = vor.u32 %v6794_v60, %v5996_v59  ;;  %v6792_v59 = vld [vmem:[%s10431_s1 + $0x54] sm:$0xf0]  ;;  %v6052_v60 = vld [vmem:[%s10431_s1 + $0xd0] sm:$0xf] }
  0x3a   : > { %860 = vrot.lane.b32.xlu2 %v813_v8, %s10444_s16  ;;  %v631_v62 = vsel %vm589_vm0, %v626_v45, %v630_v47  ;;  %1989 = vmatpush.bf16.msra.mxu0 %v6005_v54  ;;  %v751_v3 = vsel %vm10526_vm2, %v749_v43, %v750_v44  ;;  %v6061_v4 = vor.u32 %v6810_v0, %v6060_v61  ;;  %v636_v6 = vshrl.u32 %v7485_v52, 16  ;;  %v6824_v0 = vld [vmem:[%s10431_s1 + $0x154] sm:$0xf0] }
  0x3b   : > { %2068 = vmatpush.bf16.msra.mxu1 %v6069_v57  ;;  %2147 = vmatpush.bf16.msra.mxu2 %v6133_v58  ;;  %v638_v7 = vshll.u32 %v7485_v52, 16  ;;  %v643_v8 = vshll.u32 %v7487_v53, 16  ;;  %v647_v9 = vshrl.u32 %v7487_v53, 16  ;;  %v634_v19 = vor.u32 %v632_v18, %v630_v47  ;;  %v5988_v58 = vld [vmem:[%s10431_s1 + $0x50] sm:$0xf] }
  0x3c   : > { %v493_v21 = vpack.c.bf16 %v461_v16, %v461_v16  ;;  %v494_v26 = vpack.c.bf16 %v462_v17, %v462_v17  ;;  %v496_v18 = vpack.c.bf16 %v464_v28, %v464_v28  ;;  %v752_v37 = vrot.slane %v7485_v52, 1  ;;  %v467_v28 = vld [vmem:[%s7404_s30 + $0xb0] sm:$0xff] }
  0x3d   : > { %v825_v15 = vrot.slane %v643_v8, 2  ;;  %v640_v20 = vrot.slane %v638_v7, 1  ;;  %v645_v30 = vrot.slane %v643_v8, 1  ;;  %v5989_v61 = vor.u32 %v6792_v59, %v5988_v58  ;;  %v6790_v8 = vld [vmem:[%s10431_s1 + $0x44] sm:$0xf0] }
  0x3e   : > { %714 = vrot.lane.b32.xlu0 %v616_v13, %s10446_s15  ;;  %v821_v13 = vrot.slane %v636_v6, 1  ;;  %1990 = vmatpush.bf16.msra.mxu0 %v5997_v63  ;;  %v557_v32 = vunpack.c.l.b16 %v493_v21  ;;  %v558_v36 = vunpack.c.l.b16 %v494_v26  ;;  %v560_v41 = vunpack.c.l.b16 %v496_v18  ;;  %v6116_v63 = vld [vmem:[%s10431_s1 + $0x150] sm:$0xf]  ;;  %v6838_v21 = vld [vmem:[%s10431_s1 + $0x1c4] sm:$0xf0] }
  0x3f   : > { %771 = vrot.lane.b32.xlu1 %v748_v14, %s10448_s29  ;;  %v822_v14 = vrot.slane %v638_v7, 2  ;;  %2069 = vmatpush.bf16.msra.mxu1 %v6061_v4  ;;  %v641_v29 = vor.u32 %v640_v20, %v636_v6  ;;  %v649_v47 = vor.u32 %v647_v9, %v645_v30  ;;  %v6840_v4 = vld [vmem:[%s10431_s1 + $0x1d4] sm:$0xf0]  ;;  %v5980_v7 = vld [vmem:[%s10431_s1 + $0x40] sm:$0xf]  ;;  %v466_v26 = vld [vmem:[%s7404_s30 + $0xa8] sm:$0xff] }
  0x40   : > { %v7536_v42 = vpack.c.b16 %v558_v36, %v557_v32  ;;  %v6172_v20 = vld [vmem:[%s10431_s1 + $0x1c0] sm:$0xf]  ;;  %v499_v32 = vpack.c.bf16 %v467_v28, %v467_v28  ;;  %v6084_v28 = vld [vmem:[%s10431_s1 + $0x110] sm:$0xf] }
  0x41   : > { %v823_v23 = vor.u32 %v822_v14, %v821_v13  ;;  %v646_v39 = vsel %vm589_vm0, %v641_v29, %v645_v30  ;;  %v6806_v13 = vld [vmem:[%s10431_s1 + $0xc4] sm:$0xf0]  ;;  %v6108_v14 = vld [vmem:[%s10431_s1 + $0x140] sm:$0xf]  ;;  %v468_v29 = vld [vmem:[%s7404_s30 + $0xb8] sm:$0xff]  ;;  %v498_v30 = vpack.c.bf16 %v466_v26, %v466_v26 }
  0x42   : > { %862 = vrot.lane.b32.xlu2 %v812_v1, %s10444_s16  ;;  %v6124_v1 = vld [vmem:[%s10431_s1 + $0x160] sm:$0xf]  ;;  %v653_v45 = vshll.u32 %v7536_v42, 16  ;;  %v755_v54 = vrot.slane %v7536_v42, 1  ;;  %1991 = vmatpush.bf16.msra.mxu0 %v5989_v61  ;;  %v563_v36 = vunpack.c.l.b16 %v499_v32  ;;  %v6148_v32 = vld [vmem:[%s10431_s1 + $0x190] sm:$0xf] }
  0x43   : > { %v6125_v5 = vor.u32 %v6826_v2, %v6124_v1  ;;  %v6117_v2 = vor.u32 %v6824_v0, %v6116_v63  ;;  %v562_v18 = vunpack.c.l.b16 %v498_v30  ;;  %v6786_v63 = vld [vmem:[%s10431_s1 + $0x24] sm:$0xf0]  ;;  %v6028_v0 = vld [vmem:[%s10431_s1 + $0xa0] sm:$0xf]  ;;  %v6816_v30 = vld [vmem:[%s10431_s1 + $0x114] sm:$0xf0] }
  0x44   : > { %v655_v48 = vrot.slane %v653_v45, 1 }
  0x45   : > { %2148 = vmatpush.bf16.msra.mxu2 %v6125_v5 }
  0x46   : > { %716 = vrot.lane.b32.xlu0 %v619_v34, %s10446_s15  ;;  %v495_v34 = vpack.c.bf16 %v463_v27, %v463_v27 }
  0x47   : > { %773 = vrot.lane.b32.xlu1 %v747_v10, %s10448_s29  ;;  %v824_v10 = vrot.slane %v647_v9, 1  ;;  %v6044_v9 = vld [vmem:[%s10431_s1 + $0xc0] sm:$0xf]  ;;  %s7232_s29 = scalar_lea.hbm %s10443_s13, 16 }
  0x48   : > { %v559_v40 = vunpack.c.l.b16 %v495_v34  ;;  %v6045_v17 = vor.u32 %v6806_v13, %v6044_v9  ;;  %v6834_v9 = vld [vmem:[%s10431_s1 + $0x1a4] sm:$0xf0] }
  0x49   : > { %v826_v25 = vor.u32 %v825_v15, %v824_v10  ;;  %2149 = vmatpush.bf16.msra.mxu2 %v6117_v2  ;;  %v5981_v10 = vor.u32 %v6790_v8, %v5980_v7  ;;  %v6822_v15 = vld [vmem:[%s10431_s1 + $0x144] sm:$0xf0]  ;;  %v6156_v8 = vld [vmem:[%s10431_s1 + $0x1a0] sm:$0xf] }
  0x4a   : > { %864 = vrot.lane.b32.xlu2 %v820_v46, %s10544_s24  ;;  %v651_v46 = vshrl.u32 %v7536_v42, 16  ;;  %v6802_v2 = vld [vmem:[%s10431_s1 + $0xa4] sm:$0xf0] }
  0x4b   : > { %v827_v33 = vsel %vm799_vm1, %v823_v23, %v826_v25  ;;  %v6173_v23 = vor.u32 %v6838_v21, %v6172_v20  ;;  %1992 = vmatpush.bf16.msra.mxu0 %v5981_v10  ;;  %v5956_v20 = vld [vmem:[%s10431_s1 + $0x10] sm:$0xf]  ;;  %v6784_v21 = vld [vmem:[%s10431_s1 + $0x14] sm:$0xf0] }
  0x4c   : > { %v656_v50 = vor.u32 %v655_v48, %v651_v46  ;;  %v6100_v48 = vld [vmem:[%s10431_s1 + $0x130] sm:$0xf]  ;;  %v5957_v26 = vor.u32 %v6784_v21, %v5956_v20 }
  0x4e   : > { %718 = vrot.lane.b32.xlu0 %v631_v62, %s10545_s27  ;;  %v6808_v62 = vld [vmem:[%s10431_s1 + $0xd4] sm:$0xf0] }
  0x4f   : > { %775 = vrot.lane.b32.xlu1 %v751_v3, %s10546_s14  ;;  %v6053_v1 = vor.u32 %v6808_v62, %v6052_v60  ;;  %v6180_v3 = vld [vmem:[%s10431_s1 + $0x1d0] sm:$0xf]  ;;  %v5964_v62 = vld [vmem:[%s10431_s1 + $0x20] sm:$0xf] }
  0x50   : > { %v6181_v6 = vor.u32 %v6840_v4, %v6180_v3  ;;  %v6092_v3 = vld [vmem:[%s10431_s1 + $0x120] sm:$0xf]  ;;  %v6818_v4 = vld [vmem:[%s10431_s1 + $0x124] sm:$0xf0] }
  0x51   : > { %2070 = vmatpush.bf16.msra.mxu1 %v6053_v1  ;;  %v5965_v1 = vor.u32 %v6786_v63, %v5964_v62  ;;  %v6093_v7 = vor.u32 %v6818_v4, %v6092_v3  ;;  %v889_v4 = vrot.slane %v7414_v22, 2 }
  0x52   : > { %866 = vrot.lane.b32.xlu2 %v819_v38, %s10544_s24  ;;  %v753_v38 = vrot.slane %v7487_v53, 1  ;;  %2228 = vmatpush.bf16.msra.mxu3 %v6181_v6  ;;  %v6029_v6 = vor.u32 %v6802_v2, %v6028_v0  ;;  %v890_v2 = vrot.slane %v7416_v24, 2 }
  0x54   : > { %v754_v43 = vsel %vm10526_vm2, %v752_v37, %v753_v38 }
  0x55   : > { %2071 = vmatpush.bf16.msra.mxu1 %v6045_v17 }
  0x56   : > { %720 = vrot.lane.b32.xlu0 %v634_v19, %s10545_s27  ;;  %v6109_v19 = vor.u32 %v6822_v15, %v6108_v14  ;;  %2229 = vmatpush.bf16.msra.mxu3 %v6173_v23  ;;  %v6157_v14 = vor.u32 %v6834_v9, %v6156_v8  ;;  %v6020_v23 = vld [vmem:[%s10431_s1 + $0x90] sm:$0xf] }
  0x57   : > { %777 = vrot.lane.b32.xlu1 %v750_v44, %s10546_s14  ;;  %v7541_v44 = vpack.c.b16 %v560_v41, %v559_v40  ;;  %v6036_v40 = vld [vmem:[%s10431_s1 + $0xb0] sm:$0xf] }
  0x58   : > { %2150 = vmatpush.bf16.msra.mxu2 %v6109_v19 }
  0x59   : > { %v658_v49 = vshll.u32 %v7541_v44, 16  ;;  %v756_v55 = vrot.slane %v7541_v44, 1  ;;  %v662_v5 = vshrl.u32 %v7541_v44, 16 }
  0x5a   : > { %868 = vrot.lane.b32.xlu2 %v827_v33, %s10544_s24  ;;  %v500_v33 = vpack.c.bf16 %v468_v29, %v468_v29 }
  0x5b   : > { %v660_v51 = vrot.slane %v658_v49, 1  ;;  %v757_v57 = vsel %vm10526_vm2, %v755_v54, %v756_v55  ;;  %v832_v62 = vrot.slane %v658_v49, 2  ;;  %v470_v49 = vld [vmem:[%s7404_s30 + $0xc8] sm:$0xff] }
  0x5c   : > { %v564_v37 = vunpack.c.l.b16 %v500_v33  ;;  %v6832_v33 = vld [vmem:[%s10431_s1 + $0x194] sm:$0xf0] }
  0x5d   : > { %v661_v56 = vsel %vm589_vm0, %v656_v50, %v660_v51  ;;  %v664_v16 = vor.u32 %v662_v5, %v660_v51  ;;  %v6820_v50 = vld [vmem:[%s10431_s1 + $0x134] sm:$0xf0] }
  0x5e   : > { %722 = vrot.lane.b32.xlu0 %v646_v39, %s10545_s27  ;;  %v6788_v39 = vld [vmem:[%s10431_s1 + $0x34] sm:$0xf0]  ;;  %v7638_v51 = vpack.c.b16 %v564_v37, %v563_v36  ;;  %v6149_v36 = vor.u32 %v6832_v33, %v6148_v32  ;;  %v831_v37 = vrot.slane %v662_v5, 1  ;;  %v6012_v5 = vld [vmem:[%s10431_s1 + $0x80] sm:$0xf] }
  0x5f   : > { %779 = vrot.lane.b32.xlu1 %v754_v43, %s10546_s14 }
  0x60   : > { %v673_v61 = vshll.u32 %v7638_v51, 16  ;;  %v759_v13 = vrot.slane %v7638_v51, 1  ;;  %v677_v63 = vshrl.u32 %v7638_v51, 16 }
  0x62   : > { %870 = vrot.lane.b32.xlu2 %v826_v25, %s10544_s24  ;;  %v465_v25 = vld [vmem:[%s7404_s30 + $0xa0] sm:$0xff] }
  0x63   : > { %v497_v27 = vpack.c.bf16 %v465_v25, %v465_v25 }
  0x65   : > { %v561_v34 = vunpack.c.l.b16 %v497_v27  ;;  %v6800_v27 = vld [vmem:[%s10431_s1 + $0x94] sm:$0xf0] }
  0x66   : > { %724 = vrot.lane.b32.xlu0 %v649_v47, %s10545_s27  ;;  %v6804_v47 = vld [vmem:[%s10431_s1 + $0xb4] sm:$0xf0]  ;;  %v6021_v29 = vor.u32 %v6800_v27, %v6020_v23  ;;  %v1049_v23 = vrot.slane %v890_v2, 2  ;;  %v6006_v27 = vld [vmem:[%s10431_s1 + $0x78] sm:$0xf0] }
  0x67   : > { %781 = vrot.lane.b32.xlu1 %v753_v38, %s10546_s14  ;;  %v5972_v38 = vld [vmem:[%s10431_s1 + $0x30] sm:$0xf]  ;;  %v7627_v41 = vpack.c.b16 %v562_v18, %v561_v34  ;;  %v6037_v54 = vor.u32 %v6804_v47, %v6036_v40  ;;  %v6085_v18 = vor.u32 %v6816_v30, %v6084_v28  ;;  %v828_v40 = vrot.slane %v651_v46, 1  ;;  %v6798_v47 = vld [vmem:[%s10431_s1 + $0x84] sm:$0xf0] }
  0x68   : > { %v5973_v43 = vor.u32 %v6788_v39, %v5972_v38  ;;  %v5948_v38 = vld [vmem:[%s10431_s1] sm:$0xf]  ;;  %v6782_v39 = vld [vmem:[%s10431_s1 + $0x4] sm:$0xf0] }
  0x69   : > { %v666_v59 = vshrl.u32 %v7627_v41, 16  ;;  %v668_v60 = vshll.u32 %v7627_v41, 16  ;;  %2072 = vmatpush.bf16.msra.mxu1 %v6037_v54  ;;  %v758_v10 = vrot.slane %v7627_v41, 1  ;;  %v6814_v46 = vld [vmem:[%s10431_s1 + $0x104] sm:$0xf0] }
  0x6a   : > { %1993 = vmatpush.bf16.msra.mxu0 %v5973_v43  ;;  %v5949_v43 = vor.u32 %v6782_v39, %v5948_v38  ;;  %v6140_v54 = vld [vmem:[%s10431_s1 + $0x180] sm:$0xf] }
  0x6b   : > { %v670_v15 = vrot.slane %v668_v60, 1  ;;  %v760_v19 = vsel %vm10526_vm2, %v758_v10, %v759_v13  ;;  %v502_v10 = vpack.c.bf16 %v470_v49, %v470_v49 }
  0x6d   : > { %2073 = vmatpush.bf16.msra.mxu1 %v6029_v6  ;;  %v671_v25 = vor.u32 %v670_v15, %v666_v59  ;;  %v469_v6 = vld [vmem:[%s7404_s30 + $0xc0] sm:$0xff]  ;;  %v471_v15 = vld [vmem:[%s7404_s30 + $0xd0] sm:$0xff]  ;;  %v566_v28 = vunpack.c.l.b16 %v502_v10 }
  0x6e   : > { %726 = vrot.lane.b32.xlu0 %v661_v56, %s10545_s27  ;;  %v6164_v56 = vld [vmem:[%s10431_s1 + $0x1b0] sm:$0xf]  ;;  %1994 = vmatpush.bf16.msra.mxu0 %v5965_v1  ;;  %v833_v1 = vor.u32 %v832_v62, %v831_v37  ;;  %v501_v9 = vpack.c.bf16 %v469_v6, %v469_v6  ;;  %v838_v37 = vrot.slane %v677_v63, 1 }
  0x6f   : > { %783 = vrot.lane.b32.xlu1 %v757_v57, %s10546_s14  ;;  %v6836_v57 = vld [vmem:[%s10431_s1 + $0x1b4] sm:$0xf0] }
  0x70   : > { %v6165_v58 = vor.u32 %v6836_v57, %v6164_v56  ;;  %v565_v21 = vunpack.c.l.b16 %v501_v9 }
  0x71   : > { %2074 = vmatpush.bf16.msra.mxu1 %v6021_v29  ;;  %v891_v29 = vsel %vm888_vm5, %v889_v4, %v890_v2 }
  0x72   : > { %2230 = vmatpush.bf16.msra.mxu3 %v6165_v58  ;;  %1995 = vmatpush.bf16.msra.mxu0 %v5957_v26  ;;  %v829_v58 = vrot.slane %v653_v45, 2  ;;  %v6795_v26 = vld [vmem:[%s10431_s1 + $0x74] sm:$0xf]  ;;  %v1046_v38 = vrot.slane %v891_v29, 2 }
  0x73   : > { %v6009_v30 = vor.u32 %v6795_v26, %v6006_v27 }
  0x74   : > { %v830_v0 = vor.u32 %v829_v58, %v828_v40 }
  0x76   : > { %728 = vrot.lane.b32.xlu0 %v664_v16, %s10545_s27  ;;  %v675_v16 = vrot.slane %v673_v61, 1  ;;  %2231 = vmatpush.bf16.msra.mxu3 %v6157_v14  ;;  %v834_v8 = vsel %vm799_vm1, %v830_v0, %v833_v1 }
  0x77   : > { %785 = vrot.lane.b32.xlu1 %v756_v55, %s10546_s14  ;;  %v6101_v55 = vor.u32 %v6820_v50, %v6100_v48  ;;  %v6076_v48 = vld [vmem:[%s10431_s1 + $0x100] sm:$0xf]  ;;  %v6013_v50 = vor.u32 %v6798_v47, %v6012_v5  ;;  %1996 = vmatpush.bf16.msra.mxu0 %v5949_v43  ;;  %v835_v5 = vrot.slane %v666_v59, 1  ;;  %v836_v47 = vrot.slane %v668_v60, 2 }
  0x78   : > { %v676_v34 = vsel %vm589_vm0, %v671_v25, %v675_v16  ;;  %v6077_v56 = vor.u32 %v6814_v46, %v6076_v48  ;;  %v679_v45 = vor.u32 %v677_v63, %v675_v16  ;;  %872 = vrot.lane.b32.xlu2 %v834_v8, %s10544_s24  ;;  %v839_v48 = vrot.slane %v673_v61, 2 }
  0x79   : > { %2151 = vmatpush.bf16.msra.mxu2 %v6101_v55  ;;  %v6830_v55 = vld [vmem:[%s10431_s1 + $0x184] sm:$0xf0]  ;;  %2075 = vmatpush.bf16.msra.mxu1 %v6013_v50  ;;  %v837_v58 = vor.u32 %v836_v47, %v835_v5 }
  0x7a   : > { %2232 = vmatpush.bf16.msra.mxu3 %v6149_v36  ;;  %v6141_v57 = vor.u32 %v6830_v55, %v6140_v54  ;;  %v7765_v36 = vpack.c.b16 %v566_v28, %v565_v21  ;;  %v7788_v62 = vor.u32 %v839_v48, %v838_v37  ;;  %v6811_v21 = vld [vmem:[%s10431_s1 + $0xf4] sm:$0xf] }
  0x7c   : > { %v683_v50 = vshll.u32 %v7765_v36, 16  ;;  %v681_v59 = vshrl.u32 %v7765_v36, 16 }
  0x7d   : > { %2152 = vmatpush.bf16.msra.mxu2 %v6093_v7 }
  0x7e   : > { %730 = vrot.lane.b32.xlu0 %v676_v34, %s10545_s27  ;;  %2233 = vmatpush.bf16.msra.mxu3 %v6141_v57  ;;  %v892_v34 = vrot.slane %v7423_v31, 2  ;;  %v685_v4 = vrot.slane %v683_v50, 1 }
  0x7f   : > { %787 = vrot.lane.b32.xlu1 %v760_v19, %s10546_s14  ;;  %v503_v19 = vpack.c.bf16 %v471_v15, %v471_v15  ;;  %v6182_v15 = vld [vmem:[%s10431_s1 + $0x1d8] sm:$0xf0] }
  0x80   : > { %874 = vrot.lane.b32.xlu2 %v833_v1, %s10544_s24  ;;  %v841_v1 = vsel %vm799_vm1, %v837_v58, %v7788_v62 }
  0x81   : > { %2153 = vmatpush.bf16.msra.mxu2 %v6085_v18  ;;  %v567_v32 = vunpack.c.l.b16 %v503_v19  ;;  %v893_v18 = vrot.slane %v7425_v35, 2 }
  0x82   : > { %2305 = vmatpush.bf16.msrb.mxu3 %v6009_v30 }
  0x84   : > { %v7679_v17 = vpop.permute.xlu2 %769 }
  0x85   : > { %2154 = vmatpush.bf16.msra.mxu2 %v6077_v56  ;;  %v894_v56 = vsel %vm888_vm5, %v892_v34, %v893_v18 }
  0x86   : > { %732 = vrot.lane.b32.xlu0 %v679_v45, %s10545_s27  ;;  %v1052_v48 = vrot.slane %v894_v56, 2  ;;  %v761_v56 = vrot.slane %v7765_v36, 1 }
  0x87   : > { %789 = vrot.lane.b32.xlu1 %v759_v13, %s10546_s14  ;;  %v472_v13 = vld [vmem:[%s7404_s30 + $0xd8] sm:$0xff] }
  0x88   : > { %v504_v20 = vpack.c.bf16 %v472_v13, %v472_v13  ;;  %876 = vrot.lane.b32.xlu2 %v841_v1, %s10544_s24 }
  0x8a   : > { %v568_v33 = vunpack.c.l.b16 %v504_v20 }
  0x8c   : > { %v859_v3 = vpop.permute.xlu2 %858  ;;  %v7769_v43 = vpack.c.b16 %v568_v33, %v567_v32 }
  0x8d   : > { %v983_v7 = vsel %vm10522_vm3, %v7679_v17, %v859_v3 }
  0x8e   : > { %v1048_v25 = vrot.slane %v983_v7, 4  ;;  %v688_v45 = vshll.u32 %v7769_v43, 16 }
  0x90   : > { %v1123_v39 = vsel %vm10527_vm7, %v1048_v25, %v1049_v23  ;;  %v1126_v40 = vsel %vm888_vm5, %v1049_v23, %v1048_v25  ;;  %v1131_v54 = vsel %vm10523_vm6, %v1048_v25, %v1049_v23  ;;  %v6070_v23 = vld [vmem:[%s10431_s1 + $0xf8] sm:$0xf0]  ;;  %878 = vrot.lane.b32.xlu2 %v7788_v62, %s10544_s24 }
  0x94   : > { %v861_v29 = vpop.permute.xlu2 %860 }
  0xa0   : > { %v711_v14 = vpop.permute.xlu0 %710 }
  0xa1   : > { %v857_v16 = vpop.permute.xlu1 %856  ;;  %v915_v46 = vsel %vm913_vm4, %v7414_v22, %v711_v14 }
  0xa8   : > { %v768_v55 = vpop.permute.xlu0 %767 }
  0xa9   : > { %v713_v60 = vpop.permute.xlu1 %712  ;;  %v948_v57 = vsel %vm10529_vm8, %v711_v14, %v768_v55  ;;  %v981_v61 = vsel %vm10522_vm3, %v768_v55, %v857_v16  ;;  %v6839_v14 = vld [vmem:[%s10431_s1 + $0x1d4] sm:$0xf] }
  0xaa   : > { %v917_v22 = vsel %vm913_vm4, %v7416_v24, %v713_v60  ;;  %v950_v63 = vsel %vm10529_vm8, %v713_v60, %v7679_v17  ;;  %v1044_v0 = vrot.slane %v948_v57, 6  ;;  %v1045_v2 = vrot.slane %v981_v61, 4 }
  0xab   : > { %v1047_v3 = vrot.slane %v950_v63, 6  ;;  %v6185_v37 = vor.u32 %v6839_v14, %v6182_v15 }
  0xac   : > { %v1094_v6 = vsel %vm10523_vm6, %v915_v46, %v1044_v0  ;;  %v1098_v49 = vsel %vm10527_vm7, %v1045_v2, %v1046_v38  ;;  %v1102_v24 = vsel %vm10524_vm10, %v915_v46, %v1044_v0  ;;  %v1104_v7 = vsel %vm888_vm5, %v1046_v38, %v1045_v2 }
  0xad   : > { %v1120_v17 = vsel %vm10523_vm6, %v917_v22, %v1047_v3  ;;  %v1125_v8 = vsel %vm10524_vm10, %v917_v22, %v1047_v3  ;;  %v1130_v9 = vsel %vm10527_vm7, %v917_v22, %v1047_v3  ;;  %v1100_v10 = vsel %vm1099_vm9, %v1094_v6, %v1098_v49  ;;  %2544 = vmatpush.bf16.msrb.mxu2 %v6185_v37 }
  0xae   : > { %v1124_v13 = vsel %vm1099_vm9, %v1120_v17, %v1123_v39  ;;  %v1127_v16 = vsel %vm1105_vm11, %v1125_v8, %v1126_v40  ;;  %v1132_v19 = vsel %vm1099_vm9, %v1131_v54, %v1130_v9  ;;  %v1106_v20 = vsel %vm1105_vm11, %v1102_v24, %v1104_v7  ;;  %1460 = vst [vmem:[#allocation1] ss:$4 sm:$0xff] %v1100_v10  ;;  %v6827_v39 = vld [vmem:[%s10431_s1 + $0x174] sm:$0xf]  ;;  %v6134_v40 = vld [vmem:[%s10431_s1 + $0x178] sm:$0xf0] }
  0xaf   : > { %v1129_v25 = vrot.slane %v1127_v16, 2  ;;  %v1134_v26 = vrot.slane %v1132_v19, 4  ;;  %1471 = vst [vmem:[#allocation1 + $0x20] ss:$4 sm:$0xff] %v1124_v13  ;;  %v1108_v27 = vrot.slane %v1106_v20, 2  ;;  %v1109_v28 = vsel %vm10527_vm7, %v915_v46, %v1044_v0  ;;  %v863_v13 = vpop.permute.xlu2 %862 }
  0xb0   : > { %v1110_v30 = vsel %vm10523_vm6, %v1045_v2, %v1046_v38  ;;  %v1114_v32 = vsel %vm888_vm5, %v1044_v0, %v915_v46  ;;  %v1115_v33 = vsel %vm10524_vm10, %v1045_v2, %v1046_v38  ;;  %v715_v34 = vpop.permute.xlu0 %714  ;;  %v6073_v38 = vor.u32 %v6811_v21, %v6070_v23  ;;  %v6793_v8 = vld [vmem:[%s10431_s1 + $0x64] sm:$0xf]  ;;  %v5998_v9 = vld [vmem:[%s10431_s1 + $0x68] sm:$0xf0] }
  0xb1   : > { %1474 = vst [vmem:[#allocation1 + $0x21] ss:$4 sm:$0xff] %v1129_v25  ;;  %v1111_v5 = vsel %vm1099_vm9, %v1110_v30, %v1109_v28  ;;  %v1116_v47 = vsel %vm1105_vm11, %v1115_v33, %v1114_v32  ;;  %v772_v46 = vpop.permute.xlu1 %771  ;;  %v919_v58 = vsel %vm913_vm4, %v7423_v31, %v715_v34  ;;  %v6137_v63 = vor.u32 %v6827_v39, %v6134_v40 }
  0xb2   : > { %1477 = vst [vmem:[#allocation1 + $0x22] ss:$4 sm:$0xff] %v1134_v26  ;;  %v1113_v54 = vrot.slane %v1111_v5, 4  ;;  %v1118_v55 = vrot.slane %v1116_v47, 6  ;;  %v985_v60 = vsel %vm10522_vm3, %v772_v46, %v861_v29  ;;  %v952_v57 = vsel %vm10529_vm8, %v715_v34, %v772_v46  ;;  %2384 = vmatpush.bf16.msrb.mxu0 %v6073_v38 }
  0xb3   : > { %1463 = vst [vmem:[#allocation1 + $0x1] ss:$4 sm:$0xff] %v1108_v27  ;;  %v1051_v61 = vrot.slane %v985_v60, 4  ;;  %v1050_v22 = vrot.slane %v952_v57, 6  ;;  %v762_v0 = vrot.slane %v7769_v43, 1  ;;  %v686_v2 = vor.u32 %v685_v4, %v681_v59  ;;  %2463 = vmatpush.bf16.msrb.mxu1 %v6137_v63 }
  0xb4   : > { %1466 = vst [vmem:[#allocation1 + $0x2] ss:$4 sm:$0xff] %v1113_v54  ;;  %v690_v3 = vrot.slane %v688_v45, 1  ;;  %v895_v16 = vrot.slane %v7448_v11, 2  ;;  %v896_v23 = vrot.slane %v7450_v12, 2  ;;  %v692_v25 = vshrl.u32 %v7769_v43, 16 }
  0xb5   : > { %1469 = vst [vmem:[#allocation1 + $0x3] ss:$4 sm:$0xff] %v1118_v55  ;;  %v1139_v1 = vsel %vm10527_vm7, %v1051_v61, %v1052_v48  ;;  %v1142_v6 = vsel %vm888_vm5, %v1052_v48, %v1051_v61  ;;  %v1147_v31 = vsel %vm10523_vm6, %v1051_v61, %v1052_v48  ;;  %v1152_v49 = vsel %vm10524_vm10, %v1051_v61, %v1052_v48 }
  0xb6   : > { %v1136_v24 = vsel %vm10523_vm6, %v919_v58, %v1050_v22  ;;  %v1141_v7 = vsel %vm10524_vm10, %v919_v58, %v1050_v22  ;;  %v1146_v17 = vsel %vm10527_vm7, %v919_v58, %v1050_v22  ;;  %v1151_v4 = vsel %vm888_vm5, %v1050_v22, %v919_v58  ;;  %v6809_v58 = vld [vmem:[%s10431_s1 + $0xe4] sm:$0xf]  ;;  %v6062_v22 = vld [vmem:[%s10431_s1 + $0xe8] sm:$0xf0] }
  0xb7   : > { %v1140_v10 = vsel %vm1099_vm9, %v1136_v24, %v1139_v1  ;;  %v1143_v14 = vsel %vm1105_vm11, %v1141_v7, %v1142_v6  ;;  %v1148_v15 = vsel %vm1099_vm9, %v1147_v31, %v1146_v17  ;;  %v1153_v19 = vsel %vm1105_vm11, %v1152_v49, %v1151_v4 }
  0xb8   : > { %1479 = vst [vmem:[#allocation1 + $0x23] ss:$4 sm:$0xff] %v1140_v10  ;;  %v717_v20 = vpop.permute.xlu0 %716  ;;  %v763_v21 = vsel %vm10526_vm2, %v761_v56, %v762_v0  ;;  %v1055_v26 = vrot.slane %v893_v18, 2  ;;  %v691_v28 = vsel %vm589_vm0, %v686_v2, %v690_v3  ;;  %v6001_v29 = vor.u32 %v6793_v8, %v5998_v9  ;;  %v865_v2 = vpop.permute.xlu2 %864  ;;  %v6825_v10 = vld [vmem:[%s10431_s1 + $0x164] sm:$0xf] }
  0xb9   : > { %v774_v27 = vpop.permute.xlu1 %773  ;;  %791 = vrot.lane.b32.xlu1 %v763_v21, %s10546_s14  ;;  %v1145_v30 = vrot.slane %v1143_v14, 2  ;;  %v1150_v32 = vrot.slane %v1148_v15, 4  ;;  %734 = vrot.lane.b32.xlu0 %v691_v28, %s10545_s27  ;;  %v1155_v62 = vrot.slane %v1153_v19, 6  ;;  %v921_v39 = vsel %vm913_vm4, %v7425_v35, %v717_v20 }
  0xba   : > { %v987_v33 = vsel %vm10522_vm3, %v774_v27, %v863_v13  ;;  %v954_v34 = vsel %vm10529_vm8, %v717_v20, %v774_v27  ;;  %2306 = vmatpush.bf16.msrb.mxu3 %v6001_v29  ;;  %v897_v47 = vsel %vm888_vm5, %v895_v16, %v896_v23  ;;  %v694_v48 = vor.u32 %v692_v25, %v690_v3  ;;  %v6126_v13 = vld [vmem:[%s10431_s1 + $0x168] sm:$0xf0]  ;;  %v473_v27 = vld [vmem:[%s7404_s30 + $0xe0] sm:$0xff] }
  0xbb   : > { %v1054_v37 = vrot.slane %v987_v33, 4  ;;  %v1053_v18 = vrot.slane %v954_v34, 6  ;;  %v6065_v3 = vor.u32 %v6809_v58, %v6062_v22  ;;  %v1058_v6 = vrot.slane %v897_v47, 2  ;;  %v475_v47 = vld [vmem:[%s7404_s30 + $0xf0] sm:$0xff] }
  0xbc   : > { %v7881_v40 = vld.sshfl [vmem:[#allocation1] sm:$0xff pattern:$0x73625140]  ;;  %v7883_v5 = vld.sshfl [vmem:[#allocation1 + $0x8] sm:$0xff pattern:$0x73625140] }
  0xbd   : > { %v7890_v46 = vld.sshfl [vmem:[#allocation1 + $0x10] sm:$0xff pattern:$0x73625140]  ;;  %v7892_v38 = vld.sshfl [vmem:[#allocation1 + $0x18] sm:$0xff pattern:$0x73625140]  ;;  %1997 = vmatmul.bf16.vlgmr.msra.gmra.mxu0 %v7881_v40  ;;  %2076 = vmatmul.bf16.vlgmr.msra.gmra.mxu1 %v7883_v5  ;;  %v1160_v35 = vsel %vm10527_vm7, %v1054_v37, %v1055_v26  ;;  %v1163_v54 = vsel %vm888_vm5, %v1055_v26, %v1054_v37  ;;  %v1168_v55 = vsel %vm10523_vm6, %v1054_v37, %v1055_v26 }
  0xbe   : > { %1489 = vst [vmem:[#allocation1] ss:$4 sm:$0xff] %v1145_v30  ;;  %2155 = vmatmul.bf16.vlgmr.msra.gmra.mxu2 %v7890_v46  ;;  %6186 = vmatmul.msk.bf16.vlgmr.msra.gmra.mxu3 %vm913_vm4, %v7892_v38  ;;  %v1157_v60 = vsel %vm10523_vm6, %v921_v39, %v1053_v18  ;;  %v1162_v57 = vsel %vm10524_vm10, %v921_v39, %v1053_v18  ;;  %v842_v16 = vrot.slane %v681_v59, 1  ;;  %v845_v28 = vrot.slane %v692_v25, 1  ;;  %v6837_v25 = vld [vmem:[%s10431_s1 + $0x1c4] sm:$0xf] }
  0xbf   : > { %v1167_v61 = vsel %vm10527_vm7, %v921_v39, %v1053_v18  ;;  %v1164_v63 = vsel %vm1105_vm11, %v1162_v57, %v1163_v54  ;;  %v1161_v1 = vsel %vm1099_vm9, %v1157_v60, %v1160_v35  ;;  %v7914_v49 = vld.sshfl [vmem:[#allocation1 + $0x20] sm:$0xff pattern:$0x73625140]  ;;  %v7916_v24 = vld.sshfl [vmem:[#allocation1 + $0x28] sm:$0xff pattern:$0x73625140]  ;;  %2385 = vmatpush.bf16.msrb.mxu0 %v6065_v3  ;;  %v6129_v26 = vor.u32 %v6825_v10, %v6126_v13 }
  0xc0   : > { %v1169_v56 = vsel %vm1099_vm9, %v1168_v55, %v1167_v61  ;;  %v719_v31 = vpop.permute.xlu0 %718  ;;  %v7918_v7 = vld.sshfl [vmem:[#allocation1 + $0x30] sm:$0xff pattern:$0x73625140]  ;;  %v7920_v17 = vld.sshfl [vmem:[#allocation1 + $0x38] sm:$0xff pattern:$0x73625140]  ;;  %v505_v30 = vpack.c.bf16 %v473_v27, %v473_v27  ;;  %v867_v60 = vpop.permute.xlu2 %866 }
  0xc1   : > { %1491 = vst [vmem:[#allocation1 + $0x1] ss:$4 sm:$0xff] %v1150_v32  ;;  %v1166_v4 = vrot.slane %v1164_v63, 2  ;;  %v1171_v8 = vrot.slane %v1169_v56, 4  ;;  %v776_v9 = vpop.permute.xlu1 %775  ;;  %793 = vrot.lane.b32.xlu1 %v762_v0, %s10546_s14  ;;  %736 = vrot.lane.b32.xlu0 %v694_v48, %s10545_s27  ;;  %v843_v0 = vrot.slane %v683_v50, 2  ;;  %v923_v20 = vsel %vm913_vm4, %v7448_v11, %v719_v31  ;;  %v474_v18 = vld [vmem:[%s7404_s30 + $0xe8] sm:$0xff] }
  0xc2   : > { %1493 = vst [vmem:[#allocation1 + $0x2] ss:$4 sm:$0xff] %v1155_v62  ;;  %v989_v14 = vsel %vm10522_vm3, %v776_v9, %v865_v2  ;;  %v956_v15 = vsel %vm10529_vm8, %v719_v31, %v776_v9  ;;  %v846_v59 = vrot.slane %v688_v45, 2  ;;  %2464 = vmatpush.bf16.msrb.mxu1 %v6129_v26  ;;  %v6174_v39 = vld [vmem:[%s10431_s1 + $0x1c8] sm:$0xf0]  ;;  %v476_v57 = vld [vmem:[%s7404_s30 + $0xf8] sm:$0xff]  ;;  %v507_v31 = vpack.c.bf16 %v475_v47, %v475_v47 }
  0xc3   : > { %1494 = vst [vmem:[#allocation1 + $0x3] ss:$4 sm:$0xff] %v1161_v1  ;;  %v1057_v19 = vrot.slane %v989_v14, 4  ;;  %v1056_v21 = vrot.slane %v956_v15, 6  ;;  %v844_v29 = vor.u32 %v843_v0, %v842_v16  ;;  %v1061_v22 = vrot.slane %v896_v23, 2  ;;  %s7279_s30 = smov 120  }
  0xc4   : > { %1496 = vst [vmem:[#allocation1 + $0x20] ss:$4 sm:$0xff] %v1166_v4  ;;  %v7968_v56 = vor.u32 %v846_v59, %v845_v28  ;;  %v6177_v1 = vor.u32 %v6837_v25, %v6174_v39  ;;  %v508_v23 = vpack.c.bf16 %v476_v57, %v476_v57  ;;  %v569_v16 = vunpack.c.l.b16 %v505_v30  ;;  %v6791_v47 = vld [vmem:[%s10431_s1 + $0x54] sm:$0xf] }
  0xc5   : > { %1498 = vst [vmem:[#allocation1 + $0x21] ss:$4 sm:$0xff] %v1171_v8  ;;  %v1176_v50 = vsel %vm10527_vm7, %v1057_v19, %v1058_v6  ;;  %v1179_v32 = vsel %vm888_vm5, %v1058_v6, %v1057_v19  ;;  %v1184_v11 = vsel %vm10523_vm6, %v1057_v19, %v1058_v6  ;;  %v1189_v33 = vsel %vm10524_vm10, %v1057_v19, %v1058_v6 }
  0xc6   : > { %v1173_v34 = vsel %vm10523_vm6, %v923_v20, %v1056_v21  ;;  %v1178_v62 = vsel %vm10524_vm10, %v923_v20, %v1056_v21  ;;  %v1183_v45 = vsel %vm10527_vm7, %v923_v20, %v1056_v21  ;;  %v1188_v37 = vsel %vm888_vm5, %v1056_v21, %v923_v20  ;;  %2545 = vmatpush.bf16.msrb.mxu2 %v6177_v1 }
  0xc7   : > { %v1177_v48 = vsel %vm1099_vm9, %v1173_v34, %v1176_v50  ;;  %v1180_v35 = vsel %vm1105_vm11, %v1178_v62, %v1179_v32  ;;  %v1185_v54 = vsel %vm1099_vm9, %v1184_v11, %v1183_v45  ;;  %v1190_v55 = vsel %vm1105_vm11, %v1189_v33, %v1188_v37 }
  0xc8   : > { %v1182_v61 = vrot.slane %v1180_v35, 2  ;;  %v1187_v58 = vrot.slane %v1185_v54, 4  ;;  %1499 = vst [vmem:[#allocation1 + $0x22] ss:$4 sm:$0xff] %v1177_v48  ;;  %v721_v63 = vpop.permute.xlu0 %720  ;;  %v1192_v2 = vrot.slane %v1190_v55, 6  ;;  %v506_v6 = vpack.c.bf16 %v474_v18, %v474_v18  ;;  %v869_v34 = vpop.permute.xlu2 %868 }
  0xc9   : > { %v778_v3 = vpop.permute.xlu1 %777  ;;  %v848_v14 = vsel %vm799_vm1, %v844_v29, %v7968_v56  ;;  %v571_v19 = vunpack.c.l.b16 %v507_v31  ;;  %v925_v21 = vsel %vm913_vm4, %v7450_v12, %v721_v63  ;;  %v572_v27 = vunpack.c.l.b16 %v508_v23  ;;  %v5990_v48 = vld [vmem:[%s10431_s1 + $0x58] sm:$0xf0] }
  0xca   : > { %v7970_v4 = vld.sshfl [vmem:[#allocation1] sm:$0xff pattern:$0x73625140]  ;;  %v7972_v8 = vld.sshfl [vmem:[#allocation1 + $0x8] sm:$0xff pattern:$0x73625140]  ;;  %v991_v9 = vsel %vm10522_vm3, %v778_v3, %v867_v60  ;;  %v958_v10 = vsel %vm10529_vm8, %v721_v63, %v778_v3  ;;  %880 = vrot.lane.b32.xlu2 %v848_v14, %s10544_s24  ;;  %v570_v0 = vunpack.c.l.b16 %v506_v6  ;;  %v5993_v31 = vor.u32 %v6791_v47, %v5990_v48 }
  0xcb   : > { %v7978_v15 = vld.sshfl [vmem:[#allocation1 + $0x10] sm:$0xff pattern:$0x73625140]  ;;  %v7980_v13 = vld.sshfl [vmem:[#allocation1 + $0x18] sm:$0xff pattern:$0x73625140]  ;;  %v8000_v25 = vpack.c.b16 %v572_v27, %v571_v19 }
  0xcc   : > { %1501 = vst [vmem:[#allocation1 + $0x23] ss:$4 sm:$0xff] %v1182_v61  ;;  %v1060_v20 = vrot.slane %v991_v9, 4  ;;  %v1059_v26 = vrot.slane %v958_v10, 6  ;;  %v7987_v28 = vpack.c.b16 %v570_v0, %v569_v16  ;;  %v898_v29 = vrot.slane %v7485_v52, 2  ;;  %2307 = vmatpush.bf16.msrb.mxu3 %v5993_v31 }
  0xcd   : > { %2002 = vmatmul.bf16.gmra.mxu0 %v7914_v49  ;;  %2081 = vmatmul.bf16.gmra.mxu1 %v7916_v24  ;;  %1511 = vst [vmem:[#allocation1] ss:$4 sm:$0xff] %v1187_v58  ;;  %v899_v59 = vrot.slane %v7487_v53, 2  ;;  %v765_v55 = vrot.slane %v8000_v25, 1  ;;  %v703_v58 = vshll.u32 %v8000_v25, 16 }
  0xce   : > { %2160 = vmatmul.bf16.gmra.mxu2 %v7918_v7  ;;  %6187 = vmatmul.msk.bf16.gmra.mxu3 %vm913_vm4, %v7920_v17  ;;  %1513 = vst [vmem:[#allocation1 + $0x1] ss:$4 sm:$0xff] %v1192_v2  ;;  %v1197_v12 = vsel %vm10527_vm7, %v1060_v20, %v1061_v22  ;;  %v1200_v30 = vsel %vm888_vm5, %v1061_v22, %v1060_v20  ;;  %v764_v39 = vrot.slane %v7987_v28, 1  ;;  %v696_v60 = vshrl.u32 %v7987_v28, 16 }
  0xcf   : > { %v1205_v50 = vsel %vm10523_vm6, %v1060_v20, %v1061_v22  ;;  %v1194_v32 = vsel %vm10523_vm6, %v925_v21, %v1059_v26  ;;  %v1199_v11 = vsel %vm10524_vm10, %v925_v21, %v1059_v26  ;;  %v1204_v33 = vsel %vm10527_vm7, %v925_v21, %v1059_v26 }
  0xd0   : > { %v1198_v62 = vsel %vm1099_vm9, %v1194_v32, %v1197_v12  ;;  %v1201_v45 = vsel %vm1105_vm11, %v1199_v11, %v1200_v30  ;;  %v1206_v37 = vsel %vm1099_vm9, %v1205_v50, %v1204_v33  ;;  %v723_v18 = vpop.permute.xlu0 %722  ;;  %v698_v61 = vshll.u32 %v7987_v28, 16  ;;  %v871_v32 = vpop.permute.xlu2 %870 }
  0xd1   : > { %v1203_v35 = vrot.slane %v1201_v45, 2  ;;  %v1208_v54 = vrot.slane %v1206_v37, 4  ;;  %1514 = vst [vmem:[#allocation1 + $0x2] ss:$4 sm:$0xff] %v1198_v62  ;;  %v780_v57 = vpop.permute.xlu1 %779  ;;  %v900_v22 = vsel %vm888_vm5, %v898_v29, %v899_v59  ;;  %v766_v1 = vsel %vm10526_vm2, %v764_v39, %v765_v55 }
  0xd2   : > { %v993_v63 = vsel %vm10522_vm3, %v780_v57, %v869_v34  ;;  %v960_v6 = vsel %vm10529_vm8, %v723_v18, %v780_v57  ;;  %882 = vrot.lane.b32.xlu2 %v7968_v56, %s10544_s24  ;;  %795 = vrot.lane.b32.xlu1 %v766_v1, %s10546_s14  ;;  %v927_v14 = vsel %vm913_vm4, %v7485_v52, %v723_v18  ;;  %v700_v23 = vrot.slane %v698_v61, 1 }
  0xd3   : > { %v8020_v2 = vld.sshfl [vmem:[#allocation1 + $0x20] sm:$0xff pattern:$0x73625140]  ;;  %v8022_v3 = vld.sshfl [vmem:[#allocation1 + $0x28] sm:$0xff pattern:$0x73625140] }
  0xd4   : > { %v8028_v9 = vld.sshfl [vmem:[#allocation1 + $0x30] sm:$0xff pattern:$0x73625140]  ;;  %v8030_v10 = vld.sshfl [vmem:[#allocation1 + $0x38] sm:$0xff pattern:$0x73625140]  ;;  %v701_v21 = vor.u32 %v700_v23, %v696_v60 }
  0xd5   : > { %1516 = vst [vmem:[#allocation1 + $0x3] ss:$4 sm:$0xff] %v1203_v35  ;;  %v705_v16 = vrot.slane %v703_v58, 1  ;;  %v1064_v0 = vrot.slane %v900_v22, 2  ;;  %v1063_v19 = vrot.slane %v993_v63, 4  ;;  %v1062_v56 = vrot.slane %v960_v6, 6 }
  0xd6   : > { %1518 = vst [vmem:[#allocation1 + $0x20] ss:$4 sm:$0xff] %v1208_v54  ;;  %v707_v20 = vshrl.u32 %v8000_v25, 16  ;;  %v1067_v57 = vrot.slane %v899_v59, 2 }
  0xd7   : > { %v1213_v26 = vsel %vm10527_vm7, %v1063_v19, %v1064_v0  ;;  %v1216_v52 = vsel %vm888_vm5, %v1064_v0, %v1063_v19  ;;  %v1221_v27 = vsel %vm10523_vm6, %v1063_v19, %v1064_v0  ;;  %v1226_v29 = vsel %vm10524_vm10, %v1063_v19, %v1064_v0 }
  0xd8   : > { %v1210_v12 = vsel %vm10523_vm6, %v927_v14, %v1062_v56  ;;  %v1215_v30 = vsel %vm10524_vm10, %v927_v14, %v1062_v56  ;;  %v1220_v50 = vsel %vm10527_vm7, %v927_v14, %v1062_v56  ;;  %v706_v11 = vsel %vm589_vm0, %v701_v21, %v705_v16  ;;  %v725_v37 = vpop.permute.xlu0 %724 }
  0xd9   : > { %v1214_v33 = vsel %vm1099_vm9, %v1210_v12, %v1213_v26  ;;  %v1217_v34 = vsel %vm1105_vm11, %v1215_v30, %v1216_v52  ;;  %v1222_v62 = vsel %vm1099_vm9, %v1221_v27, %v1220_v50  ;;  %v782_v45 = vpop.permute.xlu1 %781  ;;  %738 = vrot.lane.b32.xlu0 %v706_v11, %s10545_s27  ;;  %v1225_v18 = vsel %vm888_vm5, %v1062_v56, %v927_v14  ;;  %v6118_v52 = vld [vmem:[%s10431_s1 + $0x158] sm:$0xf0] }
  0xda   : > { %v1219_v39 = vrot.slane %v1217_v34, 2  ;;  %1519 = vst [vmem:[#allocation1 + $0x21] ss:$4 sm:$0xff] %v1214_v33  ;;  %v1224_v47 = vrot.slane %v1222_v62, 4  ;;  %v1227_v48 = vsel %vm1105_vm11, %v1226_v29, %v1225_v18  ;;  %v995_v35 = vsel %vm10522_vm3, %v782_v45, %v871_v32  ;;  %797 = vrot.lane.b32.xlu1 %v765_v55, %s10546_s14 }
  0xdb   : > { %v852_v54 = vrot.slane %v707_v20, 1  ;;  %v962_v22 = vsel %vm10529_vm8, %v725_v37, %v782_v45  ;;  %v709_v14 = vor.u32 %v707_v20, %v705_v16  ;;  %v929_v55 = vsel %vm913_vm4, %v7487_v53, %v725_v37  ;;  %v6807_v16 = vld [vmem:[%s10431_s1 + $0xd4] sm:$0xf]  ;;  %v6054_v53 = vld [vmem:[%s10431_s1 + $0xd8] sm:$0xf0] }
  0xdc   : > { %v8061_v63 = vld.sshfl [vmem:[#allocation1] sm:$0xff pattern:$0x73625140]  ;;  %v8063_v1 = vld.sshfl [vmem:[#allocation1 + $0x8] sm:$0xff pattern:$0x73625140]  ;;  %v6057_v30 = vor.u32 %v6807_v16, %v6054_v53 }
  0xdd   : > { %v8065_v6 = vld.sshfl [vmem:[#allocation1 + $0x10] sm:$0xff pattern:$0x73625140]  ;;  %v8067_v31 = vld.sshfl [vmem:[#allocation1 + $0x18] sm:$0xff pattern:$0x73625140]  ;;  %2007 = vmatmul.bf16.gmra.mxu0 %v7970_v4  ;;  %2086 = vmatmul.bf16.gmra.mxu1 %v7972_v8 }
  0xde   : > { %2165 = vmatmul.bf16.gmra.mxu2 %v7978_v15  ;;  %6188 = vmatmul.msk.bf16.gmra.mxu3 %vm913_vm4, %v7980_v13  ;;  %v1229_v59 = vrot.slane %v1227_v48, 6  ;;  %1521 = vst [vmem:[#allocation1 + $0x22] ss:$4 sm:$0xff] %v1219_v39  ;;  %v1066_v23 = vrot.slane %v995_v35, 4  ;;  %v1065_v0 = vrot.slane %v962_v22, 6  ;;  %v849_v19 = vrot.slane %v696_v60, 1 }
  0xdf   : > { %1523 = vst [vmem:[#allocation1 + $0x23] ss:$4 sm:$0xff] %v1224_v47  ;;  %v6823_v60 = vld [vmem:[%s10431_s1 + $0x154] sm:$0xf]  ;;  %v850_v33 = vrot.slane %v698_v61, 2  ;;  %2386 = vmatpush.bf16.msrb.mxu0 %v6057_v30  ;;  %v853_v62 = vrot.slane %v703_v58, 2 }
  0xe0   : > { %1533 = vst [vmem:[#allocation1] ss:$4 sm:$0xff] %v1229_v59  ;;  %v1234_v56 = vsel %vm10527_vm7, %v1066_v23, %v1067_v57  ;;  %v1237_v20 = vsel %vm888_vm5, %v1067_v57, %v1066_v23  ;;  %v1242_v21 = vsel %vm10523_vm6, %v1066_v23, %v1067_v57  ;;  %v1231_v26 = vsel %vm10523_vm6, %v929_v55, %v1065_v0  ;;  %v6835_v61 = vld [vmem:[%s10431_s1 + $0x1b4] sm:$0xf]  ;;  %v6166_v58 = vld [vmem:[%s10431_s1 + $0x1b8] sm:$0xf0] }
  0xe1   : > { %v1235_v27 = vsel %vm1099_vm9, %v1231_v26, %v1234_v56  ;;  %v1236_v29 = vsel %vm10524_vm10, %v929_v55, %v1065_v0  ;;  %v1241_v12 = vsel %vm10527_vm7, %v929_v55, %v1065_v0  ;;  %740 = vrot.lane.b32.xlu0 %v709_v14, %s10545_s27  ;;  %v6121_v11 = vor.u32 %v6823_v60, %v6118_v52  ;;  %v6789_v48 = vld [vmem:[%s10431_s1 + $0x44] sm:$0xf]  ;;  %v5982_v35 = vld [vmem:[%s10431_s1 + $0x48] sm:$0xf0]  ;;  %v784_v0 = vpop.permute.xlu1 %783  ;;  %v873_v60 = vpop.permute.xlu2 %872 }
  0xe2   : > { %v1238_v50 = vsel %vm1105_vm11, %v1236_v29, %v1237_v20  ;;  %v1243_v32 = vsel %vm1099_vm9, %v1242_v21, %v1241_v12  ;;  %1534 = vst [vmem:[#allocation1 + $0x1] ss:$4 sm:$0xff] %v1235_v27  ;;  %v851_v37 = vor.u32 %v850_v33, %v849_v19  ;;  %v854_v39 = vor.u32 %v853_v62, %v852_v54  ;;  %v6805_v57 = vld [vmem:[%s10431_s1 + $0xc4] sm:$0xf]  ;;  %v6046_v22 = vld [vmem:[%s10431_s1 + $0xc8] sm:$0xf0]  ;;  %v727_v19 = vpop.permute.xlu0 %726 }
  0xe3   : > { %v1240_v34 = vrot.slane %v1238_v50, 2  ;;  %v1245_v45 = vrot.slane %v1243_v32, 4  ;;  %2465 = vmatpush.bf16.msrb.mxu1 %v6121_v11  ;;  %v6169_v47 = vor.u32 %v6835_v61, %v6166_v58  ;;  %v5985_v54 = vor.u32 %v6789_v48, %v5982_v35  ;;  %v6821_v14 = vld [vmem:[%s10431_s1 + $0x144] sm:$0xf]  ;;  %v6110_v23 = vld [vmem:[%s10431_s1 + $0x148] sm:$0xf0] }
  0xe4   : > { %v855_v18 = vsel %vm799_vm1, %v851_v37, %v854_v39  ;;  %v901_v55 = vrot.slane %v7536_v42, 2  ;;  %v902_v59 = vrot.slane %v7541_v44, 2  ;;  %v6049_v16 = vor.u32 %v6805_v57, %v6046_v22 }
  0xe5   : > { %1536 = vst [vmem:[#allocation1 + $0x2] ss:$4 sm:$0xff] %v1240_v34  ;;  %884 = vrot.lane.b32.xlu2 %v855_v18, %s10544_s24  ;;  %2546 = vmatpush.bf16.msrb.mxu2 %v6169_v47  ;;  %v6113_v53 = vor.u32 %v6821_v14, %v6110_v23  ;;  %v964_v56 = vsel %vm10529_vm8, %v727_v19, %v784_v0  ;;  %vm10531_vm0 = vcmask 1044484   ;;  %vm10533_vm1 = vcmask 1043459  }
  0xe6   : > { %1538 = vst [vmem:[#allocation1 + $0x3] ss:$4 sm:$0xff] %v1245_v45  ;;  %2308 = vmatpush.bf16.msrb.mxu3 %v5985_v54  ;;  %2387 = vmatpush.bf16.msrb.mxu0 %v6049_v16  ;;  %v903_v20 = vsel %vm888_vm5, %v901_v55, %v902_v59  ;;  %v1068_v21 = vrot.slane %v964_v56, 6  ;;  %v931_v26 = vsel %vm913_vm4, %v7536_v42, %v727_v19  ;;  %v8149_v11 = vld.sshfl [vmem:[#allocation1 + $0x20] sm:$0xff pattern:$0x73625140] }
  0xe7   : > { %2466 = vmatpush.bf16.msrb.mxu1 %v6113_v53  ;;  %v1070_v52 = vrot.slane %v903_v20, 2  ;;  %v997_v27 = vsel %vm10522_vm3, %v784_v0, %v873_v60  ;;  %v8151_v42 = vld.sshfl [vmem:[#allocation1 + $0x28] sm:$0xff pattern:$0x73625140]  ;;  %v1073_v0 = vrot.slane %v902_v59, 2  ;;  %v904_v53 = vrot.slane %v7627_v41, 2 }
  0xe8   : > { %v1069_v29 = vrot.slane %v997_v27, 4  ;;  %v1247_v12 = vsel %vm10523_vm6, %v931_v26, %v1068_v21  ;;  %v1252_v30 = vsel %vm10524_vm10, %v931_v26, %v1068_v21  ;;  %v1257_v50 = vsel %vm10527_vm7, %v931_v26, %v1068_v21  ;;  %v8159_v37 = vld.sshfl [vmem:[#allocation1 + $0x30] sm:$0xff pattern:$0x73625140] }
  0xe9   : > { %v1262_v32 = vsel %vm888_vm5, %v1068_v21, %v931_v26  ;;  %v786_v45 = vpop.permute.xlu1 %785  ;;  %v875_v23 = vpop.permute.xlu2 %874  ;;  %v905_v56 = vrot.slane %v7638_v51, 2 }
  0xea   : > { %v1250_v33 = vsel %vm10527_vm7, %v1069_v29, %v1070_v52  ;;  %v1253_v34 = vsel %vm888_vm5, %v1070_v52, %v1069_v29  ;;  %v1258_v62 = vsel %vm10523_vm6, %v1069_v29, %v1070_v52  ;;  %v1263_v18 = vsel %vm10524_vm10, %v1069_v29, %v1070_v52  ;;  %v729_v57 = vpop.permute.xlu0 %728 }
  0xeb   : > { %v1251_v61 = vsel %vm1099_vm9, %v1247_v12, %v1250_v33  ;;  %v1254_v58 = vsel %vm1105_vm11, %v1252_v30, %v1253_v34  ;;  %v1259_v47 = vsel %vm1099_vm9, %v1258_v62, %v1257_v50  ;;  %v1264_v54 = vsel %vm1105_vm11, %v1263_v18, %v1262_v32 }
  0xec   : > { %v1256_v48 = vrot.slane %v1254_v58, 2  ;;  %v1261_v35 = vrot.slane %v1259_v47, 4  ;;  %v1266_v22 = vrot.slane %v1264_v54, 6  ;;  %v933_v14 = vsel %vm913_vm4, %v7541_v44, %v729_v57 }
  0xed   : > { %2012 = vmatmul.bf16.gmra.mxu0 %v8020_v2  ;;  %2091 = vmatmul.bf16.gmra.mxu1 %v8022_v3  ;;  %v966_v55 = vsel %vm10529_vm8, %v729_v57, %v786_v45  ;;  %v999_v16 = vsel %vm10522_vm3, %v786_v45, %v875_v23  ;;  %v8177_v60 = vld.sshfl [vmem:[#allocation1] sm:$0xff pattern:$0x73625140]  ;;  %v8179_v52 = vld.sshfl [vmem:[#allocation1 + $0x8] sm:$0xff pattern:$0x73625140]  ;;  %v906_v62 = vsel %vm888_vm5, %v904_v53, %v905_v56 }
  0xee   : > { %2170 = vmatmul.bf16.gmra.mxu2 %v8028_v9  ;;  %6189 = vmatmul.msk.bf16.gmra.mxu3 %vm913_vm4, %v8030_v10  ;;  %v1071_v19 = vrot.slane %v966_v55, 6  ;;  %v1072_v20 = vrot.slane %v999_v16, 4  ;;  %v8184_v12 = vld.sshfl [vmem:[#allocation1 + $0x10] sm:$0xff pattern:$0x73625140]  ;;  %v1076_v47 = vrot.slane %v906_v62, 2 }
  0xef   : > { %886 = vrot.lane.b32.xlu2 %v854_v39, %s10544_s24  ;;  %v8161_v39 = vld.sshfl [vmem:[#allocation1 + $0x38] sm:$0xff pattern:$0x73625140]  ;;  %v6787_v16 = vld [vmem:[%s10431_s1 + $0x34] sm:$0xf] }
  0xf0   : > { %1539 = vst [vmem:[#allocation1 + $0x20] ss:$4 sm:$0xff] %v1251_v61  ;;  %v1268_v21 = vsel %vm10523_vm6, %v933_v14, %v1071_v19  ;;  %v1273_v26 = vsel %vm10524_vm10, %v933_v14, %v1071_v19  ;;  %v1278_v44 = vsel %vm10527_vm7, %v933_v14, %v1071_v19  ;;  %v1271_v59 = vsel %vm10527_vm7, %v1072_v20, %v1073_v0  ;;  %v8186_v30 = vld.sshfl [vmem:[#allocation1 + $0x18] sm:$0xff pattern:$0x73625140] }
  0xf1   : > { %1541 = vst [vmem:[#allocation1 + $0x21] ss:$4 sm:$0xff] %v1256_v48  ;;  %v1274_v27 = vsel %vm888_vm5, %v1073_v0, %v1072_v20  ;;  %v1279_v29 = vsel %vm10523_vm6, %v1072_v20, %v1073_v0  ;;  %v1272_v50 = vsel %vm1099_vm9, %v1268_v21, %v1271_v59  ;;  %v788_v45 = vpop.permute.xlu1 %787  ;;  %v877_v61 = vpop.permute.xlu2 %876  ;;  %v1079_v14 = vrot.slane %v905_v56, 2  ;;  %v6158_v59 = vld [vmem:[%s10431_s1 + $0x1a8] sm:$0xf0] }
  0xf2   : > { %1543 = vst [vmem:[#allocation1 + $0x22] ss:$4 sm:$0xff] %v1261_v35  ;;  %v1275_v32 = vsel %vm1105_vm11, %v1273_v26, %v1274_v27  ;;  %v1280_v33 = vsel %vm1099_vm9, %v1279_v29, %v1278_v44  ;;  %v731_v58 = vpop.permute.xlu0 %730  ;;  %v1001_v48 = vsel %vm10522_vm3, %v788_v45, %v877_v61  ;;  %v6833_v44 = vld [vmem:[%s10431_s1 + $0x1a4] sm:$0xf]  ;;  %v6803_v27 = vld [vmem:[%s10431_s1 + $0xb4] sm:$0xf] }
  0xf3   : > { %1545 = vst [vmem:[#allocation1 + $0x23] ss:$4 sm:$0xff] %v1266_v22  ;;  %v1277_v34 = vrot.slane %v1275_v32, 2  ;;  %v1282_v18 = vrot.slane %v1280_v33, 4  ;;  %v968_v35 = vsel %vm10529_vm8, %v731_v58, %v788_v45  ;;  %v1075_v54 = vrot.slane %v1001_v48, 4 }
  0xf4   : > { %10547 = vst [vmem:[#allocation13_spill] sm:$0xff] %v8186_v30  ;;  %v935_v57 = vsel %vm913_vm4, %v7627_v41, %v731_v58  ;;  %v1074_v22 = vrot.slane %v968_v35, 6  ;;  %v5974_v41 = vld [vmem:[%s10431_s1 + $0x38] sm:$0xf0] }
  0xf5   : > { %1554 = vst [vmem:[#allocation1] ss:$4 sm:$0xff] %v1272_v50  ;;  %v1287_v55 = vsel %vm10527_vm7, %v1075_v54, %v1076_v47  ;;  %v1290_v23 = vsel %vm888_vm5, %v1076_v47, %v1075_v54  ;;  %v1295_v0 = vsel %vm10523_vm6, %v1075_v54, %v1076_v47  ;;  %v1300_v19 = vsel %vm10524_vm10, %v1075_v54, %v1076_v47  ;;  %v6038_v45 = vld [vmem:[%s10431_s1 + $0xb8] sm:$0xf0] }
  0xf6   : > { %1556 = vst [vmem:[#allocation1 + $0x1] ss:$4 sm:$0xff] %v1277_v34  ;;  %v1284_v53 = vsel %vm10523_vm6, %v935_v57, %v1074_v22  ;;  %v1289_v56 = vsel %vm10524_vm10, %v935_v57, %v1074_v22  ;;  %v1294_v20 = vsel %vm10527_vm7, %v935_v57, %v1074_v22  ;;  %v1299_v21 = vsel %vm888_vm5, %v1074_v22, %v935_v57  ;;  %v6102_v61 = vld [vmem:[%s10431_s1 + $0x138] sm:$0xf0] }
  0xf7   : > { %1558 = vst [vmem:[#allocation1 + $0x2] ss:$4 sm:$0xff] %v1282_v18  ;;  %v1288_v32 = vsel %vm1099_vm9, %v1284_v53, %v1287_v55  ;;  %v1291_v33 = vsel %vm1105_vm11, %v1289_v56, %v1290_v23  ;;  %v1296_v34 = vsel %vm1099_vm9, %v1295_v0, %v1294_v20  ;;  %v1301_v62 = vsel %vm1105_vm11, %v1300_v19, %v1299_v21  ;;  %v6819_v18 = vld [vmem:[%s10431_s1 + $0x134] sm:$0xf] }
  0xf8   : > { %v1293_v58 = vrot.slane %v1291_v33, 2  ;;  %v1298_v47 = vrot.slane %v1296_v34, 4  ;;  %v1303_v48 = vrot.slane %v1301_v62, 6  ;;  %1559 = vst [vmem:[#allocation1 + $0x3] ss:$4 sm:$0xff] %v1288_v32  ;;  %v5977_v35 = vor.u32 %v6787_v16, %v5974_v41 }
  0xf9   : > { %v790_v26 = vpop.permute.xlu1 %789  ;;  %v879_v54 = vpop.permute.xlu2 %878  ;;  %v6161_v53 = vor.u32 %v6833_v44, %v6158_v59  ;;  %v6041_v21 = vor.u32 %v6803_v27, %v6038_v45  ;;  %v6105_v16 = vor.u32 %v6819_v18, %v6102_v61 }
  0xfa   : > { %v8224_v29 = vld.sshfl [vmem:[#allocation1 + $0x20] sm:$0xff pattern:$0x73625140]  ;;  %v8226_v50 = vld.sshfl [vmem:[#allocation1 + $0x28] sm:$0xff pattern:$0x73625140]  ;;  %v733_v57 = vpop.permute.xlu0 %732  ;;  %v1003_v23 = vsel %vm10522_vm3, %v790_v26, %v879_v54  ;;  %2309 = vmatpush.bf16.msrb.mxu3 %v5977_v35 }
  0xfb   : > { %10548 = vst [vmem:[#allocation14_spill] sm:$0xff] %v8224_v29  ;;  %v8241_v22 = vld.sshfl [vmem:[#allocation1 + $0x30] sm:$0xff pattern:$0x73625140]  ;;  %v937_v0 = vsel %vm913_vm4, %v7638_v51, %v733_v57  ;;  %v970_v19 = vsel %vm10529_vm8, %v733_v57, %v790_v26  ;;  %v1078_v56 = vrot.slane %v1003_v23, 4  ;;  %2547 = vmatpush.bf16.msrb.mxu2 %v6161_v53  ;;  %2388 = vmatpush.bf16.msrb.mxu0 %v6041_v21 }
  0xfc   : > { %10549 = vst [vmem:[#allocation15_spill] sm:$0xff] %v8226_v50  ;;  %v8243_v55 = vld.sshfl [vmem:[#allocation1 + $0x38] sm:$0xff pattern:$0x73625140]  ;;  %v1077_v20 = vrot.slane %v970_v19, 6  ;;  %2467 = vmatpush.bf16.msrb.mxu1 %v6105_v16 }
  0xfd   : > { %2017 = vmatmul.bf16.gmra.mxu0 %v8061_v63  ;;  %2096 = vmatmul.bf16.gmra.mxu1 %v8063_v1  ;;  %10550 = vst [vmem:[#allocation16_spill] sm:$0xff] %v8241_v22  ;;  %v1308_v41 = vsel %vm10527_vm7, %v1078_v56, %v1079_v14  ;;  %v1311_v32 = vsel %vm888_vm5, %v1079_v14, %v1078_v56 }
  0xfe   : > { %2175 = vmatmul.bf16.gmra.mxu2 %v8065_v6  ;;  %6190 = vmatmul.msk.bf16.gmra.mxu3 %vm913_vm4, %v8067_v31  ;;  %10551 = vst [vmem:[#allocation17_spill] sm:$0xff] %v8243_v55  ;;  %v1316_v33 = vsel %vm10523_vm6, %v1078_v56, %v1079_v14  ;;  %v1305_v51 = vsel %vm10523_vm6, %v937_v0, %v1077_v20 }
  0xff   : > { %1561 = vst [vmem:[#allocation1 + $0x20] ss:$4 sm:$0xff] %v1293_v58  ;;  %v1309_v26 = vsel %vm1099_vm9, %v1305_v51, %v1308_v41  ;;  %v1310_v44 = vsel %vm10524_vm10, %v937_v0, %v1077_v20  ;;  %v1315_v59 = vsel %vm10527_vm7, %v937_v0, %v1077_v20  ;;  %v8258_v62 = vld.sshfl [vmem:[#allocation1] sm:$0xff pattern:$0x73625140] }
 0x100   : > { %1563 = vst [vmem:[#allocation1 + $0x21] ss:$4 sm:$0xff] %v1298_v47  ;;  %v1312_v27 = vsel %vm1105_vm11, %v1310_v44, %v1311_v32  ;;  %v1317_v34 = vsel %vm1099_vm9, %v1316_v33, %v1315_v59  ;;  %v8260_v45 = vld.sshfl [vmem:[#allocation1 + $0x8] sm:$0xff pattern:$0x73625140]  ;;  %v907_v47 = vrot.slane %v7765_v36, 2 }
 0x101   : > { %1565 = vst [vmem:[#allocation1 + $0x22] ss:$4 sm:$0xff] %v1303_v48  ;;  %v1314_v14 = vrot.slane %v1312_v27, 2  ;;  %v1319_v18 = vrot.slane %v1317_v34, 4  ;;  %v908_v48 = vrot.slane %v7769_v43, 2 }
 0x102   : > { %1566 = vst [vmem:[#allocation1 + $0x23] ss:$4 sm:$0xff] %v1309_v26  ;;  %v8262_v61 = vld.sshfl [vmem:[#allocation1 + $0x10] sm:$0xff pattern:$0x73625140] }
 0x103   : > { %10552 = vst [vmem:[#allocation18_spill] sm:$0xff] %v8258_v62  ;;  %v8264_v58 = vld.sshfl [vmem:[#allocation1 + $0x18] sm:$0xff pattern:$0x73625140]  ;;  %v909_v35 = vsel %vm888_vm5, %v907_v47, %v908_v48  ;;  %v5966_v51 = vld [vmem:[%s10431_s1 + $0x28] sm:$0xf0] }
 0x104   : > { %10553 = vst [vmem:[#allocation19_spill] sm:$0xff] %v8260_v45  ;;  %v1082_v57 = vrot.slane %v909_v35, 2 }
 0x105   : > { %10554 = vst [vmem:[#allocation20_spill] sm:$0xff] %v8262_v61 }
 0x106   : > { %10555 = vst [vmem:[#allocation21_spill] sm:$0xff] %v8264_v58 }
 0x107   : > { %1576 = vst [vmem:[#allocation1] ss:$4 sm:$0xff] %v1314_v14 }
 0x108   : > { %1578 = vst [vmem:[#allocation1 + $0x1] ss:$4 sm:$0xff] %v1319_v18 }
 0x10d   : > { %2022 = vmatmul.bf16.gmra.mxu0 %v8149_v11  ;;  %2101 = vmatmul.bf16.gmra.mxu1 %v8151_v42 }
 0x10e   : > { %2180 = vmatmul.bf16.gmra.mxu2 %v8159_v37  ;;  %6191 = vmatmul.msk.bf16.gmra.mxu3 %vm913_vm4, %v8161_v39 }
 0x11d   : > { %2027 = vmatmul.bf16.gmra.mxu0 %v8177_v60  ;;  %2106 = vmatmul.bf16.gmra.mxu1 %v8179_v52 }
 0x11e   : > { %2185 = vmatmul.bf16.gmra.mxu2 %v8184_v12  ;;  %6192 = vmatmul.msk.bf16.gmra.mxu3 %vm913_vm4, %v8186_v30 }
 0x124   : > { %v881_v54 = vpop.permute.xlu2 %880 }
 0x12b   : > { %v792_v23 = vpop.permute.xlu1 %791  ;;  %v735_v19 = vpop.permute.xlu0 %734 }
 0x12c   : > { %v1005_v0 = vsel %vm10522_vm3, %v792_v23, %v881_v54  ;;  %v939_v56 = vsel %vm913_vm4, %v7765_v36, %v735_v19  ;;  %v972_v20 = vsel %vm10529_vm8, %v735_v19, %v792_v23  ;;  %v6785_v36 = vld [vmem:[%s10431_s1 + $0x24] sm:$0xf]  ;;  %v883_v35 = vpop.permute.xlu2 %882 }
 0x12d   : > { %2032 = vmatmul.bf16.gmra.mxu0 %v8224_v29  ;;  %2111 = vmatmul.bf16.gmra.mxu1 %v8226_v50  ;;  %v1081_v53 = vrot.slane %v1005_v0, 4  ;;  %v1080_v21 = vrot.slane %v972_v20, 6  ;;  %v8301_v54 = vld.sshfl [vmem:[#allocation1 + $0x20] sm:$0xff pattern:$0x73625140] }
 0x12e   : > { %2190 = vmatmul.bf16.gmra.mxu2 %v8241_v22  ;;  %6193 = vmatmul.msk.bf16.gmra.mxu3 %vm913_vm4, %v8243_v55  ;;  %10556 = vst [vmem:[#allocation22_spill] sm:$0xff] %v8301_v54  ;;  %v8305_v20 = vld.sshfl [vmem:[#allocation1 + $0x30] sm:$0xff pattern:$0x73625140] }
 0x12f   : > { %v1324_v16 = vsel %vm10527_vm7, %v1081_v53, %v1082_v57  ;;  %v1327_v41 = vsel %vm888_vm5, %v1082_v57, %v1081_v53  ;;  %v1332_v32 = vsel %vm10523_vm6, %v1081_v53, %v1082_v57  ;;  %v1337_v33 = vsel %vm10524_vm10, %v1081_v53, %v1082_v57  ;;  %v8303_v57 = vld.sshfl [vmem:[#allocation1 + $0x28] sm:$0xff pattern:$0x73625140]  ;;  %10558 = vst [vmem:[#allocation24_spill] sm:$0xff] %v8305_v20 }
 0x130   : > { %v1321_v26 = vsel %vm10523_vm6, %v939_v56, %v1080_v21  ;;  %v1326_v44 = vsel %vm10524_vm10, %v939_v56, %v1080_v21  ;;  %v1331_v59 = vsel %vm10527_vm7, %v939_v56, %v1080_v21  ;;  %v1336_v27 = vsel %vm888_vm5, %v1080_v21, %v939_v56  ;;  %10557 = vst [vmem:[#allocation23_spill] sm:$0xff] %v8303_v57  ;;  %v8310_v56 = vld [vmem:[%s10432_s2] sm:$0x3] }
 0x131   : > { %v1325_v34 = vsel %vm1099_vm9, %v1321_v26, %v1324_v16  ;;  %v1328_v14 = vsel %vm1105_vm11, %v1326_v44, %v1327_v41  ;;  %v1333_v18 = vsel %vm1099_vm9, %v1332_v32, %v1331_v59  ;;  %v1338_v47 = vsel %vm1105_vm11, %v1337_v33, %v1336_v27  ;;  %10559 = vst [vmem:[#allocation25_spill] sm:$0xff] %v8310_v56  ;;  %v8312_v41 = vld.sshfl [vmem:[#allocation1 + $0x38] sm:$0xff pattern:$0x73625140]  ;;  %v6801_v59 = vld [vmem:[%s10431_s1 + $0xa4] sm:$0xf] }
 0x132   : > { %v1330_v23 = vrot.slane %v1328_v14, 2  ;;  %v1335_v0 = vrot.slane %v1333_v18, 4  ;;  %v1340_v19 = vrot.slane %v1338_v47, 6  ;;  %1579 = vst [vmem:[#allocation1 + $0x2] ss:$4 sm:$0xff] %v1325_v34  ;;  %v5969_v53 = vor.u32 %v6785_v36, %v5966_v51 }
 0x133   : > { %v1085_v21 = vrot.slane %v908_v48, 2  ;;  %v794_v16 = vpop.permute.xlu1 %793  ;;  %10560 = vst [vmem:[#allocation26_spill] sm:$0xff] %v8312_v41  ;;  %v737_v33 = vpop.permute.xlu0 %736  ;;  %v8319_v44 = vperm.slane %v8310_v56, 0  ;;  %v6817_v18 = vld [vmem:[%s10431_s1 + $0x124] sm:$0xf] }
 0x134   : > { %1581 = vst [vmem:[#allocation1 + $0x3] ss:$4 sm:$0xff] %v1330_v23  ;;  %2310 = vmatpush.bf16.msrb.mxu3 %v5969_v53  ;;  %v1007_v32 = vsel %vm10522_vm3, %v794_v16, %v883_v35  ;;  %v941_v36 = vsel %vm913_vm4, %v7769_v43, %v737_v33  ;;  %v974_v51 = vsel %vm10529_vm8, %v737_v33, %v794_v16  ;;  %v6030_v43 = vld [vmem:[%s10431_s1 + $0xa8] sm:$0xf0] }
 0x135   : > { %1583 = vst [vmem:[#allocation1 + $0x20] ss:$4 sm:$0xff] %v1335_v0  ;;  %v1084_v26 = vrot.slane %v1007_v32, 4  ;;  %v1083_v48 = vrot.slane %v974_v51, 6  ;;  %v6094_v47 = vld [vmem:[%s10431_s1 + $0x128] sm:$0xf0] }
 0x136   : > { %1585 = vst [vmem:[#allocation1 + $0x21] ss:$4 sm:$0xff] %v1340_v19  ;;  %v6033_v19 = vor.u32 %v6801_v59, %v6030_v43  ;;  %v6097_v32 = vor.u32 %v6817_v18, %v6094_v47 }
 0x137   : > { %v1345_v27 = vsel %vm10527_vm7, %v1084_v26, %v1085_v21  ;;  %v1348_v34 = vsel %vm888_vm5, %v1085_v21, %v1084_v26  ;;  %v1353_v14 = vsel %vm10523_vm6, %v1084_v26, %v1085_v21  ;;  %v1342_v35 = vsel %vm10523_vm6, %v941_v36, %v1083_v48 }
 0x138   : > { %v1347_v23 = vsel %vm10524_vm10, %v941_v36, %v1083_v48  ;;  %v1352_v0 = vsel %vm10527_vm7, %v941_v36, %v1083_v48  ;;  %v1346_v53 = vsel %vm1099_vm9, %v1342_v35, %v1345_v27  ;;  %2389 = vmatpush.bf16.msrb.mxu0 %v6033_v19  ;;  %2468 = vmatpush.bf16.msrb.mxu1 %v6097_v32  ;;  %v910_v19 = vrot.slane %v7987_v28, 2 }
 0x139   : > { %v1349_v21 = vsel %vm1105_vm11, %v1347_v23, %v1348_v34  ;;  %v1354_v16 = vsel %vm1099_vm9, %v1353_v14, %v1352_v0  ;;  %1586 = vst [vmem:[#allocation1 + $0x22] ss:$4 sm:$0xff] %v1346_v53  ;;  %v6831_v34 = vld [vmem:[%s10431_s1 + $0x194] sm:$0xf] }
 0x13a   : > { %v1998_v33 = vpop.f32.mrf.mxu0  ;;  %v2077_v26 = vpop.f32.mrf.mxu1  ;;  %v1351_v51 = vrot.slane %v1349_v21, 2  ;;  %v1356_v56 = vrot.slane %v1354_v16, 4 }
 0x13b   : > { %v1999_v55 = vadd.f32 %v1998_v33, %v8319_v44  ;;  %v8343_v29 = vld.sshfl [vmem:[#allocation1] sm:$0xff pattern:$0x73625140]  ;;  %v8345_v36 = vld.sshfl [vmem:[#allocation1 + $0x8] sm:$0xff pattern:$0x73625140] }
 0x13c   : > { %v8347_v48 = vld.sshfl [vmem:[#allocation1 + $0x10] sm:$0xff pattern:$0x73625140]  ;;  %v8351_v27 = vld.sshfl [vmem:[#allocation1 + $0x18] sm:$0xff pattern:$0x73625140] }
 0x13d   : > { %v2078_v59 = vadd.f32 %v2077_v26, %v1999_v55  ;;  %2037 = vmatmul.bf16.gmra.mxu0 %v8258_v62  ;;  %2116 = vmatmul.bf16.gmra.mxu1 %v8260_v45  ;;  %1588 = vst [vmem:[#allocation1 + $0x23] ss:$4 sm:$0xff] %v1351_v51  ;;  %v6150_v55 = vld [vmem:[%s10431_s1 + $0x198] sm:$0xf0]  ;;  %v6783_v33 = vld [vmem:[%s10431_s1 + $0x14] sm:$0xf] }
 0x13e   : > { %2195 = vmatmul.bf16.gmra.mxu2 %v8262_v61  ;;  %6194 = vmatmul.msk.bf16.gmra.mxu3 %vm913_vm4, %v8264_v58  ;;  %1598 = vst [vmem:[#allocation1] ss:$4 sm:$0xff] %v1356_v56  ;;  %v6153_v14 = vor.u32 %v6831_v34, %v6150_v55  ;;  %v911_v56 = vrot.slane %v8000_v25, 2  ;;  %v5958_v26 = vld [vmem:[%s10431_s1 + $0x18] sm:$0xf0] }
 0x13f   : > { %v885_v21 = vpop.permute.xlu2 %884  ;;  %v5961_v34 = vor.u32 %v6783_v33, %v5958_v26 }
 0x140   : > { %2548 = vmatpush.bf16.msrb.mxu2 %v6153_v14  ;;  %v912_v51 = vsel %vm888_vm5, %v910_v19, %v911_v56 }
 0x141   : > { %v2156_v43 = vpop.f32.mrf.mxu2  ;;  %v2235_v18 = vpop.f32.mrf.mxu3  ;;  %2311 = vmatpush.bf16.msrb.mxu3 %v5961_v34 }
 0x142   : > { %v2157_v47 = vadd.f32 %v2156_v43, %v2078_v59  ;;  %v2000_v35 = vpop.f32.mrf.mxu0  ;;  %v2079_v23 = vpop.f32.mrf.mxu1 }
 0x143   : > { %v2001_v0 = vadd.f32 %v2000_v35, %v8319_v44  ;;  %v1088_v35 = vrot.slane %v912_v51, 2 }
 0x144   : > { %v8365_v53 = vadd.f32 %v2235_v18, %v2157_v47  ;;  %v796_v32 = vpop.permute.xlu1 %795  ;;  %v8411_v22 = vld.sshfl [vmem:[#allocation1 + $0x20] sm:$0xff pattern:$0x73625140]  ;;  %v8413_v50 = vld.sshfl [vmem:[#allocation1 + $0x28] sm:$0xff pattern:$0x73625140] }
 0x145   : > { %v2080_v16 = vadd.f32 %v2079_v23, %v2001_v0  ;;  %v1009_v59 = vsel %vm10522_vm3, %v796_v32, %v885_v21 }
 0x146   : > { %10561 = vst [vmem:[#allocation27_spill] sm:$0xff] %v8365_v53  ;;  %v1087_v23 = vrot.slane %v1009_v59, 4 }
 0x148   : > { %v1361_v58 = vsel %vm10527_vm7, %v1087_v23, %v1088_v35  ;;  %v1364_v33 = vsel %vm888_vm5, %v1088_v35, %v1087_v23  ;;  %v1369_v26 = vsel %vm10523_vm6, %v1087_v23, %v1088_v35  ;;  %v1374_v51 = vsel %vm10524_vm10, %v1087_v23, %v1088_v35 }
 0x149   : > { %v2158_v55 = vpop.f32.mrf.mxu2  ;;  %v2237_v14 = vpop.f32.mrf.mxu3 }
 0x14a   : > { %v2159_v43 = vadd.f32 %v2158_v55, %v2080_v16  ;;  %v2003_v18 = vpop.f32.mrf.mxu0  ;;  %v2082_v47 = vpop.f32.mrf.mxu1  ;;  %v1091_v55 = vrot.slane %v911_v56, 2  ;;  %v6086_v56 = vld [vmem:[%s10431_s1 + $0x118] sm:$0xf0] }
 0x14b   : > { %v2004_v0 = vadd.f32 %v2003_v18, %v8319_v44  ;;  %v739_v62 = vpop.permute.xlu0 %738  ;;  %v887_v61 = vpop.permute.xlu2 %886 }
 0x14c   : > { %v8376_v53 = vadd.f32 %v2237_v14, %v2159_v43  ;;  %v943_v21 = vsel %vm913_vm4, %v7987_v28, %v739_v62  ;;  %v976_v16 = vsel %vm10529_vm8, %v739_v62, %v796_v32  ;;  %v798_v34 = vpop.permute.xlu1 %797  ;;  %v6799_v28 = vld [vmem:[%s10431_s1 + $0x94] sm:$0xf] }
 0x14d   : > { %v2083_v19 = vadd.f32 %v2082_v47, %v2004_v0  ;;  %2042 = vmatmul.bf16.gmra.mxu0 %v8301_v54  ;;  %2121 = vmatmul.bf16.gmra.mxu1 %v8303_v57  ;;  %v1086_v59 = vrot.slane %v976_v16, 6  ;;  %v1011_v14 = vsel %vm10522_vm3, %v798_v34, %v887_v61  ;;  %v6022_v47 = vld [vmem:[%s10431_s1 + $0x98] sm:$0xf0]  ;;  %v6815_v61 = vld [vmem:[%s10431_s1 + $0x114] sm:$0xf]  ;;  %vm3946_vm3 = vcmask 1045507  }
 0x14e   : > { %10562 = vst [vmem:[#allocation28_spill] sm:$0xff] %v8376_v53  ;;  %2200 = vmatmul.bf16.gmra.mxu2 %v8305_v20  ;;  %6195 = vmatmul.msk.bf16.gmra.mxu3 %vm913_vm4, %v8312_v41 }
 0x14f   : > { %v1358_v62 = vsel %vm10523_vm6, %v943_v21, %v1086_v59  ;;  %v1363_v32 = vsel %vm10524_vm10, %v943_v21, %v1086_v59  ;;  %v1368_v43 = vsel %vm10527_vm7, %v943_v21, %v1086_v59  ;;  %v1373_v18 = vsel %vm888_vm5, %v1086_v59, %v943_v21 }
 0x150   : > { %v1362_v0 = vsel %vm1099_vm9, %v1358_v62, %v1361_v58  ;;  %v1365_v16 = vsel %vm1105_vm11, %v1363_v32, %v1364_v33  ;;  %v1370_v21 = vsel %vm1099_vm9, %v1369_v26, %v1368_v43  ;;  %v1375_v59 = vsel %vm1105_vm11, %v1374_v51, %v1373_v18  ;;  %v8416_v32 = vld.sshfl [vmem:[#allocation1 + $0x30] sm:$0xff pattern:$0x73625140]  ;;  %v8420_v51 = vld.sshfl [vmem:[#allocation1 + $0x38] sm:$0xff pattern:$0x73625140] }
 0x151   : > { %v2161_v35 = vpop.f32.mrf.mxu2  ;;  %v2240_v23 = vpop.f32.mrf.mxu3  ;;  %v1367_v20 = vrot.slane %v1365_v16, 2  ;;  %v1372_v57 = vrot.slane %v1370_v21, 4  ;;  %v1377_v45 = vrot.slane %v1375_v59, 6  ;;  %1599 = vst [vmem:[#allocation1 + $0x1] ss:$4 sm:$0xff] %v1362_v0  ;;  %v1090_v58 = vrot.slane %v1011_v14, 4 }
 0x152   : > { %v2162_v53 = vadd.f32 %v2161_v35, %v2083_v19  ;;  %v2005_v41 = vpop.f32.mrf.mxu0  ;;  %v2084_v54 = vpop.f32.mrf.mxu1  ;;  %v6025_v62 = vor.u32 %v6799_v28, %v6022_v47  ;;  %v6089_v33 = vor.u32 %v6815_v61, %v6086_v56 }
 0x153   : > { %v2006_v30 = vadd.f32 %v2005_v41, %v8319_v44  ;;  %1601 = vst [vmem:[#allocation1 + $0x2] ss:$4 sm:$0xff] %v1367_v20  ;;  %v741_v19 = vpop.permute.xlu0 %740  ;;  %v1382_v41 = vsel %vm10527_vm7, %v1090_v58, %v1091_v55  ;;  %v1385_v14 = vsel %vm888_vm5, %v1091_v55, %v1090_v58  ;;  %vm3911_vm5 = vcmask 1040384  }
 0x154   : > { %v8418_v26 = vadd.f32 %v2240_v23, %v2162_v53  ;;  %1603 = vst [vmem:[#allocation1 + $0x3] ss:$4 sm:$0xff] %v1372_v57  ;;  %v945_v18 = vsel %vm913_vm4, %v8000_v25, %v741_v19  ;;  %v978_v35 = vsel %vm10529_vm8, %v741_v19, %v798_v34  ;;  %2390 = vmatpush.bf16.msrb.mxu0 %v6025_v62  ;;  %v6142_v62 = vld [vmem:[%s10431_s1 + $0x188] sm:$0xf0] }
 0x155   : > { %v2085_v43 = vadd.f32 %v2084_v54, %v2006_v30  ;;  %1605 = vst [vmem:[#allocation1 + $0x20] ss:$4 sm:$0xff] %v1377_v45  ;;  %2469 = vmatpush.bf16.msrb.mxu1 %v6089_v33  ;;  %v1390_v53 = vsel %vm10523_vm6, %v1090_v58, %v1091_v55  ;;  %v1089_v20 = vrot.slane %v978_v35, 6  ;;  %v6829_v58 = vld [vmem:[%s10431_s1 + $0x184] sm:$0xf] }
 0x156   : > { %v6145_v33 = vor.u32 %v6829_v58, %v6142_v62  ;;  %v6078_v58 = vld [vmem:[%s10431_s1 + $0x108] sm:$0xf0] }
 0x157   : > { %v1379_v30 = vsel %vm10523_vm6, %v945_v18, %v1089_v20  ;;  %v1384_v45 = vsel %vm10524_vm10, %v945_v18, %v1089_v20  ;;  %v1389_v54 = vsel %vm10527_vm7, %v945_v18, %v1089_v20  ;;  %vm3932_vm6 = vcmask 1042434  }
 0x158   : > { %v1383_v61 = vsel %vm1099_vm9, %v1379_v30, %v1382_v41  ;;  %v1386_v56 = vsel %vm1105_vm11, %v1384_v45, %v1385_v14  ;;  %v1391_v23 = vsel %vm1099_vm9, %v1390_v53, %v1389_v54  ;;  %2549 = vmatpush.bf16.msrb.mxu2 %v6145_v33  ;;  %vm3937_vm10 = vcmask 1044482  }
 0x159   : > { %v2163_v28 = vpop.f32.mrf.mxu2  ;;  %v2242_v47 = vpop.f32.mrf.mxu3  ;;  %v1388_v0 = vrot.slane %v1386_v56, 2  ;;  %v1393_v16 = vrot.slane %v1391_v23, 4  ;;  %1606 = vst [vmem:[#allocation1 + $0x21] ss:$4 sm:$0xff] %v1383_v61  ;;  %vm3942_vm11 = vcmask 1044483  }
 0x15a   : > { %v2164_v25 = vadd.f32 %v2163_v28, %v2085_v43  ;;  %v2008_v57 = vpop.f32.mrf.mxu0  ;;  %v2087_v34 = vpop.f32.mrf.mxu1  ;;  %v6781_v28 = vld [vmem:[%s10431_s1 + $0x4] sm:$0xf] }
 0x15b   : > { %v2009_v55 = vadd.f32 %v2008_v57, %v8319_v44  ;;  %1608 = vst [vmem:[#allocation1 + $0x22] ss:$4 sm:$0xff] %v1388_v0  ;;  %v6014_v0 = vld [vmem:[%s10431_s1 + $0x88] sm:$0xf0] }
 0x15c   : > { %v8435_v21 = vadd.f32 %v2242_v47, %v2164_v25  ;;  %1610 = vst [vmem:[#allocation1 + $0x23] ss:$4 sm:$0xff] %v1393_v16  ;;  %v5950_v47 = vld [vmem:[%s10431_s1 + $0x8] sm:$0xf0] }
 0x15d   : > { %v2088_v59 = vadd.f32 %v2087_v34, %v2009_v55  ;;  %2047 = vmatmul.bf16.gmra.mxu0 %v8343_v29  ;;  %2126 = vmatmul.bf16.gmra.mxu1 %v8345_v36  ;;  %v5953_v54 = vor.u32 %v6781_v28, %v5950_v47  ;;  %v6797_v55 = vld [vmem:[%s10431_s1 + $0x84] sm:$0xf] }
 0x15e   : > { %2205 = vmatmul.bf16.gmra.mxu2 %v8347_v48  ;;  %6196 = vmatmul.msk.bf16.gmra.mxu3 %vm913_vm4, %v8351_v27  ;;  %v6017_v16 = vor.u32 %v6797_v55, %v6014_v0  ;;  %v8489_v55 = vld.sshfl [vmem:[#allocation1 + $0x18] sm:$0xff pattern:$0x73625140] }
 0x15f   : > { %2312 = vmatpush.bf16.msrb.mxu3 %v5953_v54 }
 0x160   : > { %2391 = vmatpush.bf16.msrb.mxu0 %v6017_v16 }
 0x161   : > { %v2166_v19 = vpop.f32.mrf.mxu2  ;;  %v2245_v43 = vpop.f32.mrf.mxu3 }
 0x162   : > { %v2167_v18 = vadd.f32 %v2166_v19, %v2088_v59  ;;  %v2010_v35 = vpop.f32.mrf.mxu0  ;;  %v2089_v41 = vpop.f32.mrf.mxu1  ;;  %v6813_v59 = vld [vmem:[%s10431_s1 + $0x104] sm:$0xf] }
 0x163   : > { %v2011_v14 = vadd.f32 %v2010_v35, %v8319_v44  ;;  %v6081_v62 = vor.u32 %v6813_v59, %v6078_v58 }
 0x164   : > { %v8449_v53 = vadd.f32 %v2245_v43, %v2167_v18 }
 0x165   : > { %v2090_v20 = vadd.f32 %v2089_v41, %v2011_v14  ;;  %2470 = vmatpush.bf16.msrb.mxu1 %v6081_v62 }
 0x169   : > { %v2168_v30 = vpop.f32.mrf.mxu2  ;;  %v2247_v45 = vpop.f32.mrf.mxu3 }
 0x16a   : > { %v2169_v25 = vadd.f32 %v2168_v30, %v2090_v20  ;;  %v2013_v57 = vpop.f32.mrf.mxu0  ;;  %v2092_v34 = vpop.f32.mrf.mxu1 }
 0x16b   : > { %v2014_v61 = vadd.f32 %v2013_v57, %v8319_v44  ;;  %v8481_v57 = vld.sshfl [vmem:[#allocation1] sm:$0xff pattern:$0x73625140] }
 0x16c   : > { %v8458_v56 = vadd.f32 %v2247_v45, %v2169_v25 }
 0x16d   : > { %v2093_v23 = vadd.f32 %v2092_v34, %v2014_v61  ;;  %2052 = vmatmul.bf16.gmra.mxu0 %v8411_v22  ;;  %2131 = vmatmul.bf16.gmra.mxu1 %v8413_v50  ;;  %v8483_v34 = vld.sshfl [vmem:[#allocation1 + $0x8] sm:$0xff pattern:$0x73625140] }
 0x16e   : > { %2210 = vmatmul.bf16.gmra.mxu2 %v8416_v32  ;;  %6197 = vmatmul.msk.bf16.gmra.mxu3 %vm913_vm4, %v8420_v51 }
 0x171   : > { %v2171_v33 = vpop.f32.mrf.mxu2  ;;  %v2250_v19 = vpop.f32.mrf.mxu3 }
 0x172   : > { %v2172_v43 = vadd.f32 %v2171_v33, %v2093_v23  ;;  %v2015_v18 = vpop.f32.mrf.mxu0  ;;  %v2094_v35 = vpop.f32.mrf.mxu1  ;;  %v8487_v23 = vld.sshfl [vmem:[#allocation1 + $0x10] sm:$0xff pattern:$0x73625140] }
 0x173   : > { %v2016_v41 = vadd.f32 %v2015_v18, %v8319_v44 }
 0x174   : > { %v8478_v14 = vadd.f32 %v2250_v19, %v2172_v43 }
 0x175   : > { %v2095_v20 = vadd.f32 %v2094_v35, %v2016_v41 }
 0x179   : > { %v2173_v28 = vpop.f32.mrf.mxu2  ;;  %v2252_v47 = vpop.f32.mrf.mxu3 }
 0x17a   : > { %v2174_v30 = vadd.f32 %v2173_v28, %v2095_v20  ;;  %v2018_v45 = vpop.f32.mrf.mxu0  ;;  %v2097_v54 = vpop.f32.mrf.mxu1 }
 0x17b   : > { %v2019_v25 = vadd.f32 %v2018_v45, %v8319_v44  ;;  %v8500_v45 = vld.sshfl [vmem:[#allocation1 + $0x20] sm:$0xff pattern:$0x73625140] }
 0x17c   : > { %v8485_v61 = vadd.f32 %v2252_v47, %v2174_v30  ;;  %10563 = vst [vmem:[#allocation29_spill] sm:$0xff] %v8500_v45 }
 0x17d   : > { %v2098_v0 = vadd.f32 %v2097_v54, %v2019_v25  ;;  %2057 = vmatmul.bf16.gmra.mxu0 %v8481_v57  ;;  %2136 = vmatmul.bf16.gmra.mxu1 %v8483_v34  ;;  %v8502_v54 = vld.sshfl [vmem:[#allocation1 + $0x28] sm:$0xff pattern:$0x73625140] }
 0x17e   : > { %2215 = vmatmul.bf16.gmra.mxu2 %v8487_v23  ;;  %6198 = vmatmul.msk.bf16.gmra.mxu3 %vm913_vm4, %v8489_v55  ;;  %10564 = vst [vmem:[#allocation30_spill] sm:$0xff] %v8502_v54 }
 0x181   : > { %v2176_v16 = vpop.f32.mrf.mxu2  ;;  %v2255_v59 = vpop.f32.mrf.mxu3 }
 0x182   : > { %v2177_v58 = vadd.f32 %v2176_v16, %v2098_v0  ;;  %v2020_v62 = vpop.f32.mrf.mxu0  ;;  %v2099_v33 = vpop.f32.mrf.mxu1  ;;  %v8506_v0 = vld.sshfl [vmem:[#allocation1 + $0x30] sm:$0xff pattern:$0x73625140]  ;;  %v8508_v16 = vld.sshfl [vmem:[#allocation1 + $0x38] sm:$0xff pattern:$0x73625140] }
 0x183   : > { %v2021_v19 = vadd.f32 %v2020_v62, %v8319_v44  ;;  %10566 = vst [vmem:[#allocation32_spill] sm:$0xff] %v8506_v0 }
 0x184   : > { %v8497_v43 = vadd.f32 %v2255_v59, %v2177_v58  ;;  %10567 = vst [vmem:[#allocation33_spill] sm:$0xff] %v8508_v16 }
 0x185   : > { %v2100_v18 = vadd.f32 %v2099_v33, %v2021_v19 }
 0x189   : > { %v2178_v35 = vpop.f32.mrf.mxu2  ;;  %v2257_v41 = vpop.f32.mrf.mxu3 }
 0x18a   : > { %v2179_v20 = vadd.f32 %v2178_v35, %v2100_v18  ;;  %v2023_v28 = vpop.f32.mrf.mxu0  ;;  %v2102_v47 = vpop.f32.mrf.mxu1 }
 0x18b   : > { %v2024_v30 = vadd.f32 %v2023_v28, %v8319_v44 }
 0x18c   : > { %v8504_v25 = vadd.f32 %v2257_v41, %v2179_v20 }
 0x18d   : > { %v2103_v59 = vadd.f32 %v2102_v47, %v2024_v30  ;;  %2062 = vmatmul.bf16.gmra.mxu0 %v8500_v45  ;;  %2141 = vmatmul.bf16.gmra.mxu1 %v8502_v54 }
 0x18e   : > { %10565 = vst [vmem:[#allocation31_spill] sm:$0xff] %v8504_v25  ;;  %2220 = vmatmul.bf16.gmra.mxu2 %v8506_v0  ;;  %6199 = vmatmul.msk.bf16.gmra.mxu3 %vm913_vm4, %v8508_v16 }
 0x191   : > { %v2181_v58 = vpop.f32.mrf.mxu2  ;;  %v2260_v62 = vpop.f32.mrf.mxu3 }
 0x192   : > { %v2182_v33 = vadd.f32 %v2181_v58, %v2103_v59  ;;  %v2025_v19 = vpop.f32.mrf.mxu0  ;;  %v2104_v18 = vpop.f32.mrf.mxu1 }
 0x193   : > { %v2026_v35 = vadd.f32 %v2025_v19, %v8319_v44 }
 0x194   : > { %v8516_v41 = vadd.f32 %v2260_v62, %v2182_v33 }
 0x195   : > { %v2105_v20 = vadd.f32 %v2104_v18, %v2026_v35 }
 0x199   : > { %v2183_v28 = vpop.f32.mrf.mxu2  ;;  %v2262_v47 = vpop.f32.mrf.mxu3 }
 0x19a   : > { %v2184_v30 = vadd.f32 %v2183_v28, %v2105_v20  ;;  %v2028_v25 = vpop.f32.mrf.mxu0  ;;  %v2107_v45 = vpop.f32.mrf.mxu1 }
 0x19b   : > { %v2029_v0 = vadd.f32 %v2028_v25, %v8319_v44 }
 0x19c   : > { %v8519_v54 = vadd.f32 %v2262_v47, %v2184_v30 }
 0x19d   : > { %v2108_v16 = vadd.f32 %v2107_v45, %v2029_v0  ;;  %2392 = vmatmul.bf16.vlgmr.msrb.gmra.mxu0 %v7883_v5  ;;  %2471 = vmatmul.bf16.vlgmr.msrb.gmra.mxu1 %v7890_v46 }
 0x19e   : > { %2313 = vmatmul.bf16.vlgmr.msrb.gmra.mxu3 %v7881_v40  ;;  %6200 = vmatmul.msk.bf16.vlgmr.msrb.gmra.mxu2 %vm913_vm4, %v7892_v38 }
 0x1a1   : > { %v2186_v59 = vpop.f32.mrf.mxu2  ;;  %v2265_v58 = vpop.f32.mrf.mxu3 }
 0x1a2   : > { %v2187_v62 = vadd.f32 %v2186_v59, %v2108_v16  ;;  %v2030_v33 = vpop.f32.mrf.mxu0  ;;  %v2109_v19 = vpop.f32.mrf.mxu1  ;;  %v6848_v16 = vld [vmem:[%s10433_s3 + $0x38] sm:$0xff] }
 0x1a3   : > { %v2031_v18 = vadd.f32 %v2030_v33, %v8319_v44  ;;  %3168 = vmatpush.bf16.msra.mxu3 %v6848_v16 }
 0x1a4   : > { %v8527_v25 = vadd.f32 %v2265_v58, %v2187_v62 }
 0x1a5   : > { %v2110_v35 = vadd.f32 %v2109_v19, %v2031_v18 }
 0x1a9   : > { %v2188_v45 = vpop.f32.mrf.mxu2  ;;  %v2267_v0 = vpop.f32.mrf.mxu3 }
 0x1aa   : > { %v2189_v5 = vadd.f32 %v2188_v45, %v2110_v35  ;;  %v2033_v20 = vpop.f32.mrf.mxu0  ;;  %v2112_v46 = vpop.f32.mrf.mxu1 }
 0x1ab   : > { %v2034_v40 = vadd.f32 %v2033_v20, %v8319_v44 }
 0x1ac   : > { %v8530_v28 = vadd.f32 %v2267_v0, %v2189_v5 }
 0x1ad   : > { %v2113_v38 = vadd.f32 %v2112_v46, %v2034_v40  ;;  %2397 = vmatmul.bf16.gmra.mxu0 %v7916_v24  ;;  %2476 = vmatmul.bf16.gmra.mxu1 %v7918_v7 }
 0x1ae   : > { %2318 = vmatmul.bf16.gmra.mxu3 %v7914_v49  ;;  %6201 = vmatmul.msk.bf16.gmra.mxu2 %vm913_vm4, %v7920_v17  ;;  %v3040_v49 = vld [vmem:[%s10433_s3 + $0x68] sm:$0xf] }
 0x1af   : > { %v3094_v17 = vunpack.c.l.b16 %v3040_v49 }
 0x1b1   : > { %v2191_v47 = vpop.f32.mrf.mxu2  ;;  %v2270_v30 = vpop.f32.mrf.mxu3  ;;  %v3108_v35 = vpack.c.b16 %v3094_v17, %v3094_v17 }
 0x1b2   : > { %v2192_v59 = vadd.f32 %v2191_v47, %v2113_v38  ;;  %v2035_v58 = vpop.f32.mrf.mxu0  ;;  %v2114_v62 = vpop.f32.mrf.mxu1 }
 0x1b3   : > { %v2036_v33 = vadd.f32 %v2035_v58, %v8319_v44  ;;  %v3166_v46 = vsel %vm1099_vm9, %v3108_v35, 0  ;;  %v6847_v35 = vld [vmem:[%s10433_s3 + $0x30] sm:$0xff]  ;;  %vm3922_vm9 = vcmask 1041409  }
 0x1b4   : > { %v8541_v24 = vadd.f32 %v2270_v30, %v2192_v59  ;;  %3249 = vmatpush.bf16.msra.mxu0 %v3166_v46  ;;  %3169 = vmatpush.bf16.msra.mxu3 %v6847_v35 }
 0x1b5   : > { %v2115_v7 = vadd.f32 %v2114_v62, %v2036_v33 }
 0x1b6   : > { %10568 = vst [vmem:[#allocation34_spill] sm:$0xff] %v8541_v24 }
 0x1b9   : > { %v2193_v19 = vpop.f32.mrf.mxu2  ;;  %v2272_v18 = vpop.f32.mrf.mxu3 }
 0x1ba   : > { %v2194_v45 = vadd.f32 %v2193_v19, %v2115_v7  ;;  %v2038_v0 = vpop.f32.mrf.mxu0  ;;  %v2117_v5 = vpop.f32.mrf.mxu1 }
 0x1bb   : > { %v2039_v20 = vadd.f32 %v2038_v0, %v8319_v44 }
 0x1bc   : > { %v8548_v40 = vadd.f32 %v2272_v18, %v2194_v45 }
 0x1bd   : > { %v2118_v38 = vadd.f32 %v2117_v5, %v2039_v20  ;;  %2402 = vmatmul.bf16.gmra.mxu0 %v7972_v8  ;;  %2481 = vmatmul.bf16.gmra.mxu1 %v7978_v15 }
 0x1be   : > { %10569 = vst [vmem:[#allocation35_spill] sm:$0xff] %v8548_v40  ;;  %2323 = vmatmul.bf16.gmra.mxu3 %v7970_v4  ;;  %6202 = vmatmul.msk.bf16.gmra.mxu2 %vm913_vm4, %v7980_v13 }
 0x1c1   : > { %v2196_v16 = vpop.f32.mrf.mxu2  ;;  %v2275_v47 = vpop.f32.mrf.mxu3 }
 0x1c2   : > { %v2197_v30 = vadd.f32 %v2196_v16, %v2118_v38  ;;  %v2040_v59 = vpop.f32.mrf.mxu0  ;;  %v2119_v58 = vpop.f32.mrf.mxu1 }
 0x1c3   : > { %v2041_v62 = vadd.f32 %v2040_v59, %v8319_v44 }
 0x1c4   : > { %v8556_v33 = vadd.f32 %v2275_v47, %v2197_v30 }
 0x1c5   : > { %v2120_v7 = vadd.f32 %v2119_v58, %v2041_v62 }
 0x1c9   : > { %v2198_v49 = vpop.f32.mrf.mxu2  ;;  %v2277_v17 = vpop.f32.mrf.mxu3 }
 0x1ca   : > { %v2199_v8 = vadd.f32 %v2198_v49, %v2120_v7  ;;  %v2043_v19 = vpop.f32.mrf.mxu0  ;;  %v2122_v15 = vpop.f32.mrf.mxu1  ;;  %v6853_v7 = vld [vmem:[%s10433_s3 + $0x60] sm:$0xff] }
 0x1cb   : > { %v2044_v4 = vadd.f32 %v2043_v19, %v8319_v44  ;;  %3250 = vmatpush.bf16.msra.mxu0 %v6853_v7 }
 0x1cc   : > { %v8559_v18 = vadd.f32 %v2277_v17, %v2199_v8 }
 0x1cd   : > { %v2123_v13 = vadd.f32 %v2122_v15, %v2044_v4  ;;  %2407 = vmatmul.bf16.gmra.mxu0 %v8022_v3  ;;  %2486 = vmatmul.bf16.gmra.mxu1 %v8028_v9 }
 0x1ce   : > { %2328 = vmatmul.bf16.gmra.mxu3 %v8020_v2  ;;  %6203 = vmatmul.msk.bf16.gmra.mxu2 %vm913_vm4, %v8030_v10 }
 0x1d1   : > { %v2201_v45 = vpop.f32.mrf.mxu2  ;;  %v2280_v0 = vpop.f32.mrf.mxu3 }
 0x1d2   : > { %v2202_v5 = vadd.f32 %v2201_v45, %v2123_v13  ;;  %v2045_v20 = vpop.f32.mrf.mxu0  ;;  %v2124_v46 = vpop.f32.mrf.mxu1 }
 0x1d3   : > { %v2046_v38 = vadd.f32 %v2045_v20, %v8319_v44 }
 0x1d4   : > { %v8570_v3 = vadd.f32 %v2280_v0, %v2202_v5 }
 0x1d5   : > { %v2125_v9 = vadd.f32 %v2124_v46, %v2046_v38 }
 0x1d9   : > { %v2203_v16 = vpop.f32.mrf.mxu2  ;;  %v2282_v2 = vpop.f32.mrf.mxu3 }
 0x1da   : > { %v2204_v47 = vadd.f32 %v2203_v16, %v2125_v9  ;;  %v2048_v30 = vpop.f32.mrf.mxu0  ;;  %v2127_v10 = vpop.f32.mrf.mxu1 }
 0x1db   : > { %v2049_v59 = vadd.f32 %v2048_v30, %v8319_v44 }
 0x1dc   : > { %v8573_v58 = vadd.f32 %v2282_v2, %v2204_v47 }
 0x1dd   : > { %v2128_v62 = vadd.f32 %v2127_v10, %v2049_v59  ;;  %2412 = vmatmul.bf16.gmra.mxu0 %v8063_v1  ;;  %2491 = vmatmul.bf16.gmra.mxu1 %v8065_v6 }
 0x1de   : > { %2333 = vmatmul.bf16.gmra.mxu3 %v8061_v63  ;;  %6204 = vmatmul.msk.bf16.gmra.mxu2 %vm913_vm4, %v8067_v31  ;;  %v6846_v63 = vld [vmem:[%s10433_s3 + $0x28] sm:$0xff] }
 0x1df   : > { %3170 = vmatpush.bf16.msra.mxu3 %v6846_v63 }
 0x1e1   : > { %v2206_v49 = vpop.f32.mrf.mxu2  ;;  %v2285_v17 = vpop.f32.mrf.mxu3 }
 0x1e2   : > { %v2207_v8 = vadd.f32 %v2206_v49, %v2128_v62  ;;  %v2050_v19 = vpop.f32.mrf.mxu0  ;;  %v2129_v15 = vpop.f32.mrf.mxu1 }
 0x1e3   : > { %v2051_v4 = vadd.f32 %v2050_v19, %v8319_v44 }
 0x1e4   : > { %v8584_v1 = vadd.f32 %v2285_v17, %v2207_v8  ;;  %v10570_v8 = vld [vmem:[#allocation13_spill] sm:$0xff] }
 0x1e5   : > { %v2130_v6 = vadd.f32 %v2129_v15, %v2051_v4 }
 0x1e9   : > { %v2208_v31 = vpop.f32.mrf.mxu2  ;;  %v2287_v13 = vpop.f32.mrf.mxu3 }
 0x1ea   : > { %v2209_v35 = vadd.f32 %v2208_v31, %v2130_v6  ;;  %v2053_v45 = vpop.f32.mrf.mxu0  ;;  %v2132_v0 = vpop.f32.mrf.mxu1 }
 0x1eb   : > { %v2054_v5 = vadd.f32 %v2053_v45, %v8319_v44 }
 0x1ec   : > { %v8590_v20 = vadd.f32 %v2287_v13, %v2209_v35 }
 0x1ed   : > { %v2133_v46 = vadd.f32 %v2132_v0, %v2054_v5  ;;  %2417 = vmatmul.bf16.gmra.mxu0 %v8151_v42  ;;  %2496 = vmatmul.bf16.gmra.mxu1 %v8159_v37 }
 0x1ee   : > { %2338 = vmatmul.bf16.gmra.mxu3 %v8149_v11  ;;  %6205 = vmatmul.msk.bf16.gmra.mxu2 %vm913_vm4, %v8161_v39 }
 0x1f1   : > { %v2211_v38 = vpop.f32.mrf.mxu2  ;;  %v2290_v9 = vpop.f32.mrf.mxu3 }
 0x1f2   : > { %v2212_v16 = vadd.f32 %v2211_v38, %v2133_v46  ;;  %v2055_v2 = vpop.f32.mrf.mxu0  ;;  %v2134_v47 = vpop.f32.mrf.mxu1  ;;  %v6852_v38 = vld [vmem:[%s10433_s3 + $0x58] sm:$0xff] }
 0x1f3   : > { %v2056_v30 = vadd.f32 %v2055_v2, %v8319_v44  ;;  %v10571_v2 = vld [vmem:[#allocation15_spill] sm:$0xff]  ;;  %3251 = vmatpush.bf16.msra.mxu0 %v6852_v38 }
 0x1f4   : > { %v8598_v10 = vadd.f32 %v2290_v9, %v2212_v16  ;;  %v6845_v9 = vld [vmem:[%s10433_s3 + $0x20] sm:$0xff] }
 0x1f5   : > { %v2135_v59 = vadd.f32 %v2134_v47, %v2056_v30  ;;  %v10572_v47 = vld [vmem:[#allocation16_spill] sm:$0xff]  ;;  %v10573_v30 = vld [vmem:[#allocation14_spill] sm:$0xff]  ;;  %3171 = vmatpush.bf16.msra.mxu3 %v6845_v9 }
 0x1f9   : > { %v2213_v62 = vpop.f32.mrf.mxu2  ;;  %v2292_v7 = vpop.f32.mrf.mxu3 }
 0x1fa   : > { %v2214_v42 = vadd.f32 %v2213_v62, %v2135_v59  ;;  %v2058_v49 = vpop.f32.mrf.mxu0  ;;  %v2137_v37 = vpop.f32.mrf.mxu1  ;;  %v10574_v59 = vld [vmem:[#allocation17_spill] sm:$0xff] }
 0x1fb   : > { %v2059_v11 = vadd.f32 %v2058_v49, %v8319_v44 }
 0x1fc   : > { %v8601_v17 = vadd.f32 %v2292_v7, %v2214_v42 }
 0x1fd   : > { %v2138_v39 = vadd.f32 %v2137_v37, %v2059_v11  ;;  %2422 = vmatmul.bf16.gmra.mxu0 %v8179_v52  ;;  %2501 = vmatmul.bf16.gmra.mxu1 %v8184_v12 }
 0x1fe   : > { %2343 = vmatmul.bf16.gmra.mxu3 %v8177_v60  ;;  %6206 = vmatmul.msk.bf16.gmra.mxu2 %vm913_vm4, %v10570_v8 }
 0x201   : > { %v2216_v19 = vpop.f32.mrf.mxu2  ;;  %v2295_v15 = vpop.f32.mrf.mxu3 }
 0x202   : > { %v2217_v4 = vadd.f32 %v2216_v19, %v2138_v39  ;;  %v2060_v6 = vpop.f32.mrf.mxu0  ;;  %v2139_v63 = vpop.f32.mrf.mxu1 }
 0x203   : > { %v2061_v31 = vadd.f32 %v2060_v6, %v8319_v44 }
 0x204   : > { %v8609_v13 = vadd.f32 %v2295_v15, %v2217_v4 }
 0x205   : > { %v2140_v35 = vadd.f32 %v2139_v63, %v2061_v31 }
 0x209   : > { %v2218_v45 = vpop.f32.mrf.mxu2  ;;  %v2297_v0 = vpop.f32.mrf.mxu3 }
 0x20a   : > { %v2219_v52 = vadd.f32 %v2218_v45, %v2140_v35  ;;  %v2063_v5 = vpop.f32.mrf.mxu0  ;;  %v2142_v12 = vpop.f32.mrf.mxu1  ;;  %v10575_v35 = vld [vmem:[#allocation19_spill] sm:$0xff]  ;;  %v10576_v45 = vld [vmem:[#allocation20_spill] sm:$0xff] }
 0x20b   : > { %v2064_v60 = vadd.f32 %v2063_v5, %v8319_v44 }
 0x20c   : > { %v8612_v46 = vadd.f32 %v2297_v0, %v2219_v52  ;;  %v10577_v0 = vld [vmem:[#allocation18_spill] sm:$0xff]  ;;  %v10578_v52 = vld [vmem:[#allocation21_spill] sm:$0xff] }
 0x20d   : > { %v2143_v16 = vadd.f32 %v2142_v12, %v2064_v60  ;;  %2427 = vmatmul.bf16.gmra.mxu0 %v10571_v2  ;;  %2506 = vmatmul.bf16.gmra.mxu1 %v10572_v47  ;;  %v6844_v2 = vld [vmem:[%s10433_s3 + $0x18] sm:$0xff] }
 0x20e   : > { %2348 = vmatmul.bf16.gmra.mxu3 %v10573_v30  ;;  %6207 = vmatmul.msk.bf16.gmra.mxu2 %vm913_vm4, %v10574_v59 }
 0x20f   : > { %3172 = vmatpush.bf16.msra.mxu3 %v6844_v2 }
 0x211   : > { %v2221_v62 = vpop.f32.mrf.mxu2  ;;  %v2300_v7 = vpop.f32.mrf.mxu3 }
 0x212   : > { %v2222_v42 = vadd.f32 %v2221_v62, %v2143_v16  ;;  %v2065_v49 = vpop.f32.mrf.mxu0  ;;  %v2144_v37 = vpop.f32.mrf.mxu1 }
 0x213   : > { %v2066_v11 = vadd.f32 %v2065_v49, %v8319_v44  ;;  %v10579_v44 = vld [vmem:[#allocation25_spill] sm:$0xff] }
 0x214   : > { %v8626_v39 = vadd.f32 %v2300_v7, %v2222_v42  ;;  %v8636_v5 = vperm.slane %v10579_v44, 1  ;;  %v10580_v42 = vld [vmem:[#allocation27_spill] sm:$0xff] }
 0x215   : > { %v2145_v8 = vadd.f32 %v2144_v37, %v2066_v11  ;;  %v10498_v49 = vmax.f32 %v10580_v42, 0.0 }
 0x219   : > { %v2223_v19 = vpop.f32.mrf.mxu2  ;;  %v2302_v15 = vpop.f32.mrf.mxu3 }
 0x21a   : > { %v2224_v4 = vadd.f32 %v2223_v19, %v2145_v8  ;;  %v2393_v6 = vpop.f32.mrf.mxu0  ;;  %v2472_v63 = vpop.f32.mrf.mxu1 }
 0x21c   : > { %v8628_v31 = vadd.f32 %v2302_v15, %v2224_v4 }
 0x21d   : > { %2432 = vmatmul.bf16.gmra.mxu0 %v10575_v35  ;;  %2511 = vmatmul.bf16.gmra.mxu1 %v10576_v45  ;;  %v10582_v35 = vld [vmem:[#allocation24_spill] sm:$0xff] }
 0x21e   : > { %2353 = vmatmul.bf16.gmra.mxu3 %v10577_v0  ;;  %6208 = vmatmul.msk.bf16.gmra.mxu2 %vm913_vm4, %v10578_v52  ;;  %v10583_v0 = vld [vmem:[#allocation22_spill] sm:$0xff] }
 0x21f   : > { %v10584_v52 = vld [vmem:[#allocation26_spill] sm:$0xff] }
 0x221   : > { %v2314_v12 = vpop.f32.mrf.mxu3  ;;  %v2551_v60 = vpop.f32.mrf.mxu2 }
 0x222   : > { %v2315_v38 = vadd.f32 %v2314_v12, %v8636_v5  ;;  %v2395_v9 = vpop.f32.mrf.mxu0  ;;  %v2474_v16 = vpop.f32.mrf.mxu1 }
 0x224   : > { %v2394_v47 = vadd.f32 %v2393_v6, %v2315_v38  ;;  %v6851_v6 = vld [vmem:[%s10433_s3 + $0x50] sm:$0xff]  ;;  %v10585_v38 = vld [vmem:[#allocation28_spill] sm:$0xff] }
 0x225   : > { %3252 = vmatpush.bf16.msra.mxu0 %v6851_v6 }
 0x226   : > { %v2473_v30 = vadd.f32 %v2472_v63, %v2394_v47  ;;  %v10581_v63 = vld [vmem:[#allocation23_spill] sm:$0xff] }
 0x228   : > { %v8642_v59 = vadd.f32 %v2551_v60, %v2473_v30 }
 0x229   : > { %v2316_v62 = vpop.f32.mrf.mxu3  ;;  %v2553_v7 = vpop.f32.mrf.mxu2 }
 0x22a   : > { %v10504_v37 = vmax.f32 %v8642_v59, 0.0  ;;  %v2317_v11 = vadd.f32 %v2316_v62, %v8636_v5  ;;  %v2398_v8 = vpop.f32.mrf.mxu0  ;;  %v2477_v19 = vpop.f32.mrf.mxu1 }
 0x22c   : > { %v7019_v15 = vpack.i.bf16 %v10504_v37, %v10498_v49  ;;  %v2396_v4 = vadd.f32 %v2395_v9, %v2317_v11  ;;  %v10497_v9 = vmax.f32 %v10585_v38, 0.0 }
 0x22d   : > { %2437 = vmatmul.bf16.gmra.mxu0 %v10581_v63  ;;  %2516 = vmatmul.bf16.gmra.mxu1 %v10582_v35  ;;  %v10492_v63 = vmax.f32 %v8418_v26, 0.0 }
 0x22e   : > { %v2475_v45 = vadd.f32 %v2474_v16, %v2396_v4  ;;  %2358 = vmatmul.bf16.gmra.mxu3 %v10583_v0  ;;  %6209 = vmatmul.msk.bf16.gmra.mxu2 %vm913_vm4, %v10584_v52 }
 0x22f   : > { %7020 = vrot.lane.b32.xlu0 %v7019_v15, %s7279_s30 }
 0x230   : > { %v8660_v44 = vadd.f32 %v2553_v7, %v2475_v45 }
 0x231   : > { %v2319_v12 = vpop.f32.mrf.mxu3  ;;  %v2556_v60 = vpop.f32.mrf.mxu2 }
 0x232   : > { %v10503_v2 = vmax.f32 %v8660_v44, 0.0  ;;  %v2320_v47 = vadd.f32 %v2319_v12, %v8636_v5  ;;  %v2400_v16 = vpop.f32.mrf.mxu0  ;;  %v2479_v30 = vpop.f32.mrf.mxu1 }
 0x234   : > { %v2399_v62 = vadd.f32 %v2398_v8, %v2320_v47  ;;  %v7024_v11 = vpack.i.bf16 %v10503_v2, %v10497_v9 }
 0x236   : > { %v2478_v15 = vadd.f32 %v2477_v19, %v2399_v62  ;;  %7025 = vrot.lane.b32.xlu1 %v7024_v11, %s7279_s30  ;;  %v10485_v11 = vmax.f32 %v8435_v21, 0.0 }
 0x238   : > { %v8670_v7 = vadd.f32 %v2556_v60, %v2478_v15 }
 0x239   : > { %v2321_v4 = vpop.f32.mrf.mxu3  ;;  %v2558_v6 = vpop.f32.mrf.mxu2 }
 0x23a   : > { %v10496_v35 = vmax.f32 %v8670_v7, 0.0  ;;  %v2322_v45 = vadd.f32 %v2321_v4, %v8636_v5  ;;  %v2403_v0 = vpop.f32.mrf.mxu0  ;;  %v2482_v8 = vpop.f32.mrf.mxu1 }
 0x23c   : > { %v7029_v52 = vpack.i.bf16 %v10496_v35, %v10492_v63  ;;  %v2401_v19 = vadd.f32 %v2400_v16, %v2322_v45 }
 0x23d   : > { %2442 = vmatmul.bf16.gmra.mxu0 %v8345_v36  ;;  %2521 = vmatmul.bf16.gmra.mxu1 %v8347_v48 }
 0x23e   : > { %v2480_v12 = vadd.f32 %v2479_v30, %v2401_v19  ;;  %2363 = vmatmul.bf16.gmra.mxu3 %v8343_v29  ;;  %6210 = vmatmul.msk.bf16.gmra.mxu2 %vm913_vm4, %v8351_v27  ;;  %v6843_v29 = vld [vmem:[%s10433_s3 + $0x10] sm:$0xff]  ;;  %v10477_v19 = vmax.f32 %v8449_v53, 0.0 }
 0x23f   : > { %7030 = vrot.lane.b32.xlu2 %v7029_v52, %s7279_s30  ;;  %3173 = vmatpush.bf16.msra.mxu3 %v6843_v29 }
 0x240   : > { %v8685_v60 = vadd.f32 %v2558_v6, %v2480_v12 }
 0x241   : > { %v2324_v47 = vpop.f32.mrf.mxu3  ;;  %v2561_v62 = vpop.f32.mrf.mxu2 }
 0x242   : > { %v10493_v16 = vmax.f32 %v8685_v60, 0.0  ;;  %v2325_v36 = vadd.f32 %v2324_v47, %v8636_v5  ;;  %v2405_v15 = vpop.f32.mrf.mxu0  ;;  %v2484_v48 = vpop.f32.mrf.mxu1 }
 0x244   : > { %v2404_v30 = vadd.f32 %v2403_v0, %v2325_v36  ;;  %v7034_v27 = vpack.i.bf16 %v10493_v16, %v10485_v11 }
 0x246   : > { %v2483_v4 = vadd.f32 %v2482_v8, %v2404_v30  ;;  %7035 = vrot.lane.b32.xlu0 %v7034_v27, %s7279_s30 }
 0x248   : > { %v8698_v6 = vadd.f32 %v2561_v62, %v2483_v4 }
 0x249   : > { %v2326_v45 = vpop.f32.mrf.mxu3  ;;  %v2563_v52 = vpop.f32.mrf.mxu2 }
 0x24a   : > { %v10478_v12 = vmax.f32 %v8698_v6, 0.0  ;;  %v2327_v47 = vadd.f32 %v2326_v45, %v8636_v5  ;;  %v2408_v0 = vpop.f32.mrf.mxu0  ;;  %v2487_v36 = vpop.f32.mrf.mxu1  ;;  %v10483_v45 = vmax.f32 %v8458_v56, 0.0 }
 0x24c   : > { %v7039_v29 = vpack.i.bf16 %v10478_v12, %v10477_v19  ;;  %v2406_v8 = vadd.f32 %v2405_v15, %v2327_v47 }
 0x24d   : > { %2447 = vmatmul.bf16.gmra.mxu0 %v8413_v50  ;;  %2526 = vmatmul.bf16.gmra.mxu1 %v8416_v32 }
 0x24e   : > { %v2485_v62 = vadd.f32 %v2484_v48, %v2406_v8  ;;  %2368 = vmatmul.bf16.gmra.mxu3 %v8411_v22  ;;  %6211 = vmatmul.msk.bf16.gmra.mxu2 %vm913_vm4, %v8420_v51  ;;  %v6850_v22 = vld [vmem:[%s10433_s3 + $0x48] sm:$0xff] }
 0x24f   : > { %7040 = vrot.lane.b32.xlu1 %v7039_v29, %s7279_s30  ;;  %3253 = vmatpush.bf16.msra.mxu0 %v6850_v22 }
 0x250   : > { %v8713_v30 = vadd.f32 %v2563_v52, %v2485_v62 }
 0x251   : > { %v2329_v27 = vpop.f32.mrf.mxu3  ;;  %v2566_v4 = vpop.f32.mrf.mxu2 }
 0x252   : > { %v10484_v15 = vmax.f32 %v8713_v30, 0.0  ;;  %v2330_v50 = vadd.f32 %v2329_v27, %v8636_v5  ;;  %v2410_v47 = vpop.f32.mrf.mxu0  ;;  %v2489_v32 = vpop.f32.mrf.mxu1  ;;  %v10479_v27 = vmax.f32 %v8478_v14, 0.0 }
 0x254   : > { %v2409_v48 = vadd.f32 %v2408_v0, %v2330_v50  ;;  %v7044_v51 = vpack.i.bf16 %v10484_v15, %v10483_v45  ;;  %v10590_v15 = vld [vmem:[#allocation31_spill] sm:$0xff] }
 0x255   : > { %v10488_v11 = vmax.f32 %v10590_v15, 0.0 }
 0x256   : > { %v2488_v52 = vadd.f32 %v2487_v36, %v2409_v48  ;;  %7045 = vrot.lane.b32.xlu2 %v7044_v51, %s7279_s30 }
 0x258   : > { %v8726_v29 = vadd.f32 %v2566_v4, %v2488_v52  ;;  %v6842_v4 = vld [vmem:[%s10433_s3 + $0x8] sm:$0xff]  ;;  %v10481_v52 = vmax.f32 %v8485_v61, 0.0 }
 0x259   : > { %v2331_v8 = vpop.f32.mrf.mxu3  ;;  %v2568_v62 = vpop.f32.mrf.mxu2  ;;  %3174 = vmatpush.bf16.msra.mxu3 %v6842_v4 }
 0x25a   : > { %v10480_v19 = vmax.f32 %v8726_v29, 0.0  ;;  %v2332_v12 = vadd.f32 %v2331_v8, %v8636_v5  ;;  %v2413_v0 = vpop.f32.mrf.mxu0  ;;  %v2492_v50 = vpop.f32.mrf.mxu1 }
 0x25c   : > { %v7049_v22 = vpack.i.bf16 %v10480_v19, %v10479_v27  ;;  %v2411_v36 = vadd.f32 %v2410_v47, %v2332_v12 }
 0x25d   : > { %2452 = vmatmul.bf16.gmra.mxu0 %v8483_v34  ;;  %2531 = vmatmul.bf16.gmra.mxu1 %v8487_v23 }
 0x25e   : > { %v2490_v48 = vadd.f32 %v2489_v32, %v2411_v36  ;;  %2373 = vmatmul.bf16.gmra.mxu3 %v8481_v57  ;;  %6212 = vmatmul.msk.bf16.gmra.mxu2 %vm913_vm4, %v8489_v55 }
 0x25f   : > { %7050 = vrot.lane.b32.xlu0 %v7049_v22, %s7279_s30 }
 0x260   : > { %v8744_v51 = vadd.f32 %v2568_v62, %v2490_v48  ;;  %v10486_v48 = vmax.f32 %v8497_v43, 0.0 }
 0x261   : > { %v2334_v12 = vpop.f32.mrf.mxu3  ;;  %v2571_v47 = vpop.f32.mrf.mxu2 }
 0x262   : > { %v10482_v8 = vmax.f32 %v8744_v51, 0.0  ;;  %v2335_v34 = vadd.f32 %v2334_v12, %v8636_v5  ;;  %v2415_v23 = vpop.f32.mrf.mxu0  ;;  %v2494_v32 = vpop.f32.mrf.mxu1 }
 0x264   : > { %v2414_v36 = vadd.f32 %v2413_v0, %v2335_v34  ;;  %v7054_v57 = vpack.i.bf16 %v10482_v8, %v10481_v52  ;;  %v10589_v52 = vld [vmem:[#allocation33_spill] sm:$0xff] }
 0x266   : > { %v2493_v55 = vadd.f32 %v2492_v50, %v2414_v36  ;;  %7055 = vrot.lane.b32.xlu1 %v7054_v57, %s7279_s30  ;;  %v10586_v36 = vld [vmem:[#allocation30_spill] sm:$0xff] }
 0x268   : > { %v8754_v62 = vadd.f32 %v2571_v47, %v2493_v55  ;;  %v10587_v47 = vld [vmem:[#allocation32_spill] sm:$0xff]  ;;  %v10588_v55 = vld [vmem:[#allocation29_spill] sm:$0xff] }
 0x269   : > { %v2336_v22 = vpop.f32.mrf.mxu3  ;;  %v2573_v4 = vpop.f32.mrf.mxu2 }
 0x26a   : > { %v10487_v27 = vmax.f32 %v8754_v62, 0.0  ;;  %v2337_v12 = vadd.f32 %v2336_v22, %v8636_v5  ;;  %v2418_v19 = vpop.f32.mrf.mxu0  ;;  %v2497_v0 = vpop.f32.mrf.mxu1 }
 0x26c   : > { %v7059_v34 = vpack.i.bf16 %v10487_v27, %v10486_v48  ;;  %v2416_v50 = vadd.f32 %v2415_v23, %v2337_v12 }
 0x26d   : > { %2457 = vmatmul.bf16.gmra.mxu0 %v10586_v36  ;;  %2536 = vmatmul.bf16.gmra.mxu1 %v10587_v47 }
 0x26e   : > { %v2495_v57 = vadd.f32 %v2494_v32, %v2416_v50  ;;  %2378 = vmatmul.bf16.gmra.mxu3 %v10588_v55  ;;  %6213 = vmatmul.msk.bf16.gmra.mxu2 %vm913_vm4, %v10589_v52  ;;  %v10489_v55 = vmax.f32 %v8516_v41, 0.0 }
 0x26f   : > { %7060 = vrot.lane.b32.xlu2 %v7059_v34, %s7279_s30 }
 0x270   : > { %v8769_v22 = vadd.f32 %v2573_v4, %v2495_v57 }
 0x271   : > { %v2339_v8 = vpop.f32.mrf.mxu3  ;;  %v2576_v45 = vpop.f32.mrf.mxu2 }
 0x272   : > { %v10491_v23 = vmax.f32 %v8769_v22, 0.0  ;;  %v2340_v12 = vadd.f32 %v2339_v8, %v8636_v5  ;;  %v2420_v36 = vpop.f32.mrf.mxu0  ;;  %v2499_v47 = vpop.f32.mrf.mxu1 }
 0x274   : > { %v2419_v32 = vadd.f32 %v2418_v19, %v2340_v12  ;;  %v7064_v52 = vpack.i.bf16 %v10491_v23, %v10488_v11 }
 0x276   : > { %v2498_v50 = vadd.f32 %v2497_v0, %v2419_v32  ;;  %7065 = vrot.lane.b32.xlu0 %v7064_v52, %s7279_s30  ;;  %v6841_v32 = vld [vmem:[%s10433_s3] sm:$0xff] }
 0x277   : > { %3175 = vmatpush.bf16.msra.mxu3 %v6841_v32  ;;  %v10499_v32 = vmax.f32 %v8527_v25, 0.0 }
 0x278   : > { %v8779_v4 = vadd.f32 %v2576_v45, %v2498_v50  ;;  %v6849_v45 = vld [vmem:[%s10433_s3 + $0x40] sm:$0xff] }
 0x279   : > { %v2341_v34 = vpop.f32.mrf.mxu3  ;;  %v2578_v57 = vpop.f32.mrf.mxu2  ;;  %3254 = vmatpush.bf16.msra.mxu0 %v6849_v45 }
 0x27a   : > { %v10490_v48 = vmax.f32 %v8779_v4, 0.0  ;;  %v2342_v8 = vadd.f32 %v2341_v34, %v8636_v5  ;;  %v2423_v27 = vpop.f32.mrf.mxu0  ;;  %v2502_v19 = vpop.f32.mrf.mxu1 }
 0x27c   : > { %v7069_v12 = vpack.i.bf16 %v10490_v48, %v10489_v55  ;;  %v2421_v0 = vadd.f32 %v2420_v36, %v2342_v8  ;;  %v10494_v55 = vmax.f32 %v8519_v54, 0.0 }
 0x27e   : > { %v2500_v52 = vadd.f32 %v2499_v47, %v2421_v0  ;;  %7070 = vrot.lane.b32.xlu1 %v7069_v12, %s7279_s30 }
 0x280   : > { %v8795_v50 = vadd.f32 %v2578_v57, %v2500_v52 }
 0x281   : > { %v2344_v34 = vpop.f32.mrf.mxu3  ;;  %v2581_v11 = vpop.f32.mrf.mxu2 }
 0x282   : > { %v10495_v36 = vmax.f32 %v8795_v50, 0.0  ;;  %v2345_v8 = vadd.f32 %v2344_v34, %v8636_v5  ;;  %v2425_v48 = vpop.f32.mrf.mxu0  ;;  %v2504_v23 = vpop.f32.mrf.mxu1 }
 0x284   : > { %v2424_v63 = vadd.f32 %v2423_v27, %v2345_v8  ;;  %v7074_v47 = vpack.i.bf16 %v10495_v36, %v10494_v55  ;;  %v10500_v55 = vmax.f32 %v8530_v28, 0.0 }
 0x286   : > { %v2503_v12 = vadd.f32 %v2502_v19, %v2424_v63  ;;  %7075 = vrot.lane.b32.xlu2 %v7074_v47, %s7279_s30 }
 0x288   : > { %v8805_v57 = vadd.f32 %v2581_v11, %v2503_v12 }
 0x289   : > { %v2346_v0 = vpop.f32.mrf.mxu3  ;;  %v2583_v45 = vpop.f32.mrf.mxu2 }
 0x28a   : > { %v10502_v52 = vmax.f32 %v8805_v57, 0.0  ;;  %v2347_v34 = vadd.f32 %v2346_v0, %v8636_v5  ;;  %v2428_v16 = vpop.f32.mrf.mxu0  ;;  %v2507_v27 = vpop.f32.mrf.mxu1 }
 0x28c   : > { %v7079_v8 = vpack.i.bf16 %v10502_v52, %v10499_v32  ;;  %v2426_v63 = vadd.f32 %v2425_v48, %v2347_v34 }
 0x28e   : > { %v2505_v19 = vadd.f32 %v2504_v23, %v2426_v63  ;;  %7080 = vrot.lane.b32.xlu0 %v7079_v8, %s7279_s30  ;;  %v10506_v8 = vmax.f32 %v8541_v24, 0.0 }
 0x290   : > { %v8815_v11 = vadd.f32 %v2583_v45, %v2505_v19 }
 0x291   : > { %v2349_v47 = vpop.f32.mrf.mxu3  ;;  %v2586_v12 = vpop.f32.mrf.mxu2 }
 0x292   : > { %v10501_v36 = vmax.f32 %v8815_v11, 0.0  ;;  %v2350_v0 = vadd.f32 %v2349_v47, %v8636_v5  ;;  %v2430_v35 = vpop.f32.mrf.mxu0  ;;  %v2509_v9 = vpop.f32.mrf.mxu1 }
 0x294   : > { %v2429_v49 = vadd.f32 %v2428_v16, %v2350_v0  ;;  %v7084_v48 = vpack.i.bf16 %v10501_v36, %v10500_v55  ;;  %v10508_v55 = vmax.f32 %v8548_v40, 0.0 }
 0x296   : > { %v2508_v23 = vadd.f32 %v2507_v27, %v2429_v49  ;;  %7085 = vrot.lane.b32.xlu1 %v7084_v48, %s7279_s30 }
 0x298   : > { %v8825_v45 = vadd.f32 %v2586_v12, %v2508_v23 }
 0x299   : > { %v2351_v34 = vpop.f32.mrf.mxu3  ;;  %v2588_v47 = vpop.f32.mrf.mxu2 }
 0x29a   : > { %10591 = vst [vmem:[#allocation13_spill] sm:$0xff] %v8825_v45  ;;  %v10507_v63 = vmax.f32 %v8825_v45, 0.0  ;;  %v2352_v19 = vadd.f32 %v2351_v34, %v8636_v5  ;;  %v2433_v32 = vpop.f32.mrf.mxu0  ;;  %v2512_v16 = vpop.f32.mrf.mxu1 }
 0x29c   : > { %v7089_v0 = vpack.i.bf16 %v10507_v63, %v10506_v8  ;;  %v2431_v49 = vadd.f32 %v2430_v35, %v2352_v19 }
 0x29e   : > { %v2510_v27 = vadd.f32 %v2509_v9, %v2431_v49  ;;  %7090 = vrot.lane.b32.xlu2 %v7089_v0, %s7279_s30 }
 0x2a0   : > { %v8835_v12 = vadd.f32 %v2588_v47, %v2510_v27 }
 0x2a1   : > { %v7021_v48 = vpop.permute.xlu0 %7020  ;;  %v2354_v23 = vpop.f32.mrf.mxu3 }
 0x2a2   : > { %10592 = vst [vmem:[#allocation15_spill] sm:$0xff] %v8835_v12  ;;  %v10509_v34 = vmax.f32 %v8835_v12, 0.0  ;;  %v2355_v36 = vadd.f32 %v2354_v23, %v8636_v5  ;;  %v2591_v52 = vpop.f32.mrf.mxu2  ;;  %v2435_v2 = vpop.f32.mrf.mxu0  ;;  %v7023_v35 = vunpack.i.h.bf16 %v7021_v48  ;;  %v7022_v19 = vunpack.i.l.bf16 %v7021_v48 }
 0x2a3   : > { %v2514_v37 = vpop.f32.mrf.mxu1  ;;  %v10596_v12 = vmax.f32 %v10585_v38, 0.0 }
 0x2a4   : > { %v2434_v24 = vadd.f32 %v2433_v32, %v2355_v36  ;;  %v7094_v9 = vpack.i.bf16 %v10509_v34, %v10508_v55  ;;  %v2846_v27 = vsel %vm2845_vm12, %v7022_v19, %v7023_v35  ;;  %v10515_v36 = vmax.f32 %v8556_v33, 0.0 }
 0x2a6   : > { %v2513_v47 = vadd.f32 %v2512_v16, %v2434_v24  ;;  %7095 = vrot.lane.b32.xlu0 %v7094_v9, %s7279_s30  ;;  %v10593_v24 = vmax.f32 %v8642_v59, 0.0 }
 0x2a8   : > { %v8845_v0 = vadd.f32 %v2591_v52, %v2513_v47  ;;  %v7026_v49 = vpop.permute.xlu1 %7025  ;;  %v2931_v16 = vmax.f32 %v10593_v24, %v7023_v35  ;;  %v10594_v52 = vmax.f32 %v8660_v44, 0.0 }
 0x2a9   : > { %v7028_v23 = vunpack.i.h.bf16 %v7026_v49  ;;  %v7027_v8 = vunpack.i.l.bf16 %v7026_v49  ;;  %v2356_v63 = vpop.f32.mrf.mxu3  ;;  %v10595_v49 = vmax.f32 %v10580_v42, 0.0  ;;  %v7031_v42 = vpop.permute.xlu2 %7030 }
 0x2aa   : > { %v2654_v32 = vmax.f32 %v8845_v0, 0.0  ;;  %v2357_v55 = vadd.f32 %v2356_v63, %v8636_v5  ;;  %v2593_v34 = vpop.f32.mrf.mxu2  ;;  %v2438_v48 = vpop.f32.mrf.mxu0 }
 0x2ab   : > { %v2933_v9 = vmax.f32 %v10594_v52, %v7028_v23  ;;  %v2847_v47 = vsel %vm2845_vm12, %v7027_v8, %v7028_v23  ;;  %v2517_v19 = vpop.f32.mrf.mxu1  ;;  %v2930_v40 = vmax.f32 %v10595_v49, %v2846_v27  ;;  %v10513_v23 = vmax.f32 %v8559_v18, 0.0 }
 0x2ac   : > { %v7099_v63 = vpack.i.bf16 %v2654_v32, %v10515_v36  ;;  %v2932_v45 = vmax.f32 %v10596_v12, %v2847_v47  ;;  %v2436_v59 = vadd.f32 %v2435_v2, %v2357_v55 }
 0x2ad   : > { %v2987_v35 = vpack.c.bf16 %v2933_v9, %v2931_v16 }
 0x2ae   : > { %v2986_v24 = vpack.c.bf16 %v2932_v45, %v2930_v40  ;;  %v2515_v44 = vadd.f32 %v2514_v37, %v2436_v59  ;;  %7100 = vrot.lane.b32.xlu1 %v7099_v63, %s7279_s30  ;;  %v7033_v45 = vunpack.i.h.bf16 %v7031_v42 }
 0x2af   : > { %6266 = vmatmul.msk.bf16.vlgmr.msra.gmra.mxu0 %vm3122_vm13, %v2987_v35 }
 0x2b0   : > { %v8866_v8 = vadd.f32 %v2593_v34, %v2515_v44  ;;  %3176 = vmatmul.bf16.vlgmr.msra.gmra.mxu3 %v2986_v24  ;;  %v7032_v34 = vunpack.i.l.bf16 %v7031_v42 }
 0x2b1   : > { %v2359_v27 = vpop.f32.mrf.mxu3 }
 0x2b2   : > { %v10514_v52 = vmax.f32 %v8866_v8, 0.0  ;;  %v2360_v38 = vadd.f32 %v2359_v27, %v8636_v5  ;;  %v2596_v12 = vpop.f32.mrf.mxu2  ;;  %v2440_v2 = vpop.f32.mrf.mxu0  ;;  %v2848_v49 = vsel %vm2845_vm12, %v7032_v34, %v7033_v45 }
 0x2b3   : > { %v2519_v55 = vpop.f32.mrf.mxu1 }
 0x2b4   : > { %v2439_v40 = vadd.f32 %v2438_v48, %v2360_v38  ;;  %v7104_v37 = vpack.i.bf16 %v10514_v52, %v10513_v23  ;;  %v2657_v48 = vmax.f32 %v8570_v3, 0.0  ;;  %v10599_v23 = vmax.f32 %v8418_v26, 0.0 }
 0x2b5   : > { %v10600_v52 = vmax.f32 %v8435_v21, 0.0 }
 0x2b6   : > { %v2518_v16 = vadd.f32 %v2517_v19, %v2439_v40  ;;  %7105 = vrot.lane.b32.xlu2 %v7104_v37, %s7279_s30  ;;  %v10597_v19 = vmax.f32 %v8670_v7, 0.0 }
 0x2b8   : > { %v8876_v9 = vadd.f32 %v2596_v12, %v2518_v16  ;;  %v7036_v47 = vpop.permute.xlu0 %7035  ;;  %v2935_v42 = vmax.f32 %v10597_v19, %v7033_v45  ;;  %v10598_v12 = vmax.f32 %v8685_v60, 0.0 }
 0x2b9   : > { %v7038_v63 = vunpack.i.h.bf16 %v7036_v47  ;;  %v7037_v59 = vunpack.i.l.bf16 %v7036_v47  ;;  %v2361_v35 = vpop.f32.mrf.mxu3 }
 0x2ba   : > { %v2658_v24 = vmax.f32 %v8876_v9, 0.0  ;;  %v2362_v44 = vadd.f32 %v2361_v35, %v8636_v5  ;;  %v2598_v27 = vpop.f32.mrf.mxu2  ;;  %v2443_v38 = vpop.f32.mrf.mxu0  ;;  %v2934_v35 = vmax.f32 %v10599_v23, %v2848_v49 }
 0x2bb   : > { %v2937_v40 = vmax.f32 %v10598_v12, %v7038_v63  ;;  %v2849_v37 = vsel %vm2845_vm12, %v7037_v59, %v7038_v63  ;;  %v2522_v34 = vpop.f32.mrf.mxu1  ;;  %v7046_v63 = vpop.permute.xlu2 %7045 }
 0x2bc   : > { %v7109_v16 = vpack.i.bf16 %v2658_v24, %v2657_v48  ;;  %v2441_v47 = vadd.f32 %v2440_v2, %v2362_v44  ;;  %v2936_v36 = vmax.f32 %v10600_v52, %v2849_v37  ;;  %v10516_v2 = vmax.f32 %v8573_v58, 0.0 }
 0x2bd   : > { %v2989_v7 = vpack.c.bf16 %v2937_v40, %v2935_v42  ;;  %v7048_v42 = vunpack.i.h.bf16 %v7046_v63  ;;  %v7047_v40 = vunpack.i.l.bf16 %v7046_v63 }
 0x2be   : > { %v2520_v45 = vadd.f32 %v2519_v55, %v2441_v47  ;;  %7110 = vrot.lane.b32.xlu0 %v7109_v16, %s7279_s30  ;;  %v2988_v60 = vpack.c.bf16 %v2936_v36, %v2934_v35 }
 0x2bf   : > { %6267 = vmatmul.msk.bf16.gmra.mxu0 %vm3122_vm13, %v2989_v7  ;;  %v2851_v35 = vsel %vm2845_vm12, %v7047_v40, %v7048_v42  ;;  %v10601_v7 = vmax.f32 %v8698_v6, 0.0  ;;  %v10604_v40 = vmax.f32 %v8458_v56, 0.0 }
 0x2c0   : > { %v8897_v59 = vadd.f32 %v2598_v27, %v2520_v45  ;;  %3181 = vmatmul.bf16.gmra.mxu3 %v2988_v60  ;;  %v10518_v60 = vmax.f32 %v8584_v1, 0.0 }
 0x2c1   : > { %v7041_v19 = vpop.permute.xlu1 %7040  ;;  %v2364_v12 = vpop.f32.mrf.mxu3 }
 0x2c2   : > { %v2660_v26 = vmax.f32 %v8897_v59, 0.0  ;;  %v2365_v21 = vadd.f32 %v2364_v12, %v8636_v5  ;;  %v2601_v23 = vpop.f32.mrf.mxu2  ;;  %v2445_v52 = vpop.f32.mrf.mxu0  ;;  %v7043_v55 = vunpack.i.h.bf16 %v7041_v19  ;;  %v7042_v49 = vunpack.i.l.bf16 %v7041_v19 }
 0x2c3   : > { %v2524_v44 = vpop.f32.mrf.mxu1 }
 0x2c4   : > { %v2444_v36 = vadd.f32 %v2443_v38, %v2365_v21  ;;  %v7114_v27 = vpack.i.bf16 %v2660_v26, %v10516_v2  ;;  %v2850_v16 = vsel %vm2845_vm12, %v7042_v49, %v7043_v55  ;;  %v2939_v45 = vmax.f32 %v10601_v7, %v7043_v55 }
 0x2c5   : > { %v10602_v21 = vmax.f32 %v8449_v53, 0.0 }
 0x2c6   : > { %v2523_v37 = vadd.f32 %v2522_v34, %v2444_v36  ;;  %7115 = vrot.lane.b32.xlu1 %v7114_v27, %s7279_s30 }
 0x2c7   : > { %v2938_v36 = vmax.f32 %v10602_v21, %v2850_v16 }
 0x2c8   : > { %v8908_v47 = vadd.f32 %v2601_v23, %v2523_v37  ;;  %v10603_v23 = vmax.f32 %v8713_v30, 0.0  ;;  %v2940_v37 = vmax.f32 %v10604_v40, %v2851_v35 }
 0x2c9   : > { %v2366_v38 = vpop.f32.mrf.mxu3 }
 0x2ca   : > { %v2662_v19 = vmax.f32 %v8908_v47, 0.0  ;;  %v2367_v12 = vadd.f32 %v2366_v38, %v8636_v5  ;;  %v2603_v63 = vpop.f32.mrf.mxu2  ;;  %v2448_v34 = vpop.f32.mrf.mxu0  ;;  %v2941_v49 = vmax.f32 %v10603_v23, %v7048_v42  ;;  %v2990_v2 = vpack.c.bf16 %v2940_v37, %v2938_v36 }
 0x2cb   : > { %v2527_v27 = vpop.f32.mrf.mxu1  ;;  %v10517_v42 = vmax.f32 %v8590_v20, 0.0 }
 0x2cc   : > { %v7119_v6 = vpack.i.bf16 %v2662_v19, %v10518_v60  ;;  %v2446_v55 = vadd.f32 %v2445_v52, %v2367_v12  ;;  %v2991_v7 = vpack.c.bf16 %v2941_v49, %v2939_v45 }
 0x2ce   : > { %v2525_v38 = vadd.f32 %v2524_v44, %v2446_v55  ;;  %7120 = vrot.lane.b32.xlu2 %v7119_v6, %s7279_s30 }
 0x2cf   : > { %6268 = vmatmul.msk.bf16.gmra.mxu0 %vm3122_vm13, %v2991_v7 }
 0x2d0   : > { %v8928_v53 = vadd.f32 %v2603_v63, %v2525_v38  ;;  %3186 = vmatmul.bf16.gmra.mxu3 %v2990_v2 }
 0x2d1   : > { %v2369_v30 = vpop.f32.mrf.mxu3  ;;  %v7051_v21 = vpop.permute.xlu0 %7050 }
 0x2d2   : > { %v2664_v16 = vmax.f32 %v8928_v53, 0.0  ;;  %v2370_v52 = vadd.f32 %v2369_v30, %v8636_v5  ;;  %v2606_v56 = vpop.f32.mrf.mxu2  ;;  %v2450_v35 = vpop.f32.mrf.mxu0  ;;  %v7053_v12 = vunpack.i.h.bf16 %v7051_v21  ;;  %v7052_v63 = vunpack.i.l.bf16 %v7051_v21 }
 0x2d3   : > { %v2529_v36 = vpop.f32.mrf.mxu1  ;;  %v10605_v21 = vmax.f32 %v8726_v29, 0.0 }
 0x2d4   : > { %v2449_v45 = vadd.f32 %v2448_v34, %v2370_v52  ;;  %v7124_v44 = vpack.i.bf16 %v2664_v16, %v10517_v42  ;;  %v2852_v6 = vsel %vm2845_vm12, %v7052_v63, %v7053_v12  ;;  %v2665_v34 = vmax.f32 %v8598_v10, 0.0 }
 0x2d5   : > { %v10606_v52 = vmax.f32 %v8744_v51, 0.0 }
 0x2d6   : > { %v2528_v2 = vadd.f32 %v2527_v27, %v2449_v45  ;;  %7125 = vrot.lane.b32.xlu0 %v7124_v44, %s7279_s30  ;;  %v2943_v27 = vmax.f32 %v10605_v21, %v7053_v12 }
 0x2d8   : > { %v8938_v23 = vadd.f32 %v2606_v56, %v2528_v2  ;;  %v7056_v49 = vpop.permute.xlu1 %7055  ;;  %v10607_v2 = vmax.f32 %v8478_v14, 0.0  ;;  %v7061_v14 = vpop.permute.xlu2 %7060 }
 0x2d9   : > { %v7058_v55 = vunpack.i.h.bf16 %v7056_v49  ;;  %v7057_v40 = vunpack.i.l.bf16 %v7056_v49  ;;  %v2371_v37 = vpop.f32.mrf.mxu3 }
 0x2da   : > { %v2666_v7 = vmax.f32 %v8938_v23, 0.0  ;;  %v2372_v38 = vadd.f32 %v2371_v37, %v8636_v5  ;;  %v2608_v30 = vpop.f32.mrf.mxu2  ;;  %v2942_v49 = vmax.f32 %v10607_v2, %v2852_v6  ;;  %v10608_v37 = vmax.f32 %v8485_v61, 0.0  ;;  %v2453_v29 = vpop.f32.mrf.mxu0 }
 0x2db   : > { %v2945_v56 = vmax.f32 %v10606_v52, %v7058_v55  ;;  %v2853_v45 = vsel %vm2845_vm12, %v7057_v40, %v7058_v55  ;;  %v2532_v21 = vpop.f32.mrf.mxu1 }
 0x2dc   : > { %v7129_v44 = vpack.i.bf16 %v2666_v7, %v2665_v34  ;;  %v2451_v63 = vadd.f32 %v2450_v35, %v2372_v38  ;;  %v2944_v42 = vmax.f32 %v10608_v37, %v2853_v45  ;;  %v10519_v35 = vmax.f32 %v8601_v17, 0.0 }
 0x2dd   : > { %v2993_v60 = vpack.c.bf16 %v2945_v56, %v2943_v27 }
 0x2de   : > { %v2530_v12 = vadd.f32 %v2529_v36, %v2451_v63  ;;  %7130 = vrot.lane.b32.xlu1 %v7129_v44, %s7279_s30  ;;  %v2992_v51 = vpack.c.bf16 %v2944_v42, %v2942_v49  ;;  %v7063_v36 = vunpack.i.h.bf16 %v7061_v14 }
 0x2df   : > { %6269 = vmatmul.msk.bf16.gmra.mxu0 %vm3122_vm13, %v2993_v60  ;;  %v7062_v60 = vunpack.i.l.bf16 %v7061_v14  ;;  %v10610_v14 = vmax.f32 %v8769_v22, 0.0 }
 0x2e0   : > { %v8959_v55 = vadd.f32 %v2608_v30, %v2530_v12  ;;  %3191 = vmatmul.bf16.gmra.mxu3 %v2992_v51 }
 0x2e1   : > { %v2374_v40 = vpop.f32.mrf.mxu3  ;;  %v2854_v44 = vsel %vm2845_vm12, %v7062_v60, %v7063_v36 }
 0x2e2   : > { %v2668_v6 = vmax.f32 %v8959_v55, 0.0  ;;  %v2375_v61 = vadd.f32 %v2374_v40, %v8636_v5  ;;  %v2611_v38 = vpop.f32.mrf.mxu2  ;;  %v2455_v52 = vpop.f32.mrf.mxu0 }
 0x2e3   : > { %v2534_v63 = vpop.f32.mrf.mxu1 }
 0x2e4   : > { %v2454_v27 = vadd.f32 %v2453_v29, %v2375_v61  ;;  %v7134_v42 = vpack.i.bf16 %v2668_v6, %v10519_v35  ;;  %v2669_v29 = vmax.f32 %v8609_v13, 0.0 }
 0x2e6   : > { %v2533_v30 = vadd.f32 %v2532_v21, %v2454_v27  ;;  %7135 = vrot.lane.b32.xlu2 %v7134_v42, %s7279_s30  ;;  %v10609_v21 = vmax.f32 %v8754_v62, 0.0 }
 0x2e8   : > { %v8969_v56 = vadd.f32 %v2611_v38, %v2533_v30  ;;  %v7066_v45 = vpop.permute.xlu0 %7065  ;;  %v2947_v40 = vmax.f32 %v10609_v21, %v7063_v36  ;;  %v10611_v30 = vmax.f32 %v8497_v43, 0.0  ;;  %v7076_v43 = vpop.permute.xlu2 %7075 }
 0x2e9   : > { %v7068_v2 = vunpack.i.h.bf16 %v7066_v45  ;;  %v7067_v49 = vunpack.i.l.bf16 %v7066_v45  ;;  %v2376_v37 = vpop.f32.mrf.mxu3 }
 0x2ea   : > { %v2670_v12 = vmax.f32 %v8969_v56, 0.0  ;;  %v2377_v51 = vadd.f32 %v2376_v37, %v8636_v5  ;;  %v2613_v27 = vpop.f32.mrf.mxu2  ;;  %v2946_v45 = vmax.f32 %v10611_v30, %v2854_v44  ;;  %v10612_v37 = vmax.f32 %v10590_v15, 0.0  ;;  %v2458_v21 = vpop.f32.mrf.mxu0 }
 0x2eb   : > { %v2949_v61 = vmax.f32 %v10610_v14, %v7068_v2  ;;  %v2855_v38 = vsel %vm2845_vm12, %v7067_v49, %v7068_v2 }
 0x2ec   : > { %v7139_v42 = vpack.i.bf16 %v2670_v12, %v2669_v29  ;;  %v2456_v60 = vadd.f32 %v2455_v52, %v2377_v51  ;;  %v2948_v35 = vmax.f32 %v10612_v37, %v2855_v38  ;;  %v2671_v52 = vmax.f32 %v8612_v46, 0.0  ;;  %v2537_v51 = vpop.f32.mrf.mxu1 }
 0x2ed   : > { %v2995_v62 = vpack.c.bf16 %v2949_v61, %v2947_v40  ;;  %v7078_v38 = vunpack.i.h.bf16 %v7076_v43 }
 0x2ee   : > { %v2535_v36 = vadd.f32 %v2534_v63, %v2456_v60  ;;  %7140 = vrot.lane.b32.xlu0 %v7139_v42, %s7279_s30  ;;  %v2994_v22 = vpack.c.bf16 %v2948_v35, %v2946_v45 }
 0x2ef   : > { %6270 = vmatmul.msk.bf16.gmra.mxu0 %vm3122_vm13, %v2995_v62  ;;  %v10613_v62 = vmax.f32 %v8779_v4, 0.0 }
 0x2f0   : > { %v8990_v2 = vadd.f32 %v2613_v27, %v2535_v36  ;;  %v7071_v49 = vpop.permute.xlu1 %7070  ;;  %3196 = vmatmul.bf16.gmra.mxu3 %v2994_v22  ;;  %v7077_v27 = vunpack.i.l.bf16 %v7076_v43  ;;  %v10614_v43 = vmax.f32 %v8516_v41, 0.0 }
 0x2f1   : > { %v2379_v14 = vpop.f32.mrf.mxu3  ;;  %v7073_v63 = vunpack.i.h.bf16 %v7071_v49  ;;  %v7072_v40 = vunpack.i.l.bf16 %v7071_v49  ;;  %v2673_v49 = vmax.f32 %v8626_v39, 0.0  ;;  %v6338_v39 = vld [vmem:[%s10434_s4 + $0x70] sm:$0xf] }
 0x2f2   : > { %v2672_v44 = vmax.f32 %v8990_v2, 0.0  ;;  %v2380_v15 = vadd.f32 %v2379_v14, %v8636_v5  ;;  %v2616_v42 = vpop.f32.mrf.mxu2  ;;  %v2857_v37 = vsel %vm2845_vm12, %v7077_v27, %v7078_v38 }
 0x2f3   : > { %v2856_v30 = vsel %vm2845_vm12, %v7072_v40, %v7073_v63  ;;  %v2951_v36 = vmax.f32 %v10613_v62, %v7073_v63 }
 0x2f4   : > { %v2459_v61 = vadd.f32 %v2458_v21, %v2380_v15  ;;  %v7144_v35 = vpack.i.bf16 %v2672_v44, %v2671_v52  ;;  %v2950_v15 = vmax.f32 %v10614_v43, %v2856_v30 }
 0x2f6   : > { %v2538_v60 = vadd.f32 %v2537_v51, %v2459_v61  ;;  %7145 = vrot.lane.b32.xlu1 %v7144_v35, %s7279_s30  ;;  %v10615_v51 = vmax.f32 %v8795_v50, 0.0  ;;  %v2460_v61 = vpop.f32.mrf.mxu0  ;;  %v10616_v35 = vmax.f32 %v8519_v54, 0.0 }
 0x2f8   : > { %v9001_v45 = vadd.f32 %v2616_v42, %v2538_v60  ;;  %v2953_v40 = vmax.f32 %v10615_v51, %v7078_v38  ;;  %v2952_v27 = vmax.f32 %v10616_v35, %v2857_v37  ;;  %v2539_v60 = vpop.f32.mrf.mxu1  ;;  %v2675_v38 = vmax.f32 %v8628_v31, 0.0 }
 0x2f9   : > { %v2381_v22 = vpop.f32.mrf.mxu3 }
 0x2fa   : > { %v2674_v21 = vmax.f32 %v9001_v45, 0.0  ;;  %v2382_v14 = vadd.f32 %v2381_v22, %v8636_v5  ;;  %v2997_v42 = vpack.c.bf16 %v2953_v40, %v2951_v36  ;;  %v2996_v41 = vpack.c.bf16 %v2952_v27, %v2950_v15  ;;  %v2618_v5 = vpop.f32.mrf.mxu2 }
 0x2fb   : > { %v10617_v40 = vmax.f32 %v8805_v57, 0.0  ;;  %v10619_v27 = vmax.f32 %v8527_v25, 0.0 }
 0x2fc   : > { %v7149_v4 = vpack.i.bf16 %v2674_v21, %v2673_v49  ;;  %v2461_v63 = vadd.f32 %v2460_v61, %v2382_v14 }
 0x2fe   : > { %v2540_v62 = vadd.f32 %v2539_v60, %v2461_v63  ;;  %7150 = vrot.lane.b32.xlu2 %v7149_v4, %s7279_s30  ;;  %v10618_v4 = vmax.f32 %v8815_v11, 0.0  ;;  %v10620_v60 = vmax.f32 %v8530_v28, 0.0 }
 0x2ff   : > { %6271 = vmatmul.msk.bf16.gmra.mxu0 %vm3122_vm13, %v2997_v42 }
 0x300   : > { %v9021_v50 = vadd.f32 %v2618_v5, %v2540_v62  ;;  %3201 = vmatmul.bf16.gmra.mxu3 %v2996_v41  ;;  %v7081_v22 = vpop.permute.xlu0 %7080 }
 0x301   : > { %v7083_v37 = vunpack.i.h.bf16 %v7081_v22  ;;  %v7082_v36 = vunpack.i.l.bf16 %v7081_v22  ;;  %v7091_v22 = vpop.permute.xlu2 %7090 }
 0x302   : > { %v2676_v30 = vmax.f32 %v9021_v50, 0.0  ;;  %v7092_v57 = vunpack.i.l.bf16 %v7091_v22  ;;  %v6885_v50 = vld [vmem:[%s10434_s4 + $0xf4] sm:$0xf0] }
 0x303   : > { %v2858_v43 = vsel %vm2845_vm12, %v7082_v36, %v7083_v37  ;;  %v2955_v61 = vmax.f32 %v10617_v40, %v7083_v37 }
 0x304   : > { %v7154_v54 = vpack.i.bf16 %v2676_v30, %v2675_v38  ;;  %v2954_v42 = vmax.f32 %v10619_v27, %v2858_v43  ;;  %v10623_v43 = vld [vmem:[#allocation15_spill] sm:$0xff] }
 0x305   : > { %v10624_v40 = vmax.f32 %v10623_v43, 0.0  ;;  %v10627_v27 = vld [vmem:[#allocation35_spill] sm:$0xff]  ;;  %v10630_v43 = vmax.f32 %v8866_v8, 0.0 }
 0x306   : > { %7155 = vrot.lane.b32.xlu0 %v7154_v54, %s7279_s30  ;;  %v7093_v54 = vunpack.i.h.bf16 %v7091_v22  ;;  %s10520_s30 = smov 112  }
 0x308   : > { %v7086_v14 = vpop.permute.xlu1 %7085  ;;  %v2860_v11 = vsel %vm2845_vm12, %v7092_v57, %v7093_v54 }
 0x309   : > { %v7088_v15 = vunpack.i.h.bf16 %v7086_v14  ;;  %v7087_v51 = vunpack.i.l.bf16 %v7086_v14 }
 0x30b   : > { %v2957_v63 = vmax.f32 %v10618_v4, %v7088_v15  ;;  %v2859_v35 = vsel %vm2845_vm12, %v7087_v51, %v7088_v15  ;;  %v10621_v15 = vld [vmem:[#allocation13_spill] sm:$0xff]  ;;  %v10625_v4 = vld [vmem:[#allocation34_spill] sm:$0xff] }
 0x30c   : > { %v2956_v62 = vmax.f32 %v10620_v60, %v2859_v35  ;;  %v10622_v51 = vmax.f32 %v10621_v15, 0.0 }
 0x30d   : > { %v2999_v41 = vpack.c.bf16 %v2957_v63, %v2955_v61  ;;  %v10626_v63 = vmax.f32 %v10625_v4, 0.0 }
 0x30e   : > { %v2998_v5 = vpack.c.bf16 %v2956_v62, %v2954_v42  ;;  %v2959_v25 = vmax.f32 %v10622_v51, %v7093_v54  ;;  %v10628_v42 = vmax.f32 %v10627_v27, 0.0 }
 0x30f   : > { %6272 = vmatmul.msk.bf16.gmra.mxu0 %vm3122_vm13, %v2999_v41  ;;  %v2958_v35 = vmax.f32 %v10626_v63, %v2860_v11 }
 0x310   : > { %3206 = vmatmul.bf16.gmra.mxu3 %v2998_v5  ;;  %v7106_v22 = vpop.permute.xlu2 %7105 }
 0x311   : > { %v7107_v15 = vunpack.i.l.bf16 %v7106_v22 }
 0x318   : > { %v7096_v37 = vpop.permute.xlu0 %7095 }
 0x319   : > { %v7098_v36 = vunpack.i.h.bf16 %v7096_v37  ;;  %v7097_v14 = vunpack.i.l.bf16 %v7096_v37  ;;  %v7108_v37 = vunpack.i.h.bf16 %v7106_v22 }
 0x31b   : > { %v2961_v28 = vmax.f32 %v10624_v40, %v7098_v36  ;;  %v2861_v61 = vsel %vm2845_vm12, %v7097_v14, %v7098_v36  ;;  %v2863_v36 = vsel %vm2845_vm12, %v7107_v15, %v7108_v37  ;;  %v10629_v14 = vmax.f32 %v8556_v33, 0.0 }
 0x31c   : > { %v2960_v60 = vmax.f32 %v10628_v42, %v2861_v61  ;;  %v2965_v40 = vmax.f32 %v10630_v43, %v7108_v37  ;;  %v10631_v61 = vmax.f32 %v8559_v18, 0.0 }
 0x31d   : > { %v3001_v62 = vpack.c.bf16 %v2961_v28, %v2959_v25 }
 0x31e   : > { %v3000_v41 = vpack.c.bf16 %v2960_v60, %v2958_v35  ;;  %v2964_v4 = vmax.f32 %v10631_v61, %v2863_v36  ;;  %v10632_v36 = vmax.f32 %v8573_v58, 0.0 }
 0x31f   : > { %6273 = vmatmul.msk.bf16.gmra.mxu0 %vm3122_vm13, %v3001_v62 }
 0x320   : > { %v7101_v5 = vpop.permute.xlu1 %7100  ;;  %3211 = vmatmul.bf16.gmra.mxu3 %v3000_v41 }
 0x321   : > { %v7103_v57 = vunpack.i.h.bf16 %v7101_v5  ;;  %v7102_v54 = vunpack.i.l.bf16 %v7101_v5 }
 0x323   : > { %v2862_v51 = vsel %vm2845_vm12, %v7102_v54, %v7103_v57  ;;  %v2963_v11 = vmax.f32 %v2654_v32, %v7103_v57 }
 0x324   : > { %v2962_v25 = vmax.f32 %v10629_v14, %v2862_v51 }
 0x325   : > { %v3003_v63 = vpack.c.bf16 %v2965_v40, %v2963_v11 }
 0x326   : > { %v3002_v35 = vpack.c.bf16 %v2964_v4, %v2962_v25 }
 0x328   : > { %v7121_v9 = vpop.permute.xlu2 %7120 }
 0x329   : > { %v7123_v43 = vunpack.i.h.bf16 %v7121_v9  ;;  %v7122_v40 = vunpack.i.l.bf16 %v7121_v9 }
 0x32c   : > { %v3256_v28 = vpop.f32.mrf.mxu0 }
 0x32f   : > { %6274 = vmatmul.msk.bf16.gmra.mxu0 %vm3122_vm13, %v3003_v63 }
 0x330   : > { %3216 = vmatmul.bf16.gmra.mxu3 %v3002_v35  ;;  %v7111_v27 = vpop.permute.xlu0 %7110  ;;  %v2866_v35 = vsel %vm2845_vm12, %v7122_v40, %v7123_v43 }
 0x331   : > { %v7113_v60 = vunpack.i.h.bf16 %v7111_v27  ;;  %v7112_v33 = vunpack.i.l.bf16 %v7111_v27 }
 0x333   : > { %v3177_v42 = vpop.f32.mrf.mxu3  ;;  %v2864_v62 = vsel %vm2845_vm12, %v7112_v33, %v7113_v60  ;;  %v2967_v5 = vmax.f32 %v2658_v24, %v7113_v60 }
 0x334   : > { %v3257_v0 = vadd.f32 %v3256_v28, %v3177_v42  ;;  %v3258_v32 = vpop.f32.mrf.mxu0  ;;  %v2966_v51 = vmax.f32 %v2657_v48, %v2864_v62 }
 0x336   : > { %3327 = vst.msk [vmem:[#allocation2] sm:$0xff] %vm10525_vm14, %v3257_v0  ;;  %v2971_v0 = vmax.f32 %v2662_v19, %v7123_v43 }
 0x338   : > { %v7116_v8 = vpop.permute.xlu1 %7115 }
 0x339   : > { %v7118_v41 = vunpack.i.h.bf16 %v7116_v8  ;;  %v7117_v18 = vunpack.i.l.bf16 %v7116_v8 }
 0x33b   : > { %v2969_v22 = vmax.f32 %v2660_v26, %v7118_v41  ;;  %v2865_v57 = vsel %vm2845_vm12, %v7117_v18, %v7118_v41  ;;  %v3179_v54 = vpop.f32.mrf.mxu3  ;;  %v10633_v41 = vmax.f32 %v8584_v1, 0.0 }
 0x33c   : > { %v3259_v37 = vadd.f32 %v3258_v32, %v3179_v54  ;;  %v3261_v15 = vpop.f32.mrf.mxu0  ;;  %v2968_v11 = vmax.f32 %v10632_v36, %v2865_v57 }
 0x33d   : > { %v3005_v14 = vpack.c.bf16 %v2969_v22, %v2967_v5  ;;  %v2970_v18 = vmax.f32 %v10633_v41, %v2866_v35  ;;  %v10634_v5 = vmax.f32 %v8590_v20, 0.0 }
 0x33e   : > { %3328 = vst.msk [vmem:[#allocation2 + $0x8] sm:$0xff] %vm10525_vm14, %v3259_v37  ;;  %v3004_v25 = vpack.c.bf16 %v2968_v11, %v2966_v51 }
 0x33f   : > { %6275 = vmatmul.msk.bf16.gmra.mxu0 %vm3122_vm13, %v3005_v14 }
 0x340   : > { %3221 = vmatmul.bf16.gmra.mxu3 %v3004_v25  ;;  %v7136_v53 = vpop.permute.xlu2 %7135 }
 0x341   : > { %v7138_v36 = vunpack.i.h.bf16 %v7136_v53  ;;  %v7137_v1 = vunpack.i.l.bf16 %v7136_v53 }
 0x343   : > { %v3182_v24 = vpop.f32.mrf.mxu3 }
 0x344   : > { %v3262_v59 = vadd.f32 %v3261_v15, %v3182_v24  ;;  %v3263_v26 = vpop.f32.mrf.mxu0 }
 0x345   : > { %v3355_v28 = vld [vmem:[#allocation2] ss:$2 sm:$0xff]  ;;  %v3383_v61 = vld [vmem:[#allocation2 + $0x1] ss:$2 sm:$0xff] }
 0x346   : > { %v3410_v3 = vmax.f32 %v3355_v28, %v3383_v61  ;;  %3329 = vst.msk [vmem:[#allocation2 + $0x10] sm:$0xff] %vm10525_vm14, %v3262_v59  ;;  %v2977_v61 = vmax.f32 %v2668_v6, %v7138_v36 }
 0x348   : > { %v3438_v58 = vrot.slane %v3410_v3, 2  ;;  %v3439_v48 = vrot.slane %v3410_v3, 4  ;;  %v3440_v4 = vrot.slane %v3410_v3, 6  ;;  %3480 = vst [vmem:[#allocation1] ss:$4 sm:$0xff] %v3410_v3  ;;  %v7126_v63 = vpop.permute.xlu0 %7125 }
 0x349   : > { %v7128_v27 = vunpack.i.h.bf16 %v7126_v63  ;;  %v7127_v42 = vunpack.i.l.bf16 %v7126_v63 }
 0x34a   : > { %3482 = vst [vmem:[#allocation1 + $0x1] ss:$4 sm:$0xff] %v3438_v58 }
 0x34b   : > { %3484 = vst [vmem:[#allocation1 + $0x2] ss:$4 sm:$0xff] %v3439_v48  ;;  %v2973_v32 = vmax.f32 %v2664_v16, %v7128_v27  ;;  %v2867_v60 = vsel %vm2845_vm12, %v7127_v42, %v7128_v27  ;;  %v3184_v33 = vpop.f32.mrf.mxu3 }
 0x34c   : > { %3486 = vst [vmem:[#allocation1 + $0x3] ss:$4 sm:$0xff] %v3440_v4  ;;  %v3264_v8 = vadd.f32 %v3263_v26, %v3184_v33  ;;  %v3266_v62 = vpop.f32.mrf.mxu0  ;;  %v2972_v22 = vmax.f32 %v10634_v5, %v2867_v60  ;;  %v2869_v26 = vsel %vm2845_vm12, %v7137_v1, %v7138_v36  ;;  %v10635_v4 = vmax.f32 %v8601_v17, 0.0 }
 0x34d   : > { %v3007_v57 = vpack.c.bf16 %v2973_v32, %v2971_v0 }
 0x34e   : > { %3330 = vst.msk [vmem:[#allocation2 + $0x18] sm:$0xff] %vm10525_vm14, %v3264_v8  ;;  %v3006_v47 = vpack.c.bf16 %v2972_v22, %v2970_v18  ;;  %v2976_v63 = vmax.f32 %v10635_v4, %v2869_v26 }
 0x34f   : > { %6276 = vmatmul.msk.bf16.gmra.mxu0 %vm3122_vm13, %v3007_v57 }
 0x350   : > { %v7131_v19 = vpop.permute.xlu1 %7130  ;;  %3226 = vmatmul.bf16.gmra.mxu3 %v3006_v47 }
 0x351   : > { %v7133_v16 = vunpack.i.h.bf16 %v7131_v19  ;;  %v7132_v54 = vunpack.i.l.bf16 %v7131_v19 }
 0x353   : > { %v3187_v37 = vpop.f32.mrf.mxu3  ;;  %v2868_v25 = vsel %vm2845_vm12, %v7132_v54, %v7133_v16  ;;  %v2975_v43 = vmax.f32 %v2666_v7, %v7133_v16  ;;  %v3493_v28 = vld.sshfl [vmem:[#allocation1] sm:$0xff pattern:$0x73625140] }
 0x354   : > { %v3267_v15 = vadd.f32 %v3266_v62, %v3187_v37  ;;  %v3268_v51 = vpop.f32.mrf.mxu0  ;;  %v2974_v40 = vmax.f32 %v2665_v34, %v2868_v25  ;;  %v3574_v34 = vpack.c.bf16 %v3493_v28, %v3493_v28 }
 0x355   : > { %v3357_v11 = vld [vmem:[#allocation2 + $0x10] ss:$2 sm:$0xff]  ;;  %v3385_v14 = vld [vmem:[#allocation2 + $0x11] ss:$2 sm:$0xff]  ;;  %v3009_v35 = vpack.c.bf16 %v2977_v61, %v2975_v43 }
 0x356   : > { %v3411_v20 = vmax.f32 %v3357_v11, %v3385_v14  ;;  %3331 = vst.msk [vmem:[#allocation2 + $0x20] sm:$0xff] %vm10525_vm14, %v3267_v15  ;;  %v3008_v23 = vpack.c.bf16 %v2976_v63, %v2974_v40  ;;  %v3606_v17 = vunpack.c.l.b16 %v3574_v34 }
 0x358   : > { %v3441_v9 = vrot.slane %v3411_v20, 2  ;;  %v3442_v24 = vrot.slane %v3411_v20, 4  ;;  %v3443_v59 = vrot.slane %v3411_v20, 6  ;;  %3488 = vst [vmem:[#allocation1 + $0x20] ss:$4 sm:$0xff] %v3411_v20 }
 0x35a   : > { %3490 = vst [vmem:[#allocation1 + $0x21] ss:$4 sm:$0xff] %v3441_v9 }
 0x35b   : > { %3492 = vst [vmem:[#allocation1 + $0x22] ss:$4 sm:$0xff] %v3442_v24  ;;  %v3189_v3 = vpop.f32.mrf.mxu3 }
 0x35c   : > { %3495 = vst [vmem:[#allocation1] ss:$4 sm:$0xff] %v3443_v59  ;;  %v3269_v58 = vadd.f32 %v3268_v51, %v3189_v3  ;;  %v3271_v48 = vpop.f32.mrf.mxu0 }
 0x35e   : > { %3332 = vst.msk [vmem:[#allocation2 + $0x28] sm:$0xff] %vm10525_vm14, %v3269_v58 }
 0x35f   : > { %6277 = vmatmul.msk.bf16.gmra.mxu0 %vm3122_vm13, %v3009_v35 }
 0x360   : > { %3231 = vmatmul.bf16.gmra.mxu3 %v3008_v23  ;;  %v7141_v10 = vpop.permute.xlu0 %7140 }
 0x361   : > { %v7143_v27 = vunpack.i.h.bf16 %v7141_v10  ;;  %v7142_v42 = vunpack.i.l.bf16 %v7141_v10 }
 0x362   : > { %v3494_v7 = vld.sshfl [vmem:[#allocation1 + $0x20] sm:$0xff pattern:$0x73625140] }
 0x363   : > { %v3192_v55 = vpop.f32.mrf.mxu3  ;;  %v3575_v6 = vpack.c.bf16 %v3494_v7, %v3494_v7  ;;  %v2870_v57 = vsel %vm2845_vm12, %v7142_v42, %v7143_v27  ;;  %v2979_v37 = vmax.f32 %v2670_v12, %v7143_v27 }
 0x364   : > { %v3272_v0 = vadd.f32 %v3271_v48, %v3192_v55  ;;  %v3273_v32 = vpop.f32.mrf.mxu0  ;;  %v2978_v14 = vmax.f32 %v2669_v29, %v2870_v57  ;;  %v7151_v29 = vpop.permute.xlu2 %7150 }
 0x365   : > { %v3359_v60 = vld [vmem:[#allocation2 + $0x20] ss:$2 sm:$0xff]  ;;  %v3387_v33 = vld [vmem:[#allocation2 + $0x21] ss:$2 sm:$0xff]  ;;  %v3607_v8 = vunpack.c.l.b16 %v3575_v6  ;;  %v7153_v43 = vunpack.i.h.bf16 %v7151_v29  ;;  %v7152_v40 = vunpack.i.l.bf16 %v7151_v29 }
 0x366   : > { %v3412_v62 = vmax.f32 %v3359_v60, %v3387_v33  ;;  %3333 = vst.msk [vmem:[#allocation2 + $0x30] sm:$0xff] %vm10525_vm14, %v3272_v0 }
 0x367   : > { %v9103_v41 = vpack.c.b16 %v3607_v8, %v3606_v17  ;;  %v2872_v35 = vsel %vm2845_vm12, %v7152_v40, %v7153_v43  ;;  %v2983_v7 = vmax.f32 %v2674_v21, %v7153_v43  ;;  %v6402_v21 = vld [vmem:[%s10434_s4 + $0xf0] sm:$0xf] }
 0x368   : > { %v3444_v18 = vrot.slane %v3412_v62, 2  ;;  %v3445_v5 = vrot.slane %v3412_v62, 4  ;;  %v3446_v22 = vrot.slane %v3412_v62, 6  ;;  %3496 = vst [vmem:[#allocation1 + $0x1] ss:$4 sm:$0xff] %v3412_v62  ;;  %v7146_v47 = vpop.permute.xlu1 %7145 }
 0x369   : > { %v7148_v19 = vunpack.i.h.bf16 %v7146_v47  ;;  %v7147_v53 = vunpack.i.l.bf16 %v7146_v47  ;;  %v3766_v16 = vrot.slane %v9103_v41, 2  ;;  %v3702_v54 = vrot.slane %v9103_v41, 1 }
 0x36a   : > { %3497 = vst [vmem:[#allocation1 + $0x2] ss:$4 sm:$0xff] %v3444_v18  ;;  %v3631_v15 = vshrl.u32 %v9103_v41, 16  ;;  %v3633_v51 = vshll.u32 %v9103_v41, 16 }
 0x36b   : > { %3498 = vst [vmem:[#allocation1 + $0x3] ss:$4 sm:$0xff] %v3445_v5  ;;  %v2981_v36 = vmax.f32 %v2672_v44, %v7148_v19  ;;  %v2871_v1 = vsel %vm2845_vm12, %v7147_v53, %v7148_v19  ;;  %3774 = vrot.lane.b32.xlu1 %v3766_v16, %s10546_s14  ;;  %3710 = vrot.lane.b32.xlu0 %v3702_v54, %s10545_s27  ;;  %v3194_v11 = vpop.f32.mrf.mxu3 }
 0x36c   : > { %3499 = vst [vmem:[#allocation1 + $0x20] ss:$4 sm:$0xff] %v3446_v22  ;;  %v3274_v56 = vadd.f32 %v3273_v32, %v3194_v11  ;;  %v3276_v12 = vpop.f32.mrf.mxu0  ;;  %v3726_v20 = vrot.slane %v3631_v15, 1  ;;  %v3727_v25 = vrot.slane %v3633_v51, 2  ;;  %v2980_v9 = vmax.f32 %v2671_v52, %v2871_v1 }
 0x36d   : > { %v3011_v2 = vpack.c.bf16 %v2981_v36, %v2979_v37  ;;  %v3635_v44 = vrot.slane %v3633_v51, 1  ;;  %v2982_v32 = vmax.f32 %v2673_v49, %v2872_v35  ;;  %v6403_v49 = vor.u32 %v6885_v50, %v6402_v21 }
 0x36e   : > { %3334 = vst.msk [vmem:[#allocation2 + $0x38] sm:$0xff] %vm10525_vm14, %v3274_v56  ;;  %v3728_v24 = vor.u32 %v3727_v25, %v3726_v20  ;;  %v3010_v59 = vpack.c.bf16 %v2980_v9, %v2978_v14 }
 0x36f   : > { %6278 = vmatmul.msk.bf16.gmra.mxu0 %vm3122_vm13, %v3011_v2  ;;  %v3636_v13 = vor.u32 %v3635_v44, %v3631_v15  ;;  %4777 = vmatpush.bf16.msra.mxu2 %v6403_v49 }
 0x370   : > { %3750 = vrot.lane.b32.xlu2 %v3728_v24, %s7280_s19  ;;  %3236 = vmatmul.bf16.gmra.mxu3 %v3010_v59 }
 0x372   : > { %v3502_v34 = vld.sshfl [vmem:[#allocation1] sm:$0xff pattern:$0x73625140] }
 0x373   : > { %3686 = vrot.lane.b32.xlu1 %v3636_v13, %s10520_s30  ;;  %v3197_v26 = vpop.f32.mrf.mxu3  ;;  %v3576_v31 = vpack.c.bf16 %v3502_v34, %v3502_v34  ;;  %v6394_v34 = vld [vmem:[%s10434_s4 + $0xe0] sm:$0xf] }
 0x374   : > { %v3277_v46 = vadd.f32 %v3276_v12, %v3197_v26  ;;  %v3278_v52 = vpop.f32.mrf.mxu0 }
 0x375   : > { %v3361_v28 = vld [vmem:[#allocation2 + $0x30] ss:$2 sm:$0xff]  ;;  %v3389_v61 = vld [vmem:[#allocation2 + $0x31] ss:$2 sm:$0xff]  ;;  %v3608_v22 = vunpack.c.l.b16 %v3576_v31 }
 0x376   : > { %v3413_v3 = vmax.f32 %v3361_v28, %v3389_v61  ;;  %3335 = vst.msk [vmem:[#allocation2 + $0x40] sm:$0xff] %vm10525_vm14, %v3277_v46 }
 0x378   : > { %v3447_v58 = vrot.slane %v3413_v3, 2  ;;  %v3448_v48 = vrot.slane %v3413_v3, 4  ;;  %v3449_v4 = vrot.slane %v3413_v3, 6  ;;  %3500 = vst [vmem:[#allocation1 + $0x21] ss:$4 sm:$0xff] %v3413_v3  ;;  %v7156_v63 = vpop.permute.xlu0 %7155 }
 0x379   : > { %v7158_v23 = vunpack.i.h.bf16 %v7156_v63  ;;  %v7157_v10 = vunpack.i.l.bf16 %v7156_v63 }
 0x37a   : > { %3501 = vst [vmem:[#allocation1 + $0x22] ss:$4 sm:$0xff] %v3447_v58 }
 0x37b   : > { %3504 = vst [vmem:[#allocation1] ss:$4 sm:$0xff] %v3448_v48  ;;  %v2985_v55 = vmax.f32 %v2676_v30, %v7158_v23  ;;  %v2873_v6 = vsel %vm2845_vm12, %v7157_v10, %v7158_v23  ;;  %v3199_v27 = vpop.f32.mrf.mxu3  ;;  %vm10528_vm12 = vcmask 1046532  }
 0x37c   : > { %3505 = vst [vmem:[#allocation1 + $0x1] ss:$4 sm:$0xff] %v3449_v4  ;;  %v3279_v42 = vadd.f32 %v3278_v52, %v3199_v27  ;;  %v3281_v0 = vpop.f32.mrf.mxu0  ;;  %v2984_v60 = vmax.f32 %v2675_v38, %v2873_v6  ;;  %v6869_v38 = vld [vmem:[%s10434_s4 + $0x74] sm:$0xf0] }
 0x37d   : > { %v3013_v33 = vpack.c.bf16 %v2985_v55, %v2983_v7  ;;  %v6339_v17 = vor.u32 %v6869_v38, %v6338_v39  ;;  %v6883_v7 = vld [vmem:[%s10434_s4 + $0xe4] sm:$0xf0]  ;;  %v6330_v55 = vld [vmem:[%s10434_s4 + $0x60] sm:$0xf] }
 0x37e   : > { %3336 = vst.msk [vmem:[#allocation2 + $0x48] sm:$0xff] %vm10525_vm14, %v3279_v42  ;;  %v3012_v45 = vpack.c.bf16 %v2984_v60, %v2982_v32  ;;  %v6867_v32 = vld [vmem:[%s10434_s4 + $0x64] sm:$0xf0] }
 0x37f   : > { %6279 = vmatmul.msk.bf16.gmra.mxu0 %vm3122_vm13, %v3013_v33  ;;  %4743 = vmatpush.bf16.msra.mxu1 %v6339_v17  ;;  %vm3924_vm13 = vcmask 1042433  }
 0x380   : > { %3241 = vmatmul.bf16.gmra.mxu3 %v3012_v45  ;;  %v6331_v45 = vor.u32 %v6867_v32, %v6330_v55 }
 0x381   : > { %v3503_v30 = vld.sshfl [vmem:[#allocation1 + $0x20] sm:$0xff pattern:$0x73625140] }
 0x382   : > { %v3577_v8 = vpack.c.bf16 %v3503_v30, %v3503_v30 }
 0x383   : > { %v3202_v62 = vpop.f32.mrf.mxu3  ;;  %4744 = vmatpush.bf16.msra.mxu1 %v6331_v45 }
 0x384   : > { %v3282_v18 = vadd.f32 %v3281_v0, %v3202_v62  ;;  %v3283_v5 = vpop.f32.mrf.mxu0  ;;  %v3609_v57 = vunpack.c.l.b16 %v3577_v8  ;;  %v6395_v0 = vor.u32 %v6883_v7, %v6394_v34 }
 0x385   : > { %v3363_v47 = vld [vmem:[#allocation2 + $0x40] ss:$2 sm:$0xff]  ;;  %v3391_v19 = vld [vmem:[#allocation2 + $0x41] ss:$2 sm:$0xff] }
 0x386   : > { %v3414_v53 = vmax.f32 %v3363_v47, %v3391_v19  ;;  %3337 = vst.msk [vmem:[#allocation2 + $0x50] sm:$0xff] %vm10525_vm14, %v3282_v18  ;;  %v9151_v16 = vpack.c.b16 %v3609_v57, %v3608_v22  ;;  %4778 = vmatpush.bf16.msra.mxu2 %v6395_v0 }
 0x388   : > { %v3450_v54 = vrot.slane %v3414_v53, 2  ;;  %v3451_v37 = vrot.slane %v3414_v53, 4  ;;  %v3452_v15 = vrot.slane %v3414_v53, 6  ;;  %3506 = vst [vmem:[#allocation1 + $0x2] ss:$4 sm:$0xff] %v3414_v53  ;;  %v3703_v51 = vrot.slane %v9151_v16, 1 }
 0x389   : > { %v3638_v36 = vshrl.u32 %v9151_v16, 16  ;;  %v3640_v1 = vshll.u32 %v9151_v16, 16  ;;  %v3767_v26 = vrot.slane %v9151_v16, 2 }
 0x38a   : > { %3507 = vst [vmem:[#allocation1 + $0x3] ss:$4 sm:$0xff] %v3450_v54  ;;  %3712 = vrot.lane.b32.xlu1 %v3703_v51, %s10545_s27 }
 0x38b   : > { %3508 = vst [vmem:[#allocation1 + $0x20] ss:$4 sm:$0xff] %v3451_v37  ;;  %v3204_v11 = vpop.f32.mrf.mxu3  ;;  %v3729_v14 = vrot.slane %v3638_v36, 1  ;;  %v3730_v56 = vrot.slane %v3640_v1, 2  ;;  %v3642_v12 = vrot.slane %v3640_v1, 1 }
 0x38c   : > { %3509 = vst [vmem:[#allocation1 + $0x21] ss:$4 sm:$0xff] %v3452_v15  ;;  %v3284_v20 = vadd.f32 %v3283_v5, %v3204_v11  ;;  %v3286_v25 = vpop.f32.mrf.mxu0 }
 0x38d   : > { %v3731_v9 = vor.u32 %v3730_v56, %v3729_v14  ;;  %v3643_v2 = vor.u32 %v3642_v12, %v3638_v36 }
 0x38e   : > { %3338 = vst.msk [vmem:[#allocation2 + $0x58] sm:$0xff] %vm10525_vm14, %v3284_v20 }
 0x38f   : > { %3752 = vrot.lane.b32.xlu0 %v3731_v9, %s7280_s19  ;;  %3688 = vrot.lane.b32.xlu2 %v3643_v2, %s10520_s30 }
 0x391   : > { %v3511_v28 = vld.sshfl [vmem:[#allocation1] sm:$0xff pattern:$0x73625140] }
 0x392   : > { %v3578_v48 = vpack.c.bf16 %v3511_v28, %v3511_v28 }
 0x393   : > { %v3207_v44 = vpop.f32.mrf.mxu3 }
 0x394   : > { %v3287_v24 = vadd.f32 %v3286_v25, %v3207_v44  ;;  %v3288_v59 = vpop.f32.mrf.mxu0  ;;  %v3610_v35 = vunpack.c.l.b16 %v3578_v48  ;;  %v6865_v48 = vld [vmem:[%s10434_s4 + $0x54] sm:$0xf0] }
 0x395   : > { %v3365_v13 = vld [vmem:[#allocation2 + $0x50] ss:$2 sm:$0xff]  ;;  %v3393_v29 = vld [vmem:[#allocation2 + $0x51] ss:$2 sm:$0xff] }
 0x396   : > { %v3415_v46 = vmax.f32 %v3365_v13, %v3393_v29  ;;  %3339 = vst.msk [vmem:[#allocation2 + $0x60] sm:$0xff] %vm10525_vm14, %v3287_v24 }
 0x397   : > { %3776 = vrot.lane.b32.xlu2 %v3767_v26, %s10546_s14 }
 0x398   : > { %v3453_v52 = vrot.slane %v3415_v46, 2  ;;  %v3454_v43 = vrot.slane %v3415_v46, 4  ;;  %v3455_v40 = vrot.slane %v3415_v46, 6  ;;  %3510 = vst [vmem:[#allocation1 + $0x22] ss:$4 sm:$0xff] %v3415_v46 }
 0x399   : > { %v6386_v46 = vld [vmem:[%s10434_s4 + $0xd0] sm:$0xf] }
 0x39a   : > { %3513 = vst [vmem:[#allocation1] ss:$4 sm:$0xff] %v3453_v52  ;;  %v6881_v52 = vld [vmem:[%s10434_s4 + $0xd4] sm:$0xf0] }
 0x39b   : > { %3514 = vst [vmem:[#allocation1 + $0x1] ss:$4 sm:$0xff] %v3454_v43  ;;  %v3209_v61 = vpop.f32.mrf.mxu3 }
 0x39c   : > { %3515 = vst [vmem:[#allocation1 + $0x2] ss:$4 sm:$0xff] %v3455_v40  ;;  %v3289_v3 = vadd.f32 %v3288_v59, %v3209_v61  ;;  %v3291_v58 = vpop.f32.mrf.mxu0 }
 0x39e   : > { %3340 = vst.msk [vmem:[#allocation2 + $0x68] sm:$0xff] %vm10525_vm14, %v3289_v3  ;;  %v6387_v3 = vor.u32 %v6881_v52, %v6386_v46 }
 0x39f   : > { %v3512_v4 = vld.sshfl [vmem:[#allocation1 + $0x20] sm:$0xff pattern:$0x73625140] }
 0x3a0   : > { %v3579_v63 = vpack.c.bf16 %v3512_v4, %v3512_v4  ;;  %4779 = vmatpush.bf16.msra.mxu2 %v6387_v3 }
 0x3a2   : > { %v3611_v23 = vunpack.c.l.b16 %v3579_v63 }
 0x3a3   : > { %v3212_v10 = vpop.f32.mrf.mxu3 }
 0x3a4   : > { %v3292_v6 = vadd.f32 %v3291_v58, %v3212_v10  ;;  %v3293_v27 = vpop.f32.mrf.mxu0  ;;  %v9173_v42 = vpack.c.b16 %v3611_v23, %v3610_v35  ;;  %v6322_v58 = vld [vmem:[%s10434_s4 + $0x50] sm:$0xf] }
 0x3a5   : > { %v3367_v60 = vld [vmem:[#allocation2 + $0x60] ss:$2 sm:$0xff]  ;;  %v3395_v33 = vld [vmem:[#allocation2 + $0x61] ss:$2 sm:$0xff]  ;;  %v6323_v35 = vor.u32 %v6865_v48, %v6322_v58 }
 0x3a6   : > { %v3416_v21 = vmax.f32 %v3367_v60, %v3395_v33  ;;  %3341 = vst.msk [vmem:[#allocation2 + $0x70] sm:$0xff] %vm10525_vm14, %v3292_v6  ;;  %v3704_v50 = vrot.slane %v9173_v42, 1  ;;  %v3768_v39 = vrot.slane %v9173_v42, 2  ;;  %v3645_v31 = vshrl.u32 %v9173_v42, 16 }
 0x3a7   : > { %v3647_v49 = vshll.u32 %v9173_v42, 16  ;;  %4745 = vmatpush.bf16.msra.mxu1 %v6323_v35  ;;  %v6877_v35 = vld [vmem:[%s10434_s4 + $0xb4] sm:$0xf0] }
 0x3a8   : > { %v3456_v38 = vrot.slane %v3416_v21, 2  ;;  %v3457_v30 = vrot.slane %v3416_v21, 4  ;;  %v3458_v17 = vrot.slane %v3416_v21, 6  ;;  %3516 = vst [vmem:[#allocation1 + $0x3] ss:$4 sm:$0xff] %v3416_v21  ;;  %3714 = vrot.lane.b32.xlu1 %v3704_v50, %s10545_s27  ;;  %3778 = vrot.lane.b32.xlu0 %v3768_v39, %s10546_s14  ;;  %v3732_v8 = vrot.slane %v3645_v31, 1 }
 0x3a9   : > { %v3733_v62 = vrot.slane %v3647_v49, 2  ;;  %v3649_v18 = vrot.slane %v3647_v49, 1  ;;  %v6378_v39 = vld [vmem:[%s10434_s4 + $0xc0] sm:$0xf] }
 0x3aa   : > { %3517 = vst [vmem:[#allocation1 + $0x20] ss:$4 sm:$0xff] %v3456_v38 }
 0x3ab   : > { %3518 = vst [vmem:[#allocation1 + $0x21] ss:$4 sm:$0xff] %v3457_v30  ;;  %v3214_v5 = vpop.f32.mrf.mxu3  ;;  %v3734_v22 = vor.u32 %v3733_v62, %v3732_v8  ;;  %v3650_v19 = vor.u32 %v3649_v18, %v3645_v31  ;;  %v6879_v31 = vld [vmem:[%s10434_s4 + $0xc4] sm:$0xf0] }
 0x3ac   : > { %3519 = vst [vmem:[#allocation1 + $0x22] ss:$4 sm:$0xff] %v3458_v17  ;;  %v3294_v57 = vadd.f32 %v3293_v27, %v3214_v5  ;;  %v3296_v47 = vpop.f32.mrf.mxu0  ;;  %v6379_v49 = vor.u32 %v6879_v31, %v6378_v39  ;;  %v6882_v39 = vld [vmem:[%s10434_s4 + $0xe4] sm:$0xf] }
 0x3ad   : > { %3754 = vrot.lane.b32.xlu2 %v3734_v22, %s7280_s19 }
 0x3ae   : > { %3342 = vst.msk [vmem:[#allocation2 + $0x78] sm:$0xff] %vm10525_vm14, %v3294_v57  ;;  %4780 = vmatpush.bf16.msra.mxu2 %v6379_v49  ;;  %v6396_v49 = vld [vmem:[%s10434_s4 + $0xe8] sm:$0xf0] }
 0x3af   : > { %v3520_v53 = vld.sshfl [vmem:[#allocation1] sm:$0xff pattern:$0x73625140] }
 0x3b0   : > { %3690 = vrot.lane.b32.xlu0 %v3650_v19, %s10520_s30  ;;  %v3580_v54 = vpack.c.bf16 %v3520_v53, %v3520_v53 }
 0x3b2   : > { %v3612_v12 = vunpack.c.l.b16 %v3580_v54 }
 0x3b3   : > { %v3217_v37 = vpop.f32.mrf.mxu3  ;;  %v3521_v15 = vld.sshfl [vmem:[#allocation1 + $0x20] sm:$0xff pattern:$0x73625140] }
 0x3b4   : > { %v3297_v51 = vadd.f32 %v3296_v47, %v3217_v37  ;;  %v3298_v36 = vpop.f32.mrf.mxu0  ;;  %v3581_v1 = vpack.c.bf16 %v3521_v15, %v3521_v15 }
 0x3b5   : > { %v3369_v11 = vld [vmem:[#allocation2 + $0x70] ss:$2 sm:$0xff]  ;;  %v3397_v14 = vld [vmem:[#allocation2 + $0x71] ss:$2 sm:$0xff] }
 0x3b6   : > { %v3417_v56 = vmax.f32 %v3369_v11, %v3397_v14  ;;  %3343 = vst.msk [vmem:[#allocation2 + $0x80] sm:$0xff] %vm10525_vm14, %v3297_v51  ;;  %v3613_v20 = vunpack.c.l.b16 %v3581_v1  ;;  %v6314_v11 = vld [vmem:[%s10434_s4 + $0x40] sm:$0xf]  ;;  %v6863_v14 = vld [vmem:[%s10434_s4 + $0x44] sm:$0xf0] }
 0x3b8   : > { %v3459_v25 = vrot.slane %v3417_v56, 2  ;;  %v3460_v9 = vrot.slane %v3417_v56, 4  ;;  %v3461_v2 = vrot.slane %v3417_v56, 6  ;;  %3522 = vst [vmem:[#allocation1] ss:$4 sm:$0xff] %v3417_v56  ;;  %v9189_v44 = vpack.c.b16 %v3613_v20, %v3612_v12 }
 0x3ba   : > { %3523 = vst [vmem:[#allocation1 + $0x1] ss:$4 sm:$0xff] %v3459_v25  ;;  %v3769_v24 = vrot.slane %v9189_v44, 2  ;;  %v3705_v59 = vrot.slane %v9189_v44, 1  ;;  %v3652_v13 = vshrl.u32 %v9189_v44, 16  ;;  %v3654_v29 = vshll.u32 %v9189_v44, 16 }
 0x3bb   : > { %3524 = vst [vmem:[#allocation1 + $0x2] ss:$4 sm:$0xff] %v3460_v9  ;;  %v3219_v26 = vpop.f32.mrf.mxu3  ;;  %v6315_v9 = vor.u32 %v6863_v14, %v6314_v11  ;;  %v6452_v11 = vld [vmem:[%s10434_s4 + $0x158] sm:$0xf0] }
 0x3bc   : > { %3525 = vst [vmem:[#allocation1 + $0x3] ss:$4 sm:$0xff] %v3461_v2  ;;  %3780 = vrot.lane.b32.xlu1 %v3769_v24, %s10546_s14  ;;  %3716 = vrot.lane.b32.xlu2 %v3705_v59, %s10545_s27  ;;  %v3299_v43 = vadd.f32 %v3298_v36, %v3219_v26  ;;  %v3301_v40 = vpop.f32.mrf.mxu0  ;;  %v3735_v28 = vrot.slane %v3652_v13, 1  ;;  %v3736_v61 = vrot.slane %v3654_v29, 2  ;;  %v3656_v63 = vrot.slane %v3654_v29, 1 }
 0x3bd   : > { %4746 = vmatpush.bf16.msra.mxu1 %v6315_v9 }
 0x3be   : > { %3344 = vst.msk [vmem:[#allocation2 + $0x88] sm:$0xff] %vm10525_vm14, %v3299_v43  ;;  %v3737_v4 = vor.u32 %v3736_v61, %v3735_v28  ;;  %v3657_v23 = vor.u32 %v3656_v63, %v3652_v13  ;;  %v6370_v63 = vld [vmem:[%s10434_s4 + $0xb0] sm:$0xf] }
 0x3c0   : > { %3756 = vrot.lane.b32.xlu0 %v3737_v4, %s7280_s19 }
 0x3c3   : > { %v3222_v10 = vpop.f32.mrf.mxu3  ;;  %v3529_v33 = vld.sshfl [vmem:[#allocation1] sm:$0xff pattern:$0x73625140] }
 0x3c4   : > { %3692 = vrot.lane.b32.xlu1 %v3657_v23, %s10520_s30  ;;  %v3302_v34 = vadd.f32 %v3301_v40, %v3222_v10  ;;  %v3303_v7 = vpop.f32.mrf.mxu0  ;;  %v3582_v38 = vpack.c.bf16 %v3529_v33, %v3529_v33 }
 0x3c5   : > { %v3371_v55 = vld [vmem:[#allocation2 + $0x80] ss:$2 sm:$0xff]  ;;  %v3399_v6 = vld [vmem:[#allocation2 + $0x81] ss:$2 sm:$0xff] }
 0x3c6   : > { %v3418_v27 = vmax.f32 %v3371_v55, %v3399_v6  ;;  %3345 = vst.msk [vmem:[#allocation2 + $0x90] sm:$0xff] %vm10525_vm14, %v3302_v34  ;;  %v3614_v57 = vunpack.c.l.b16 %v3582_v38  ;;  %v6371_v34 = vor.u32 %v6877_v35, %v6370_v63  ;;  %v6861_v55 = vld [vmem:[%s10434_s4 + $0x34] sm:$0xf0]  ;;  %v6884_v6 = vld [vmem:[%s10434_s4 + $0xf4] sm:$0xf] }
 0x3c7   : > { %v6898_v38 = vld [vmem:[%s10434_s4 + $0x164] sm:$0xf]  ;;  %v6372_v63 = vld [vmem:[%s10434_s4 + $0xb8] sm:$0xf0]  ;;  %v6892_v35 = vld [vmem:[%s10434_s4 + $0x134] sm:$0xf] }
 0x3c8   : > { %v3462_v0 = vrot.slane %v3418_v27, 2  ;;  %v3463_v32 = vrot.slane %v3418_v27, 4  ;;  %v3464_v60 = vrot.slane %v3418_v27, 6  ;;  %3526 = vst [vmem:[#allocation1 + $0x20] ss:$4 sm:$0xff] %v3418_v27  ;;  %4781 = vmatpush.bf16.msra.mxu2 %v6371_v34 }
 0x3c9   : > { %v6436_v34 = vld [vmem:[%s10434_s4 + $0x138] sm:$0xf0] }
 0x3ca   : > { %3527 = vst [vmem:[#allocation1 + $0x21] ss:$4 sm:$0xff] %v3462_v0  ;;  %v6404_v0 = vld [vmem:[%s10434_s4 + $0xf8] sm:$0xf0] }
 0x3cb   : > { %3528 = vst [vmem:[#allocation1 + $0x22] ss:$4 sm:$0xff] %v3463_v32  ;;  %v3224_v45 = vpop.f32.mrf.mxu3  ;;  %v6900_v32 = vld [vmem:[%s10434_s4 + $0x174] sm:$0xf]  ;;  %v6407_v33 = vor.u32 %v6884_v6, %v6404_v0 }
 0x3cc   : > { %3531 = vst [vmem:[#allocation1] ss:$4 sm:$0xff] %v3464_v60  ;;  %v3304_v21 = vadd.f32 %v3303_v7, %v3224_v45  ;;  %v3306_v50 = vpop.f32.mrf.mxu0  ;;  %v6306_v7 = vld [vmem:[%s10434_s4 + $0x30] sm:$0xf]  ;;  %v6468_v60 = vld [vmem:[%s10434_s4 + $0x178] sm:$0xf0] }
 0x3cd   : > { %v6307_v27 = vor.u32 %v6861_v55, %v6306_v7  ;;  %v6471_v45 = vor.u32 %v6900_v32, %v6468_v60  ;;  %4947 = vmatpush.bf16.msrb.mxu3 %v6407_v33  ;;  %v6439_v7 = vor.u32 %v6892_v35, %v6436_v34  ;;  %v6298_v32 = vld [vmem:[%s10434_s4 + $0x20] sm:$0xf]  ;;  %v6859_v60 = vld [vmem:[%s10434_s4 + $0x24] sm:$0xf0]  ;;  %v6348_v35 = vld [vmem:[%s10434_s4 + $0x88] sm:$0xf0] }
 0x3ce   : > { %3346 = vst.msk [vmem:[#allocation2 + $0x98] sm:$0xff] %vm10525_vm14, %v3304_v21 }
 0x3cf   : > { %4747 = vmatpush.bf16.msra.mxu1 %v6307_v27  ;;  %4981 = vmatpush.bf16.msrb.mxu0 %v6471_v45  ;;  %v6362_v45 = vld [vmem:[%s10434_s4 + $0xa0] sm:$0xf] }
 0x3d2   : > { %v3530_v30 = vld.sshfl [vmem:[#allocation1 + $0x20] sm:$0xff pattern:$0x73625140] }
 0x3d3   : > { %v3227_v17 = vpop.f32.mrf.mxu3  ;;  %v3583_v8 = vpack.c.bf16 %v3530_v30, %v3530_v30 }
 0x3d4   : > { %v3307_v62 = vadd.f32 %v3306_v50, %v3227_v17  ;;  %v3308_v18 = vpop.f32.mrf.mxu0  ;;  %v6399_v17 = vor.u32 %v6882_v39, %v6396_v49  ;;  %v9340_v39 = vpop.permute.xlu2 %3750  ;;  %v6364_v49 = vld [vmem:[%s10434_s4 + $0xa8] sm:$0xf0] }
 0x3d5   : > { %v3373_v5 = vld [vmem:[#allocation2 + $0x90] ss:$2 sm:$0xff]  ;;  %v3401_v22 = vld [vmem:[#allocation2 + $0x91] ss:$2 sm:$0xff]  ;;  %v3615_v47 = vunpack.c.l.b16 %v3583_v8  ;;  %v6460_v8 = vld [vmem:[%s10434_s4 + $0x168] sm:$0xf0] }
 0x3d6   : > { %v3419_v19 = vmax.f32 %v3373_v5, %v3401_v22  ;;  %3347 = vst.msk [vmem:[#allocation2 + $0xa0] sm:$0xff] %vm10525_vm14, %v3307_v62  ;;  %v6463_v22 = vor.u32 %v6898_v38, %v6460_v8  ;;  %4948 = vmatpush.bf16.msrb.mxu3 %v6399_v17  ;;  %v6890_v38 = vld [vmem:[%s10434_s4 + $0x124] sm:$0xf] }
 0x3d7   : > { %v9221_v53 = vpack.c.b16 %v3615_v47, %v3614_v57  ;;  %v6880_v57 = vld [vmem:[%s10434_s4 + $0xd4] sm:$0xf]  ;;  %v6388_v47 = vld [vmem:[%s10434_s4 + $0xd8] sm:$0xf0] }
 0x3d8   : > { %v3465_v54 = vrot.slane %v3419_v19, 2  ;;  %v3466_v37 = vrot.slane %v3419_v19, 4  ;;  %v3467_v15 = vrot.slane %v3419_v19, 6  ;;  %3532 = vst [vmem:[#allocation1 + $0x1] ss:$4 sm:$0xff] %v3419_v19  ;;  %4982 = vmatpush.bf16.msrb.mxu0 %v6463_v22 }
 0x3d9   : > { %v3706_v51 = vrot.slane %v9221_v53, 1  ;;  %v3659_v36 = vshrl.u32 %v9221_v53, 16  ;;  %v3661_v1 = vshll.u32 %v9221_v53, 16  ;;  %v3770_v40 = vrot.slane %v9221_v53, 2  ;;  %v6896_v19 = vld [vmem:[%s10434_s4 + $0x154] sm:$0xf] }
 0x3da   : > { %3533 = vst [vmem:[#allocation1 + $0x2] ss:$4 sm:$0xff] %v3465_v54  ;;  %v6857_v22 = vld [vmem:[%s10434_s4 + $0x14] sm:$0xf0] }
 0x3db   : > { %3534 = vst [vmem:[#allocation1 + $0x3] ss:$4 sm:$0xff] %v3466_v37  ;;  %3718 = vrot.lane.b32.xlu0 %v3706_v51, %s10545_s27  ;;  %v3229_v56 = vpop.f32.mrf.mxu3  ;;  %v3738_v12 = vrot.slane %v3659_v36, 1  ;;  %v3739_v20 = vrot.slane %v3661_v1, 2  ;;  %v3663_v25 = vrot.slane %v3661_v1, 1  ;;  %v6391_v51 = vor.u32 %v6880_v57, %v6388_v47 }
 0x3dc   : > { %3535 = vst [vmem:[#allocation1 + $0x20] ss:$4 sm:$0xff] %v3467_v15  ;;  %v3309_v2 = vadd.f32 %v3308_v18, %v3229_v56  ;;  %v3311_v24 = vpop.f32.mrf.mxu0  ;;  %v6299_v47 = vor.u32 %v6859_v60, %v6298_v32 }
 0x3dd   : > { %v3740_v59 = vor.u32 %v3739_v20, %v3738_v12  ;;  %v3664_v13 = vor.u32 %v3663_v25, %v3659_v36  ;;  %v6455_v20 = vor.u32 %v6896_v19, %v6452_v11  ;;  %v6878_v25 = vld [vmem:[%s10434_s4 + $0xc4] sm:$0xf]  ;;  %4949 = vmatpush.bf16.msrb.mxu3 %v6391_v51  ;;  %v3711_v57 = vpop.permute.xlu0 %3710  ;;  %v6354_v19 = vld [vmem:[%s10434_s4 + $0x90] sm:$0xf]  ;;  %v6873_v11 = vld [vmem:[%s10434_s4 + $0x94] sm:$0xf0] }
 0x3de   : > { %3348 = vst.msk [vmem:[#allocation2 + $0xa8] sm:$0xff] %vm10525_vm14, %v3309_v2  ;;  %4748 = vmatpush.bf16.msra.mxu1 %v6299_v47 }
 0x3df   : > { %3758 = vrot.lane.b32.xlu1 %v3740_v59, %s7280_s19  ;;  %3694 = vrot.lane.b32.xlu2 %v3664_v13, %s10520_s30 }
 0x3e0   : > { %4983 = vmatpush.bf16.msrb.mxu0 %v6455_v20  ;;  %v6872_v20 = vld [vmem:[%s10434_s4 + $0x94] sm:$0xf] }
 0x3e2   : > { %v3538_v48 = vld.sshfl [vmem:[#allocation1] sm:$0xff pattern:$0x73625140] }
 0x3e3   : > { %v3232_v29 = vpop.f32.mrf.mxu3  ;;  %v3584_v21 = vpack.c.bf16 %v3538_v48, %v3538_v48  ;;  %v9310_v48 = vpop.permute.xlu1 %3774 }
 0x3e4   : > { %v3312_v26 = vadd.f32 %v3311_v24, %v3232_v29  ;;  %v3313_v46 = vpop.f32.mrf.mxu0 }
 0x3e5   : > { %v3375_v52 = vld [vmem:[#allocation2 + $0xa0] ss:$2 sm:$0xff]  ;;  %v3403_v43 = vld [vmem:[#allocation2 + $0xa1] ss:$2 sm:$0xff]  ;;  %v3616_v18 = vunpack.c.l.b16 %v3584_v21 }
 0x3e6   : > { %v3420_v28 = vmax.f32 %v3375_v52, %v3403_v43  ;;  %3349 = vst.msk [vmem:[#allocation2 + $0xb0] sm:$0xff] %vm10525_vm14, %v3312_v26  ;;  %v6380_v26 = vld [vmem:[%s10434_s4 + $0xc8] sm:$0xf0]  ;;  %v6894_v43 = vld [vmem:[%s10434_s4 + $0x144] sm:$0xf] }
 0x3e7   : > { %3782 = vrot.lane.b32.xlu2 %v3770_v40, %s10546_s14  ;;  %v6383_v52 = vor.u32 %v6878_v25, %v6380_v26  ;;  %v6444_v40 = vld [vmem:[%s10434_s4 + $0x148] sm:$0xf0]  ;;  %v6875_v21 = vld [vmem:[%s10434_s4 + $0xa4] sm:$0xf0]  ;;  %v6356_v25 = vld [vmem:[%s10434_s4 + $0x98] sm:$0xf0] }
 0x3e8   : > { %v3468_v61 = vrot.slane %v3420_v28, 2  ;;  %v3469_v3 = vrot.slane %v3420_v28, 4  ;;  %v3470_v58 = vrot.slane %v3420_v28, 6  ;;  %3536 = vst [vmem:[#allocation1 + $0x21] ss:$4 sm:$0xff] %v3420_v28  ;;  %v6363_v51 = vor.u32 %v6875_v21, %v6362_v45 }
 0x3e9   : > { %4950 = vmatpush.bf16.msrb.mxu3 %v6383_v52  ;;  %v6346_v52 = vld [vmem:[%s10434_s4 + $0x80] sm:$0xf] }
 0x3ea   : > { %3537 = vst [vmem:[#allocation1 + $0x22] ss:$4 sm:$0xff] %v3468_v61  ;;  %4782 = vmatpush.bf16.msra.mxu2 %v6363_v51 }
 0x3eb   : > { %v3234_v4 = vpop.f32.mrf.mxu3  ;;  %3540 = vst [vmem:[#allocation1] ss:$4 sm:$0xff] %v3469_v3 }
 0x3ec   : > { %3541 = vst [vmem:[#allocation1 + $0x1] ss:$4 sm:$0xff] %v3470_v58  ;;  %v3314_v23 = vadd.f32 %v3313_v46, %v3234_v4  ;;  %v3316_v10 = vpop.f32.mrf.mxu0  ;;  %v6447_v58 = vor.u32 %v6894_v43, %v6444_v40  ;;  %v6876_v4 = vld [vmem:[%s10434_s4 + $0xb4] sm:$0xf]  ;;  %v9395_v40 = vpop.permute.xlu2 %3688 }
 0x3ee   : > { %3350 = vst.msk [vmem:[#allocation2 + $0xb8] sm:$0xff] %vm10525_vm14, %v3314_v23  ;;  %4984 = vmatpush.bf16.msrb.mxu0 %v6447_v58 }
 0x3f1   : > { %v3539_v50 = vld.sshfl [vmem:[#allocation1 + $0x20] sm:$0xff pattern:$0x73625140] }
 0x3f2   : > { %v3585_v31 = vpack.c.bf16 %v3539_v50, %v3539_v50  ;;  %4985 = vmatpush.bf16.msrb.mxu0 %v6439_v7  ;;  %v6874_v50 = vld [vmem:[%s10434_s4 + $0xa4] sm:$0xf]  ;;  %v6412_v7 = vld [vmem:[%s10434_s4 + $0x108] sm:$0xf0] }
 0x3f3   : > { %v3237_v30 = vpop.f32.mrf.mxu3 }
 0x3f4   : > { %v3317_v62 = vadd.f32 %v3316_v10, %v3237_v30  ;;  %v3617_v5 = vunpack.c.l.b16 %v3585_v31  ;;  %v3318_v1 = vpop.f32.mrf.mxu0  ;;  %v6375_v10 = vor.u32 %v6876_v4, %v6372_v63  ;;  %v6428_v30 = vld [vmem:[%s10434_s4 + $0x128] sm:$0xf0]  ;;  %v6870_v63 = vld [vmem:[%s10434_s4 + $0x84] sm:$0xf] }
 0x3f5   : > { %v3377_v54 = vld [vmem:[#allocation2 + $0xb0] ss:$2 sm:$0xff]  ;;  %v3405_v37 = vld [vmem:[#allocation2 + $0xb1] ss:$2 sm:$0xff]  ;;  %v6351_v34 = vor.u32 %v6870_v63, %v6348_v35 }
 0x3f6   : > { %3351 = vst.msk [vmem:[#allocation2 + $0xc0] sm:$0xff] %vm10525_vm14, %v3317_v62  ;;  %v9286_v15 = vpack.c.b16 %v3617_v5, %v3616_v18  ;;  %v3421_v36 = vmax.f32 %v3377_v54, %v3405_v37  ;;  %4951 = vmatpush.bf16.msrb.mxu3 %v6375_v10  ;;  %v9353_v18 = vpop.permute.xlu1 %3686  ;;  %v6290_v5 = vld [vmem:[%s10434_s4 + $0x10] sm:$0xf] }
 0x3f7   : > { %v3791_v45 = vsel %vm10525_vm14, %v9103_v41, %v9353_v18 }
 0x3f8   : > { %v3707_v14 = vrot.slane %v9286_v15, 1  ;;  %v3666_v56 = vshrl.u32 %v9286_v15, 16  ;;  %v3668_v12 = vshll.u32 %v9286_v15, 16  ;;  %v3471_v9 = vrot.slane %v3421_v36, 2  ;;  %3542 = vst [vmem:[#allocation1 + $0x2] ss:$4 sm:$0xff] %v3421_v36 }
 0x3f9   : > { %v3472_v2 = vrot.slane %v3421_v36, 4  ;;  %v3473_v24 = vrot.slane %v3421_v36, 6  ;;  %v6367_v36 = vor.u32 %v6874_v50, %v6364_v49 }
 0x3fa   : > { %3720 = vrot.lane.b32.xlu2 %v3707_v14, %s10545_s27  ;;  %v3741_v59 = vrot.slane %v3666_v56, 1  ;;  %v3742_v13 = vrot.slane %v3668_v12, 2  ;;  %v3670_v29 = vrot.slane %v3668_v12, 1  ;;  %3543 = vst [vmem:[#allocation1 + $0x3] ss:$4 sm:$0xff] %v3471_v9  ;;  %v3807_v14 = vsel %vm913_vm4, %v9353_v18, %v3711_v57 }
 0x3fb   : > { %v3239_v46 = vpop.f32.mrf.mxu3  ;;  %3544 = vst [vmem:[#allocation1 + $0x20] ss:$4 sm:$0xff] %v3472_v2  ;;  %v6291_v12 = vor.u32 %v6857_v22, %v6290_v5  ;;  %4952 = vmatpush.bf16.msrb.mxu3 %v6367_v36  ;;  %v6355_v9 = vor.u32 %v6873_v11, %v6354_v19  ;;  %v6359_v2 = vor.u32 %v6872_v20, %v6356_v25  ;;  %v9393_v43 = vrot.slane %v3807_v14, 7  ;;  %v3777_v19 = vpop.permute.xlu2 %3776 }
 0x3fc   : > { %v3319_v28 = vadd.f32 %v3318_v1, %v3239_v46  ;;  %v3743_v61 = vor.u32 %v3742_v13, %v3741_v59  ;;  %v3671_v3 = vor.u32 %v3670_v29, %v3666_v56  ;;  %3545 = vst [vmem:[#allocation1 + $0x21] ss:$4 sm:$0xff] %v3473_v24  ;;  %v3321_v23 = vpop.f32.mrf.mxu0  ;;  %v6431_v1 = vor.u32 %v6890_v38, %v6428_v30  ;;  %v6888_v24 = vld [vmem:[%s10434_s4 + $0x114] sm:$0xf]  ;;  %v6420_v59 = vld [vmem:[%s10434_s4 + $0x118] sm:$0xf0] }
 0x3fd   : > { %v6282_v13 = vld [vmem:[%s10434_s4] sm:$0xf]  ;;  %v6423_v26 = vor.u32 %v6888_v24, %v6420_v59  ;;  %v6855_v46 = vld [vmem:[%s10434_s4 + $0x4] sm:$0xf0]  ;;  %4749 = vmatpush.bf16.msra.mxu1 %v6291_v12  ;;  %4783 = vmatpush.bf16.msra.mxu2 %v6355_v9  ;;  %v3950_v21 = vsel %vm10531_vm0, %v3791_v45, %v9393_v43  ;;  %v3923_v47 = vsel %vm3922_vm9, %v3791_v45, %v9393_v43  ;;  %v3886_v35 = vrot.slane %v3777_v19, 4 }
 0x3fe   : > { %3352 = vst.msk [vmem:[#allocation2 + $0xc8] sm:$0xff] %vm10525_vm14, %v3319_v28  ;;  %3760 = vrot.lane.b32.xlu1 %v3743_v61, %s7280_s19  ;;  %3696 = vrot.lane.b32.xlu0 %v3671_v3, %s10636_s25  ;;  %v6871_v61 = vld [vmem:[%s10434_s4 + $0x84] sm:$0xf0]  ;;  %v3840_v3 = vsel %vm10529_vm8, %v9340_v39, %v9310_v48  ;;  %v6283_v4 = vor.u32 %v6855_v46, %v6282_v13 }
 0x3ff   : > { %4986 = vmatpush.bf16.msrb.mxu0 %v6431_v1  ;;  %4953 = vmatpush.bf16.msrb.mxu3 %v6359_v2  ;;  %v6347_v10 = vor.u32 %v6871_v61, %v6346_v52  ;;  %v3881_v60 = vrot.slane %v3840_v3, 5  ;;  %v3933_v36 = vsel %vm3932_vm6, %v3791_v45, %v9393_v43  ;;  %v3913_v20 = vsel %vm3911_vm5, %v3791_v45, %v9393_v43 }
 0x400   : > { %v3941_v59 = vsel %vm10533_vm1, %v3791_v45, %v9393_v43 }
 0x401   : > { %v9342_v31 = vld.sshfl [vmem:[#allocation1] sm:$0xff pattern:$0x73625140]  ;;  %4750 = vmatpush.bf16.msra.mxu1 %v6283_v4  ;;  %4784 = vmatpush.bf16.msra.mxu2 %v6347_v10 }
 0x402   : > { %v3586_v29 = vpack.c.bf16 %v9342_v31, %v9342_v31 }
 0x403   : > { %v3242_v55 = vpop.f32.mrf.mxu3  ;;  %4987 = vmatpush.bf16.msrb.mxu0 %v6423_v26  ;;  %4954 = vmatpush.bf16.msrb.mxu3 %v6351_v34 }
 0x404   : > { %v3322_v6 = vadd.f32 %v3321_v23, %v3242_v55  ;;  %v3323_v54 = vpop.f32.mrf.mxu0  ;;  %v6886_v23 = vld [vmem:[%s10434_s4 + $0x104] sm:$0xf]  ;;  %v3824_v55 = vsel %vm10530_vm15, %v3711_v57, %v9340_v39 }
 0x405   : > { %v3379_v27 = vld [vmem:[#allocation2 + $0xc0] ss:$2 sm:$0xff]  ;;  %v3407_v0 = vld [vmem:[#allocation2 + $0xc1] ss:$2 sm:$0xff]  ;;  %v6415_v32 = vor.u32 %v6886_v23, %v6412_v7  ;;  %v3880_v39 = vrot.slane %v3824_v55, 6 }
 0x406   : > { %v3422_v33 = vmax.f32 %v3379_v27, %v3407_v0  ;;  %3353 = vst.msk [vmem:[#allocation2 + $0xd0] sm:$0xff] %vm10525_vm14, %v3322_v6  ;;  %v3753_v6 = vpop.permute.xlu0 %3752  ;;  %v3618_v27 = vunpack.c.l.b16 %v3586_v29 }
 0x407   : > { %4988 = vmatpush.bf16.msrb.mxu0 %v6415_v32  ;;  %v3842_v11 = vsel %vm10529_vm8, %v3753_v6, %v3777_v19  ;;  %v3925_v24 = vsel %vm3924_vm13, %v3923_v47, %v3880_v39  ;;  %vm10640_vm8 = vcmask 1041408   ;;  %v3943_v4 = vsel %vm3942_vm11, %v3941_v59, %v3880_v39 }
 0x408   : > { %v3474_v17 = vrot.slane %v3422_v33, 2  ;;  %v3475_v8 = vrot.slane %v3422_v33, 4  ;;  %v3476_v62 = vrot.slane %v3422_v33, 6  ;;  %3546 = vst [vmem:[#allocation1 + $0x22] ss:$4 sm:$0xff] %v3422_v33  ;;  %v3882_v33 = vrot.slane %v9310_v48, 4  ;;  %v3713_v48 = vpop.permute.xlu1 %3712 }
 0x409   : > { %v3826_v1 = vsel %vm10530_vm15, %v3713_v48, %v3753_v6  ;;  %v3885_v52 = vrot.slane %v3842_v11, 5  ;;  %v3915_v61 = vsel %vm10640_vm8, %v3913_v20, %v3880_v39  ;;  %vm10641_vm15 = vcmask 1043457  }
 0x40a   : > { %3549 = vst [vmem:[#allocation1] ss:$4 sm:$0xff] %v3474_v17  ;;  %v3919_v12 = vsel %vm10533_vm1, %v3881_v60, %v3882_v33  ;;  %v3927_v2 = vsel %vm10531_vm0, %v3881_v60, %v3882_v33  ;;  %v3884_v46 = vrot.slane %v3826_v1, 6  ;;  %vm10643_vm8 = vcmask 1045509  }
 0x40b   : > { %v3244_v37 = vpop.f32.mrf.mxu3  ;;  %3550 = vst [vmem:[#allocation1 + $0x1] ss:$4 sm:$0xff] %v3475_v8  ;;  %v3953_v8 = vsel %vm10526_vm2, %v3882_v33, %v3881_v60  ;;  %vm10637_vm2 = vcmask 1045509   ;;  %v3929_v43 = vsel %vm10641_vm15, %v3925_v24, %v3927_v2  ;;  %v3968_v6 = vsel %vm10531_vm0, %v3885_v52, %v3886_v35 }
 0x40c   : > { %v3324_v56 = vadd.f32 %v3323_v54, %v3244_v37  ;;  %3551 = vst [vmem:[#allocation1 + $0x2] ss:$4 sm:$0xff] %v3476_v62  ;;  %v3951_v62 = vsel %vm10527_vm7, %v3950_v21, %v3880_v39  ;;  %v3809_v54 = vsel %vm913_vm4, %v9395_v40, %v3713_v48  ;;  %v3936_v29 = vsel %vm10637_vm2, %v3881_v60, %v3882_v33 }
 0x40d   : > { %v3955_v25 = vsel %vm10528_vm12, %v3951_v62, %v3953_v8  ;;  %v3883_v13 = vrot.slane %v3809_v54, 7  ;;  %vm10638_vm7 = vcmask 1043458   ;;  %vm10639_vm12 = vcmask 1046534  }
 0x40e   : > { %3354 = vst.msk [vmem:[#allocation2 + $0xd8] sm:$0xff] %vm10525_vm14, %v3324_v56  ;;  %vm10532_vm14 = vcmask 1042432   ;;  %v3934_v26 = vsel %vm10638_vm7, %v3933_v36, %v3880_v39  ;;  %v3957_v3 = vrot.slane %v3955_v25, 4  ;;  %vm10642_vm2 = vcmask 916480  }
 0x40f   : > { %v3548_v28 = vld.sshfl [vmem:[#allocation1 + $0x20] sm:$0xff pattern:$0x73625140]  ;;  %v3793_v63 = vsel %vm10642_vm2, %v9151_v16, %v9395_v40  ;;  %v3938_v10 = vsel %vm3937_vm10, %v3934_v26, %v3936_v29  ;;  %v3921_v16 = vsel %vm10532_vm14, %v3915_v61, %v3919_v12  ;;  %v3931_v21 = vrot.slane %v3929_v43, 1 }
 0x410   : > { %v3587_v58 = vpack.c.bf16 %v3548_v28, %v3548_v28  ;;  %v3945_v28 = vsel %vm10639_vm12, %v3881_v60, %v3882_v33  ;;  %v3966_v34 = vsel %vm3922_vm9, %v3793_v63, %v3883_v13  ;;  %v3972_v7 = vsel %vm3932_vm6, %v3793_v63, %v3883_v13 }
 0x411   : > { %v3967_v55 = vsel %vm3924_vm13, %v3966_v34, %v3884_v46  ;;  %v3947_v40 = vsel %vm3946_vm3, %v3943_v4, %v3945_v28  ;;  %v3959_v32 = vsel %vm3911_vm5, %v3793_v63, %v3883_v13  ;;  %v3978_v39 = vsel %vm10533_vm1, %v3793_v63, %v3883_v13 }
 0x412   : > { %v3619_v0 = vunpack.c.l.b16 %v3587_v58  ;;  %v3771_v58 = vrot.slane %v9286_v15, 2  ;;  %vm10644_vm15 = vcmask 1041408   ;;  %vm10645_vm12 = vcmask 1043457  }
 0x413   : > { %v3949_v8 = vrot.slane %v3947_v40, 3  ;;  %v3979_v62 = vsel %vm3942_vm11, %v3978_v39, %v3884_v46  ;;  %vm10646_vm2 = vcmask 1046534  }
 0x414   : > { %v9423_v50 = vpack.c.b16 %v3619_v0, %v3618_v27  ;;  %v3973_v27 = vsel %vm10638_vm7, %v3972_v7, %v3884_v46  ;;  %v3974_v0 = vsel %vm10643_vm8, %v3885_v52, %v3886_v35  ;;  %vm10647_vm7 = vcmask 654336  }
 0x415   : > { %v3381_v31 = vld [vmem:[#allocation2 + $0xd0] ss:$2 sm:$0xff]  ;;  %v3409_v49 = vld [vmem:[#allocation2 + $0xd1] ss:$2 sm:$0xff]  ;;  %vm10648_vm8 = vcmask 523264  }
 0x416   : > { %v3423_v38 = vmax.f32 %v3381_v31, %v3409_v49  ;;  %v3708_v30 = vrot.slane %v9423_v50, 1  ;;  %v3673_v41 = vshrl.u32 %v9423_v50, 16  ;;  %v3675_v17 = vshll.u32 %v9423_v50, 16 }
 0x417   : > { %v3772_v45 = vrot.slane %v9423_v50, 2  ;;  %v3961_v31 = vsel %vm10644_vm15, %v3959_v32, %v3884_v46  ;;  %vm10649_vm15 = vcmask 1045508  }
 0x418   : > { %v3477_v18 = vrot.slane %v3423_v38, 2  ;;  %v3478_v5 = vrot.slane %v3423_v38, 4  ;;  %v3479_v22 = vrot.slane %v3423_v38, 6  ;;  %3722 = vrot.lane.b32.xlu0 %v3708_v30, %s10545_s27  ;;  %3552 = vst [vmem:[#allocation1 + $0x3] ss:$4 sm:$0xff] %v3423_v38  ;;  %v3677_v57 = vrot.slane %v3675_v17, 1 }
 0x419   : > { %v3744_v37 = vrot.slane %v3673_v41, 1  ;;  %v3745_v51 = vrot.slane %v3675_v17, 2  ;;  %v3940_v38 = vrot.slane %v3938_v10, 2  ;;  %v3964_v30 = vsel %vm10533_vm1, %v3885_v52, %v3886_v35 }
 0x41a   : > { %3553 = vst [vmem:[#allocation1 + $0x20] ss:$4 sm:$0xff] %v3477_v18  ;;  %v9439_v14 = vpop.permute.xlu0 %3778  ;;  %v3678_v56 = vor.u32 %v3677_v57, %v3673_v41  ;;  %v3715_v60 = vpop.permute.xlu1 %3714  ;;  %v3969_v41 = vsel %vm10645_vm12, %v3967_v55, %v3968_v6  ;;  %v3975_v17 = vsel %vm3937_vm10, %v3973_v27, %v3974_v0  ;;  %v3980_v18 = vsel %vm10646_vm2, %v3885_v52, %v3886_v35 }
 0x41b   : > { %3554 = vst [vmem:[#allocation1 + $0x21] ss:$4 sm:$0xff] %v3478_v5  ;;  %v3746_v9 = vor.u32 %v3745_v51, %v3744_v37  ;;  %v3755_v5 = vpop.permute.xlu2 %3754  ;;  %v3984_v37 = vsel %vm10531_vm0, %v3793_v63, %v3883_v13  ;;  %v3965_v51 = vsel %vm10532_vm14, %v3961_v31, %v3964_v30  ;;  %v3971_v36 = vrot.slane %v3969_v41, 1 }
 0x41c   : > { %3555 = vst [vmem:[#allocation1 + $0x22] ss:$4 sm:$0xff] %v3479_v22  ;;  %3698 = vrot.lane.b32.xlu1 %v3678_v56, %s10636_s25  ;;  %v3828_v57 = vsel %vm10647_vm7, %v3715_v60, %v3755_v5  ;;  %v3844_v47 = vsel %vm10648_vm8, %v3755_v5, %v9439_v14  ;;  %v3977_v1 = vrot.slane %v3975_v17, 2  ;;  %v3981_v11 = vsel %vm3946_vm3, %v3979_v62, %v3980_v18 }
 0x41d   : > { %3762 = vrot.lane.b32.xlu2 %v3746_v9, %s7280_s19  ;;  %v3985_v56 = vsel %vm10649_vm15, %v3984_v37, %v3884_v46  ;;  %vm10650_vm12 = vcmask 1046528   ;;  %vm10651_vm2 = vcmask 916480   ;;  %v3888_v25 = vrot.slane %v3828_v57, 6 }
 0x41e   : > { %v3986_v12 = vsel %vm10650_vm12, %v3886_v35, %v3885_v52  ;;  %v3889_v9 = vrot.slane %v3844_v47, 5  ;;  %v3890_v2 = vrot.slane %v9439_v14, 4  ;;  %v3983_v46 = vrot.slane %v3981_v11, 3 }
 0x41f   : > { %v3556_v23 = vld.sshfl [vmem:[#allocation1] sm:$0xff pattern:$0x73625140]  ;;  %vm10652_vm7 = vcmask 1046532   ;;  %vm10653_vm8 = vcmask 1041408   ;;  %vm10654_vm15 = vcmask 1043458  }
 0x420   : > { %4270 = vst [vmem:[#allocation1 + $0x4] ss:$9 sm:$0xff] %v3957_v3  ;;  %3784 = vrot.lane.b32.xlu0 %v3771_v58, %s10546_s14  ;;  %v3588_v19 = vpack.c.bf16 %v3556_v23, %v3556_v23  ;;  %v3987_v28 = vsel %vm10652_vm7, %v3985_v56, %v3986_v12  ;;  %v3996_v14 = vsel %vm10533_vm1, %v3889_v9, %v3890_v2  ;;  %vm10655_vm12 = vcmask 1045509  }
 0x421   : > { %v4000_v58 = vsel %vm10531_vm0, %v3889_v9, %v3890_v2  ;;  %v4006_v7 = vsel %vm10655_vm12, %v3889_v9, %v3890_v2  ;;  %vm10657_vm7 = vcmask 1043457   ;;  %vm10662_vm12 = vcmask 654336  }
 0x422   : > { %v3691_v33 = vpop.permute.xlu0 %3690  ;;  %v3620_v29 = vunpack.c.l.b16 %v3588_v19 }
 0x423   : > { %v3557_v49 = vld.sshfl [vmem:[#allocation1 + $0x20] sm:$0xff pattern:$0x73625140]  ;;  %v3811_v48 = vsel %vm913_vm4, %v3691_v33, %v3715_v60  ;;  %v3795_v20 = vsel %vm10651_vm2, %v9173_v42, %v3691_v33  ;;  %vm10656_vm2 = vcmask 1046534   ;;  %v3989_v60 = vrot.slane %v3987_v28, 4  ;;  %v3717_v57 = vpop.permute.xlu2 %3716 }
 0x424   : > { %4258 = vst [vmem:[#allocation1] ss:$9 sm:$0xff] %v3921_v16  ;;  %3786 = vrot.lane.b32.xlu1 %v3772_v45, %s10546_s14  ;;  %v3887_v22 = vrot.slane %v3811_v48, 7  ;;  %v3589_v54 = vpack.c.bf16 %v3557_v49, %v3557_v49  ;;  %v4012_v55 = vsel %vm10656_vm2, %v3889_v9, %v3890_v2  ;;  %vm10663_vm2 = vcmask 916480  }
 0x425   : > { %4261 = vst [vmem:[#allocation1 + $0x1] ss:$9 sm:$0xff] %v3931_v21 }
 0x426   : > { %4264 = vst [vmem:[#allocation1 + $0x2] ss:$9 sm:$0xff] %v3940_v38  ;;  %v3998_v24 = vsel %vm3922_vm9, %v3795_v20, %v3887_v22  ;;  %v3991_v59 = vsel %vm3911_vm5, %v3795_v20, %v3887_v22  ;;  %v4004_v13 = vsel %vm3932_vm6, %v3795_v20, %v3887_v22  ;;  %v3621_v26 = vunpack.c.l.b16 %v3589_v54 }
 0x427   : > { %4267 = vst [vmem:[#allocation1 + $0x3] ss:$9 sm:$0xff] %v3949_v8  ;;  %v4010_v52 = vsel %vm10533_vm1, %v3795_v20, %v3887_v22  ;;  %v3999_v42 = vsel %vm3924_vm13, %v3998_v24, %v3888_v25  ;;  %v4016_v61 = vsel %vm10531_vm0, %v3795_v20, %v3887_v22  ;;  %v3993_v43 = vsel %vm10653_vm8, %v3991_v59, %v3888_v25 }
 0x428   : > { %4272 = vst [vmem:[#allocation1 + $0x5] ss:$9 sm:$0xff] %v3965_v51  ;;  %v9500_v3 = vpack.c.b16 %v3621_v26, %v3620_v29  ;;  %v4005_v4 = vsel %vm10654_vm15, %v4004_v13, %v3888_v25  ;;  %v4011_v63 = vsel %vm3942_vm11, %v4010_v52, %v3888_v25  ;;  %v4001_v6 = vsel %vm10657_vm7, %v3999_v42, %v4000_v58 }
 0x429   : > { %4275 = vst [vmem:[#allocation1 + $0x6] ss:$9 sm:$0xff] %v3971_v36  ;;  %vm10658_vm0 = vcmask 1045508   ;;  %v4007_v0 = vsel %vm3937_vm10, %v4005_v4, %v4006_v7  ;;  %vm10659_vm8 = vcmask 1046528   ;;  %v3997_v45 = vsel %vm10532_vm14, %v3993_v43, %v3996_v14 }
 0x42a   : > { %4278 = vst [vmem:[#allocation1 + $0x7] ss:$9 sm:$0xff] %v3977_v1  ;;  %v3709_v35 = vrot.slane %v9500_v3, 1  ;;  %v3680_v10 = vshrl.u32 %v9500_v3, 16  ;;  %v3682_v34 = vshll.u32 %v9500_v3, 16  ;;  %v4017_v27 = vsel %vm10658_vm0, %v4016_v61, %v3888_v25 }
 0x42b   : > { %v4018_v33 = vsel %vm10659_vm8, %v3890_v2, %v3889_v9  ;;  %v4013_v21 = vsel %vm3946_vm3, %v4011_v63, %v4012_v55  ;;  %v4003_v48 = vrot.slane %v4001_v6, 1  ;;  %vm10660_vm0 = vcmask 1046532  }
 0x42c   : > { %3724 = vrot.lane.b32.xlu0 %v3709_v35, %s10545_s27  ;;  %v3747_v16 = vrot.slane %v3680_v10, 1  ;;  %v3748_v40 = vrot.slane %v3682_v34, 2  ;;  %v3684_v32 = vrot.slane %v3682_v34, 1  ;;  %v4019_v38 = vsel %vm10660_vm0, %v4017_v27, %v4018_v33  ;;  %s434_s27 = sand.u32 1, %s7266_s26  }
 0x42d   : > { %v4009_v18 = vrot.slane %v4007_v0, 2  ;;  %v4015_v5 = vrot.slane %v4013_v21, 3  ;;  %vm10661_vm15 = vcmask 523264   ;;  %v4021_v47 = vrot.slane %v4019_v38, 4  ;;  %s5864_s30 = scalar_lea.sflag [#allocation5], %s434_s27 }
 0x42e   : > { %v3781_v23 = vpop.permute.xlu1 %3780  ;;  %v3749_v17 = vor.u32 %v3748_v40, %v3747_v16  ;;  %v3685_v8 = vor.u32 %v3684_v32, %v3680_v10  ;;  %vm10664_vm7 = vcmask 1041408   ;;  %v3773_v2 = vrot.slane %v9500_v3, 2 }
 0x42f   : > { %v3894_v1 = vrot.slane %v3781_v23, 4  ;;  %vm10665_vm8 = vcmask 1044484   ;;  %vm10666_vm0 = vcmask 1043458  }
 0x430   : > { %3764 = vrot.lane.b32.xlu1 %v3749_v17, %s7280_s19  ;;  %3700 = vrot.lane.b32.xlu2 %v3685_v8, %s10636_s25 }
 0x431   : > { %v9519_v39 = vld [vmem:[#allocation1] sm:$0xff]  ;;  %v4280_v30 = vld [vmem:[#allocation1 + $0x9] sm:$0xff]  ;;  %v9527_v41 = vld [vmem:[#allocation1 + $0x12] sm:$0xff] }
 0x432   : > { %v9521_v31 = vld [vmem:[#allocation1 + $0x1b] sm:$0xff]  ;;  %v9523_v49 = vld [vmem:[#allocation1 + $0x24] sm:$0xff]  ;;  %4751 = vmatmul.bf16.vlgmr.msra.gmra.mxu1 %v9519_v39  ;;  %v3757_v62 = vpop.permute.xlu0 %3756  ;;  %4785 = vmatmul.bf16.vlgmr.msra.gmra.mxu2 %v4280_v30 }
 0x433   : > { %4955 = vmatmul.bf16.vlgmr.msrb.gmra.mxu3 %v4280_v30  ;;  %4285 = vst [vmem:[#allocation1] ss:$9 sm:$0xff] %v3983_v46  ;;  %4989 = vmatmul.bf16.vlgmr.msrb.gmra.mxu0 %v9527_v41  ;;  %v3846_v22 = vsel %vm10661_vm15, %v3757_v62, %v3781_v23  ;;  %v3830_v19 = vsel %vm10662_vm12, %v3717_v57, %v3757_v62  ;;  %vm10667_vm15 = vmmov %vm10665_vm8  ;;  %vm10668_vm12 = vcmask 1045509  }
 0x434   : > { %4287 = vst [vmem:[#allocation1 + $0x1] ss:$9 sm:$0xff] %v3989_v60  ;;  %v3893_v37 = vrot.slane %v3846_v22, 5  ;;  %v3892_v11 = vrot.slane %v3830_v19, 6 }
 0x435   : > { %4288 = vst [vmem:[#allocation1 + $0x2] ss:$9 sm:$0xff] %v3997_v45 }
 0x436   : > { %4290 = vst [vmem:[#allocation1 + $0x3] ss:$9 sm:$0xff] %v4003_v48  ;;  %v3693_v54 = vpop.permute.xlu1 %3692  ;;  %v4028_v20 = vsel %vm10533_vm1, %v3893_v37, %v3894_v1  ;;  %v4032_v46 = vsel %vm10667_vm15, %v3893_v37, %v3894_v1  ;;  %v4038_v28 = vsel %vm10668_vm12, %v3893_v37, %v3894_v1  ;;  %vm10677_vm15 = vcmask 1043459  }
 0x437   : > { %4292 = vst [vmem:[#allocation1 + $0x4] ss:$9 sm:$0xff] %v4009_v18  ;;  %v3813_v51 = vsel %vm913_vm4, %v3693_v54, %v3717_v57  ;;  %v3797_v56 = vsel %vm10663_vm2, %v9189_v44, %v3693_v54  ;;  %vm10669_vm2 = vcmask 1043457   ;;  %vm10678_vm12 = vcmask 1041408  }
 0x438   : > { %4294 = vst [vmem:[#allocation1 + $0x5] ss:$9 sm:$0xff] %v4015_v5  ;;  %v3891_v36 = vrot.slane %v3813_v51, 7  ;;  %3788 = vrot.lane.b32.xlu2 %v3773_v2, %s10546_s14  ;;  %v6917_v2 = vld [vmem:[%s10434_s4 + $0x1f4] sm:$0xf0] }
 0x439   : > { %4296 = vst [vmem:[#allocation1 + $0x6] ss:$9 sm:$0xff] %v4021_v47  ;;  %v3695_v0 = vpop.permute.xlu2 %3694 }
 0x43a   : > { %v4023_v12 = vsel %vm3911_vm5, %v3797_v56, %v3891_v36  ;;  %v4030_v9 = vsel %vm3922_vm9, %v3797_v56, %v3891_v36  ;;  %v4036_v59 = vsel %vm3932_vm6, %v3797_v56, %v3891_v36  ;;  %v4042_v13 = vsel %vm10533_vm1, %v3797_v56, %v3891_v36 }
 0x43b   : > { %v4025_v25 = vsel %vm10664_vm7, %v4023_v12, %v3892_v11  ;;  %v4031_v44 = vsel %vm3924_vm13, %v4030_v9, %v3892_v11  ;;  %v4048_v29 = vsel %vm10665_vm8, %v3797_v56, %v3891_v36  ;;  %v4037_v26 = vsel %vm10666_vm0, %v4036_v59, %v3892_v11 }
 0x43c   : > { %v4029_v24 = vsel %vm10532_vm14, %v4025_v25, %v4028_v20  ;;  %v4043_v52 = vsel %vm3942_vm11, %v4042_v13, %v3892_v11  ;;  %v4033_v42 = vsel %vm10669_vm2, %v4031_v44, %v4032_v46  ;;  %vm10670_vm7 = vcmask 1045508   ;;  %vm10679_vm2 = vmmov %vm10677_vm15  ;;  %v6530_v20 = vld [vmem:[%s10434_s4 + $0x1f0] sm:$0xf]  ;;  %v6901_v44 = vld [vmem:[%s10434_s4 + $0x174] sm:$0xf0] }
 0x43d   : > { %4297 = vst [vmem:[#allocation1 + $0x7] ss:$9 sm:$0xff] %v4029_v24  ;;  %v4049_v61 = vsel %vm10670_vm7, %v4048_v29, %v3892_v11  ;;  %vm10671_vm14 = vcmask 1046534   ;;  %v4039_v58 = vsel %vm3937_vm10, %v4037_v26, %v4038_v28  ;;  %vm10672_vm1 = vcmask 1046528   ;;  %v6466_v24 = vld [vmem:[%s10434_s4 + $0x170] sm:$0xf] }
 0x43e   : > { %v4044_v14 = vsel %vm10671_vm14, %v3893_v37, %v3894_v1  ;;  %v4050_v43 = vsel %vm10672_vm1, %v3894_v1, %v3893_v37  ;;  %v4035_v63 = vrot.slane %v4033_v42, 1  ;;  %vm10673_vm8 = vcmask 1046532   ;;  %v6522_v26 = vld [vmem:[%s10434_s4 + $0x1e0] sm:$0xf] }
 0x43f   : > { %v4045_v4 = vsel %vm3946_vm3, %v4043_v52, %v4044_v14  ;;  %v4051_v35 = vsel %vm10673_vm8, %v4049_v61, %v4050_v43  ;;  %v4041_v7 = vrot.slane %v4039_v58, 2  ;;  %vm10674_vm14 = vcmask 654336   ;;  %v6915_v52 = vld [vmem:[%s10434_s4 + $0x1e4] sm:$0xf0]  ;;  %v6458_v28 = vld [vmem:[%s10434_s4 + $0x160] sm:$0xf] }
 0x440   : > { %v4047_v27 = vrot.slane %v4045_v4, 3  ;;  %v4053_v16 = vrot.slane %v4051_v35, 4  ;;  %vm10675_vm1 = vcmask 523264   ;;  %vm10676_vm0 = vcmask 916480   ;;  %v6899_v58 = vld [vmem:[%s10434_s4 + $0x164] sm:$0xf0] }
 0x441   : > { %v3783_v60 = vpop.permute.xlu2 %3782  ;;  %v3799_v38 = vsel %vm10676_vm0, %v9221_v53, %v3695_v0  ;;  %vm10680_vm7 = vcmask 1044484   ;;  %vm10681_vm8 = vcmask 1042432   ;;  %vm10684_vm0 = vcmask 1045509  }
 0x442   : > { %v3898_v30 = vrot.slane %v3783_v60, 4  ;;  %v6531_v13 = vor.u32 %v6917_v2, %v6530_v20  ;;  %v6467_v29 = vor.u32 %v6901_v44, %v6466_v24  ;;  %v6523_v14 = vor.u32 %v6915_v52, %v6522_v26  ;;  %v6490_v26 = vld [vmem:[%s10434_s4 + $0x1a0] sm:$0xf] }
 0x443   : > { %v6459_v43 = vor.u32 %v6899_v58, %v6458_v28  ;;  %v6891_v58 = vld [vmem:[%s10434_s4 + $0x124] sm:$0xf0] }
 0x444   : > { %v9559_v23 = vld [vmem:[#allocation1] sm:$0xff]  ;;  %v4299_v55 = vld [vmem:[#allocation1 + $0x9] sm:$0xff]  ;;  %v9566_v6 = vld [vmem:[#allocation1 + $0x12] sm:$0xff]  ;;  %4845 = vmatpush.bf16.msrb.mxu2 %v6531_v13  ;;  %4811 = vmatpush.bf16.msrb.mxu1 %v6467_v29 }
 0x445   : > { %v9561_v10 = vld [vmem:[#allocation1 + $0x1b] sm:$0xff]  ;;  %v9563_v34 = vld [vmem:[#allocation1 + $0x24] sm:$0xff]  ;;  %4756 = vmatmul.bf16.gmra.mxu1 %v9559_v23  ;;  %4790 = vmatmul.bf16.gmra.mxu2 %v4299_v55 }
 0x446   : > { %4960 = vmatmul.bf16.gmra.mxu3 %v4299_v55  ;;  %4304 = vst [vmem:[#allocation1] ss:$9 sm:$0xff] %v4035_v63  ;;  %4994 = vmatmul.bf16.gmra.mxu0 %v9566_v6 }
 0x447   : > { %4306 = vst [vmem:[#allocation1 + $0x1] ss:$9 sm:$0xff] %v4041_v7 }
 0x448   : > { %4308 = vst [vmem:[#allocation1 + $0x2] ss:$9 sm:$0xff] %v4047_v27  ;;  %4846 = vmatpush.bf16.msrb.mxu2 %v6523_v14  ;;  %4812 = vmatpush.bf16.msrb.mxu1 %v6459_v43  ;;  %v6426_v14 = vld [vmem:[%s10434_s4 + $0x120] sm:$0xf] }
 0x449   : > { %4310 = vst [vmem:[#allocation1 + $0x3] ss:$9 sm:$0xff] %v4053_v16  ;;  %v6514_v16 = vld [vmem:[%s10434_s4 + $0x1d0] sm:$0xf] }
 0x44d   : > { %v3719_v40 = vpop.permute.xlu0 %3718 }
 0x44e   : > { %v3815_v32 = vsel %vm913_vm4, %v3695_v0, %v3719_v40 }
 0x44f   : > { %v3895_v33 = vrot.slane %v3815_v32, 7  ;;  %v6450_v32 = vld [vmem:[%s10434_s4 + $0x150] sm:$0xf] }
 0x451   : > { %v3759_v45 = vpop.permute.xlu1 %3758  ;;  %v4055_v62 = vsel %vm3911_vm5, %v3799_v38, %v3895_v33  ;;  %v4062_v18 = vsel %vm3922_vm9, %v3799_v38, %v3895_v33  ;;  %v4068_v5 = vsel %vm3932_vm6, %v3799_v38, %v3895_v33  ;;  %v4074_v22 = vsel %vm10677_vm15, %v3799_v38, %v3895_v33 }
 0x452   : > { %v3832_v21 = vsel %vm10674_vm14, %v3719_v40, %v3759_v45  ;;  %v3848_v48 = vsel %vm10675_vm1, %v3759_v45, %v3783_v60  ;;  %vm10682_vm14 = vcmask 1043457   ;;  %vm10683_vm1 = vcmask 1043458   ;;  %v6913_v40 = vld [vmem:[%s10434_s4 + $0x1d4] sm:$0xf0] }
 0x453   : > { %v3896_v17 = vrot.slane %v3832_v21, 6  ;;  %v3897_v8 = vrot.slane %v3848_v48, 5  ;;  %vm10685_vm15 = vcmask 1046534   ;;  %v6515_v60 = vor.u32 %v6913_v40, %v6514_v16  ;;  %v6506_v21 = vld [vmem:[%s10434_s4 + $0x1c0] sm:$0xf] }
 0x454   : > { %v6911_v48 = vld [vmem:[%s10434_s4 + $0x1c4] sm:$0xf0] }
 0x455   : > { %v4057_v57 = vsel %vm10678_vm12, %v4055_v62, %v3896_v17  ;;  %v4060_v47 = vsel %vm10679_vm2, %v3897_v8, %v3898_v30  ;;  %v4063_v19 = vsel %vm3924_vm13, %v4062_v18, %v3896_v17  ;;  %v4064_v54 = vsel %vm10680_vm7, %v3897_v8, %v3898_v30  ;;  %vm10686_vm12 = vmmov %vm10680_vm7  ;;  %4847 = vmatpush.bf16.msrb.mxu2 %v6515_v60 }
 0x456   : > { %v4061_v53 = vsel %vm10681_vm8, %v4057_v57, %v4060_v47  ;;  %v4065_v37 = vsel %vm10682_vm14, %v4063_v19, %v4064_v54  ;;  %v4069_v51 = vsel %vm10683_vm1, %v4068_v5, %v3896_v17  ;;  %v4070_v36 = vsel %vm10684_vm0, %v3897_v8, %v3898_v30  ;;  %v6498_v5 = vld [vmem:[%s10434_s4 + $0x1b0] sm:$0xf]  ;;  %v3721_v57 = vpop.permute.xlu2 %3720 }
 0x457   : > { %v4067_v1 = vrot.slane %v4065_v37, 1  ;;  %v4071_v11 = vsel %vm3937_vm10, %v4069_v51, %v4070_v36  ;;  %v4075_v56 = vsel %vm3942_vm11, %v4074_v22, %v3896_v17  ;;  %v4076_v12 = vsel %vm10685_vm15, %v3897_v8, %v3898_v30  ;;  %4311 = vst [vmem:[#allocation1 + $0x4] ss:$9 sm:$0xff] %v4061_v53  ;;  %v6909_v22 = vld [vmem:[%s10434_s4 + $0x1b4] sm:$0xf0] }
 0x458   : > { %v4073_v25 = vrot.slane %v4071_v11, 2  ;;  %v4077_v9 = vsel %vm3946_vm3, %v4075_v56, %v4076_v12  ;;  %v4080_v46 = vsel %vm10686_vm12, %v3799_v38, %v3895_v33  ;;  %vm10687_vm2 = vcmask 1045508   ;;  %v6897_v33 = vld [vmem:[%s10434_s4 + $0x154] sm:$0xf0]  ;;  %v6434_v56 = vld [vmem:[%s10434_s4 + $0x130] sm:$0xf] }
 0x459   : > { %v4079_v59 = vrot.slane %v4077_v9, 3  ;;  %4313 = vst [vmem:[#allocation1 + $0x5] ss:$9 sm:$0xff] %v4067_v1  ;;  %v4081_v42 = vsel %vm10687_vm2, %v4080_v46, %v3896_v17  ;;  %vm10688_vm7 = vcmask 1046528   ;;  %vm10689_vm8 = vcmask 1046532  }
 0x45a   : > { %4315 = vst [vmem:[#allocation1 + $0x6] ss:$9 sm:$0xff] %v4073_v25  ;;  %v4082_v61 = vsel %vm10688_vm7, %v3898_v30, %v3897_v8  ;;  %v6451_v45 = vor.u32 %v6897_v33, %v6450_v32  ;;  %v6507_v38 = vor.u32 %v6911_v48, %v6506_v21  ;;  %v6442_v30 = vld [vmem:[%s10434_s4 + $0x140] sm:$0xf]  ;;  %v6895_v17 = vld [vmem:[%s10434_s4 + $0x144] sm:$0xf0]  ;;  %v6499_v47 = vor.u32 %v6909_v22, %v6498_v5 }
 0x45b   : > { %4317 = vst [vmem:[#allocation1 + $0x7] ss:$9 sm:$0xff] %v4079_v59  ;;  %v4083_v4 = vsel %vm10689_vm8, %v4081_v42, %v4082_v61  ;;  %v6443_v62 = vor.u32 %v6895_v17, %v6442_v30  ;;  %vm10690_vm14 = vcmask 654336   ;;  %vm10691_vm1 = vcmask 916480   ;;  %v6893_v12 = vld [vmem:[%s10434_s4 + $0x134] sm:$0xf0] }
 0x45c   : > { %v4085_v63 = vrot.slane %v4083_v4, 4  ;;  %4813 = vmatpush.bf16.msrb.mxu1 %v6451_v45  ;;  %4848 = vmatpush.bf16.msrb.mxu2 %v6507_v38  ;;  %v6435_v25 = vor.u32 %v6893_v12, %v6434_v56  ;;  %vm10692_vm0 = vcmask 1041408   ;;  %vm10693_vm15 = vcmask 1043459   ;;  %v6907_v46 = vld [vmem:[%s10434_s4 + $0x1a4] sm:$0xf0]  ;;  %vm10696_vm8 = vmmov %vm10691_vm1 }
 0x45d   : > { %vm10694_vm2 = vcmask 1043458   ;;  %vm10695_vm7 = vcmask 523264  }
 0x460   : > { %4814 = vmatpush.bf16.msrb.mxu1 %v6443_v62  ;;  %4849 = vmatpush.bf16.msrb.mxu2 %v6499_v47  ;;  %v6482_v47 = vld [vmem:[%s10434_s4 + $0x190] sm:$0xf] }
 0x462   : > { %v9618_v35 = vld [vmem:[#allocation1] sm:$0xff]  ;;  %v4319_v27 = vld [vmem:[#allocation1 + $0x9] sm:$0xff]  ;;  %v9625_v0 = vld [vmem:[#allocation1 + $0x12] sm:$0xff] }
 0x463   : > { %v9620_v7 = vld [vmem:[#allocation1 + $0x1b] sm:$0xff]  ;;  %v9622_v55 = vld [vmem:[#allocation1 + $0x24] sm:$0xff]  ;;  %4761 = vmatmul.bf16.gmra.mxu1 %v9618_v35  ;;  %4795 = vmatmul.bf16.gmra.mxu2 %v4319_v27 }
 0x464   : > { %4965 = vmatmul.bf16.gmra.mxu3 %v4319_v27  ;;  %4324 = vst [vmem:[#allocation1] ss:$9 sm:$0xff] %v4085_v63  ;;  %4999 = vmatmul.bf16.gmra.mxu0 %v9625_v0  ;;  %v6491_v63 = vor.u32 %v6907_v46, %v6490_v26  ;;  %v6427_v27 = vor.u32 %v6891_v58, %v6426_v14  ;;  %v6418_v26 = vld [vmem:[%s10434_s4 + $0x110] sm:$0xf]  ;;  %v6889_v46 = vld [vmem:[%s10434_s4 + $0x114] sm:$0xf0] }
 0x465   : > { %4815 = vmatpush.bf16.msrb.mxu1 %v6435_v25 }
 0x466   : > { %4850 = vmatpush.bf16.msrb.mxu2 %v6491_v63 }
 0x469   : > { %4816 = vmatpush.bf16.msrb.mxu1 %v6427_v27 }
 0x470   : > { %v3697_v8 = vpop.permute.xlu0 %3696  ;;  %v3761_v18 = vpop.permute.xlu1 %3760 }
 0x471   : > { %v3817_v19 = vsel %vm913_vm4, %v3697_v8, %v3721_v57  ;;  %v3834_v53 = vsel %vm10690_vm14, %v3721_v57, %v3761_v18  ;;  %v3801_v1 = vsel %vm10691_vm1, %v9286_v15, %v3697_v8  ;;  %vm10697_vm14 = vcmask 1045508  }
 0x472   : > { %v3899_v37 = vrot.slane %v3817_v19, 7  ;;  %v3900_v36 = vrot.slane %v3834_v53, 6  ;;  %vm10698_vm1 = vcmask 654336  }
 0x474   : > { %v4087_v20 = vsel %vm3911_vm5, %v3801_v1, %v3899_v37  ;;  %v4094_v9 = vsel %vm3922_vm9, %v3801_v1, %v3899_v37  ;;  %v4100_v2 = vsel %vm3932_vm6, %v3801_v1, %v3899_v37  ;;  %v4106_v44 = vsel %vm10693_vm15, %v3801_v1, %v3899_v37 }
 0x475   : > { %v4089_v13 = vsel %vm10692_vm0, %v4087_v20, %v3900_v36  ;;  %v4112_v29 = vsel %vm10686_vm12, %v3801_v1, %v3899_v37  ;;  %v4095_v52 = vsel %vm3924_vm13, %v4094_v9, %v3900_v36  ;;  %v4101_v28 = vsel %vm10694_vm2, %v4100_v2, %v3900_v36  ;;  %vm10699_vm0 = vmmov %vm10693_vm15 }
 0x476   : > { %v4107_v16 = vsel %vm3942_vm11, %v4106_v44, %v3900_v36  ;;  %v4113_v40 = vsel %vm10697_vm14, %v4112_v29, %v3900_v36  ;;  %vm10700_vm15 = vmmov %vm10686_vm12  ;;  %vm10701_vm12 = vcmask 1045509   ;;  %vm10702_vm2 = vcmask 1046534  }
 0x477   : > { %v3763_v24 = vpop.permute.xlu2 %3762  ;;  %vm10705_vm14 = vcmask 1046528  }
 0x48a   : > { %v3723_v54 = vpop.permute.xlu0 %3722  ;;  %v3701_v62 = vpop.permute.xlu2 %3700 }
 0x48b   : > { %v3836_v32 = vsel %vm10698_vm1, %v3723_v54, %v3763_v24  ;;  %vm10706_vm1 = vcmask 1046532  }
 0x48c   : > { %v3904_v36 = vrot.slane %v3836_v32, 6  ;;  %v6410_v32 = vld [vmem:[%s10434_s4 + $0x100] sm:$0xf] }
 0x48e   : > { %v3699_v51 = vpop.permute.xlu1 %3698 }
 0x48f   : > { %v3819_v11 = vsel %vm913_vm4, %v3699_v51, %v3723_v54  ;;  %v3803_v43 = vsel %vm10696_vm8, %v9423_v50, %v3699_v51  ;;  %vm10704_vm8 = vcmask 1043457   ;;  %v6905_v51 = vld [vmem:[%s10434_s4 + $0x194] sm:$0xf0] }
 0x490   : > { %v9672_v59 = vrot.slane %v3819_v11, 7  ;;  %v6483_v56 = vor.u32 %v6905_v51, %v6482_v47 }
 0x492   : > { %v3785_v15 = vpop.permute.xlu0 %3784  ;;  %v4119_v60 = vsel %vm3911_vm5, %v3803_v43, %v9672_v59  ;;  %v4126_v38 = vsel %vm3922_vm9, %v3803_v43, %v9672_v59  ;;  %4851 = vmatpush.bf16.msrb.mxu2 %v6483_v56 }
 0x493   : > { %v3850_v42 = vsel %vm10695_vm7, %v3761_v18, %v3785_v15  ;;  %v3902_v61 = vrot.slane %v3785_v15, 4  ;;  %vm10703_vm7 = vcmask 1042432   ;;  %v4127_v20 = vsel %vm3924_vm13, %v4126_v38, %v3904_v36 }
 0x494   : > { %v3901_v4 = vrot.slane %v3850_v42, 5 }
 0x496   : > { %v4092_v33 = vsel %vm10699_vm0, %v3901_v4, %v3902_v61  ;;  %v4096_v45 = vsel %vm10700_vm15, %v3901_v4, %v3902_v61  ;;  %v4102_v21 = vsel %vm10701_vm12, %v3901_v4, %v3902_v61  ;;  %v4108_v50 = vsel %vm10702_vm2, %v3901_v4, %v3902_v61  ;;  %v3787_v48 = vpop.permute.xlu1 %3786 }
 0x497   : > { %v4093_v30 = vsel %vm10703_vm7, %v4089_v13, %v4092_v33  ;;  %v4097_v17 = vsel %vm10704_vm8, %v4095_v52, %v4096_v45  ;;  %v4103_v8 = vsel %vm3937_vm10, %v4101_v28, %v4102_v21  ;;  %v4109_v22 = vsel %vm3946_vm3, %v4107_v16, %v4108_v50  ;;  %v6474_v52 = vld [vmem:[%s10434_s4 + $0x180] sm:$0xf]  ;;  %v3789_v16 = vpop.permute.xlu2 %3788 }
 0x498   : > { %v4099_v18 = vrot.slane %v4097_v17, 1  ;;  %v4105_v5 = vrot.slane %v4103_v8, 2  ;;  %v4114_v57 = vsel %vm10705_vm14, %v3902_v61, %v3901_v4  ;;  %4325 = vst [vmem:[#allocation1 + $0x1] ss:$9 sm:$0xff] %v4093_v30  ;;  %v4111_v19 = vrot.slane %v4109_v22, 3 }
 0x499   : > { %v4115_v54 = vsel %vm10706_vm1, %v4113_v40, %v4114_v57  ;;  %vm10707_vm0 = vcmask 523264   ;;  %v3906_v37 = vrot.slane %v3787_v48, 4  ;;  %vm10708_vm15 = vcmask 1041408  }
 0x49a   : > { %v3852_v53 = vsel %vm10707_vm0, %v3763_v24, %v3787_v48  ;;  %v4117_v1 = vrot.slane %v4115_v54, 4  ;;  %4327 = vst [vmem:[#allocation1 + $0x2] ss:$9 sm:$0xff] %v4099_v18  ;;  %v4121_v12 = vsel %vm10708_vm15, %v4119_v60, %v3904_v36  ;;  %vm10709_vm12 = vcmask 1043459   ;;  %v6887_v60 = vld [vmem:[%s10434_s4 + $0x104] sm:$0xf0] }
 0x49b   : > { %v3905_v11 = vrot.slane %v3852_v53, 5  ;;  %4329 = vst [vmem:[#allocation1 + $0x3] ss:$9 sm:$0xff] %v4105_v5  ;;  %vm10710_vm2 = vcmask 1044484   ;;  %v4132_v13 = vsel %vm3932_vm6, %v3803_v43, %v9672_v59  ;;  %vm10711_vm14 = vmmov %vm10709_vm12  ;;  %vm10713_vm0 = vcmask 1045509  }
 0x49c   : > { %4331 = vst [vmem:[#allocation1 + $0x4] ss:$9 sm:$0xff] %v4111_v19  ;;  %v4138_v44 = vsel %vm10711_vm14, %v3803_v43, %v9672_v59  ;;  %vm10712_vm1 = vmmov %vm10710_vm2  ;;  %vm10714_vm15 = vcmask 1046534   ;;  %v6419_v61 = vor.u32 %v6889_v46, %v6418_v26  ;;  %v6411_v50 = vor.u32 %v6887_v60, %v6410_v32 }
 0x49d   : > { %v4124_v25 = vsel %vm10709_vm12, %v3905_v11, %v3906_v37  ;;  %v4128_v9 = vsel %vm10710_vm2, %v3905_v11, %v3906_v37  ;;  %4333 = vst [vmem:[#allocation1 + $0x5] ss:$9 sm:$0xff] %v4117_v1  ;;  %v4144_v29 = vsel %vm10712_vm1, %v3803_v43, %v9672_v59  ;;  %v4134_v28 = vsel %vm10713_vm0, %v3905_v11, %v3906_v37  ;;  %v6903_v59 = vld [vmem:[%s10434_s4 + $0x184] sm:$0xf0] }
 0x49e   : > { %v4125_v2 = vsel %vm10703_vm7, %v4121_v12, %v4124_v25  ;;  %v4129_v24 = vsel %vm10704_vm8, %v4127_v20, %v4128_v9  ;;  %v4140_v42 = vsel %vm10714_vm15, %v3905_v11, %v3906_v37  ;;  %vm10715_vm12 = vcmask 1046528   ;;  %v3725_v58 = vpop.permute.xlu0 %3724  ;;  %4817 = vmatpush.bf16.msrb.mxu1 %v6419_v61 }
 0x49f   : > { %v4131_v15 = vrot.slane %v4129_v24, 1  ;;  %4334 = vst [vmem:[#allocation1 + $0x6] ss:$9 sm:$0xff] %v4125_v2  ;;  %v4146_v14 = vsel %vm10715_vm12, %v3906_v37, %v3905_v11  ;;  %v6475_v43 = vor.u32 %v6903_v59, %v6474_v52  ;;  %vm10716_vm2 = vcmask 1043458  }
 0x4a0   : > { %v4133_v4 = vsel %vm10716_vm2, %v4132_v13, %v3904_v36  ;;  %v4139_v63 = vsel %vm3942_vm11, %v4138_v44, %v3904_v36  ;;  %vm10717_vm7 = vcmask 1045508   ;;  %v3821_v40 = vsel %vm913_vm4, %v3701_v62, %v3725_v58  ;;  %v6868_v44 = vld [vmem:[%s10434_s4 + $0x74] sm:$0xf] }
 0x4a1   : > { %4336 = vst [vmem:[#allocation1 + $0x7] ss:$9 sm:$0xff] %v4131_v15  ;;  %v4145_v27 = vsel %vm10717_vm7, %v4144_v29, %v3904_v36  ;;  %v4135_v33 = vsel %vm3937_vm10, %v4133_v4, %v4134_v28  ;;  %v4141_v45 = vsel %vm3946_vm3, %v4139_v63, %v4140_v42  ;;  %v3907_v21 = vrot.slane %v3821_v40, 7  ;;  %4852 = vmatpush.bf16.msrb.mxu2 %v6475_v43  ;;  %v6340_v29 = vld [vmem:[%s10434_s4 + $0x78] sm:$0xf0] }
 0x4a2   : > { %vm10718_vm8 = vcmask 1046532   ;;  %vm10719_vm4 = vcmask 916480   ;;  %v3910_v30 = vrot.slane %v3789_v16, 4  ;;  %v3765_v17 = vpop.permute.xlu1 %3764  ;;  %v4137_v8 = vrot.slane %v4135_v33, 2  ;;  %4818 = vmatpush.bf16.msrb.mxu1 %v6411_v50  ;;  %v6554_v42 = vld [vmem:[%s10434_s4 + $0x220] sm:$0xf] }
 0x4a3   : > { %v4147_v48 = vsel %vm10718_vm8, %v4145_v27, %v4146_v14  ;;  %v3805_v38 = vsel %vm10719_vm4, %v9500_v3, %v3701_v62  ;;  %v4143_v18 = vrot.slane %v4141_v45, 3  ;;  %vm10720_vm14 = vcmask 654336   ;;  %v6923_v43 = vld [vmem:[%s10434_s4 + $0x224] sm:$0xf0]  ;;  %v9807_v27 = vld [vmem:[%s10435_s5] sm:$0x3] }
 0x4a4   : > { %v3838_v5 = vsel %vm10720_vm14, %v3725_v58, %v3765_v17  ;;  %vm10721_vm1 = vcmask 523264   ;;  %v4149_v57 = vrot.slane %v4147_v48, 4  ;;  %v4151_v47 = vsel %vm3911_vm5, %v3805_v38, %v3907_v21  ;;  %v6866_v45 = vld [vmem:[%s10434_s4 + $0x64] sm:$0xf] }
 0x4a5   : > { %v3854_v22 = vsel %vm10721_vm1, %v3765_v17, %v3789_v16  ;;  %v3908_v19 = vrot.slane %v3838_v5, 6  ;;  %v4158_v3 = vsel %vm3922_vm9, %v3805_v38, %v3907_v21  ;;  %v4164_v62 = vsel %vm3932_vm6, %v3805_v38, %v3907_v21  ;;  %v6864_v5 = vld [vmem:[%s10434_s4 + $0x54] sm:$0xf] }
 0x4a6   : > { %v3909_v54 = vrot.slane %v3854_v22, 5  ;;  %vm10722_vm0 = vcmask 1043459   ;;  %vm10723_vm15 = vcmask 1044484   ;;  %vm10724_vm5 = vcmask 1041408   ;;  %v6324_v22 = vld [vmem:[%s10434_s4 + $0x58] sm:$0xf0] }
 0x4a7   : > { %v4170_v51 = vsel %vm10722_vm0, %v3805_v38, %v3907_v21  ;;  %v4176_v36 = vsel %vm10723_vm15, %v3805_v38, %v3907_v21  ;;  %v4153_v12 = vsel %vm10724_vm5, %v4151_v47, %v3908_v19  ;;  %vm10725_vm12 = vmmov %vm10722_vm0  ;;  %v4159_v25 = vsel %vm3924_vm13, %v4158_v3, %v3908_v19  ;;  %v6332_v21 = vld [vmem:[%s10434_s4 + $0x68] sm:$0xf0] }
 0x4a8   : > { %v9763_v53 = vld [vmem:[#allocation1] sm:$0xff]  ;;  %v4338_v11 = vld [vmem:[#allocation1 + $0x9] sm:$0xff]  ;;  %v9774_v56 = vld [vmem:[#allocation1 + $0x12] sm:$0xff]  ;;  %v4156_v20 = vsel %vm10725_vm12, %v3909_v54, %v3910_v30  ;;  %vm10727_vm6 = vcmask 1042432   ;;  %vm10728_vm2 = vcmask 1043457   ;;  %vm10729_vm7 = vcmask 1043458  }
 0x4a9   : > { %v9765_v37 = vld [vmem:[#allocation1 + $0x1b] sm:$0xff]  ;;  %v9771_v1 = vld [vmem:[#allocation1 + $0x24] sm:$0xff]  ;;  %4766 = vmatmul.bf16.gmra.mxu1 %v9763_v53  ;;  %vm10726_vm9 = vmmov %vm10723_vm15  ;;  %4800 = vmatmul.bf16.gmra.mxu2 %v4338_v11  ;;  %v4157_v2 = vsel %vm10727_vm6, %v4153_v12, %v4156_v20  ;;  %v4165_v15 = vsel %vm10729_vm7, %v4164_v62, %v3908_v19  ;;  %vm10730_vm8 = vcmask 1045509   ;;  %v4171_v52 = vsel %vm3942_vm11, %v4170_v51, %v3908_v19 }
 0x4aa   : > { %v4160_v9 = vsel %vm10726_vm9, %v3909_v54, %v3910_v30  ;;  %v4166_v13 = vsel %vm10730_vm8, %v3909_v54, %v3910_v30  ;;  %4970 = vmatmul.bf16.gmra.mxu3 %v4338_v11  ;;  %vm10731_vm13 = vcmask 1046534   ;;  %5004 = vmatmul.bf16.gmra.mxu0 %v9774_v56  ;;  %4343 = vst [vmem:[#allocation1] ss:$9 sm:$0xff] %v4137_v8  ;;  %vm10732_vm4 = vcmask 1045508   ;;  %v6862_v62 = vld [vmem:[%s10434_s4 + $0x44] sm:$0xf] }
 0x4ab   : > { %v4161_v24 = vsel %vm10728_vm2, %v4159_v25, %v4160_v9  ;;  %v4167_v46 = vsel %vm3937_vm10, %v4165_v15, %v4166_v13  ;;  %v4172_v28 = vsel %vm10731_vm13, %v3909_v54, %v3910_v30  ;;  %v4177_v14 = vsel %vm10732_vm4, %v4176_v36, %v3908_v19  ;;  %4345 = vst [vmem:[#allocation1 + $0x1] ss:$9 sm:$0xff] %v4143_v18  ;;  %v6316_v51 = vld [vmem:[%s10434_s4 + $0x48] sm:$0xf0]  ;;  %v6546_v12 = vld [vmem:[%s10434_s4 + $0x210] sm:$0xf] }
 0x4ac   : > { %v4163_v26 = vrot.slane %v4161_v24, 1  ;;  %v4169_v61 = vrot.slane %v4167_v46, 2  ;;  %v4173_v59 = vsel %vm3946_vm3, %v4171_v52, %v4172_v28  ;;  %vm10733_vm14 = vcmask 1046528   ;;  %4347 = vst [vmem:[#allocation1 + $0x2] ss:$9 sm:$0xff] %v4149_v57 }
 0x4ad   : > { %v4178_v58 = vsel %vm10733_vm14, %v3910_v30, %v3909_v54  ;;  %v4175_v4 = vrot.slane %v4173_v59, 3  ;;  %vm10734_vm10 = vcmask 1046532   ;;  %v6343_v16 = vor.u32 %v6868_v44, %v6340_v29  ;;  %4348 = vst [vmem:[#allocation1 + $0x3] ss:$9 sm:$0xff] %v4157_v2  ;;  %v6921_v20 = vld [vmem:[%s10434_s4 + $0x214] sm:$0xf0] }
 0x4ae   : > { %v4179_v63 = vsel %vm10734_vm10, %v4177_v14, %v4178_v58  ;;  %v6555_v40 = vor.u32 %v6923_v43, %v6554_v42  ;;  %4350 = vst [vmem:[#allocation1 + $0x4] ss:$9 sm:$0xff] %v4163_v26  ;;  %v9810_v60 = vperm.slane %v9807_v27, 0  ;;  %v6335_v50 = vor.u32 %v6866_v45, %v6332_v21  ;;  %v6860_v2 = vld [vmem:[%s10434_s4 + $0x34] sm:$0xf] }
 0x4af   : > { %v4181_v32 = vrot.slane %v4179_v63, 4  ;;  %4913 = vmatpush.bf16.msra.mxu2 %v6343_v16  ;;  %4352 = vst [vmem:[#allocation1 + $0x5] ss:$9 sm:$0xff] %v4169_v61  ;;  %v4752_v33 = vpop.f32.mrf.mxu1  ;;  %v6327_v57 = vor.u32 %v6864_v5, %v6324_v22  ;;  %v6319_v11 = vor.u32 %v6862_v62, %v6316_v51  ;;  %v6547_v9 = vor.u32 %v6921_v20, %v6546_v12  ;;  %v6308_v24 = vld [vmem:[%s10434_s4 + $0x38] sm:$0xf0] }
 0x4b0   : > { %4884 = vmatpush.bf16.msra.mxu1 %v6555_v40  ;;  %4354 = vst [vmem:[#allocation1 + $0x6] ss:$9 sm:$0xff] %v4175_v4  ;;  %v4753_v48 = vadd.f32 %v4752_v33, %v9810_v60  ;;  %v6311_v15 = vor.u32 %v6860_v2, %v6308_v24  ;;  %v6300_v44 = vld [vmem:[%s10434_s4 + $0x28] sm:$0xf0]  ;;  %v6538_v29 = vld [vmem:[%s10434_s4 + $0x200] sm:$0xf] }
 0x4b1   : > { %4356 = vst [vmem:[#allocation1 + $0x7] ss:$9 sm:$0xff] %v4181_v32  ;;  %v6919_v46 = vld [vmem:[%s10434_s4 + $0x204] sm:$0xf0]  ;;  %v6292_v52 = vld [vmem:[%s10434_s4 + $0x18] sm:$0xf0] }
 0x4b2   : > { %v6539_v28 = vor.u32 %v6919_v46, %v6538_v29  ;;  %v6854_v4 = vld [vmem:[%s10434_s4 + $0x4] sm:$0xf]  ;;  %v6284_v63 = vld [vmem:[%s10434_s4 + $0x8] sm:$0xf0]  ;;  %v6916_v32 = vld [vmem:[%s10434_s4 + $0x1f4] sm:$0xf] }
 0x4b3   : > { %4914 = vmatpush.bf16.msra.mxu2 %v6335_v50  ;;  %v6287_v16 = vor.u32 %v6854_v4, %v6284_v63  ;;  %v6556_v40 = vld [vmem:[%s10434_s4 + $0x228] sm:$0xf0]  ;;  %v6532_v45 = vld [vmem:[%s10434_s4 + $0x1f8] sm:$0xf0]  ;;  %v6914_v21 = vld [vmem:[%s10434_s4 + $0x1e4] sm:$0xf] }
 0x4b4   : > { %4885 = vmatpush.bf16.msra.mxu1 %v6547_v9  ;;  %v6524_v50 = vld [vmem:[%s10434_s4 + $0x1e8] sm:$0xf0]  ;;  %v6516_v5 = vld [vmem:[%s10434_s4 + $0x1d8] sm:$0xf0]  ;;  %vm4732_vm3 = vcmask 392192   ;;  %vm10735_vm11 = vcmask 916480  }
 0x4b5   : > { %v4786_v38 = vpop.f32.mrf.mxu2  ;;  %v6508_v62 = vld [vmem:[%s10434_s4 + $0x1c8] sm:$0xf0]  ;;  %v6908_v20 = vld [vmem:[%s10434_s4 + $0x1b4] sm:$0xf]  ;;  %vm10736_vm1 = vmmov %vm10735_vm11  ;;  %vm5295_vm0 = vcmask 130048   ;;  %vm10745_vm13 = vcmask 654336  }
 0x4b6   : > { %v9819_v30 = vadd.f32 %v4786_v38, %v4753_v48  ;;  %v6527_v38 = vor.u32 %v6914_v21, %v6524_v50  ;;  %v6492_v29 = vld [vmem:[%s10434_s4 + $0x1a8] sm:$0xf0]  ;;  %vm10737_vm15 = vmmov %vm10736_vm1 }
 0x4b7   : > { %v9833_v47 = vpop.f32.mrf.mxu1  ;;  %4915 = vmatpush.bf16.msra.mxu2 %v6327_v57  ;;  %v6920_v57 = vld [vmem:[%s10434_s4 + $0x214] sm:$0xf]  ;;  %vm10738_vm5 = vmmov %vm10736_vm1 }
 0x4b8   : > { %v9821_v17 = vld [vmem:[#allocation1] sm:$0xff]  ;;  %v4358_v8 = vld [vmem:[#allocation1 + $0x9] sm:$0xff]  ;;  %v9824_v18 = vld [vmem:[#allocation1 + $0x12] sm:$0xff]  ;;  %4886 = vmatpush.bf16.msra.mxu1 %v6539_v28 }
 0x4b9   : > { %4771 = vmatmul.bf16.gmra.mxu1 %v9821_v17  ;;  %4805 = vmatmul.bf16.gmra.mxu2 %v4358_v8  ;;  %v9915_v48 = vld [vmem:[#allocation1 + $0x1b] sm:$0xff]  ;;  %vm10739_vm12 = vmmov %vm10736_vm1 }
 0x4ba   : > { %4975 = vmatmul.bf16.gmra.mxu3 %v4358_v8  ;;  %5009 = vmatmul.bf16.gmra.mxu0 %v9824_v18  ;;  %v6912_v8 = vld [vmem:[%s10434_s4 + $0x1d4] sm:$0xf]  ;;  %vm10740_vm9 = vmmov %vm10736_vm1 }
 0x4bb   : > { %4916 = vmatpush.bf16.msra.mxu2 %v6319_v11  ;;  %v6519_v22 = vor.u32 %v6912_v8, %v6516_v5  ;;  %vm10741_vm6 = vmmov %vm10736_vm1 }
 0x4bc   : > { %vm10742_vm2 = vmmov %vm10736_vm1 }
 0x4bd   : > { %v9835_v19 = vpop.f32.mrf.mxu2  ;;  %vm10743_vm7 = vmmov %vm10736_vm1 }
 0x4be   : > { %vm10744_vm8 = vmmov %vm10736_vm1 }
 0x4bf   : > { %4917 = vmatpush.bf16.msra.mxu2 %v6311_v15  ;;  %vm10746_vm4 = vmmov %vm10745_vm13 }
 0x4c0   : > { %vm10747_vm14 = vmmov %vm10746_vm4 }
 0x4c1   : > { %vm10748_vm10 = vmmov %vm10746_vm4 }
 0x4c2   : > { %v4757_v54 = vpop.f32.mrf.mxu1 }
 0x4c3   : > { %v4758_v3 = vadd.f32 %v4757_v54, %v9810_v60 }
 0x4c8   : > { %v4791_v36 = vpop.f32.mrf.mxu2 }
 0x4c9   : > { %v9850_v25 = vadd.f32 %v4791_v36, %v4758_v3  ;;  %4819 = vmatmul.bf16.vlgmr.msrb.gmra.mxu1 %v9527_v41  ;;  %4853 = vmatmul.bf16.vlgmr.msrb.gmra.mxu2 %v9521_v31  ;;  %v6858_v41 = vld [vmem:[%s10434_s4 + $0x24] sm:$0xf] }
 0x4ca   : > { %v9860_v13 = vpop.f32.mrf.mxu1  ;;  %v6303_v26 = vor.u32 %v6858_v41, %v6300_v44  ;;  %v6910_v3 = vld [vmem:[%s10434_s4 + $0x1c4] sm:$0xf] }
 0x4cb   : > { %v6511_v51 = vor.u32 %v6910_v3, %v6508_v62  ;;  %v6906_v44 = vld [vmem:[%s10434_s4 + $0x1a4] sm:$0xf] }
 0x4cc   : > { %4918 = vmatpush.bf16.msra.mxu2 %v6303_v26  ;;  %v6918_v26 = vld [vmem:[%s10434_s4 + $0x204] sm:$0xf]  ;;  %v6495_v46 = vor.u32 %v6906_v44, %v6492_v29 }
 0x4d0   : > { %v9882_v61 = vpop.f32.mrf.mxu2 }
 0x4d9   : > { %4824 = vmatmul.bf16.gmra.mxu1 %v9566_v6  ;;  %4858 = vmatmul.bf16.gmra.mxu2 %v9561_v10  ;;  %v6856_v6 = vld [vmem:[%s10434_s4 + $0x14] sm:$0xf] }
 0x4da   : > { %v6295_v42 = vor.u32 %v6856_v6, %v6292_v52 }
 0x4dc   : > { %4919 = vmatpush.bf16.msra.mxu2 %v6295_v42 }
 0x4e0   : > { %v4762_v59 = vpop.f32.mrf.mxu1  ;;  %4920 = vmatpush.bf16.msra.mxu2 %v6287_v16 }
 0x4e1   : > { %v4763_v14 = vadd.f32 %v4762_v59, %v9810_v60 }
 0x4e6   : > { %v4796_v58 = vpop.f32.mrf.mxu2 }
 0x4e7   : > { %v9885_v43 = vadd.f32 %v4796_v58, %v4763_v14  ;;  %v6904_v14 = vld [vmem:[%s10434_s4 + $0x194] sm:$0xf]  ;;  %v6484_v58 = vld [vmem:[%s10434_s4 + $0x198] sm:$0xf0] }
 0x4e8   : > { %v9940_v36 = vpop.f32.mrf.mxu1  ;;  %v6487_v4 = vor.u32 %v6904_v14, %v6484_v58 }
 0x4e9   : > { %4829 = vmatmul.bf16.gmra.mxu1 %v9625_v0  ;;  %4863 = vmatmul.bf16.gmra.mxu2 %v9620_v7  ;;  %v6922_v0 = vld [vmem:[%s10434_s4 + $0x224] sm:$0xf] }
 0x4ea   : > { %v6559_v33 = vor.u32 %v6922_v0, %v6556_v40 }
 0x4ec   : > { %5054 = vmatpush.bf16.msrb.mxu2 %v6559_v33 }
 0x4ee   : > { %v9942_v11 = vpop.f32.mrf.mxu2 }
 0x4f9   : > { %4834 = vmatmul.bf16.gmra.mxu1 %v9774_v56  ;;  %4868 = vmatmul.bf16.gmra.mxu2 %v9765_v37  ;;  %v6535_v56 = vor.u32 %v6916_v32, %v6532_v45  ;;  %v6902_v32 = vld [vmem:[%s10434_s4 + $0x184] sm:$0xf] }
 0x4fb   : > { %5015 = vmatpush.bf16.msrb.mxu1 %v6535_v56 }
 0x4ff   : > { %5016 = vmatpush.bf16.msrb.mxu1 %v6527_v38 }
 0x503   : > { %5017 = vmatpush.bf16.msrb.mxu1 %v6519_v22 }
 0x507   : > { %5018 = vmatpush.bf16.msrb.mxu1 %v6511_v51 }
 0x509   : > { %4839 = vmatmul.bf16.gmra.mxu1 %v9824_v18  ;;  %4873 = vmatmul.bf16.gmra.mxu2 %v9915_v48  ;;  %v6548_v18 = vld [vmem:[%s10434_s4 + $0x218] sm:$0xf0] }
 0x50a   : > { %v6551_v54 = vor.u32 %v6920_v57, %v6548_v18  ;;  %v4755_v57 = vadd.f32 %v9833_v47, %v9810_v60 }
 0x50c   : > { %5055 = vmatpush.bf16.msrb.mxu2 %v6551_v54  ;;  %v4789_v18 = vadd.f32 %v9835_v19, %v4755_v57 }
 0x519   : > { %6560 = vmatmul.msk.bf16.vlgmr.msra.gmra.mxu1 %vm4732_vm3, %v9523_v49  ;;  %4921 = vmatmul.bf16.vlgmr.msra.gmra.mxu2 %v9519_v39  ;;  %v6500_v39 = vld [vmem:[%s10434_s4 + $0x1b8] sm:$0xf0] }
 0x51a   : > { %v6503_v9 = vor.u32 %v6908_v20, %v6500_v39 }
 0x51c   : > { %5019 = vmatpush.bf16.msrb.mxu1 %v6503_v9  ;;  %v4760_v9 = vadd.f32 %v9860_v13, %v9810_v60 }
 0x51e   : > { %v4794_v47 = vadd.f32 %v9882_v61, %v4760_v9 }
 0x520   : > { %5020 = vmatpush.bf16.msrb.mxu1 %v6495_v46 }
 0x524   : > { %5021 = vmatpush.bf16.msrb.mxu1 %v6487_v4 }
 0x526   : > { %v4767_v12 = vpop.f32.mrf.mxu1 }
 0x527   : > { %v4768_v2 = vadd.f32 %v4767_v12, %v9810_v60 }
 0x529   : > { %6561 = vmatmul.msk.bf16.gmra.mxu1 %vm4732_vm3, %v9563_v34  ;;  %4926 = vmatmul.bf16.gmra.mxu2 %v9559_v23  ;;  %v6540_v23 = vld [vmem:[%s10434_s4 + $0x208] sm:$0xf0] }
 0x52a   : > { %v6543_v6 = vor.u32 %v6918_v26, %v6540_v23  ;;  %v4765_v26 = vadd.f32 %v9940_v36, %v9810_v60 }
 0x52c   : > { %v4801_v24 = vpop.f32.mrf.mxu2  ;;  %5056 = vmatpush.bf16.msrb.mxu2 %v6543_v6  ;;  %v4799_v13 = vadd.f32 %v9942_v11, %v4765_v26 }
 0x52d   : > { %v9954_v15 = vadd.f32 %v4801_v24, %v4768_v2 }
 0x52e   : > { %v4769_v41 = vpop.f32.mrf.mxu1 }
 0x52f   : > { %v4770_v52 = vadd.f32 %v4769_v41, %v9810_v60 }
 0x534   : > { %v4803_v28 = vpop.f32.mrf.mxu2 }
 0x535   : > { %v9969_v42 = vadd.f32 %v4803_v28, %v4770_v52 }
 0x536   : > { %v4772_v59 = vpop.f32.mrf.mxu1 }
 0x537   : > { %v4773_v63 = vadd.f32 %v4772_v59, %v9810_v60 }
 0x539   : > { %6562 = vmatmul.msk.bf16.gmra.mxu1 %vm4732_vm3, %v9622_v55  ;;  %4931 = vmatmul.bf16.gmra.mxu2 %v9618_v35  ;;  %v6476_v35 = vld [vmem:[%s10434_s4 + $0x188] sm:$0xf0] }
 0x53a   : > { %v6479_v33 = vor.u32 %v6902_v32, %v6476_v35 }
 0x53c   : > { %v4806_v16 = vpop.f32.mrf.mxu2  ;;  %5022 = vmatpush.bf16.msrb.mxu1 %v6479_v33 }
 0x53d   : > { %v4807_v0 = vadd.f32 %v4806_v16, %v4773_v63 }
 0x53e   : > { %v4774_v40 = vpop.f32.mrf.mxu1 }
 0x53f   : > { %v4775_v45 = vadd.f32 %v4774_v40, %v9810_v60 }
 0x544   : > { %v4808_v56 = vpop.f32.mrf.mxu2 }
 0x545   : > { %v9988_v21 = vadd.f32 %v4808_v56, %v4775_v45 }
 0x546   : > { %v4820_v50 = vpop.f32.mrf.mxu1 }
 0x547   : > { %v4821_v38 = vadd.f32 %v4820_v50, %v9819_v30  ;;  %v4361_v30 = vld [vmem:[#allocation1 + $0x24] sm:$0xff] }
 0x549   : > { %6563 = vmatmul.msk.bf16.gmra.mxu1 %vm4732_vm3, %v9771_v1  ;;  %4936 = vmatmul.bf16.gmra.mxu2 %v9763_v53 }
 0x54c   : > { %v4854_v8 = vpop.f32.mrf.mxu2 }
 0x54d   : > { %v4855_v5 = vadd.f32 %v4854_v8, %v4821_v38 }
 0x54e   : > { %v4822_v22 = vpop.f32.mrf.mxu1 }
 0x54f   : > { %v4823_v54 = vadd.f32 %v4822_v22, %v4789_v18 }
 0x554   : > { %v4856_v3 = vpop.f32.mrf.mxu2 }
 0x555   : > { %v4857_v62 = vadd.f32 %v4856_v3, %v4823_v54 }
 0x556   : > { %v4825_v51 = vpop.f32.mrf.mxu1 }
 0x557   : > { %v4826_v12 = vadd.f32 %v4825_v51, %v9850_v25  ;;  %v4956_v51 = vpop.f32.mrf.mxu3 }
 0x559   : > { %6564 = vmatmul.msk.bf16.gmra.mxu1 %vm4732_vm3, %v4361_v30  ;;  %4941 = vmatmul.bf16.gmra.mxu2 %v9821_v17 }
 0x55c   : > { %v4859_v53 = vpop.f32.mrf.mxu2 }
 0x55d   : > { %v4860_v20 = vadd.f32 %v4859_v53, %v4826_v12 }
 0x55e   : > { %v4827_v39 = vpop.f32.mrf.mxu1 }
 0x55f   : > { %v4828_v19 = vadd.f32 %v4827_v39, %v4794_v47 }
 0x564   : > { %v4861_v2 = vpop.f32.mrf.mxu2 }
 0x565   : > { %v4862_v24 = vadd.f32 %v4861_v2, %v4828_v19  ;;  %v4958_v19 = vpop.f32.mrf.mxu3 }
 0x566   : > { %v4830_v41 = vpop.f32.mrf.mxu1 }
 0x567   : > { %v4831_v44 = vadd.f32 %v4830_v41, %v9885_v43 }
 0x569   : > { %5023 = vmatmul.bf16.vlgmr.msrb.gmra.mxu1 %v9521_v31  ;;  %6565 = vmatmul.msk.bf16.vlgmr.msrb.gmra.mxu2 %vm4732_vm3, %v9523_v49 }
 0x56c   : > { %v4864_v17 = vpop.f32.mrf.mxu2 }
 0x56d   : > { %v4865_v25 = vadd.f32 %v4864_v17, %v4831_v44 }
 0x56e   : > { %v4832_v29 = vpop.f32.mrf.mxu1 }
 0x56f   : > { %v4833_v61 = vadd.f32 %v4832_v29, %v4799_v13 }
 0x574   : > { %v4866_v46 = vpop.f32.mrf.mxu2 }
 0x575   : > { %v4867_v23 = vadd.f32 %v4866_v46, %v4833_v61 }
 0x576   : > { %v4835_v6 = vpop.f32.mrf.mxu1 }
 0x577   : > { %v4836_v52 = vadd.f32 %v4835_v6, %v9954_v15 }
 0x579   : > { %5028 = vmatmul.bf16.gmra.mxu1 %v9561_v10  ;;  %6566 = vmatmul.msk.bf16.gmra.mxu2 %vm4732_vm3, %v9563_v34 }
 0x57c   : > { %v4869_v31 = vpop.f32.mrf.mxu2 }
 0x57d   : > { %v4870_v49 = vadd.f32 %v4869_v31, %v4836_v52 }
 0x57e   : > { %v4837_v43 = vpop.f32.mrf.mxu1 }
 0x584   : > { %v4871_v28 = vpop.f32.mrf.mxu2 }
 0x586   : > { %v4840_v59 = vpop.f32.mrf.mxu1 }
 0x587   : > { %v4841_v14 = vadd.f32 %v4840_v59, %v4807_v0 }
 0x589   : > { %5033 = vmatmul.bf16.gmra.mxu1 %v9620_v7  ;;  %6567 = vmatmul.msk.bf16.gmra.mxu2 %vm4732_vm3, %v9622_v55 }
 0x58c   : > { %v4874_v60 = vpop.f32.mrf.mxu2 }
 0x58d   : > { %v4875_v36 = vadd.f32 %v4874_v60, %v4841_v14 }
 0x58e   : > { %v4842_v11 = vpop.f32.mrf.mxu1 }
 0x58f   : > { %v4843_v12 = vadd.f32 %v4842_v11, %v9988_v21 }
 0x594   : > { %v4876_v15 = vpop.f32.mrf.mxu2 }
 0x596   : > { %v4888_v58 = vpop.f32.mrf.mxu1 }
 0x597   : > { %v10017_v10 = vadd.f32 %v4888_v58, %v4855_v5 }
 0x599   : > { %5038 = vmatmul.bf16.gmra.mxu1 %v9765_v37  ;;  %6568 = vmatmul.msk.bf16.gmra.mxu2 %vm4732_vm3, %v9771_v1 }
 0x59c   : > { %v4922_v34 = vpop.f32.mrf.mxu2 }
 0x59e   : > { %v4890_v4 = vpop.f32.mrf.mxu1 }
 0x59f   : > { %v10022_v63 = vadd.f32 %v4890_v4, %v4857_v62 }
 0x5a1   : > { %v5085_v11 = vmax.f32 %v10022_v63, 0.0 }
 0x5a4   : > { %v4924_v7 = vpop.f32.mrf.mxu2 }
 0x5a6   : > { %v4893_v16 = vpop.f32.mrf.mxu1 }
 0x5a7   : > { %v10024_v0 = vadd.f32 %v4893_v16, %v4860_v20  ;;  %v4877_v20 = vadd.f32 %v4876_v15, %v4843_v12 }
 0x5a9   : > { %5043 = vmatmul.bf16.gmra.mxu1 %v9915_v48  ;;  %6569 = vmatmul.msk.bf16.gmra.mxu2 %vm4732_vm3, %v4361_v30  ;;  %v4838_v48 = vadd.f32 %v4837_v43, %v9969_v42  ;;  %v4990_v30 = vpop.f32.mrf.mxu0  ;;  %v10053_v42 = vperm.slane %v9807_v27, 1  ;;  %vm10749_vm3 = vmmov %vm10746_vm4 }
 0x5ab   : > { %v4872_v22 = vadd.f32 %v4871_v28, %v4838_v48  ;;  %v4923_v47 = vadd.f32 %v4922_v34, %v10053_v42  ;;  %v4925_v21 = vadd.f32 %v4924_v7, %v10053_v42  ;;  %v5087_v48 = vmax.f32 %v10024_v0, 0.0 }
 0x5ac   : > { %v4927_v55 = vpop.f32.mrf.mxu2 }
 0x5ad   : > { %v4959_v13 = vadd.f32 %v4958_v19, %v4925_v21  ;;  %v4928_v52 = vadd.f32 %v4927_v55, %v10053_v42 }
 0x5ae   : > { %v4895_v40 = vpop.f32.mrf.mxu1 }
 0x5af   : > { %v10028_v32 = vadd.f32 %v4895_v40, %v4862_v24  ;;  %v4957_v24 = vadd.f32 %v4956_v51, %v4923_v47 }
 0x5b1   : > { %v4992_v41 = vpop.f32.mrf.mxu0  ;;  %v4991_v17 = vadd.f32 %v4990_v30, %v4957_v24  ;;  %v5089_v24 = vmax.f32 %v10028_v32, 0.0 }
 0x5b4   : > { %v4929_v37 = vpop.f32.mrf.mxu2 }
 0x5b5   : > { %v4930_v34 = vadd.f32 %v4929_v37, %v10053_v42 }
 0x5b6   : > { %v4898_v35 = vpop.f32.mrf.mxu1 }
 0x5b7   : > { %v10030_v33 = vadd.f32 %v4898_v35, %v4865_v25  ;;  %v4961_v25 = vpop.f32.mrf.mxu3 }
 0x5b8   : > { %v4962_v14 = vadd.f32 %v4961_v25, %v4928_v52  ;;  %v6932_v25 = vld [vmem:[%s10436_s6 + $0x40] sm:$0xff] }
 0x5b9   : > { %v4995_v61 = vpop.f32.mrf.mxu0  ;;  %5352 = vmatpush.bf16.msra.mxu0 %v6932_v25 }
 0x5ba   : > { %v4996_v7 = vadd.f32 %v4995_v61, %v4962_v14  ;;  %v6930_v14 = vld [vmem:[%s10436_s6 + $0x30] sm:$0xff] }
 0x5bc   : > { %v10032_v1 = vpop.f32.mrf.mxu2 }
 0x5be   : > { %v4900_v45 = vpop.f32.mrf.mxu1 }
 0x5bf   : > { %v10034_v56 = vadd.f32 %v4900_v45, %v4867_v23  ;;  %v5083_v23 = vmax.f32 %v10017_v10, 0.0  ;;  %v4963_v28 = vpop.f32.mrf.mxu3 }
 0x5c0   : > { %v4964_v35 = vadd.f32 %v4963_v28, %v4930_v34 }
 0x5c1   : > { %v4997_v58 = vpop.f32.mrf.mxu0 }
 0x5c2   : > { %v4998_v51 = vadd.f32 %v4997_v58, %v4964_v35 }
 0x5c4   : > { %v10036_v50 = vpop.f32.mrf.mxu2 }
 0x5c6   : > { %v4903_v38 = vpop.f32.mrf.mxu1 }
 0x5c7   : > { %v10038_v8 = vadd.f32 %v4903_v38, %v4870_v49  ;;  %v4993_v49 = vadd.f32 %v4992_v41, %v4959_v13  ;;  %v4966_v55 = vpop.f32.mrf.mxu3 }
 0x5c9   : > { %v5000_v37 = vpop.f32.mrf.mxu0 }
 0x5cc   : > { %v10041_v5 = vpop.f32.mrf.mxu2 }
 0x5ce   : > { %v4905_v57 = vpop.f32.mrf.mxu1 }
 0x5cf   : > { %v10043_v18 = vadd.f32 %v4905_v57, %v4872_v22  ;;  %v4933_v57 = vadd.f32 %v10032_v1, %v10053_v42  ;;  %v4968_v47 = vpop.f32.mrf.mxu3  ;;  %v4935_v1 = vadd.f32 %v10036_v50, %v10053_v42 }
 0x5d1   : > { %v4969_v13 = vadd.f32 %v4968_v47, %v4935_v1 }
 0x5d4   : > { %v10045_v54 = vpop.f32.mrf.mxu2 }
 0x5d5   : > { %v4940_v35 = vadd.f32 %v10045_v54, %v10053_v42 }
 0x5d6   : > { %v4908_v3 = vpop.f32.mrf.mxu1 }
 0x5d7   : > { %v10047_v62 = vadd.f32 %v4908_v3, %v4875_v36 }
 0x5dc   : > { %v10050_v53 = vpop.f32.mrf.mxu2 }
 0x5de   : > { %v4910_v39 = vpop.f32.mrf.mxu1 }
 0x5df   : > { %v10055_v9 = vadd.f32 %v4910_v39, %v4877_v20  ;;  %v4967_v20 = vadd.f32 %v4966_v55, %v4933_v57  ;;  %v6929_v57 = vld [vmem:[%s10436_s6 + $0x28] sm:$0xff] }
 0x5e1   : > { %v5001_v21 = vadd.f32 %v5000_v37, %v4967_v20 }
 0x5e4   : > { %v10058_v2 = vpop.f32.mrf.mxu2 }
 0x5e6   : > { %v5024_v44 = vpop.f32.mrf.mxu1 }
 0x5e7   : > { %v5025_v29 = vadd.f32 %v5024_v44, %v4991_v17  ;;  %v6931_v17 = vld [vmem:[%s10436_s6 + $0x38] sm:$0xff] }
 0x5e8   : > { %5311 = vmatpush.bf16.msra.mxu3 %v6931_v17 }
 0x5ec   : > { %v5058_v26 = vpop.f32.mrf.mxu2  ;;  %5312 = vmatpush.bf16.msra.mxu3 %v6930_v14  ;;  %v4945_v14 = vadd.f32 %v10058_v2, %v10053_v42 }
 0x5ed   : > { %v10061_v27 = vadd.f32 %v5058_v26, %v5025_v29  ;;  %v5002_v29 = vpop.f32.mrf.mxu0 }
 0x5ee   : > { %v5026_v46 = vpop.f32.mrf.mxu1 }
 0x5ef   : > { %v5084_v6 = vmax.f32 %v10061_v27, 0.0  ;;  %v5027_v43 = vadd.f32 %v5026_v46, %v4993_v49  ;;  %v4971_v46 = vpop.f32.mrf.mxu3 }
 0x5f0   : > { %5313 = vmatpush.bf16.msra.mxu3 %v6929_v57 }
 0x5f1   : > { %v7159_v31 = vpack.i.bf16 %v5084_v6, %v5083_v23 }
 0x5f3   : > { %7160 = vrot.lane.b32.xlu0 %v7159_v31, %s10636_s25  ;;  %v5091_v31 = vmax.f32 %v10030_v33, 0.0 }
 0x5f4   : > { %v5060_v59 = vpop.f32.mrf.mxu2 }
 0x5f5   : > { %v10071_v60 = vadd.f32 %v5060_v59, %v5027_v43  ;;  %v4938_v43 = vadd.f32 %v10041_v5, %v10053_v42  ;;  %v5003_v59 = vadd.f32 %v5002_v29, %v4969_v13 }
 0x5f6   : > { %v5029_v36 = vpop.f32.mrf.mxu1 }
 0x5f7   : > { %v5086_v15 = vmax.f32 %v10071_v60, 0.0  ;;  %v5030_v16 = vadd.f32 %v5029_v36, %v4996_v7  ;;  %v5005_v36 = vpop.f32.mrf.mxu0 }
 0x5f9   : > { %v7164_v4 = vpack.i.bf16 %v5086_v15, %v5085_v11 }
 0x5fb   : > { %7165 = vrot.lane.b32.xlu1 %v7164_v4, %s10636_s25  ;;  %v4972_v4 = vadd.f32 %v4971_v46, %v4938_v43 }
 0x5fc   : > { %v5063_v40 = vpop.f32.mrf.mxu2 }
 0x5fd   : > { %v10081_v45 = vadd.f32 %v5063_v40, %v5030_v16  ;;  %v5093_v16 = vmax.f32 %v10034_v56, 0.0  ;;  %v4973_v40 = vpop.f32.mrf.mxu3  ;;  %v5006_v37 = vadd.f32 %v5005_v36, %v4972_v4 }
 0x5fe   : > { %v5031_v38 = vpop.f32.mrf.mxu1 }
 0x5ff   : > { %v5088_v22 = vmax.f32 %v10081_v45, 0.0  ;;  %v5032_v12 = vadd.f32 %v5031_v38, %v4998_v51  ;;  %v6928_v51 = vld [vmem:[%s10436_s6 + $0x20] sm:$0xff] }
 0x600   : > { %5314 = vmatpush.bf16.msra.mxu3 %v6928_v51 }
 0x601   : > { %v7169_v3 = vpack.i.bf16 %v5088_v22, %v5087_v48 }
 0x603   : > { %7170 = vrot.lane.b32.xlu2 %v7169_v3, %s10636_s25 }
 0x604   : > { %v5065_v30 = vpop.f32.mrf.mxu2 }
 0x605   : > { %v10092_v39 = vadd.f32 %v5065_v30, %v5032_v12  ;;  %v5007_v12 = vpop.f32.mrf.mxu0  ;;  %v4974_v30 = vadd.f32 %v4973_v40, %v4940_v35  ;;  %v4976_v29 = vpop.f32.mrf.mxu3 }
 0x606   : > { %v5034_v19 = vpop.f32.mrf.mxu1 }
 0x607   : > { %v5090_v41 = vmax.f32 %v10092_v39, 0.0  ;;  %v5035_v26 = vadd.f32 %v5034_v19, %v5001_v21  ;;  %v5095_v19 = vmax.f32 %v10038_v8, 0.0  ;;  %v4943_v21 = vadd.f32 %v10050_v53, %v10053_v42 }
 0x608   : > { %v5008_v25 = vadd.f32 %v5007_v12, %v4974_v30  ;;  %v5101_v30 = vmax.f32 %v10055_v9, 0.0 }
 0x609   : > { %v7174_v44 = vpack.i.bf16 %v5090_v41, %v5089_v24  ;;  %v4977_v46 = vadd.f32 %v4976_v29, %v4943_v21  ;;  %v6925_v21 = vld [vmem:[%s10436_s6 + $0x8] sm:$0xff] }
 0x60b   : > { %7175 = vrot.lane.b32.xlu0 %v7174_v44, %s10636_s25  ;;  %v6927_v44 = vld [vmem:[%s10436_s6 + $0x18] sm:$0xff] }
 0x60c   : > { %v5068_v50 = vpop.f32.mrf.mxu2  ;;  %5315 = vmatpush.bf16.msra.mxu3 %v6927_v44 }
 0x60d   : > { %v10109_v61 = vadd.f32 %v5068_v50, %v5035_v26  ;;  %v6926_v50 = vld [vmem:[%s10436_s6 + $0x10] sm:$0xff]  ;;  %v5010_v53 = vpop.f32.mrf.mxu0  ;;  %v4978_v4 = vpop.f32.mrf.mxu3 }
 0x60e   : > { %v5036_v52 = vpop.f32.mrf.mxu1  ;;  %v4979_v40 = vadd.f32 %v4978_v4, %v4945_v14 }
 0x60f   : > { %v5092_v49 = vmax.f32 %v10109_v61, 0.0  ;;  %v5037_v58 = vadd.f32 %v5036_v52, %v5003_v59 }
 0x610   : > { %5316 = vmatpush.bf16.msra.mxu3 %v6926_v50 }
 0x611   : > { %v7179_v28 = vpack.i.bf16 %v5092_v49, %v5091_v31 }
 0x613   : > { %7180 = vrot.lane.b32.xlu1 %v7179_v28, %s10636_s25  ;;  %v5097_v28 = vmax.f32 %v10043_v18, 0.0 }
 0x614   : > { %v5070_v34 = vpop.f32.mrf.mxu2  ;;  %5317 = vmatpush.bf16.msra.mxu3 %v6925_v21 }
 0x615   : > { %v10123_v7 = vadd.f32 %v5070_v34, %v5037_v58  ;;  %v5011_v58 = vadd.f32 %v5010_v53, %v4977_v46  ;;  %v5012_v57 = vpop.f32.mrf.mxu0 }
 0x616   : > { %v5039_v5 = vpop.f32.mrf.mxu1 }
 0x617   : > { %v5094_v55 = vmax.f32 %v10123_v7, 0.0  ;;  %v5040_v3 = vadd.f32 %v5039_v5, %v5006_v37 }
 0x619   : > { %v7184_v38 = vpack.i.bf16 %v5094_v55, %v5093_v16 }
 0x61b   : > { %7185 = vrot.lane.b32.xlu2 %v7184_v38, %s10636_s25  ;;  %v5099_v38 = vmax.f32 %v10047_v62, 0.0 }
 0x61c   : > { %v5073_v54 = vpop.f32.mrf.mxu2 }
 0x61d   : > { %v10140_v20 = vadd.f32 %v5073_v54, %v5040_v3  ;;  %v5013_v3 = vadd.f32 %v5012_v57, %v4979_v40 }
 0x61e   : > { %v5041_v47 = vpop.f32.mrf.mxu1 }
 0x61f   : > { %v5096_v1 = vmax.f32 %v10140_v20, 0.0  ;;  %v5042_v26 = vadd.f32 %v5041_v47, %v5008_v25 }
 0x621   : > { %v7189_v17 = vpack.i.bf16 %v5096_v1, %v5095_v19 }
 0x623   : > { %7190 = vrot.lane.b32.xlu0 %v7189_v17, %s10636_s25  ;;  %v6924_v17 = vld [vmem:[%s10436_s6] sm:$0xff] }
 0x624   : > { %v5075_v13 = vpop.f32.mrf.mxu2  ;;  %5318 = vmatpush.bf16.msra.mxu3 %v6924_v17 }
 0x625   : > { %v10157_v52 = vadd.f32 %v5075_v13, %v5042_v26 }
 0x626   : > { %v5044_v43 = vpop.f32.mrf.mxu1 }
 0x627   : > { %v5098_v59 = vmax.f32 %v10157_v52, 0.0  ;;  %v5045_v34 = vadd.f32 %v5044_v43, %v5011_v58 }
 0x629   : > { %v7194_v36 = vpack.i.bf16 %v5098_v59, %v5097_v28 }
 0x62b   : > { %7195 = vrot.lane.b32.xlu1 %v7194_v36, %s10636_s25 }
 0x62c   : > { %v5078_v5 = vpop.f32.mrf.mxu2 }
 0x62d   : > { %v10168_v35 = vadd.f32 %v5078_v5, %v5045_v34 }
 0x62e   : > { %v5046_v42 = vpop.f32.mrf.mxu1 }
 0x62f   : > { %v5100_v37 = vmax.f32 %v10168_v35, 0.0  ;;  %v5047_v51 = vadd.f32 %v5046_v42, %v5013_v3 }
 0x631   : > { %v7199_v2 = vpack.i.bf16 %v5100_v37, %v5099_v38 }
 0x633   : > { %7200 = vrot.lane.b32.xlu2 %v7199_v2, %s10636_s25 }
 0x634   : > { %v5080_v12 = vpop.f32.mrf.mxu2 }
 0x635   : > { %v10177_v54 = vadd.f32 %v5080_v12, %v5047_v51 }
 0x637   : > { %v5102_v47 = vmax.f32 %v10177_v54, 0.0 }
 0x639   : > { %v7204_v44 = vpack.i.bf16 %v5102_v47, %v5101_v30 }
 0x63b   : > { %7205 = vrot.lane.b32.xlu0 %v7204_v44, %s10636_s25 }
 0x65d   : > { %v7171_v40 = vpop.permute.xlu2 %7170 }
 0x65e   : > { %v7173_v27 = vunpack.i.h.bf16 %v7171_v40 }
 0x660   : > { %v5198_v10 = vmax.f32 %v5088_v22, %v7173_v27 }
 0x665   : > { %v7161_v25 = vpop.permute.xlu0 %7160 }
 0x666   : > { %v7163_v29 = vunpack.i.h.bf16 %v7161_v25  ;;  %v7162_v26 = vunpack.i.l.bf16 %v7161_v25 }
 0x668   : > { %v5163_v13 = vsel %vm10735_vm11, %v7162_v26, %v7163_v29  ;;  %v5194_v43 = vmax.f32 %v5084_v6, %v7163_v29  ;;  %v7172_v6 = vunpack.i.l.bf16 %v7171_v40  ;;  %vm10750_vm11 = vmmov %vm10749_vm3 }
 0x669   : > { %v5193_v58 = vmax.f32 %v5083_v23, %v5163_v13 }
 0x66a   : > { %v5165_v60 = vsel %vm10737_vm15, %v7172_v6, %v7173_v27 }
 0x66d   : > { %v7166_v50 = vpop.permute.xlu1 %7165 }
 0x66e   : > { %v7168_v46 = vunpack.i.h.bf16 %v7166_v50  ;;  %v7167_v53 = vunpack.i.l.bf16 %v7166_v50 }
 0x670   : > { %v5196_v14 = vmax.f32 %v5086_v15, %v7168_v46  ;;  %v5164_v36 = vsel %vm10736_vm1, %v7167_v53, %v7168_v46  ;;  %vm10751_vm1 = vmmov %vm10749_vm3 }
 0x671   : > { %v5195_v34 = vmax.f32 %v5085_v11, %v5164_v36  ;;  %v5197_v11 = vmax.f32 %v5087_v48, %v5165_v60  ;;  %vm10752_vm15 = vmmov %vm10751_vm1 }
 0x672   : > { %v5214_v4 = vpack.c.bf16 %v5196_v14, %v5194_v43 }
 0x673   : > { %v5213_v5 = vpack.c.bf16 %v5195_v34, %v5193_v58 }
 0x674   : > { %6606 = vmatmul.msk.bf16.vlgmr.msra.gmra.mxu0 %vm5295_vm0, %v5214_v4 }
 0x675   : > { %5319 = vmatmul.bf16.vlgmr.msra.gmra.mxu3 %v5213_v5  ;;  %v7186_v44 = vpop.permute.xlu2 %7185 }
 0x676   : > { %v7188_v21 = vunpack.i.h.bf16 %v7186_v44  ;;  %v7187_v39 = vunpack.i.l.bf16 %v7186_v44 }
 0x678   : > { %v5168_v17 = vsel %vm10740_vm9, %v7187_v39, %v7188_v21  ;;  %v5204_v48 = vmax.f32 %v5094_v55, %v7188_v21  ;;  %v6940_v21 = vld [vmem:[%s10437_s7 + $0x38] sm:$0xff]  ;;  %vm10755_vm9 = vmmov %vm10751_vm1 }
 0x679   : > { %5644 = vmatpush.bf16.msra.mxu1 %v6940_v21  ;;  %v6973_v21 = vld [vmem:[%s10441_s11 + $0x38] sm:$0xff] }
 0x67a   : > { %5849 = vmatpush.bf16.msrb.mxu3 %v6973_v21 }
 0x67d   : > { %v7176_v57 = vpop.permute.xlu0 %7175 }
 0x67e   : > { %v7178_v15 = vunpack.i.h.bf16 %v7176_v57  ;;  %v7177_v42 = vunpack.i.l.bf16 %v7176_v57 }
 0x680   : > { %v5200_v63 = vmax.f32 %v5090_v41, %v7178_v15  ;;  %v5166_v23 = vsel %vm10738_vm5, %v7177_v42, %v7178_v15  ;;  %vm10753_vm5 = vmmov %vm10751_vm1 }
 0x681   : > { %v5199_v2 = vmax.f32 %v5089_v24, %v5166_v23  ;;  %v5203_v24 = vmax.f32 %v5093_v16, %v5168_v17  ;;  %v6939_v17 = vld [vmem:[%s10437_s7 + $0x30] sm:$0xff] }
 0x682   : > { %v5216_v3 = vpack.c.bf16 %v5200_v63, %v5198_v10  ;;  %5645 = vmatpush.bf16.msra.mxu1 %v6939_v17  ;;  %v6971_v17 = vld [vmem:[%s10441_s11 + $0x28] sm:$0xff] }
 0x683   : > { %v5215_v51 = vpack.c.bf16 %v5199_v2, %v5197_v11 }
 0x684   : > { %6607 = vmatmul.msk.bf16.gmra.mxu0 %vm5295_vm0, %v5216_v3 }
 0x685   : > { %v7181_v12 = vpop.permute.xlu1 %7180  ;;  %5324 = vmatmul.bf16.gmra.mxu3 %v5215_v51 }
 0x686   : > { %v7183_v45 = vunpack.i.h.bf16 %v7181_v12  ;;  %v7182_v22 = vunpack.i.l.bf16 %v7181_v12 }
 0x688   : > { %v5167_v41 = vsel %vm10739_vm12, %v7182_v22, %v7183_v45  ;;  %v5202_v0 = vmax.f32 %v5092_v49, %v7183_v45  ;;  %v6948_v22 = vld [vmem:[%s10437_s7 + $0x78] sm:$0xff]  ;;  %vm10754_vm12 = vmmov %vm10751_vm1 }
 0x689   : > { %v5201_v32 = vmax.f32 %v5091_v31, %v5167_v41  ;;  %5657 = vmatpush.bf16.msra.mxu2 %v6948_v22  ;;  %v6947_v41 = vld [vmem:[%s10437_s7 + $0x70] sm:$0xff]  ;;  %v6958_v22 = vld [vmem:[%s10439_s9] sm:$0xff] }
 0x68a   : > { %v5218_v25 = vpack.c.bf16 %v5204_v48, %v5202_v0  ;;  %v6938_v48 = vld [vmem:[%s10437_s7 + $0x28] sm:$0xff] }
 0x68b   : > { %v5217_v29 = vpack.c.bf16 %v5203_v24, %v5201_v32  ;;  %v6946_v32 = vld [vmem:[%s10437_s7 + $0x68] sm:$0xff]  ;;  %5646 = vmatpush.bf16.msra.mxu1 %v6938_v48  ;;  %v6970_v48 = vld [vmem:[%s10441_s11 + $0x20] sm:$0xff] }
 0x68d   : > { %v7201_v14 = vpop.permute.xlu2 %7200  ;;  %5658 = vmatpush.bf16.msra.mxu2 %v6947_v41  ;;  %v6972_v41 = vld [vmem:[%s10441_s11 + $0x30] sm:$0xff] }
 0x68e   : > { %v7203_v36 = vunpack.i.h.bf16 %v7201_v14  ;;  %v7202_v20 = vunpack.i.l.bf16 %v7201_v14  ;;  %5850 = vmatpush.bf16.msrb.mxu3 %v6972_v41 }
 0x690   : > { %v5171_v52 = vsel %vm10743_vm7, %v7202_v20, %v7203_v36  ;;  %v5210_v8 = vmax.f32 %v5100_v37, %v7203_v36  ;;  %vm10757_vm7 = vcmask 523264  }
 0x691   : > { %5659 = vmatpush.bf16.msra.mxu2 %v6946_v32 }
 0x692   : > { %5851 = vmatpush.bf16.msrb.mxu3 %v6971_v17 }
 0x694   : > { %6608 = vmatmul.msk.bf16.gmra.mxu0 %vm5295_vm0, %v5218_v25 }
 0x695   : > { %5329 = vmatmul.bf16.gmra.mxu3 %v5217_v29  ;;  %v7191_v26 = vpop.permute.xlu0 %7190  ;;  %v6945_v29 = vld [vmem:[%s10437_s7 + $0x60] sm:$0xff] }
 0x696   : > { %v7193_v50 = vunpack.i.h.bf16 %v7191_v26  ;;  %v7192_v13 = vunpack.i.l.bf16 %v7191_v26  ;;  %v6937_v26 = vld [vmem:[%s10437_s7 + $0x20] sm:$0xff]  ;;  %5660 = vmatpush.bf16.msra.mxu2 %v6945_v29  ;;  %5852 = vmatpush.bf16.msrb.mxu3 %v6970_v48 }
 0x697   : > { %5647 = vmatpush.bf16.msra.mxu1 %v6937_v26 }
 0x698   : > { %v5169_v61 = vsel %vm10741_vm6, %v7192_v13, %v7193_v50  ;;  %v5206_v31 = vmax.f32 %v5096_v1, %v7193_v50  ;;  %v6944_v13 = vld [vmem:[%s10437_s7 + $0x58] sm:$0xff]  ;;  %vm10756_vm6 = vcmask 261120  }
 0x699   : > { %v5205_v16 = vmax.f32 %v5095_v19, %v5169_v61  ;;  %v6943_v61 = vld [vmem:[%s10437_s7 + $0x50] sm:$0xff] }
 0x69a   : > { %5661 = vmatpush.bf16.msra.mxu2 %v6944_v13 }
 0x69d   : > { %v7196_v46 = vpop.permute.xlu1 %7195 }
 0x69e   : > { %v7198_v49 = vunpack.i.h.bf16 %v7196_v46  ;;  %v7197_v33 = vunpack.i.l.bf16 %v7196_v46  ;;  %v6936_v46 = vld [vmem:[%s10437_s7 + $0x18] sm:$0xff]  ;;  %5662 = vmatpush.bf16.msra.mxu2 %v6943_v61  ;;  %v6967_v61 = vld [vmem:[%s10441_s11 + $0x8] sm:$0xff] }
 0x69f   : > { %5648 = vmatpush.bf16.msra.mxu1 %v6936_v46 }
 0x6a0   : > { %v5208_v56 = vmax.f32 %v5098_v59, %v7198_v49  ;;  %v5170_v7 = vsel %vm10742_vm2, %v7197_v33, %v7198_v49 }
 0x6a1   : > { %v5207_v55 = vmax.f32 %v5097_v28, %v5170_v7  ;;  %v5209_v28 = vmax.f32 %v5099_v38, %v5171_v52  ;;  %v6942_v52 = vld [vmem:[%s10437_s7 + $0x48] sm:$0xff] }
 0x6a2   : > { %v5220_v53 = vpack.c.bf16 %v5208_v56, %v5206_v31  ;;  %5663 = vmatpush.bf16.msra.mxu2 %v6942_v52 }
 0x6a3   : > { %v5219_v43 = vpack.c.bf16 %v5207_v55, %v5205_v16 }
 0x6a4   : > { %6609 = vmatmul.msk.bf16.gmra.mxu0 %vm5295_vm0, %v5220_v53 }
 0x6a5   : > { %5334 = vmatmul.bf16.gmra.mxu3 %v5219_v43 }
 0x6ad   : > { %v7206_v1 = vpop.permute.xlu0 %7205 }
 0x6ae   : > { %v7208_v59 = vunpack.i.h.bf16 %v7206_v1  ;;  %v7207_v58 = vunpack.i.l.bf16 %v7206_v1  ;;  %v6935_v1 = vld [vmem:[%s10437_s7 + $0x10] sm:$0xff] }
 0x6af   : > { %5649 = vmatpush.bf16.msra.mxu1 %v6935_v1 }
 0x6b0   : > { %v5212_v18 = vmax.f32 %v5102_v47, %v7208_v59  ;;  %v5172_v19 = vsel %vm10744_vm8, %v7207_v58, %v7208_v59  ;;  %v6934_v59 = vld [vmem:[%s10437_s7 + $0x8] sm:$0xff]  ;;  %v6941_v58 = vld [vmem:[%s10437_s7 + $0x40] sm:$0xff] }
 0x6b1   : > { %v5211_v34 = vmax.f32 %v5101_v30, %v5172_v19  ;;  %5664 = vmatpush.bf16.msra.mxu2 %v6941_v58  ;;  %v6955_v19 = vld [vmem:[%s10437_s7 + $0xb0] sm:$0xff] }
 0x6b2   : > { %v5222_v4 = vpack.c.bf16 %v5212_v18, %v5210_v8  ;;  %v6933_v8 = vld [vmem:[%s10437_s7] sm:$0xff]  ;;  %v6956_v18 = vld [vmem:[%s10437_s7 + $0xb8] sm:$0xff] }
 0x6b3   : > { %v5221_v5 = vpack.c.bf16 %v5211_v34, %v5209_v28  ;;  %5650 = vmatpush.bf16.msra.mxu1 %v6934_v59  ;;  %v6954_v28 = vld [vmem:[%s10437_s7 + $0xa8] sm:$0xff]  ;;  %v6953_v34 = vld [vmem:[%s10437_s7 + $0xa0] sm:$0xff] }
 0x6b4   : > { %6610 = vmatmul.msk.bf16.gmra.mxu0 %vm5295_vm0, %v5222_v4  ;;  %v6952_v4 = vld [vmem:[%s10437_s7 + $0x98] sm:$0xff]  ;;  %v7211_v59 = vld [vmem:[%s10442_s12] ss:$0 sm:$0xff] }
 0x6b5   : > { %5339 = vmatmul.bf16.gmra.mxu3 %v5221_v5  ;;  %v6957_v5 = vld [vmem:[%s10437_s7 + $0xc0] sm:$0xff] }
 0x6b6   : > { %5690 = vmatpush.bf16.msrb.mxu2 %v6957_v5 }
 0x6b7   : > { %5651 = vmatpush.bf16.msra.mxu1 %v6933_v8 }
 0x6bb   : > { %5670 = vmatpush.bf16.msrb.mxu1 %v6956_v18 }
 0x6bf   : > { %5671 = vmatpush.bf16.msrb.mxu1 %v6955_v19 }
 0x6c3   : > { %5672 = vmatpush.bf16.msrb.mxu1 %v6954_v28 }
 0x6c7   : > { %5673 = vmatpush.bf16.msrb.mxu1 %v6953_v34 }
 0x6cb   : > { %5674 = vmatpush.bf16.msrb.mxu1 %v6952_v4 }
 0x6f1   : > { %v5354_v40 = vpop.f32.mrf.mxu0 }
 0x6f8   : > { %v5320_v27 = vpop.f32.mrf.mxu3 }
 0x6f9   : > { %v5355_v35 = vadd.f32 %v5354_v40, %v5320_v27  ;;  %v5356_v37 = vpop.f32.mrf.mxu0  ;;  %v6951_v40 = vld [vmem:[%s10437_s7 + $0x90] sm:$0xff]  ;;  %v6950_v27 = vld [vmem:[%s10437_s7 + $0x88] sm:$0xff] }
 0x6fa   : > { %5675 = vmatpush.bf16.msrb.mxu1 %v6951_v40 }
 0x6fb   : > { %5379 = vst.msk [vmem:[#allocation3] sm:$0xff] %vm10745_vm13, %v5355_v35  ;;  %v6949_v35 = vld [vmem:[%s10437_s7 + $0x80] sm:$0xff] }
 0x6fe   : > { %5676 = vmatpush.bf16.msrb.mxu1 %v6950_v27 }
 0x700   : > { %v5322_v54 = vpop.f32.mrf.mxu3 }
 0x701   : > { %v5357_v47 = vadd.f32 %v5356_v37, %v5322_v54  ;;  %v5359_v6 = vpop.f32.mrf.mxu0 }
 0x702   : > { %5677 = vmatpush.bf16.msrb.mxu1 %v6949_v35 }
 0x703   : > { %5380 = vst.msk [vmem:[#allocation3 + $0x8] sm:$0xff] %vm10746_vm4, %v5357_v47 }
 0x708   : > { %v5325_v62 = vpop.f32.mrf.mxu3 }
 0x709   : > { %v5360_v38 = vadd.f32 %v5359_v6, %v5325_v62  ;;  %v5361_v9 = vpop.f32.mrf.mxu0 }
 0x70b   : > { %5381 = vst.msk [vmem:[#allocation3 + $0x10] sm:$0xff] %vm10747_vm14, %v5360_v38 }
 0x710   : > { %v5327_v30 = vpop.f32.mrf.mxu3 }
 0x711   : > { %v5362_v57 = vadd.f32 %v5361_v9, %v5327_v30  ;;  %v5364_v60 = vpop.f32.mrf.mxu0 }
 0x713   : > { %5382 = vst.msk [vmem:[#allocation3 + $0x18] sm:$0xff] %vm10748_vm10, %v5362_v57 }
 0x718   : > { %v5330_v15 = vpop.f32.mrf.mxu3 }
 0x719   : > { %v5365_v42 = vadd.f32 %v5364_v60, %v5330_v15  ;;  %v5366_v10 = vpop.f32.mrf.mxu0  ;;  %v6965_v15 = vld [vmem:[%s10439_s9 + $0x38] sm:$0xff] }
 0x71b   : > { %5383 = vst.msk [vmem:[#allocation3 + $0x20] sm:$0xff] %vm10749_vm3, %v5365_v42 }
 0x720   : > { %v5332_v63 = vpop.f32.mrf.mxu3 }
 0x721   : > { %v5367_v23 = vadd.f32 %v5366_v10, %v5332_v63  ;;  %v5369_v11 = vpop.f32.mrf.mxu0 }
 0x723   : > { %5384 = vst.msk [vmem:[#allocation3 + $0x28] sm:$0xff] %vm10750_vm11, %v5367_v23 }
 0x728   : > { %v5335_v2 = vpop.f32.mrf.mxu3 }
 0x729   : > { %v5370_v3 = vadd.f32 %v5369_v11, %v5335_v2  ;;  %v5371_v51 = vpop.f32.mrf.mxu0  ;;  %v6964_v2 = vld [vmem:[%s10439_s9 + $0x30] sm:$0xff] }
 0x72b   : > { %5385 = vst.msk [vmem:[#allocation3 + $0x30] sm:$0xff] %vm10751_vm1, %v5370_v3  ;;  %v6963_v3 = vld [vmem:[%s10439_s9 + $0x28] sm:$0xff] }
 0x730   : > { %v5337_v12 = vpop.f32.mrf.mxu3 }
 0x731   : > { %v5372_v44 = vadd.f32 %v5371_v51, %v5337_v12  ;;  %v5374_v45 = vpop.f32.mrf.mxu0  ;;  %v6962_v51 = vld [vmem:[%s10439_s9 + $0x20] sm:$0xff]  ;;  %v6961_v12 = vld [vmem:[%s10439_s9 + $0x18] sm:$0xff] }
 0x733   : > { %5386 = vst.msk [vmem:[#allocation3 + $0x38] sm:$0xff] %vm10752_vm15, %v5372_v44  ;;  %v6960_v44 = vld [vmem:[%s10439_s9 + $0x10] sm:$0xff] }
 0x738   : > { %v5340_v39 = vpop.f32.mrf.mxu3 }
 0x739   : > { %v5375_v0 = vadd.f32 %v5374_v45, %v5340_v39  ;;  %v5376_v24 = vpop.f32.mrf.mxu0  ;;  %v6959_v45 = vld [vmem:[%s10439_s9 + $0x8] sm:$0xff] }
 0x73b   : > { %5387 = vst.msk [vmem:[#allocation3 + $0x40] sm:$0xff] %vm10753_vm5, %v5375_v0 }
 0x740   : > { %v5342_v25 = vpop.f32.mrf.mxu3 }
 0x741   : > { %v5377_v50 = vadd.f32 %v5376_v24, %v5342_v25  ;;  %v6969_v24 = vld [vmem:[%s10441_s11 + $0x18] sm:$0xff]  ;;  %v7209_v25 = vld [vmem:[%s10438_s8] ss:$0 sm:$0xff] }
 0x742   : > { %v5389_v37 = vld [vmem:[#allocation3] ss:$10 sm:$0xff]  ;;  %v5391_v54 = vld [vmem:[#allocation3 + $0x1] ss:$10 sm:$0xff]  ;;  %5853 = vmatpush.bf16.msrb.mxu3 %v6969_v24 }
 0x743   : > { %5388 = vst.msk [vmem:[#allocation3 + $0x48] sm:$0xff] %vm10754_vm12, %v5377_v50  ;;  %v5392_v6 = vmax.f32 %v5389_v37, %v5391_v54  ;;  %v6968_v50 = vld [vmem:[%s10441_s11 + $0x10] sm:$0xff] }
 0x746   : > { %5854 = vmatpush.bf16.msrb.mxu3 %v6968_v50 }
 0x74a   : > { %v5404_v49 = vld [vmem:[#allocation3 + $0x6] ss:$10 sm:$0xff]  ;;  %v5406_v33 = vld [vmem:[#allocation3 + $0x7] ss:$10 sm:$0xff]  ;;  %5855 = vmatpush.bf16.msrb.mxu3 %v6967_v61 }
 0x74b   : > { %v5399_v31 = vld [vmem:[#allocation3 + $0x4] ss:$10 sm:$0xff]  ;;  %v5407_v56 = vmax.f32 %v5404_v49, %v5406_v33  ;;  %v5401_v7 = vld [vmem:[#allocation3 + $0x5] ss:$10 sm:$0xff] }
 0x74c   : > { %v5394_v16 = vld [vmem:[#allocation3 + $0x2] ss:$10 sm:$0xff]  ;;  %v5396_v55 = vld [vmem:[#allocation3 + $0x3] ss:$10 sm:$0xff]  ;;  %v5402_v53 = vmax.f32 %v5399_v31, %v5401_v7 }
 0x74d   : > { %v5397_v43 = vmax.f32 %v5394_v16, %v5396_v55  ;;  %5422 = vrot.lane.b32.xlu0 %v5407_v56, %s10636_s25  ;;  %v5409_v14 = vld [vmem:[#allocation3 + $0x8] ss:$10 sm:$0xff]  ;;  %v5411_v36 = vld [vmem:[#allocation3 + $0x9] ss:$10 sm:$0xff]  ;;  %s5942_s25 = sshll.u32 %s434_s27, 3 }
 0x74e   : > { %5418 = vrot.lane.b32.xlu2 %v5402_v53, %s10544_s24  ;;  %v5412_v20 = vmax.f32 %v5409_v14, %v5411_v36  ;;  %v6966_v7 = vld [vmem:[%s10441_s11] sm:$0xff]  ;;  %s436_s21 = scalar_lea.vmem [#allocation4], %s5942_s25 }
 0x74f   : > { %5414 = vrot.lane.b32.xlu1 %v5397_v43, %s7280_s19  ;;  %5856 = vmatpush.bf16.msrb.mxu3 %v6966_v7  ;;  %v7210_v43 = vld [vmem:[%s10440_s10] ss:$0 sm:$0xff]  ;;  %s5876_s22 = sshll.u32 %s436_s21, 4  ;;  %s5877_s22 = int_to_ptr.vmem [resolvable:$true] %s5876_s22 }
 0x757   : > { %5426 = vrot.lane.b32.xlu1 %v5412_v20, %s10546_s14  ;;  %s5874_s14 = scalar_lea.hbm %s10443_s13, %s7397_s20 }
 0x758   : > { %s5878_s28 = sshll.u32 %s5874_s14, 4  ;;  %s5879_s28 = int_to_ptr.hbm [resolvable:$true] %s5878_s28 }
 0x759   : > { %s7226_s23 = sshra.s32 %s5879_s28, 4  ;;  %s7227_s23 = int_to_ptr.hbm [resolvable:$true] %s7226_s23 }
 0x75a   : > { %s7228_s15 = scalar_lea.hbm %s7227_s23, 8  ;;  %p7233_p0 = scmp.lt.s32.totalorder %s7227_s23, %s10443_s13 }
 0x75b   : > { %p7229_p11 = scmp.ne.s32.totalorder %s7227_s23, %s7228_s15  ;;  %p7234_p1 = scmp.lt.s32.totalorder %s7232_s29, %s7228_s15 }
 0x75d   : > { %p7230_p12 = pnand %p7229_p11, %p7387_p5  ;;  %p7235_p2 = por %p7234_p1, %p7233_p0 }
 0x75f   : > { %p7231_p13 = pneg %p7230_p12 }
 0x761   : > { %p7236_p3 = pnand %p7235_p2, %p7231_p13 }
 0x7a8   : > { %v5419_v62 = vpop.permute.xlu2 %5418 }
 0x7bf   : > { %v5423_v47 = vpop.permute.xlu0 %5422 }
 0x7c1   : > { %v5415_v38 = vpop.permute.xlu1 %5414 }
 0x7c2   : > { %v5429_v9 = vsel %vm10755_vm9, %v5392_v6, %v5415_v38  ;;  %v5430_v30 = vsel %vm10756_vm6, %v5415_v38, %v5419_v62 }
 0x7c3   : > { %v5431_v57 = vsel %vm10742_vm2, %v5430_v30, %v5423_v47  ;;  %v5433_v60 = vpack.c.bf16 %v5429_v9, %v5429_v9 }
 0x7c4   : > { %v5434_v42 = vpack.c.bf16 %v5431_v57, %v5431_v57 }
 0x7c5   : > { %5652 = vmatmul.bf16.vlgmr.msra.gmra.mxu1 %v5433_v60 }
 0x7c6   : > { %5665 = vmatmul.bf16.vlgmr.msra.gmra.mxu2 %v5434_v42 }
 0x7c7   : > { %5766 = vmatpush.bf16.msra.mxu2 %v6965_v15 }
 0x7c9   : > { %v5427_v10 = vpop.permute.xlu1 %5426 }
 0x7ca   : > { %v5432_v63 = vsel %vm10757_vm7, %v5423_v47, %v5427_v10  ;;  %v5436_v11 = vpack.c.bf16 %v5427_v10, %v5427_v10 }
 0x7cb   : > { %v5435_v23 = vpack.c.bf16 %v5432_v63, %v5432_v63  ;;  %5767 = vmatpush.bf16.msra.mxu2 %v6964_v2 }
 0x7cf   : > { %5768 = vmatpush.bf16.msra.mxu2 %v6963_v3 }
 0x7d3   : > { %5769 = vmatpush.bf16.msra.mxu2 %v6962_v51 }
 0x7d5   : > { %5678 = vmatmul.bf16.vlgmr.msrb.gmra.mxu1 %v5435_v23 }
 0x7d6   : > { %6711 = vmatmul.msk.bf16.vlgmr.msrb.gmra.mxu2 %vm5295_vm0, %v5436_v11 }
 0x7d7   : > { %5770 = vmatpush.bf16.msra.mxu2 %v6961_v12 }
 0x7db   : > { %5771 = vmatpush.bf16.msra.mxu2 %v6960_v44 }
 0x7df   : > { %5772 = vmatpush.bf16.msra.mxu2 %v6959_v45 }
 0x7e3   : > { %5773 = vmatpush.bf16.msra.mxu2 %v6958_v22 }
 0x842   : > { %v5653_v39 = vpop.f32.mrf.mxu1 }
 0x843   : > { %v5654_v13 = vadd.f32 %v7209_v25, %v5653_v39 }
 0x849   : > { %v5666_v0 = vpop.f32.mrf.mxu2 }
 0x84a   : > { %v5655_v32 = vpop.f32.mrf.mxu1  ;;  %v5667_v46 = vadd.f32 %v5666_v0, %v5654_v13 }
 0x851   : > { %v5668_v29 = vpop.f32.mrf.mxu2 }
 0x852   : > { %v5679_v26 = vpop.f32.mrf.mxu1 }
 0x853   : > { %v5680_v49 = vadd.f32 %v5679_v26, %v5667_v46 }
 0x859   : > { %v5692_v33 = vpop.f32.mrf.mxu2 }
 0x85a   : > { %v5693_v31 = vadd.f32 %v5692_v33, %v5680_v49  ;;  %v5681_v56 = vpop.f32.mrf.mxu1 }
 0x85c   : > { %v5696_v16 = vmax.f32 %v5693_v31, 0.0 }
 0x85e   : > { %v5697_v55 = vpack.c.bf16 %v5696_v16, %v5696_v16 }
 0x860   : > { %5774 = vmatmul.bf16.vlgmr.msra.gmra.mxu2 %v5697_v55 }
 0x861   : > { %v5694_v53 = vpop.f32.mrf.mxu2 }
 0x8e3   : > { %v5775_v14 = vpop.f32.mrf.mxu2 }
 0x8e4   : > { %v5776_v36 = vadd.f32 %v7210_v43, %v5775_v14 }
 0x8e6   : > { %v5779_v20 = vmax.f32 %v5776_v36, 0.0 }
 0x8e8   : > { %v5780_v1 = vpack.c.bf16 %v5779_v20, %v5779_v20 }
 0x8ea   : > { %5857 = vmatmul.bf16.vlgmr.msrb.gmra.mxu3 %v5780_v1 }
 0x8eb   : > { %v5777_v52 = vpop.f32.mrf.mxu2 }
 0x96d   : > { %v5858_v58 = vpop.f32.mrf.mxu3 }
 0x96e   : > { %v5859_v8 = vadd.f32 %v7211_v59, %v5858_v58 }
 0x970   : > { %5862 = vst [vmem:[%s436_s21] sm:$0xff] %v5859_v8 }
 0x971   : > { %7239 = shalt.err (!%p7236_p3)
}
 0x972   : > { %6974 = dma.vmem_to_hbm [thread:$0]  (%p7387_p5), %s5877_s22, 128, %s5879_s28, %s5864_s30  }
 0x975   : > { %v5860_v18 = vpop.f32.mrf.mxu3 }
 0x976 PF: > { %s10758_s27 = sld [smem:[#allocation9_spill]] }
 0x977   : > { %s10759_s19 = sld [smem:[#allocation7_spill]] }
 0x97c   : > { %p6980_p4 = scmp.ge.s32.totalorder %s10758_s27, 2 }
 0x97d   : > { %s5890_s16 = sand.u32 1, %s10759_s19  }
 0x97e   : > { %p6977_p7 = pnand %p6980_p4, %p7391_p6  ;;  %s5891_s17 = scalar_lea.sflag [#allocation5], %s5890_s16 }
 0x980   : > { %p6978_p8 = pneg %p6977_p7 }
 0x982   : > { %7257 = dma.done.wait (%p6978_p8), %s5891_s17, 128  }
 0x983   : > { %7259 = vsyncadd (%p6978_p8), %s5891_s17, 4294967168  ;;  %s10761_s28 = sld [smem:[#allocation10_spill]]  ;;  %s10764_s25 = smov %s7266_s26 }
 0x984   : > { %s10762_s21 = sld [smem:[#allocation8_spill]] }
 0x985   : > { %s10763_s27 = sld [smem:[#allocation11_spill]] }
 0x989   : > { %p23_p9 = scmp.ge.s32.totalorder %s10761_s28, 4  }
 0x98a   : > { %s10765_s26 = smov %s10762_s21 }
 0x98b   :  { %25 = sbr.rel (!%p23_p9) target bundleno = 5 (0x5), region = 163 }
 0x990   :  { %5897 = vsyncpa [#allocation5], 1 }
 0x991   :  { %5899 = vsyncpa [#allocation5 + $0x1], 1 }

</bundles_post_ra>
